<compile_context>
chip_gen: v7x
topology: tpu7x:2x2x1
jax: 0.10.0
libtpu: 0.0.40
codegen_flags: <defaults>
</compile_context>

<pallas_src>
import functools
import math

import numpy as np
import jax
import jax.numpy as jnp
from jax.experimental import pallas as pl
from jax.experimental.pallas import tpu as pltpu


# ----------------------------------------------------------------------------
# In-kernel helpers (traced inside the Pallas kernels)
# ----------------------------------------------------------------------------
def _layer_norm(x, g, b, eps=1e-5):
    mu = jnp.mean(x, axis=-1, keepdims=True)
    xc = x - mu
    var = jnp.mean(xc * xc, axis=-1, keepdims=True)
    return xc * jax.lax.rsqrt(var + eps) * g + b


def _conv1d_same(x, w_ref, pre_idx, bias, K):
    """'same' 1-D conv (odd K) on a single-sample (T, Cin) slab.

    K per-tap matmuls; each shifted tap is built with pltpu.roll (XLU) plus an
    iota edge-mask -- no pad/slice/concat copies. w_ref[pre_idx + (dk,)] is the
    (Cin, Cout) weight of tap dk; bias is (1, Cout)."""
    T = x.shape[0]
    pad = (K - 1) // 2
    rows = jax.lax.broadcasted_iota(jnp.int32, (T, 1), 0)
    out = None
    for dk in range(K):
        d = dk - pad
        w_k = w_ref[pre_idx + (dk,)]
        if d == 0:
            tap = x
        else:
            tap = pltpu.roll(x, shift=(-d) % T, axis=0)
            valid = jnp.logical_and(rows >= -d, rows < T - d)
            tap = jnp.where(valid, tap, 0.0)
        term = jnp.dot(tap, w_k, preferred_element_type=jnp.float32)
        out = term if out is None else out + term
    return out + bias


def _fft_block(x, i, n_heads, K, wqkv_ref, wo_ref, c1_ref, c2_ref,
               bqkv_ref, b1_ref, vec_ref):
    """Post-norm FFT block (MHA + conv-FFN) on a single-sample (T, D) slab.

    vec_ref rows per block: [bo, ln1_g, ln1_b, conv2_b, ln2_g, ln2_b]."""
    T, D = x.shape
    hd = D // n_heads
    scale = 1.0 / math.sqrt(hd)

    # --- multi-head self-attention: one fat QKV matmul, heads batched on a
    #     leading axis, single (T, D) @ (D, D) output projection ---------------
    qkv = (jnp.dot(x, wqkv_ref[i], preferred_element_type=jnp.float32)
           + bqkv_ref[i])                                          # (T, 3D)
    q = jnp.concatenate([qkv[None, :, h * hd:(h + 1) * hd]
                         for h in range(n_heads)], axis=0) * scale  # (H, T, hd)
    k = jnp.concatenate([qkv[None, :, D + h * hd:D + (h + 1) * hd]
                         for h in range(n_heads)], axis=0)
    v = jnp.concatenate([qkv[None, :, 2 * D + h * hd:2 * D + (h + 1) * hd]
                         for h in range(n_heads)], axis=0)
    s = jax.lax.dot_general(q, k, (((2,), (2,)), ((0,), (0,))),
                            preferred_element_type=jnp.float32)     # (H, T, T)
    s = s - jnp.max(s, axis=-1, keepdims=True)
    p = jnp.exp(s)
    p = p * pl.reciprocal(jnp.sum(p, axis=-1, keepdims=True), approx=True)
    ctx = jax.lax.dot_general(p, v, (((2,), (1,)), ((0,), (0,))),
                              preferred_element_type=jnp.float32)   # (H, T, hd)
    ctx2 = jnp.concatenate([ctx[h] for h in range(n_heads)], axis=1)  # (T, D)
    attn = (jnp.dot(ctx2, wo_ref[i], preferred_element_type=jnp.float32)
            + vec_ref[i, 0:1, :])
    x1 = _layer_norm(x + attn, vec_ref[i, 1:2, :], vec_ref[i, 2:3, :])

    # --- conv feed-forward: conv -> relu -> conv, residual, LN ---------------
    h1 = jnp.maximum(_conv1d_same(x1, c1_ref, (i,), b1_ref[i], K), 0.0)
    h2 = _conv1d_same(h1, c2_ref, (i,), vec_ref[i, 3:4, :], K)
    return _layer_norm(x1 + h2, vec_ref[i, 4:5, :], vec_ref[i, 5:6, :])


def _feature_predictor(x, conv_ref, vec_ref, stream, K):
    """conv->relu->LN->(dropout=id)->conv->relu->LN->linear(D,1).

    conv_ref: (2*S, K, D, D); vec_ref: (8*S, D) rows per stream:
    [b1, g1, be1, b2, g2, be2, w_linear_row, b_linear(in col 0)].
    Returns a lane-dense (1, T) row."""
    o = 8 * stream
    h = jnp.maximum(_conv1d_same(x, conv_ref, (2 * stream + 0,),
                                 vec_ref[o + 0:o + 1, :], K), 0.0)
    h = _layer_norm(h, vec_ref[o + 1:o + 2, :], vec_ref[o + 2:o + 3, :])
    h = jnp.maximum(_conv1d_same(h, conv_ref, (2 * stream + 1,),
                                 vec_ref[o + 3:o + 4, :], K), 0.0)
    h = _layer_norm(h, vec_ref[o + 4:o + 5, :], vec_ref[o + 5:o + 6, :])
    wl = vec_ref[o + 6:o + 7, :]                                    # (1, D)
    pred = jax.lax.dot_general(wl, h, (((1,), (1,)), ((), ())),
                               preferred_element_type=jnp.float32)  # (1, T)
    return pred + vec_ref[o + 7:o + 8, 0:1]


# ----------------------------------------------------------------------------
# Fused Pallas kernels (grid=(B,), one sample per grid step)
# ----------------------------------------------------------------------------
def _encoder_kernel(text_ref, emb_ref, pe_ref,
                    wqkv_ref, wo_ref, c1_ref, c2_ref, bqkv_ref, b1_ref, vec_ref,
                    fpc_ref, fpv_ref,
                    xenc_ref, dur_ref, *, n_heads):
    """phoneme embedding (one-hot built in-kernel) + PE + encoder FFT stack
       + duration predictor (ReLU'd, lane-dense (1, Tp) output)."""
    V = emb_ref.shape[0]
    Tp = text_ref.shape[1]
    n_blocks = wqkv_ref.shape[0]
    fft_K = c1_ref.shape[1]
    feat_K = fpc_ref.shape[1]

    ids = text_ref[0]                                               # (Tp, 1)
    oh = (jax.lax.broadcasted_iota(jnp.int32, (Tp, V), 1) == ids
          ).astype(jnp.float32)                                     # (Tp, V)
    x = jnp.dot(oh, emb_ref[...], preferred_element_type=jnp.float32)
    x = x + pe_ref[...]

    for i in range(n_blocks):
        x = _fft_block(x, i, n_heads, fft_K,
                       wqkv_ref, wo_ref, c1_ref, c2_ref,
                       bqkv_ref, b1_ref, vec_ref)

    xenc_ref[0] = x.astype(xenc_ref.dtype)
    dur = _feature_predictor(x, fpc_ref, fpv_ref, 0, feat_K)        # (1, Tp)
    dur_ref[0] = jnp.maximum(dur, 0.0).astype(dur_ref.dtype)        # F.relu


def _adaptor_decoder_kernel(xenc_ref, start_ref, cum_ref, pidx_ref, eidx_ref,
                            pemb_ref, eemb_ref, pe_ref,
                            wqkv_ref, wo_ref, c1_ref, c2_ref, bqkv_ref, b1_ref,
                            vec_ref, fpc_ref, fpv_ref, melw_ref, melb_ref,
                            mel_ref, ppred_ref, epred_ref,
                            *, n_heads, pitch_scale, energy_scale):
    """length regulator (one matmul) + pitch/energy predictors + bucketized
       pitch/energy embedding adds + PE + decoder FFT stack + mel projection."""
    Tp = xenc_ref.shape[1]
    Tm = pidx_ref.shape[1]
    Cb = pemb_ref.shape[0]
    n_blocks = wqkv_ref.shape[0]
    fft_K = c1_ref.shape[1]
    feat_K = fpc_ref.shape[1]

    # --- length regulator: 0/1 expansion matrix -> one (Tm,Tp)@(Tp,D) matmul --
    xenc = xenc_ref[0]                                              # (Tp, D)
    start = start_ref[0]                                            # (1, Tp)
    cum = cum_ref[0]                                                # (1, Tp)
    t_pos = jax.lax.broadcasted_iota(jnp.int32, (Tm, Tp), 0)
    E = jnp.where(jnp.logical_and(t_pos >= start, t_pos < cum), 1.0, 0.0)
    x = jnp.dot(E, xenc, preferred_element_type=jnp.float32)        # (Tm, D)

    # --- pitch / energy predictors (on length-regulated, pre-embedding x) ----
    ppred = _feature_predictor(x, fpc_ref, fpv_ref, 0, feat_K)      # (1, Tm)
    epred = _feature_predictor(x, fpc_ref, fpv_ref, 1, feat_K)
    ppred_ref[0] = ppred.astype(ppred_ref.dtype)
    epred_ref[0] = epred.astype(epred_ref.dtype)

    # --- bucketized (host-side searchsorted) pitch/energy embedding adds -----
    poh = (jax.lax.broadcasted_iota(jnp.int32, (Tm, Cb), 1) == pidx_ref[0]
           ).astype(jnp.float32)                                    # (Tm, Cb)
    eoh = (jax.lax.broadcasted_iota(jnp.int32, (Tm, Cb), 1) == eidx_ref[0]
           ).astype(jnp.float32)
    p_emb = jnp.dot(poh, pemb_ref[...], preferred_element_type=jnp.float32)
    e_emb = jnp.dot(eoh, eemb_ref[...], preferred_element_type=jnp.float32)
    x = x + pitch_scale * p_emb + energy_scale * e_emb

    # --- decoder: positional encoding + FFT blocks ---------------------------
    x = x + pe_ref[...]
    for i in range(n_blocks):
        x = _fft_block(x, i, n_heads, fft_K,
                       wqkv_ref, wo_ref, c1_ref, c2_ref,
                       bqkv_ref, b1_ref, vec_ref)

    # --- mel projection, lane-dense (Tm, n_mels); permute done in wrapper ----
    mel = (jnp.dot(x, melw_ref[...], preferred_element_type=jnp.float32)
           + melb_ref[...])
    mel_ref[0] = mel.astype(mel_ref.dtype)


# ----------------------------------------------------------------------------
# Parameter init (deterministic, synthetic); weights stored pre-packed in slabs
# ----------------------------------------------------------------------------
def sinusoidal_pe(max_len, d):
    pos = np.arange(max_len)[:, None].astype(np.float64)
    i = np.arange(d)[None, :].astype(np.float64)
    angle = pos / np.power(10000.0, (2.0 * (i // 2)) / d)
    pe = np.zeros((max_len, d))
    pe[:, 0::2] = np.sin(angle[:, 0::2])
    pe[:, 1::2] = np.cos(angle[:, 1::2])
    return jnp.asarray(pe, dtype=jnp.float32)


def _nrm(key, shape, scale=0.1):
    return scale * jax.random.normal(key, shape, dtype=jnp.float32)


def init_fft_stack(key, n_blocks, D, K, C):
    wqkv, wo, c1, c2, bqkv, b1, vec = [], [], [], [], [], [], []
    for bk in jax.random.split(key, n_blocks):
        k0, k1, k2, k3 = jax.random.split(bk, 4)
        wqkv.append(_nrm(k0, (D, 3 * D)))
        wo.append(_nrm(k1, (D, D)))
        c1.append(_nrm(k2, (K, D, C)))          # per-tap (Cin, Cout) weights
        c2.append(_nrm(k3, (K, C, D)))
        bqkv.append(jnp.zeros((1, 3 * D), jnp.float32))
        b1.append(jnp.zeros((1, C), jnp.float32))
        # rows: [bo, ln1_g, ln1_b, conv2_b, ln2_g, ln2_b]
        vec.append(jnp.stack([jnp.zeros(D), jnp.ones(D), jnp.zeros(D),
                              jnp.zeros(D), jnp.ones(D), jnp.zeros(D)]
                             ).astype(jnp.float32))
    return dict(wqkv=jnp.stack(wqkv), wo=jnp.stack(wo),
                c1=jnp.stack(c1), c2=jnp.stack(c2),
                bqkv=jnp.stack(bqkv), b1=jnp.stack(b1), vec=jnp.stack(vec))


def init_fp_stack(key, n_streams, D, K):
    convs, vecs = [], []
    for sk in jax.random.split(key, n_streams):
        k1, k2, k3 = jax.random.split(sk, 3)
        convs += [_nrm(k1, (K, D, D)), _nrm(k2, (K, D, D))]   # stage 0, stage 1
        wl = _nrm(k3, (D,))
        # rows: [b1, g1, be1, b2, g2, be2, w_linear_row, b_linear(col 0)]
        vecs.append(jnp.stack([jnp.zeros(D), jnp.ones(D), jnp.zeros(D),
                               jnp.zeros(D), jnp.ones(D), jnp.zeros(D),
                               wl, jnp.zeros(D)]).astype(jnp.float32))
    return dict(conv=jnp.stack(convs),                 # (2*S, K, D, D)
                vec=jnp.concatenate(vecs, axis=0))     # (8*S, D)


def init_params(key, cfg):
    D = cfg['embed_dim']
    ks = jax.random.split(key, 9)
    phon = _nrm(ks[0], (cfg['vocab_size'], D)).at[cfg['pad_idx']].set(0.0)
    return dict(
        phoneme_emb=phon,
        pitch_emb=_nrm(ks[1], (cfg['codebook_size'], D)),
        energy_emb=_nrm(ks[2], (cfg['codebook_size'], D)),
        mel_w=_nrm(ks[3], (D, cfg['n_mels'])),
        mel_b=jnp.zeros((1, cfg['n_mels']), jnp.float32),
        pe=sinusoidal_pe(cfg['max_len'], D),
        encoder=init_fft_stack(ks[4], cfg['n_blocks'], D,
                               cfg['fft_kernel'], cfg['conv_channels']),
        decoder=init_fft_stack(ks[5], cfg['n_blocks'], D,
                               cfg['fft_kernel'], cfg['conv_channels']),
        dur_fp=init_fp_stack(ks[6], 1, D, cfg['feature_kernel']),
        var_fp=init_fp_stack(ks[7], 2, D, cfg['feature_kernel']),  # pitch, energy
    )


# ----------------------------------------------------------------------------
# Forward pass (training path of FastSpeechV2.forward, eval mode) — 2 kernels
# ----------------------------------------------------------------------------
def fastspeech2_forward(params, text, duration, energy, pitch, *, cfg):
    B, Tp = text.shape
    Tm = pitch.shape[1]
    D = cfg['embed_dim']
    nmel = cfg['n_mels']
    nh = cfg['n_heads']
    Cb = cfg['codebook_size']

    # ---- small host-side glue (cumsum / bucketize only) ----
    dur_i = duration.astype(jnp.int32)
    cum = jnp.cumsum(dur_i, axis=1)                                 # (B, Tp)
    start = cum - dur_i
    pitch_bounds = jnp.logspace(cfg['min_pitch'], cfg['max_pitch'], Cb)[1:-1]
    pitch_idx = jnp.searchsorted(pitch_bounds, pitch,
                                 side='left').astype(jnp.int32)
    energy_bounds = jnp.linspace(cfg['min_energy'], cfg['max_energy'], Cb)[1:-1]
    energy_idx = jnp.searchsorted(energy_bounds, energy,
                                  side='left').astype(jnp.int32)

    text3 = text.astype(jnp.int32).reshape(B, Tp, 1)
    start3 = start.reshape(B, 1, Tp)
    cum3 = cum.reshape(B, 1, Tp)
    pidx3 = pitch_idx.reshape(B, Tm, 1)
    eidx3 = energy_idx.reshape(B, Tm, 1)

    pe_p = params['pe'][:Tp]      # (Tp, D) — fetched once (constant index map)
    pe_m = params['pe'][:Tm]

    def bspec(*tail):
        zeros = (0,) * len(tail)
        return pl.BlockSpec((1,) + tuple(tail), lambda b: (b,) + zeros)

    def wspec(arr):
        zeros = (0,) * arr.ndim
        return pl.BlockSpec(arr.shape, lambda b: zeros)

    cparams = pltpu.CompilerParams(dimension_semantics=("parallel",))

    # ---- kernel A: encoder stack + duration predictor ----
    enc = params['encoder']
    enc_in = [text3, params['phoneme_emb'], pe_p,
              enc['wqkv'], enc['wo'], enc['c1'], enc['c2'],
              enc['bqkv'], enc['b1'], enc['vec'],
              params['dur_fp']['conv'], params['dur_fp']['vec']]
    enc_specs = [bspec(Tp, 1)] + [wspec(a) for a in enc_in[1:]]

    x_enc, dur = pl.pallas_call(
        functools.partial(_encoder_kernel, n_heads=nh),
        grid=(B,),
        in_specs=enc_specs,
        out_specs=(bspec(Tp, D), bspec(1, Tp)),
        out_shape=(jax.ShapeDtypeStruct((B, Tp, D), jnp.float32),
                   jax.ShapeDtypeStruct((B, 1, Tp), jnp.float32)),
        compiler_params=cparams,
    )(*enc_in)

    # ---- kernel B: variance adaptor + decoder + mel projection ----
    dec = params['decoder']
    dec_in = [x_enc, start3, cum3, pidx3, eidx3,
              params['pitch_emb'], params['energy_emb'], pe_m,
              dec['wqkv'], dec['wo'], dec['c1'], dec['c2'],
              dec['bqkv'], dec['b1'], dec['vec'],
              params['var_fp']['conv'], params['var_fp']['vec'],
              params['mel_w'], params['mel_b']]
    dec_specs = ([bspec(Tp, D), bspec(1, Tp), bspec(1, Tp),
                  bspec(Tm, 1), bspec(Tm, 1)]
                 + [wspec(a) for a in dec_in[5:]])

    mel, ppred, epred = pl.pallas_call(
        functools.partial(_adaptor_decoder_kernel, n_heads=nh,
                          pitch_scale=cfg['pitch_scale'],
                          energy_scale=cfg['energy_scale']),
        grid=(B,),
        in_specs=dec_specs,
        out_specs=(bspec(Tm, nmel), bspec(1, Tm), bspec(1, Tm)),
        out_shape=(jax.ShapeDtypeStruct((B, Tm, nmel), jnp.float32),
                   jax.ShapeDtypeStruct((B, 1, Tm), jnp.float32),
                   jax.ShapeDtypeStruct((B, 1, Tm), jnp.float32)),
        compiler_params=cparams,
    )(*dec_in)

    # (0, 2, 1) permute of the mel is done here (lane-dense store in-kernel).
    return {'pred_mel': jnp.transpose(mel, (0, 2, 1)),      # (B, n_mels, Tm)
            'pred_duration': dur.reshape(B, Tp),
            'pred_pitch': ppred.reshape(B, Tm),
            'pred_energy': epred.reshape(B, Tm)}


# TODO(synk): the WaveGlow vocoder (self._load_vocoder / text2voice) is an external
# model and not part of forward(); the prenorm=True (PreNormFFTBlock) variant is
# not exercised by this config and is not implemented here.

# ----------------------------------------------------------------------------
# Main
# ----------------------------------------------------------------------------
if __name__ == "__main__":
    cfg = dict(
        max_len=128, vocab_size=40, pad_idx=0,
        n_blocks=2, n_heads=4, fft_kernel=3, feature_kernel=3,
        embed_dim=32, n_mels=16, conv_channels=64,
        min_pitch=float(np.log10(80.0)), max_pitch=float(np.log10(800.0)),
        codebook_size=32, min_energy=0.0, max_energy=100.0,
        prenorm=False, pitch_scale=1.0, energy_scale=1e-6,
    )

    key = jax.random.PRNGKey(0)
    k_par, k_txt, k_dur, k_pit, k_eng = jax.random.split(key, 5)

    params = init_params(k_par, cfg)

    B, T_phon, T_mel = 2, 8, 16
    text = jax.random.randint(k_txt, (B, T_phon), 1, cfg['vocab_size'],
                              dtype=jnp.int32)
    # durations in {1, 2}: per-batch sums <= T_mel (length regulator pads rest)
    duration = jax.random.randint(k_dur, (B, T_phon), 1, 3, dtype=jnp.int32)
    pitch = jax.random.uniform(k_pit, (B, T_mel), minval=80.0, maxval=800.0,
                               dtype=jnp.float32)
    energy = jax.random.uniform(k_eng, (B, T_mel), minval=0.0, maxval=100.0,
                                dtype=jnp.float32)

    fwd = jax.jit(functools.partial(fastspeech2_forward, cfg=cfg))
    out = fwd(params, text, duration, energy, pitch)
    out = jax.block_until_ready(out)

    assert out['pred_mel'].shape == (B, cfg['n_mels'], T_mel)
    assert out['pred_duration'].shape == (B, T_phon)
    assert out['pred_pitch'].shape == (B, T_mel)
    assert out['pred_energy'].shape == (B, T_mel)
    for v in out.values():
        assert bool(jnp.isfinite(v).all())
    print("KERNEL_OK")
</pallas_src>

<mosaic_0001>
module attributes {stable_mosaic.version = 11 : i64} {
  func.func @_encoder_kernel(%arg0: i32, %arg1: memref<1x8x1xi32, #tpu.memory_space<vmem>>, %arg2: memref<40x32xf32, #tpu.memory_space<vmem>>, %arg3: memref<8x32xf32, #tpu.memory_space<vmem>>, %arg4: memref<2x32x96xf32, #tpu.memory_space<vmem>>, %arg5: memref<2x32x32xf32, #tpu.memory_space<vmem>>, %arg6: memref<2x3x32x64xf32, #tpu.memory_space<vmem>>, %arg7: memref<2x3x64x32xf32, #tpu.memory_space<vmem>>, %arg8: memref<2x1x96xf32, #tpu.memory_space<vmem>>, %arg9: memref<2x1x64xf32, #tpu.memory_space<vmem>>, %arg10: memref<2x6x32xf32, #tpu.memory_space<vmem>>, %arg11: memref<2x3x32x32xf32, #tpu.memory_space<vmem>>, %arg12: memref<8x32xf32, #tpu.memory_space<vmem>>, %arg13: memref<1x8x32xf32, #tpu.memory_space<vmem>>, %arg14: memref<1x1x8xf32, #tpu.memory_space<vmem>>) attributes {dimension_semantics = [#tpu.dimension_semantics<parallel>], iteration_bounds = array<i64: 2>, scalar_prefetch = 0 : i64, scratch_operands = 0 : i64, tpu.core_type = #tpu.core_type<tc>, window_params = [{transform_indices = @transform_0, window_bounds = array<i64: 1, 8, 1>}, {pipeline_mode = #tpu.pipeline_mode<synchronous>, transform_indices = @transform_1, window_bounds = array<i64: 40, 32>}, {pipeline_mode = #tpu.pipeline_mode<synchronous>, transform_indices = @transform_2, window_bounds = array<i64: 8, 32>}, {pipeline_mode = #tpu.pipeline_mode<synchronous>, transform_indices = @transform_3, window_bounds = array<i64: 2, 32, 96>}, {pipeline_mode = #tpu.pipeline_mode<synchronous>, transform_indices = @transform_4, window_bounds = array<i64: 2, 32, 32>}, {pipeline_mode = #tpu.pipeline_mode<synchronous>, transform_indices = @transform_5, window_bounds = array<i64: 2, 3, 32, 64>}, {pipeline_mode = #tpu.pipeline_mode<synchronous>, transform_indices = @transform_6, window_bounds = array<i64: 2, 3, 64, 32>}, {pipeline_mode = #tpu.pipeline_mode<synchronous>, transform_indices = @transform_7, window_bounds = array<i64: 2, 1, 96>}, {pipeline_mode = #tpu.pipeline_mode<synchronous>, transform_indices = @transform_8, window_bounds = array<i64: 2, 1, 64>}, {pipeline_mode = #tpu.pipeline_mode<synchronous>, transform_indices = @transform_9, window_bounds = array<i64: 2, 6, 32>}, {pipeline_mode = #tpu.pipeline_mode<synchronous>, transform_indices = @transform_10, window_bounds = array<i64: 2, 3, 32, 32>}, {pipeline_mode = #tpu.pipeline_mode<synchronous>, transform_indices = @transform_11, window_bounds = array<i64: 8, 32>}, {transform_indices = @transform_12, window_bounds = array<i64: 1, 8, 32>}, {transform_indices = @transform_13, window_bounds = array<i64: 1, 1, 8>}]} {
    %c0 = arith.constant 0 : index
    %c0_0 = arith.constant 0 : index
    %c0_1 = arith.constant 0 : index
    %0 = vector.load %arg1[%c0, %c0_0, %c0_1] : memref<1x8x1xi32, #tpu.memory_space<vmem>>, vector<1x8x1xi32>
    %1 = vector.shape_cast %0 : vector<1x8x1xi32> to vector<8x1xi32>
    %2 = tpu.iota {dimensions = array<i32: 1>} : vector<8x40xi32>
    %3 = vector.broadcast %1 : vector<8x1xi32> to vector<8x40xi32>
    %4 = arith.cmpi eq, %2, %3 : vector<8x40xi32>
    %5 = arith.extui %4 : vector<8x40xi1> to vector<8x40xi32>
    %6 = arith.sitofp %5 : vector<8x40xi32> to vector<8x40xf32>
    %c0_2 = arith.constant 0 : index
    %c0_3 = arith.constant 0 : index
    %7 = vector.load %arg2[%c0_2, %c0_3] : memref<40x32xf32, #tpu.memory_space<vmem>>, vector<40x32xf32>
    %cst = arith.constant dense<0.000000e+00> : vector<8x32xf32>
    %8 = tpu.matmul %6, %7, %cst {dimension_numbers = #tpu.dot_dimension_numbers<[1], [0], [0], [1], [0, 0, 1, 1], [], []>} : vector<8x40xf32>, vector<40x32xf32>, vector<8x32xf32> -> vector<8x32xf32>
    %c0_4 = arith.constant 0 : index
    %c0_5 = arith.constant 0 : index
    %9 = vector.load %arg3[%c0_4, %c0_5] : memref<8x32xf32, #tpu.memory_space<vmem>>, vector<8x32xf32>
    %10 = arith.addf %8, %9 : vector<8x32xf32>
    %c0_6 = arith.constant 0 : index
    %c0_7 = arith.constant 0 : index
    %c0_8 = arith.constant 0 : index
    %11 = vector.load %arg4[%c0_6, %c0_7, %c0_8] : memref<2x32x96xf32, #tpu.memory_space<vmem>>, vector<1x32x96xf32>
    %12 = vector.shape_cast %11 : vector<1x32x96xf32> to vector<32x96xf32>
    %cst_9 = arith.constant dense<0.000000e+00> : vector<8x96xf32>
    %13 = tpu.matmul %10, %12, %cst_9 {dimension_numbers = #tpu.dot_dimension_numbers<[1], [0], [0], [1], [0, 0, 1, 1], [], []>} : vector<8x32xf32>, vector<32x96xf32>, vector<8x96xf32> -> vector<8x96xf32>
    %c0_10 = arith.constant 0 : index
    %c0_11 = arith.constant 0 : index
    %c0_12 = arith.constant 0 : index
    %14 = vector.load %arg8[%c0_10, %c0_11, %c0_12] : memref<2x1x96xf32, #tpu.memory_space<vmem>>, vector<1x1x96xf32>
    %15 = vector.shape_cast %14 : vector<1x1x96xf32> to vector<1x96xf32>
    %16 = vector.broadcast %15 : vector<1x96xf32> to vector<8x96xf32>
    %17 = arith.addf %13, %16 : vector<8x96xf32>
    %18 = vector.extract_strided_slice %17 {offsets = [0, 0], sizes = [8, 8], strides = [1, 1]} : vector<8x96xf32> to vector<8x8xf32>
    %19 = vector.shape_cast %18 : vector<8x8xf32> to vector<1x8x8xf32>
    %20 = vector.extract_strided_slice %17 {offsets = [0, 8], sizes = [8, 8], strides = [1, 1]} : vector<8x96xf32> to vector<8x8xf32>
    %21 = vector.shape_cast %20 : vector<8x8xf32> to vector<1x8x8xf32>
    %22 = vector.extract_strided_slice %17 {offsets = [0, 16], sizes = [8, 8], strides = [1, 1]} : vector<8x96xf32> to vector<8x8xf32>
    %23 = vector.shape_cast %22 : vector<8x8xf32> to vector<1x8x8xf32>
    %24 = vector.extract_strided_slice %17 {offsets = [0, 24], sizes = [8, 8], strides = [1, 1]} : vector<8x96xf32> to vector<8x8xf32>
    %25 = vector.shape_cast %24 : vector<8x8xf32> to vector<1x8x8xf32>
    %26 = tpu.concatenate %19, %21, %23, %25 in 0 : vector<1x8x8xf32>, vector<1x8x8xf32>, vector<1x8x8xf32>, vector<1x8x8xf32> -> vector<4x8x8xf32>
    %cst_13 = arith.constant 0.353553385 : f32
    %27 = vector.broadcast %cst_13 : f32 to vector<4x8x8xf32>
    %28 = arith.mulf %26, %27 : vector<4x8x8xf32>
    %29 = vector.extract_strided_slice %17 {offsets = [0, 32], sizes = [8, 8], strides = [1, 1]} : vector<8x96xf32> to vector<8x8xf32>
    %30 = vector.shape_cast %29 : vector<8x8xf32> to vector<1x8x8xf32>
    %31 = vector.extract_strided_slice %17 {offsets = [0, 40], sizes = [8, 8], strides = [1, 1]} : vector<8x96xf32> to vector<8x8xf32>
    %32 = vector.shape_cast %31 : vector<8x8xf32> to vector<1x8x8xf32>
    %33 = vector.extract_strided_slice %17 {offsets = [0, 48], sizes = [8, 8], strides = [1, 1]} : vector<8x96xf32> to vector<8x8xf32>
    %34 = vector.shape_cast %33 : vector<8x8xf32> to vector<1x8x8xf32>
    %35 = vector.extract_strided_slice %17 {offsets = [0, 56], sizes = [8, 8], strides = [1, 1]} : vector<8x96xf32> to vector<8x8xf32>
    %36 = vector.shape_cast %35 : vector<8x8xf32> to vector<1x8x8xf32>
    %37 = tpu.concatenate %30, %32, %34, %36 in 0 : vector<1x8x8xf32>, vector<1x8x8xf32>, vector<1x8x8xf32>, vector<1x8x8xf32> -> vector<4x8x8xf32>
    %38 = vector.extract_strided_slice %17 {offsets = [0, 64], sizes = [8, 8], strides = [1, 1]} : vector<8x96xf32> to vector<8x8xf32>
    %39 = vector.shape_cast %38 : vector<8x8xf32> to vector<1x8x8xf32>
    %40 = vector.extract_strided_slice %17 {offsets = [0, 72], sizes = [8, 8], strides = [1, 1]} : vector<8x96xf32> to vector<8x8xf32>
    %41 = vector.shape_cast %40 : vector<8x8xf32> to vector<1x8x8xf32>
    %42 = vector.extract_strided_slice %17 {offsets = [0, 80], sizes = [8, 8], strides = [1, 1]} : vector<8x96xf32> to vector<8x8xf32>
    %43 = vector.shape_cast %42 : vector<8x8xf32> to vector<1x8x8xf32>
    %44 = vector.extract_strided_slice %17 {offsets = [0, 88], sizes = [8, 8], strides = [1, 1]} : vector<8x96xf32> to vector<8x8xf32>
    %45 = vector.shape_cast %44 : vector<8x8xf32> to vector<1x8x8xf32>
    %46 = tpu.concatenate %39, %41, %43, %45 in 0 : vector<1x8x8xf32>, vector<1x8x8xf32>, vector<1x8x8xf32>, vector<1x8x8xf32> -> vector<4x8x8xf32>
    %cst_14 = arith.constant dense<0.000000e+00> : vector<4x8x8xf32>
    %47 = tpu.matmul %28, %37, %cst_14 {dimension_numbers = #tpu.dot_dimension_numbers<[2], [2], [1], [1], [0, 0, 0, 1, 1, 1], [0], [0]>} : vector<4x8x8xf32>, vector<4x8x8xf32>, vector<4x8x8xf32> -> vector<4x8x8xf32>
    %cst_15 = arith.constant dense<0xFF800000> : vector<4x8xf32>
    %48 = vector.multi_reduction <maximumf>, %47, %cst_15 [2] : vector<4x8x8xf32> to vector<4x8xf32>
    %49 = vector.shape_cast %48 : vector<4x8xf32> to vector<4x8x1xf32>
    %50 = vector.broadcast %49 : vector<4x8x1xf32> to vector<4x8x8xf32>
    %51 = arith.subf %47, %50 : vector<4x8x8xf32>
    %52 = math.exp %51 : vector<4x8x8xf32>
    %cst_16 = arith.constant dense<0.000000e+00> : vector<4x8xf32>
    %53 = vector.multi_reduction <add>, %52, %cst_16 [2] : vector<4x8x8xf32> to vector<4x8xf32>
    %54 = vector.shape_cast %53 : vector<4x8xf32> to vector<4x8x1xf32>
    %55 = tpu.reciprocal %54 {approx = true} : vector<4x8x1xf32> -> vector<4x8x1xf32>
    %56 = vector.broadcast %55 : vector<4x8x1xf32> to vector<4x8x8xf32>
    %57 = arith.mulf %52, %56 : vector<4x8x8xf32>
    %cst_17 = arith.constant dense<0.000000e+00> : vector<4x8x8xf32>
    %58 = tpu.matmul %57, %46, %cst_17 {dimension_numbers = #tpu.dot_dimension_numbers<[2], [1], [1], [2], [0, 0, 0, 1, 1, 2], [0], [0]>} : vector<4x8x8xf32>, vector<4x8x8xf32>, vector<4x8x8xf32> -> vector<4x8x8xf32>
    %59 = vector.extract_strided_slice %58 {offsets = [0, 0, 0], sizes = [1, 8, 8], strides = [1, 1, 1]} : vector<4x8x8xf32> to vector<1x8x8xf32>
    %60 = vector.shape_cast %59 : vector<1x8x8xf32> to vector<8x8xf32>
    %61 = vector.extract_strided_slice %58 {offsets = [1, 0, 0], sizes = [1, 8, 8], strides = [1, 1, 1]} : vector<4x8x8xf32> to vector<1x8x8xf32>
    %62 = vector.shape_cast %61 : vector<1x8x8xf32> to vector<8x8xf32>
    %63 = vector.extract_strided_slice %58 {offsets = [2, 0, 0], sizes = [1, 8, 8], strides = [1, 1, 1]} : vector<4x8x8xf32> to vector<1x8x8xf32>
    %64 = vector.shape_cast %63 : vector<1x8x8xf32> to vector<8x8xf32>
    %65 = vector.extract_strided_slice %58 {offsets = [3, 0, 0], sizes = [1, 8, 8], strides = [1, 1, 1]} : vector<4x8x8xf32> to vector<1x8x8xf32>
    %66 = vector.shape_cast %65 : vector<1x8x8xf32> to vector<8x8xf32>
    %67 = tpu.concatenate %60, %62, %64, %66 in 1 : vector<8x8xf32>, vector<8x8xf32>, vector<8x8xf32>, vector<8x8xf32> -> vector<8x32xf32>
    %c0_18 = arith.constant 0 : index
    %c0_19 = arith.constant 0 : index
    %c0_20 = arith.constant 0 : index
    %68 = vector.load %arg5[%c0_18, %c0_19, %c0_20] : memref<2x32x32xf32, #tpu.memory_space<vmem>>, vector<1x32x32xf32>
    %69 = vector.shape_cast %68 : vector<1x32x32xf32> to vector<32x32xf32>
    %cst_21 = arith.constant dense<0.000000e+00> : vector<8x32xf32>
    %70 = tpu.matmul %67, %69, %cst_21 {dimension_numbers = #tpu.dot_dimension_numbers<[1], [0], [0], [1], [0, 0, 1, 1], [], []>} : vector<8x32xf32>, vector<32x32xf32>, vector<8x32xf32> -> vector<8x32xf32>
    %c0_22 = arith.constant 0 : index
    %c0_23 = arith.constant 0 : index
    %c0_24 = arith.constant 0 : index
    %71 = vector.load %arg10[%c0_22, %c0_23, %c0_24] : memref<2x6x32xf32, #tpu.memory_space<vmem>>, vector<1x1x32xf32>
    %72 = vector.shape_cast %71 : vector<1x1x32xf32> to vector<1x32xf32>
    %73 = vector.broadcast %72 : vector<1x32xf32> to vector<8x32xf32>
    %74 = arith.addf %70, %73 : vector<8x32xf32>
    %75 = arith.addf %10, %74 : vector<8x32xf32>
    %c0_25 = arith.constant 0 : index
    %c1 = arith.constant 1 : index
    %c0_26 = arith.constant 0 : index
    %76 = vector.load %arg10[%c0_25, %c1, %c0_26] : memref<2x6x32xf32, #tpu.memory_space<vmem>>, vector<1x1x32xf32>
    %77 = vector.shape_cast %76 : vector<1x1x32xf32> to vector<1x32xf32>
    %c0_27 = arith.constant 0 : index
    %c2 = arith.constant 2 : index
    %c0_28 = arith.constant 0 : index
    %78 = vector.load %arg10[%c0_27, %c2, %c0_28] : memref<2x6x32xf32, #tpu.memory_space<vmem>>, vector<1x1x32xf32>
    %79 = vector.shape_cast %78 : vector<1x1x32xf32> to vector<1x32xf32>
    %cst_29 = arith.constant dense<0.000000e+00> : vector<8xf32>
    %80 = vector.multi_reduction <add>, %75, %cst_29 [1] : vector<8x32xf32> to vector<8xf32>
    %81 = vector.shape_cast %80 : vector<8xf32> to vector<8x1xf32>
    %cst_30 = arith.constant 3.200000e+01 : f32
    %82 = vector.broadcast %cst_30 : f32 to vector<8x1xf32>
    %83 = arith.divf %81, %82 : vector<8x1xf32>
    %84 = vector.broadcast %83 : vector<8x1xf32> to vector<8x32xf32>
    %85 = arith.subf %75, %84 : vector<8x32xf32>
    %86 = arith.mulf %85, %85 : vector<8x32xf32>
    %cst_31 = arith.constant dense<0.000000e+00> : vector<8xf32>
    %87 = vector.multi_reduction <add>, %86, %cst_31 [1] : vector<8x32xf32> to vector<8xf32>
    %88 = vector.shape_cast %87 : vector<8xf32> to vector<8x1xf32>
    %cst_32 = arith.constant 3.200000e+01 : f32
    %89 = vector.broadcast %cst_32 : f32 to vector<8x1xf32>
    %90 = arith.divf %88, %89 : vector<8x1xf32>
    %cst_33 = arith.constant 9.99999974E-6 : f32
    %91 = vector.broadcast %cst_33 : f32 to vector<8x1xf32>
    %92 = arith.addf %90, %91 : vector<8x1xf32>
    %93 = math.rsqrt %92 : vector<8x1xf32>
    %94 = vector.broadcast %93 : vector<8x1xf32> to vector<8x32xf32>
    %95 = arith.mulf %85, %94 : vector<8x32xf32>
    %96 = vector.broadcast %77 : vector<1x32xf32> to vector<8x32xf32>
    %97 = arith.mulf %95, %96 : vector<8x32xf32>
    %98 = vector.broadcast %79 : vector<1x32xf32> to vector<8x32xf32>
    %99 = arith.addf %97, %98 : vector<8x32xf32>
    %c0_34 = arith.constant 0 : index
    %c0_35 = arith.constant 0 : index
    %c0_36 = arith.constant 0 : index
    %100 = vector.load %arg9[%c0_34, %c0_35, %c0_36] : memref<2x1x64xf32, #tpu.memory_space<vmem>>, vector<1x1x64xf32>
    %101 = vector.shape_cast %100 : vector<1x1x64xf32> to vector<1x64xf32>
    %102 = tpu.iota {dimensions = array<i32: 0>} : vector<8x1xi32>
    %c0_37 = arith.constant 0 : index
    %c0_38 = arith.constant 0 : index
    %c0_39 = arith.constant 0 : index
    %c0_40 = arith.constant 0 : index
    %103 = vector.load %arg6[%c0_37, %c0_38, %c0_39, %c0_40] : memref<2x3x32x64xf32, #tpu.memory_space<vmem>>, vector<1x1x32x64xf32>
    %104 = vector.shape_cast %103 : vector<1x1x32x64xf32> to vector<32x64xf32>
    %c1_i32 = arith.constant 1 : i32
    %105 = tpu.dynamic_rotate %99 by %c1_i32 dim 0 : vector<8x32xf32>, i32 -> vector<8x32xf32>
    %c1_i32_41 = arith.constant 1 : i32
    %106 = vector.broadcast %c1_i32_41 : i32 to vector<8x1xi32>
    %107 = arith.cmpi sge, %102, %106 : vector<8x1xi32>
    %c9_i32 = arith.constant 9 : i32
    %108 = vector.broadcast %c9_i32 : i32 to vector<8x1xi32>
    %109 = arith.cmpi slt, %102, %108 : vector<8x1xi32>
    %110 = arith.andi %107, %109 : vector<8x1xi1>
    %cst_42 = arith.constant 0.000000e+00 : f32
    %111 = vector.shape_cast %110 : vector<8x1xi1> to vector<8x1xi1>
    %112 = vector.broadcast %111 : vector<8x1xi1> to vector<8x32xi1>
    %113 = vector.broadcast %cst_42 : f32 to vector<8x32xf32>
    %114 = arith.select %112, %105, %113 : vector<8x32xi1>, vector<8x32xf32>
    %cst_43 = arith.constant dense<0.000000e+00> : vector<8x64xf32>
    %115 = tpu.matmul %114, %104, %cst_43 {dimension_numbers = #tpu.dot_dimension_numbers<[1], [0], [0], [1], [0, 0, 1, 1], [], []>} : vector<8x32xf32>, vector<32x64xf32>, vector<8x64xf32> -> vector<8x64xf32>
    %c0_44 = arith.constant 0 : index
    %c1_45 = arith.constant 1 : index
    %c0_46 = arith.constant 0 : index
    %c0_47 = arith.constant 0 : index
    %116 = vector.load %arg6[%c0_44, %c1_45, %c0_46, %c0_47] : memref<2x3x32x64xf32, #tpu.memory_space<vmem>>, vector<1x1x32x64xf32>
    %117 = vector.shape_cast %116 : vector<1x1x32x64xf32> to vector<32x64xf32>
    %cst_48 = arith.constant dense<0.000000e+00> : vector<8x64xf32>
    %118 = tpu.matmul %99, %117, %cst_48 {dimension_numbers = #tpu.dot_dimension_numbers<[1], [0], [0], [1], [0, 0, 1, 1], [], []>} : vector<8x32xf32>, vector<32x64xf32>, vector<8x64xf32> -> vector<8x64xf32>
    %119 = arith.addf %115, %118 : vector<8x64xf32>
    %c0_49 = arith.constant 0 : index
    %c2_50 = arith.constant 2 : index
    %c0_51 = arith.constant 0 : index
    %c0_52 = arith.constant 0 : index
    %120 = vector.load %arg6[%c0_49, %c2_50, %c0_51, %c0_52] : memref<2x3x32x64xf32, #tpu.memory_space<vmem>>, vector<1x1x32x64xf32>
    %121 = vector.shape_cast %120 : vector<1x1x32x64xf32> to vector<32x64xf32>
    %c7_i32 = arith.constant 7 : i32
    %122 = tpu.dynamic_rotate %99 by %c7_i32 dim 0 : vector<8x32xf32>, i32 -> vector<8x32xf32>
    %c-1_i32 = arith.constant -1 : i32
    %123 = vector.broadcast %c-1_i32 : i32 to vector<8x1xi32>
    %124 = arith.cmpi sge, %102, %123 : vector<8x1xi32>
    %c7_i32_53 = arith.constant 7 : i32
    %125 = vector.broadcast %c7_i32_53 : i32 to vector<8x1xi32>
    %126 = arith.cmpi slt, %102, %125 : vector<8x1xi32>
    %127 = arith.andi %124, %126 : vector<8x1xi1>
    %cst_54 = arith.constant 0.000000e+00 : f32
    %128 = vector.shape_cast %127 : vector<8x1xi1> to vector<8x1xi1>
    %129 = vector.broadcast %128 : vector<8x1xi1> to vector<8x32xi1>
    %130 = vector.broadcast %cst_54 : f32 to vector<8x32xf32>
    %131 = arith.select %129, %122, %130 : vector<8x32xi1>, vector<8x32xf32>
    %cst_55 = arith.constant dense<0.000000e+00> : vector<8x64xf32>
    %132 = tpu.matmul %131, %121, %cst_55 {dimension_numbers = #tpu.dot_dimension_numbers<[1], [0], [0], [1], [0, 0, 1, 1], [], []>} : vector<8x32xf32>, vector<32x64xf32>, vector<8x64xf32> -> vector<8x64xf32>
    %133 = arith.addf %119, %132 : vector<8x64xf32>
    %134 = vector.broadcast %101 : vector<1x64xf32> to vector<8x64xf32>
    %135 = arith.addf %133, %134 : vector<8x64xf32>
    %cst_56 = arith.constant 0.000000e+00 : f32
    %136 = vector.broadcast %cst_56 : f32 to vector<8x64xf32>
    %137 = arith.maximumf %135, %136 : vector<8x64xf32>
    %c0_57 = arith.constant 0 : index
    %c3 = arith.constant 3 : index
    %c0_58 = arith.constant 0 : index
    %138 = vector.load %arg10[%c0_57, %c3, %c0_58] : memref<2x6x32xf32, #tpu.memory_space<vmem>>, vector<1x1x32xf32>
    %139 = vector.shape_cast %138 : vector<1x1x32xf32> to vector<1x32xf32>
    %140 = tpu.iota {dimensions = array<i32: 0>} : vector<8x1xi32>
    %c0_59 = arith.constant 0 : index
    %c0_60 = arith.constant 0 : index
    %c0_61 = arith.constant 0 : index
    %c0_62 = arith.constant 0 : index
    %141 = vector.load %arg7[%c0_59, %c0_60, %c0_61, %c0_62] : memref<2x3x64x32xf32, #tpu.memory_space<vmem>>, vector<1x1x64x32xf32>
    %142 = vector.shape_cast %141 : vector<1x1x64x32xf32> to vector<64x32xf32>
    %c1_i32_63 = arith.constant 1 : i32
    %143 = tpu.dynamic_rotate %137 by %c1_i32_63 dim 0 : vector<8x64xf32>, i32 -> vector<8x64xf32>
    %c1_i32_64 = arith.constant 1 : i32
    %144 = vector.broadcast %c1_i32_64 : i32 to vector<8x1xi32>
    %145 = arith.cmpi sge, %140, %144 : vector<8x1xi32>
    %c9_i32_65 = arith.constant 9 : i32
    %146 = vector.broadcast %c9_i32_65 : i32 to vector<8x1xi32>
    %147 = arith.cmpi slt, %140, %146 : vector<8x1xi32>
    %148 = arith.andi %145, %147 : vector<8x1xi1>
    %cst_66 = arith.constant 0.000000e+00 : f32
    %149 = vector.shape_cast %148 : vector<8x1xi1> to vector<8x1xi1>
    %150 = vector.broadcast %149 : vector<8x1xi1> to vector<8x64xi1>
    %151 = vector.broadcast %cst_66 : f32 to vector<8x64xf32>
    %152 = arith.select %150, %143, %151 : vector<8x64xi1>, vector<8x64xf32>
    %cst_67 = arith.constant dense<0.000000e+00> : vector<8x32xf32>
    %153 = tpu.matmul %152, %142, %cst_67 {dimension_numbers = #tpu.dot_dimension_numbers<[1], [0], [0], [1], [0, 0, 1, 1], [], []>} : vector<8x64xf32>, vector<64x32xf32>, vector<8x32xf32> -> vector<8x32xf32>
    %c0_68 = arith.constant 0 : index
    %c1_69 = arith.constant 1 : index
    %c0_70 = arith.constant 0 : index
    %c0_71 = arith.constant 0 : index
    %154 = vector.load %arg7[%c0_68, %c1_69, %c0_70, %c0_71] : memref<2x3x64x32xf32, #tpu.memory_space<vmem>>, vector<1x1x64x32xf32>
    %155 = vector.shape_cast %154 : vector<1x1x64x32xf32> to vector<64x32xf32>
    %cst_72 = arith.constant dense<0.000000e+00> : vector<8x32xf32>
    %156 = tpu.matmul %137, %155, %cst_72 {dimension_numbers = #tpu.dot_dimension_numbers<[1], [0], [0], [1], [0, 0, 1, 1], [], []>} : vector<8x64xf32>, vector<64x32xf32>, vector<8x32xf32> -> vector<8x32xf32>
    %157 = arith.addf %153, %156 : vector<8x32xf32>
    %c0_73 = arith.constant 0 : index
    %c2_74 = arith.constant 2 : index
    %c0_75 = arith.constant 0 : index
    %c0_76 = arith.constant 0 : index
    %158 = vector.load %arg7[%c0_73, %c2_74, %c0_75, %c0_76] : memref<2x3x64x32xf32, #tpu.memory_space<vmem>>, vector<1x1x64x32xf32>
    %159 = vector.shape_cast %158 : vector<1x1x64x32xf32> to vector<64x32xf32>
    %c7_i32_77 = arith.constant 7 : i32
    %160 = tpu.dynamic_rotate %137 by %c7_i32_77 dim 0 : vector<8x64xf32>, i32 -> vector<8x64xf32>
    %c-1_i32_78 = arith.constant -1 : i32
    %161 = vector.broadcast %c-1_i32_78 : i32 to vector<8x1xi32>
    %162 = arith.cmpi sge, %140, %161 : vector<8x1xi32>
    %c7_i32_79 = arith.constant 7 : i32
    %163 = vector.broadcast %c7_i32_79 : i32 to vector<8x1xi32>
    %164 = arith.cmpi slt, %140, %163 : vector<8x1xi32>
    %165 = arith.andi %162, %164 : vector<8x1xi1>
    %cst_80 = arith.constant 0.000000e+00 : f32
    %166 = vector.shape_cast %165 : vector<8x1xi1> to vector<8x1xi1>
    %167 = vector.broadcast %166 : vector<8x1xi1> to vector<8x64xi1>
    %168 = vector.broadcast %cst_80 : f32 to vector<8x64xf32>
    %169 = arith.select %167, %160, %168 : vector<8x64xi1>, vector<8x64xf32>
    %cst_81 = arith.constant dense<0.000000e+00> : vector<8x32xf32>
    %170 = tpu.matmul %169, %159, %cst_81 {dimension_numbers = #tpu.dot_dimension_numbers<[1], [0], [0], [1], [0, 0, 1, 1], [], []>} : vector<8x64xf32>, vector<64x32xf32>, vector<8x32xf32> -> vector<8x32xf32>
    %171 = arith.addf %157, %170 : vector<8x32xf32>
    %172 = vector.broadcast %139 : vector<1x32xf32> to vector<8x32xf32>
    %173 = arith.addf %171, %172 : vector<8x32xf32>
    %174 = arith.addf %99, %173 : vector<8x32xf32>
    %c0_82 = arith.constant 0 : index
    %c4 = arith.constant 4 : index
    %c0_83 = arith.constant 0 : index
    %175 = vector.load %arg10[%c0_82, %c4, %c0_83] : memref<2x6x32xf32, #tpu.memory_space<vmem>>, vector<1x1x32xf32>
    %176 = vector.shape_cast %175 : vector<1x1x32xf32> to vector<1x32xf32>
    %c0_84 = arith.constant 0 : index
    %c5 = arith.constant 5 : index
    %c0_85 = arith.constant 0 : index
    %177 = vector.load %arg10[%c0_84, %c5, %c0_85] : memref<2x6x32xf32, #tpu.memory_space<vmem>>, vector<1x1x32xf32>
    %178 = vector.shape_cast %177 : vector<1x1x32xf32> to vector<1x32xf32>
    %cst_86 = arith.constant dense<0.000000e+00> : vector<8xf32>
    %179 = vector.multi_reduction <add>, %174, %cst_86 [1] : vector<8x32xf32> to vector<8xf32>
    %180 = vector.shape_cast %179 : vector<8xf32> to vector<8x1xf32>
    %cst_87 = arith.constant 3.200000e+01 : f32
    %181 = vector.broadcast %cst_87 : f32 to vector<8x1xf32>
    %182 = arith.divf %180, %181 : vector<8x1xf32>
    %183 = vector.broadcast %182 : vector<8x1xf32> to vector<8x32xf32>
    %184 = arith.subf %174, %183 : vector<8x32xf32>
    %185 = arith.mulf %184, %184 : vector<8x32xf32>
    %cst_88 = arith.constant dense<0.000000e+00> : vector<8xf32>
    %186 = vector.multi_reduction <add>, %185, %cst_88 [1] : vector<8x32xf32> to vector<8xf32>
    %187 = vector.shape_cast %186 : vector<8xf32> to vector<8x1xf32>
    %cst_89 = arith.constant 3.200000e+01 : f32
    %188 = vector.broadcast %cst_89 : f32 to vector<8x1xf32>
    %189 = arith.divf %187, %188 : vector<8x1xf32>
    %cst_90 = arith.constant 9.99999974E-6 : f32
    %190 = vector.broadcast %cst_90 : f32 to vector<8x1xf32>
    %191 = arith.addf %189, %190 : vector<8x1xf32>
    %192 = math.rsqrt %191 : vector<8x1xf32>
    %193 = vector.broadcast %192 : vector<8x1xf32> to vector<8x32xf32>
    %194 = arith.mulf %184, %193 : vector<8x32xf32>
    %195 = vector.broadcast %176 : vector<1x32xf32> to vector<8x32xf32>
    %196 = arith.mulf %194, %195 : vector<8x32xf32>
    %197 = vector.broadcast %178 : vector<1x32xf32> to vector<8x32xf32>
    %198 = arith.addf %196, %197 : vector<8x32xf32>
    %c1_91 = arith.constant 1 : index
    %c0_92 = arith.constant 0 : index
    %c0_93 = arith.constant 0 : index
    %199 = vector.load %arg4[%c1_91, %c0_92, %c0_93] : memref<2x32x96xf32, #tpu.memory_space<vmem>>, vector<1x32x96xf32>
    %200 = vector.shape_cast %199 : vector<1x32x96xf32> to vector<32x96xf32>
    %cst_94 = arith.constant dense<0.000000e+00> : vector<8x96xf32>
    %201 = tpu.matmul %198, %200, %cst_94 {dimension_numbers = #tpu.dot_dimension_numbers<[1], [0], [0], [1], [0, 0, 1, 1], [], []>} : vector<8x32xf32>, vector<32x96xf32>, vector<8x96xf32> -> vector<8x96xf32>
    %c1_95 = arith.constant 1 : index
    %c0_96 = arith.constant 0 : index
    %c0_97 = arith.constant 0 : index
    %202 = vector.load %arg8[%c1_95, %c0_96, %c0_97] : memref<2x1x96xf32, #tpu.memory_space<vmem>>, vector<1x1x96xf32>
    %203 = vector.shape_cast %202 : vector<1x1x96xf32> to vector<1x96xf32>
    %204 = vector.broadcast %203 : vector<1x96xf32> to vector<8x96xf32>
    %205 = arith.addf %201, %204 : vector<8x96xf32>
    %206 = vector.extract_strided_slice %205 {offsets = [0, 0], sizes = [8, 8], strides = [1, 1]} : vector<8x96xf32> to vector<8x8xf32>
    %207 = vector.shape_cast %206 : vector<8x8xf32> to vector<1x8x8xf32>
    %208 = vector.extract_strided_slice %205 {offsets = [0, 8], sizes = [8, 8], strides = [1, 1]} : vector<8x96xf32> to vector<8x8xf32>
    %209 = vector.shape_cast %208 : vector<8x8xf32> to vector<1x8x8xf32>
    %210 = vector.extract_strided_slice %205 {offsets = [0, 16], sizes = [8, 8], strides = [1, 1]} : vector<8x96xf32> to vector<8x8xf32>
    %211 = vector.shape_cast %210 : vector<8x8xf32> to vector<1x8x8xf32>
    %212 = vector.extract_strided_slice %205 {offsets = [0, 24], sizes = [8, 8], strides = [1, 1]} : vector<8x96xf32> to vector<8x8xf32>
    %213 = vector.shape_cast %212 : vector<8x8xf32> to vector<1x8x8xf32>
    %214 = tpu.concatenate %207, %209, %211, %213 in 0 : vector<1x8x8xf32>, vector<1x8x8xf32>, vector<1x8x8xf32>, vector<1x8x8xf32> -> vector<4x8x8xf32>
    %cst_98 = arith.constant 0.353553385 : f32
    %215 = vector.broadcast %cst_98 : f32 to vector<4x8x8xf32>
    %216 = arith.mulf %214, %215 : vector<4x8x8xf32>
    %217 = vector.extract_strided_slice %205 {offsets = [0, 32], sizes = [8, 8], strides = [1, 1]} : vector<8x96xf32> to vector<8x8xf32>
    %218 = vector.shape_cast %217 : vector<8x8xf32> to vector<1x8x8xf32>
    %219 = vector.extract_strided_slice %205 {offsets = [0, 40], sizes = [8, 8], strides = [1, 1]} : vector<8x96xf32> to vector<8x8xf32>
    %220 = vector.shape_cast %219 : vector<8x8xf32> to vector<1x8x8xf32>
    %221 = vector.extract_strided_slice %205 {offsets = [0, 48], sizes = [8, 8], strides = [1, 1]} : vector<8x96xf32> to vector<8x8xf32>
    %222 = vector.shape_cast %221 : vector<8x8xf32> to vector<1x8x8xf32>
    %223 = vector.extract_strided_slice %205 {offsets = [0, 56], sizes = [8, 8], strides = [1, 1]} : vector<8x96xf32> to vector<8x8xf32>
    %224 = vector.shape_cast %223 : vector<8x8xf32> to vector<1x8x8xf32>
    %225 = tpu.concatenate %218, %220, %222, %224 in 0 : vector<1x8x8xf32>, vector<1x8x8xf32>, vector<1x8x8xf32>, vector<1x8x8xf32> -> vector<4x8x8xf32>
    %226 = vector.extract_strided_slice %205 {offsets = [0, 64], sizes = [8, 8], strides = [1, 1]} : vector<8x96xf32> to vector<8x8xf32>
    %227 = vector.shape_cast %226 : vector<8x8xf32> to vector<1x8x8xf32>
    %228 = vector.extract_strided_slice %205 {offsets = [0, 72], sizes = [8, 8], strides = [1, 1]} : vector<8x96xf32> to vector<8x8xf32>
    %229 = vector.shape_cast %228 : vector<8x8xf32> to vector<1x8x8xf32>
    %230 = vector.extract_strided_slice %205 {offsets = [0, 80], sizes = [8, 8], strides = [1, 1]} : vector<8x96xf32> to vector<8x8xf32>
    %231 = vector.shape_cast %230 : vector<8x8xf32> to vector<1x8x8xf32>
    %232 = vector.extract_strided_slice %205 {offsets = [0, 88], sizes = [8, 8], strides = [1, 1]} : vector<8x96xf32> to vector<8x8xf32>
    %233 = vector.shape_cast %232 : vector<8x8xf32> to vector<1x8x8xf32>
    %234 = tpu.concatenate %227, %229, %231, %233 in 0 : vector<1x8x8xf32>, vector<1x8x8xf32>, vector<1x8x8xf32>, vector<1x8x8xf32> -> vector<4x8x8xf32>
    %cst_99 = arith.constant dense<0.000000e+00> : vector<4x8x8xf32>
    %235 = tpu.matmul %216, %225, %cst_99 {dimension_numbers = #tpu.dot_dimension_numbers<[2], [2], [1], [1], [0, 0, 0, 1, 1, 1], [0], [0]>} : vector<4x8x8xf32>, vector<4x8x8xf32>, vector<4x8x8xf32> -> vector<4x8x8xf32>
    %cst_100 = arith.constant dense<0xFF800000> : vector<4x8xf32>
    %236 = vector.multi_reduction <maximumf>, %235, %cst_100 [2] : vector<4x8x8xf32> to vector<4x8xf32>
    %237 = vector.shape_cast %236 : vector<4x8xf32> to vector<4x8x1xf32>
    %238 = vector.broadcast %237 : vector<4x8x1xf32> to vector<4x8x8xf32>
    %239 = arith.subf %235, %238 : vector<4x8x8xf32>
    %240 = math.exp %239 : vector<4x8x8xf32>
    %cst_101 = arith.constant dense<0.000000e+00> : vector<4x8xf32>
    %241 = vector.multi_reduction <add>, %240, %cst_101 [2] : vector<4x8x8xf32> to vector<4x8xf32>
    %242 = vector.shape_cast %241 : vector<4x8xf32> to vector<4x8x1xf32>
    %243 = tpu.reciprocal %242 {approx = true} : vector<4x8x1xf32> -> vector<4x8x1xf32>
    %244 = vector.broadcast %243 : vector<4x8x1xf32> to vector<4x8x8xf32>
    %245 = arith.mulf %240, %244 : vector<4x8x8xf32>
    %cst_102 = arith.constant dense<0.000000e+00> : vector<4x8x8xf32>
    %246 = tpu.matmul %245, %234, %cst_102 {dimension_numbers = #tpu.dot_dimension_numbers<[2], [1], [1], [2], [0, 0, 0, 1, 1, 2], [0], [0]>} : vector<4x8x8xf32>, vector<4x8x8xf32>, vector<4x8x8xf32> -> vector<4x8x8xf32>
    %247 = vector.extract_strided_slice %246 {offsets = [0, 0, 0], sizes = [1, 8, 8], strides = [1, 1, 1]} : vector<4x8x8xf32> to vector<1x8x8xf32>
    %248 = vector.shape_cast %247 : vector<1x8x8xf32> to vector<8x8xf32>
    %249 = vector.extract_strided_slice %246 {offsets = [1, 0, 0], sizes = [1, 8, 8], strides = [1, 1, 1]} : vector<4x8x8xf32> to vector<1x8x8xf32>
    %250 = vector.shape_cast %249 : vector<1x8x8xf32> to vector<8x8xf32>
    %251 = vector.extract_strided_slice %246 {offsets = [2, 0, 0], sizes = [1, 8, 8], strides = [1, 1, 1]} : vector<4x8x8xf32> to vector<1x8x8xf32>
    %252 = vector.shape_cast %251 : vector<1x8x8xf32> to vector<8x8xf32>
    %253 = vector.extract_strided_slice %246 {offsets = [3, 0, 0], sizes = [1, 8, 8], strides = [1, 1, 1]} : vector<4x8x8xf32> to vector<1x8x8xf32>
    %254 = vector.shape_cast %253 : vector<1x8x8xf32> to vector<8x8xf32>
    %255 = tpu.concatenate %248, %250, %252, %254 in 1 : vector<8x8xf32>, vector<8x8xf32>, vector<8x8xf32>, vector<8x8xf32> -> vector<8x32xf32>
    %c1_103 = arith.constant 1 : index
    %c0_104 = arith.constant 0 : index
    %c0_105 = arith.constant 0 : index
    %256 = vector.load %arg5[%c1_103, %c0_104, %c0_105] : memref<2x32x32xf32, #tpu.memory_space<vmem>>, vector<1x32x32xf32>
    %257 = vector.shape_cast %256 : vector<1x32x32xf32> to vector<32x32xf32>
    %cst_106 = arith.constant dense<0.000000e+00> : vector<8x32xf32>
    %258 = tpu.matmul %255, %257, %cst_106 {dimension_numbers = #tpu.dot_dimension_numbers<[1], [0], [0], [1], [0, 0, 1, 1], [], []>} : vector<8x32xf32>, vector<32x32xf32>, vector<8x32xf32> -> vector<8x32xf32>
    %c1_107 = arith.constant 1 : index
    %c0_108 = arith.constant 0 : index
    %c0_109 = arith.constant 0 : index
    %259 = vector.load %arg10[%c1_107, %c0_108, %c0_109] : memref<2x6x32xf32, #tpu.memory_space<vmem>>, vector<1x1x32xf32>
    %260 = vector.shape_cast %259 : vector<1x1x32xf32> to vector<1x32xf32>
    %261 = vector.broadcast %260 : vector<1x32xf32> to vector<8x32xf32>
    %262 = arith.addf %258, %261 : vector<8x32xf32>
    %263 = arith.addf %198, %262 : vector<8x32xf32>
    %c1_110 = arith.constant 1 : index
    %c1_111 = arith.constant 1 : index
    %c0_112 = arith.constant 0 : index
    %264 = vector.load %arg10[%c1_110, %c1_111, %c0_112] : memref<2x6x32xf32, #tpu.memory_space<vmem>>, vector<1x1x32xf32>
    %265 = vector.shape_cast %264 : vector<1x1x32xf32> to vector<1x32xf32>
    %c1_113 = arith.constant 1 : index
    %c2_114 = arith.constant 2 : index
    %c0_115 = arith.constant 0 : index
    %266 = vector.load %arg10[%c1_113, %c2_114, %c0_115] : memref<2x6x32xf32, #tpu.memory_space<vmem>>, vector<1x1x32xf32>
    %267 = vector.shape_cast %266 : vector<1x1x32xf32> to vector<1x32xf32>
    %cst_116 = arith.constant dense<0.000000e+00> : vector<8xf32>
    %268 = vector.multi_reduction <add>, %263, %cst_116 [1] : vector<8x32xf32> to vector<8xf32>
    %269 = vector.shape_cast %268 : vector<8xf32> to vector<8x1xf32>
    %cst_117 = arith.constant 3.200000e+01 : f32
    %270 = vector.broadcast %cst_117 : f32 to vector<8x1xf32>
    %271 = arith.divf %269, %270 : vector<8x1xf32>
    %272 = vector.broadcast %271 : vector<8x1xf32> to vector<8x32xf32>
    %273 = arith.subf %263, %272 : vector<8x32xf32>
    %274 = arith.mulf %273, %273 : vector<8x32xf32>
    %cst_118 = arith.constant dense<0.000000e+00> : vector<8xf32>
    %275 = vector.multi_reduction <add>, %274, %cst_118 [1] : vector<8x32xf32> to vector<8xf32>
    %276 = vector.shape_cast %275 : vector<8xf32> to vector<8x1xf32>
    %cst_119 = arith.constant 3.200000e+01 : f32
    %277 = vector.broadcast %cst_119 : f32 to vector<8x1xf32>
    %278 = arith.divf %276, %277 : vector<8x1xf32>
    %cst_120 = arith.constant 9.99999974E-6 : f32
    %279 = vector.broadcast %cst_120 : f32 to vector<8x1xf32>
    %280 = arith.addf %278, %279 : vector<8x1xf32>
    %281 = math.rsqrt %280 : vector<8x1xf32>
    %282 = vector.broadcast %281 : vector<8x1xf32> to vector<8x32xf32>
    %283 = arith.mulf %273, %282 : vector<8x32xf32>
    %284 = vector.broadcast %265 : vector<1x32xf32> to vector<8x32xf32>
    %285 = arith.mulf %283, %284 : vector<8x32xf32>
    %286 = vector.broadcast %267 : vector<1x32xf32> to vector<8x32xf32>
    %287 = arith.addf %285, %286 : vector<8x32xf32>
    %c1_121 = arith.constant 1 : index
    %c0_122 = arith.constant 0 : index
    %c0_123 = arith.constant 0 : index
    %288 = vector.load %arg9[%c1_121, %c0_122, %c0_123] : memref<2x1x64xf32, #tpu.memory_space<vmem>>, vector<1x1x64xf32>
    %289 = vector.shape_cast %288 : vector<1x1x64xf32> to vector<1x64xf32>
    %290 = tpu.iota {dimensions = array<i32: 0>} : vector<8x1xi32>
    %c1_124 = arith.constant 1 : index
    %c0_125 = arith.constant 0 : index
    %c0_126 = arith.constant 0 : index
    %c0_127 = arith.constant 0 : index
    %291 = vector.load %arg6[%c1_124, %c0_125, %c0_126, %c0_127] : memref<2x3x32x64xf32, #tpu.memory_space<vmem>>, vector<1x1x32x64xf32>
    %292 = vector.shape_cast %291 : vector<1x1x32x64xf32> to vector<32x64xf32>
    %c1_i32_128 = arith.constant 1 : i32
    %293 = tpu.dynamic_rotate %287 by %c1_i32_128 dim 0 : vector<8x32xf32>, i32 -> vector<8x32xf32>
    %c1_i32_129 = arith.constant 1 : i32
    %294 = vector.broadcast %c1_i32_129 : i32 to vector<8x1xi32>
    %295 = arith.cmpi sge, %290, %294 : vector<8x1xi32>
    %c9_i32_130 = arith.constant 9 : i32
    %296 = vector.broadcast %c9_i32_130 : i32 to vector<8x1xi32>
    %297 = arith.cmpi slt, %290, %296 : vector<8x1xi32>
    %298 = arith.andi %295, %297 : vector<8x1xi1>
    %cst_131 = arith.constant 0.000000e+00 : f32
    %299 = vector.shape_cast %298 : vector<8x1xi1> to vector<8x1xi1>
    %300 = vector.broadcast %299 : vector<8x1xi1> to vector<8x32xi1>
    %301 = vector.broadcast %cst_131 : f32 to vector<8x32xf32>
    %302 = arith.select %300, %293, %301 : vector<8x32xi1>, vector<8x32xf32>
    %cst_132 = arith.constant dense<0.000000e+00> : vector<8x64xf32>
    %303 = tpu.matmul %302, %292, %cst_132 {dimension_numbers = #tpu.dot_dimension_numbers<[1], [0], [0], [1], [0, 0, 1, 1], [], []>} : vector<8x32xf32>, vector<32x64xf32>, vector<8x64xf32> -> vector<8x64xf32>
    %c1_133 = arith.constant 1 : index
    %c1_134 = arith.constant 1 : index
    %c0_135 = arith.constant 0 : index
    %c0_136 = arith.constant 0 : index
    %304 = vector.load %arg6[%c1_133, %c1_134, %c0_135, %c0_136] : memref<2x3x32x64xf32, #tpu.memory_space<vmem>>, vector<1x1x32x64xf32>
    %305 = vector.shape_cast %304 : vector<1x1x32x64xf32> to vector<32x64xf32>
    %cst_137 = arith.constant dense<0.000000e+00> : vector<8x64xf32>
    %306 = tpu.matmul %287, %305, %cst_137 {dimension_numbers = #tpu.dot_dimension_numbers<[1], [0], [0], [1], [0, 0, 1, 1], [], []>} : vector<8x32xf32>, vector<32x64xf32>, vector<8x64xf32> -> vector<8x64xf32>
    %307 = arith.addf %303, %306 : vector<8x64xf32>
    %c1_138 = arith.constant 1 : index
    %c2_139 = arith.constant 2 : index
    %c0_140 = arith.constant 0 : index
    %c0_141 = arith.constant 0 : index
    %308 = vector.load %arg6[%c1_138, %c2_139, %c0_140, %c0_141] : memref<2x3x32x64xf32, #tpu.memory_space<vmem>>, vector<1x1x32x64xf32>
    %309 = vector.shape_cast %308 : vector<1x1x32x64xf32> to vector<32x64xf32>
    %c7_i32_142 = arith.constant 7 : i32
    %310 = tpu.dynamic_rotate %287 by %c7_i32_142 dim 0 : vector<8x32xf32>, i32 -> vector<8x32xf32>
    %c-1_i32_143 = arith.constant -1 : i32
    %311 = vector.broadcast %c-1_i32_143 : i32 to vector<8x1xi32>
    %312 = arith.cmpi sge, %290, %311 : vector<8x1xi32>
    %c7_i32_144 = arith.constant 7 : i32
    %313 = vector.broadcast %c7_i32_144 : i32 to vector<8x1xi32>
    %314 = arith.cmpi slt, %290, %313 : vector<8x1xi32>
    %315 = arith.andi %312, %314 : vector<8x1xi1>
    %cst_145 = arith.constant 0.000000e+00 : f32
    %316 = vector.shape_cast %315 : vector<8x1xi1> to vector<8x1xi1>
    %317 = vector.broadcast %316 : vector<8x1xi1> to vector<8x32xi1>
    %318 = vector.broadcast %cst_145 : f32 to vector<8x32xf32>
    %319 = arith.select %317, %310, %318 : vector<8x32xi1>, vector<8x32xf32>
    %cst_146 = arith.constant dense<0.000000e+00> : vector<8x64xf32>
    %320 = tpu.matmul %319, %309, %cst_146 {dimension_numbers = #tpu.dot_dimension_numbers<[1], [0], [0], [1], [0, 0, 1, 1], [], []>} : vector<8x32xf32>, vector<32x64xf32>, vector<8x64xf32> -> vector<8x64xf32>
    %321 = arith.addf %307, %320 : vector<8x64xf32>
    %322 = vector.broadcast %289 : vector<1x64xf32> to vector<8x64xf32>
    %323 = arith.addf %321, %322 : vector<8x64xf32>
    %cst_147 = arith.constant 0.000000e+00 : f32
    %324 = vector.broadcast %cst_147 : f32 to vector<8x64xf32>
    %325 = arith.maximumf %323, %324 : vector<8x64xf32>
    %c1_148 = arith.constant 1 : index
    %c3_149 = arith.constant 3 : index
    %c0_150 = arith.constant 0 : index
    %326 = vector.load %arg10[%c1_148, %c3_149, %c0_150] : memref<2x6x32xf32, #tpu.memory_space<vmem>>, vector<1x1x32xf32>
    %327 = vector.shape_cast %326 : vector<1x1x32xf32> to vector<1x32xf32>
    %328 = tpu.iota {dimensions = array<i32: 0>} : vector<8x1xi32>
    %c1_151 = arith.constant 1 : index
    %c0_152 = arith.constant 0 : index
    %c0_153 = arith.constant 0 : index
    %c0_154 = arith.constant 0 : index
    %329 = vector.load %arg7[%c1_151, %c0_152, %c0_153, %c0_154] : memref<2x3x64x32xf32, #tpu.memory_space<vmem>>, vector<1x1x64x32xf32>
    %330 = vector.shape_cast %329 : vector<1x1x64x32xf32> to vector<64x32xf32>
    %c1_i32_155 = arith.constant 1 : i32
    %331 = tpu.dynamic_rotate %325 by %c1_i32_155 dim 0 : vector<8x64xf32>, i32 -> vector<8x64xf32>
    %c1_i32_156 = arith.constant 1 : i32
    %332 = vector.broadcast %c1_i32_156 : i32 to vector<8x1xi32>
    %333 = arith.cmpi sge, %328, %332 : vector<8x1xi32>
    %c9_i32_157 = arith.constant 9 : i32
    %334 = vector.broadcast %c9_i32_157 : i32 to vector<8x1xi32>
    %335 = arith.cmpi slt, %328, %334 : vector<8x1xi32>
    %336 = arith.andi %333, %335 : vector<8x1xi1>
    %cst_158 = arith.constant 0.000000e+00 : f32
    %337 = vector.shape_cast %336 : vector<8x1xi1> to vector<8x1xi1>
    %338 = vector.broadcast %337 : vector<8x1xi1> to vector<8x64xi1>
    %339 = vector.broadcast %cst_158 : f32 to vector<8x64xf32>
    %340 = arith.select %338, %331, %339 : vector<8x64xi1>, vector<8x64xf32>
    %cst_159 = arith.constant dense<0.000000e+00> : vector<8x32xf32>
    %341 = tpu.matmul %340, %330, %cst_159 {dimension_numbers = #tpu.dot_dimension_numbers<[1], [0], [0], [1], [0, 0, 1, 1], [], []>} : vector<8x64xf32>, vector<64x32xf32>, vector<8x32xf32> -> vector<8x32xf32>
    %c1_160 = arith.constant 1 : index
    %c1_161 = arith.constant 1 : index
    %c0_162 = arith.constant 0 : index
    %c0_163 = arith.constant 0 : index
    %342 = vector.load %arg7[%c1_160, %c1_161, %c0_162, %c0_163] : memref<2x3x64x32xf32, #tpu.memory_space<vmem>>, vector<1x1x64x32xf32>
    %343 = vector.shape_cast %342 : vector<1x1x64x32xf32> to vector<64x32xf32>
    %cst_164 = arith.constant dense<0.000000e+00> : vector<8x32xf32>
    %344 = tpu.matmul %325, %343, %cst_164 {dimension_numbers = #tpu.dot_dimension_numbers<[1], [0], [0], [1], [0, 0, 1, 1], [], []>} : vector<8x64xf32>, vector<64x32xf32>, vector<8x32xf32> -> vector<8x32xf32>
    %345 = arith.addf %341, %344 : vector<8x32xf32>
    %c1_165 = arith.constant 1 : index
    %c2_166 = arith.constant 2 : index
    %c0_167 = arith.constant 0 : index
    %c0_168 = arith.constant 0 : index
    %346 = vector.load %arg7[%c1_165, %c2_166, %c0_167, %c0_168] : memref<2x3x64x32xf32, #tpu.memory_space<vmem>>, vector<1x1x64x32xf32>
    %347 = vector.shape_cast %346 : vector<1x1x64x32xf32> to vector<64x32xf32>
    %c7_i32_169 = arith.constant 7 : i32
    %348 = tpu.dynamic_rotate %325 by %c7_i32_169 dim 0 : vector<8x64xf32>, i32 -> vector<8x64xf32>
    %c-1_i32_170 = arith.constant -1 : i32
    %349 = vector.broadcast %c-1_i32_170 : i32 to vector<8x1xi32>
    %350 = arith.cmpi sge, %328, %349 : vector<8x1xi32>
    %c7_i32_171 = arith.constant 7 : i32
    %351 = vector.broadcast %c7_i32_171 : i32 to vector<8x1xi32>
    %352 = arith.cmpi slt, %328, %351 : vector<8x1xi32>
    %353 = arith.andi %350, %352 : vector<8x1xi1>
    %cst_172 = arith.constant 0.000000e+00 : f32
    %354 = vector.shape_cast %353 : vector<8x1xi1> to vector<8x1xi1>
    %355 = vector.broadcast %354 : vector<8x1xi1> to vector<8x64xi1>
    %356 = vector.broadcast %cst_172 : f32 to vector<8x64xf32>
    %357 = arith.select %355, %348, %356 : vector<8x64xi1>, vector<8x64xf32>
    %cst_173 = arith.constant dense<0.000000e+00> : vector<8x32xf32>
    %358 = tpu.matmul %357, %347, %cst_173 {dimension_numbers = #tpu.dot_dimension_numbers<[1], [0], [0], [1], [0, 0, 1, 1], [], []>} : vector<8x64xf32>, vector<64x32xf32>, vector<8x32xf32> -> vector<8x32xf32>
    %359 = arith.addf %345, %358 : vector<8x32xf32>
    %360 = vector.broadcast %327 : vector<1x32xf32> to vector<8x32xf32>
    %361 = arith.addf %359, %360 : vector<8x32xf32>
    %362 = arith.addf %287, %361 : vector<8x32xf32>
    %c1_174 = arith.constant 1 : index
    %c4_175 = arith.constant 4 : index
    %c0_176 = arith.constant 0 : index
    %363 = vector.load %arg10[%c1_174, %c4_175, %c0_176] : memref<2x6x32xf32, #tpu.memory_space<vmem>>, vector<1x1x32xf32>
    %364 = vector.shape_cast %363 : vector<1x1x32xf32> to vector<1x32xf32>
    %c1_177 = arith.constant 1 : index
    %c5_178 = arith.constant 5 : index
    %c0_179 = arith.constant 0 : index
    %365 = vector.load %arg10[%c1_177, %c5_178, %c0_179] : memref<2x6x32xf32, #tpu.memory_space<vmem>>, vector<1x1x32xf32>
    %366 = vector.shape_cast %365 : vector<1x1x32xf32> to vector<1x32xf32>
    %cst_180 = arith.constant dense<0.000000e+00> : vector<8xf32>
    %367 = vector.multi_reduction <add>, %362, %cst_180 [1] : vector<8x32xf32> to vector<8xf32>
    %368 = vector.shape_cast %367 : vector<8xf32> to vector<8x1xf32>
    %cst_181 = arith.constant 3.200000e+01 : f32
    %369 = vector.broadcast %cst_181 : f32 to vector<8x1xf32>
    %370 = arith.divf %368, %369 : vector<8x1xf32>
    %371 = vector.broadcast %370 : vector<8x1xf32> to vector<8x32xf32>
    %372 = arith.subf %362, %371 : vector<8x32xf32>
    %373 = arith.mulf %372, %372 : vector<8x32xf32>
    %cst_182 = arith.constant dense<0.000000e+00> : vector<8xf32>
    %374 = vector.multi_reduction <add>, %373, %cst_182 [1] : vector<8x32xf32> to vector<8xf32>
    %375 = vector.shape_cast %374 : vector<8xf32> to vector<8x1xf32>
    %cst_183 = arith.constant 3.200000e+01 : f32
    %376 = vector.broadcast %cst_183 : f32 to vector<8x1xf32>
    %377 = arith.divf %375, %376 : vector<8x1xf32>
    %cst_184 = arith.constant 9.99999974E-6 : f32
    %378 = vector.broadcast %cst_184 : f32 to vector<8x1xf32>
    %379 = arith.addf %377, %378 : vector<8x1xf32>
    %380 = math.rsqrt %379 : vector<8x1xf32>
    %381 = vector.broadcast %380 : vector<8x1xf32> to vector<8x32xf32>
    %382 = arith.mulf %372, %381 : vector<8x32xf32>
    %383 = vector.broadcast %364 : vector<1x32xf32> to vector<8x32xf32>
    %384 = arith.mulf %382, %383 : vector<8x32xf32>
    %385 = vector.broadcast %366 : vector<1x32xf32> to vector<8x32xf32>
    %386 = arith.addf %384, %385 : vector<8x32xf32>
    %c0_185 = arith.constant 0 : index
    %c0_186 = arith.constant 0 : index
    %c0_187 = arith.constant 0 : index
    %387 = vector.load %arg13[%c0_185, %c0_186, %c0_187] : memref<1x8x32xf32, #tpu.memory_space<vmem>>, vector<1x8x32xf32>
    %388 = vector.shape_cast %387 : vector<1x8x32xf32> to vector<8x32xf32>
    %389 = vector.shape_cast %386 : vector<8x32xf32> to vector<1x8x32xf32>
    tpu.vector_store %arg13[%c0_185, %c0_186, %c0_187], %389 {strides = array<i32>} : memref<1x8x32xf32, #tpu.memory_space<vmem>>, vector<1x8x32xf32>,
    %c0_188 = arith.constant 0 : index
    %c0_189 = arith.constant 0 : index
    %390 = vector.load %arg12[%c0_188, %c0_189] : memref<8x32xf32, #tpu.memory_space<vmem>>, vector<1x32xf32>
    %391 = tpu.iota {dimensions = array<i32: 0>} : vector<8x1xi32>
    %c0_190 = arith.constant 0 : index
    %c0_191 = arith.constant 0 : index
    %c0_192 = arith.constant 0 : index
    %c0_193 = arith.constant 0 : index
    %392 = vector.load %arg11[%c0_190, %c0_191, %c0_192, %c0_193] : memref<2x3x32x32xf32, #tpu.memory_space<vmem>>, vector<1x1x32x32xf32>
    %393 = vector.shape_cast %392 : vector<1x1x32x32xf32> to vector<32x32xf32>
    %c1_i32_194 = arith.constant 1 : i32
    %394 = tpu.dynamic_rotate %386 by %c1_i32_194 dim 0 : vector<8x32xf32>, i32 -> vector<8x32xf32>
    %c1_i32_195 = arith.constant 1 : i32
    %395 = vector.broadcast %c1_i32_195 : i32 to vector<8x1xi32>
    %396 = arith.cmpi sge, %391, %395 : vector<8x1xi32>
    %c9_i32_196 = arith.constant 9 : i32
    %397 = vector.broadcast %c9_i32_196 : i32 to vector<8x1xi32>
    %398 = arith.cmpi slt, %391, %397 : vector<8x1xi32>
    %399 = arith.andi %396, %398 : vector<8x1xi1>
    %cst_197 = arith.constant 0.000000e+00 : f32
    %400 = vector.shape_cast %399 : vector<8x1xi1> to vector<8x1xi1>
    %401 = vector.broadcast %400 : vector<8x1xi1> to vector<8x32xi1>
    %402 = vector.broadcast %cst_197 : f32 to vector<8x32xf32>
    %403 = arith.select %401, %394, %402 : vector<8x32xi1>, vector<8x32xf32>
    %cst_198 = arith.constant dense<0.000000e+00> : vector<8x32xf32>
    %404 = tpu.matmul %403, %393, %cst_198 {dimension_numbers = #tpu.dot_dimension_numbers<[1], [0], [0], [1], [0, 0, 1, 1], [], []>} : vector<8x32xf32>, vector<32x32xf32>, vector<8x32xf32> -> vector<8x32xf32>
    %c0_199 = arith.constant 0 : index
    %c1_200 = arith.constant 1 : index
    %c0_201 = arith.constant 0 : index
    %c0_202 = arith.constant 0 : index
    %405 = vector.load %arg11[%c0_199, %c1_200, %c0_201, %c0_202] : memref<2x3x32x32xf32, #tpu.memory_space<vmem>>, vector<1x1x32x32xf32>
    %406 = vector.shape_cast %405 : vector<1x1x32x32xf32> to vector<32x32xf32>
    %cst_203 = arith.constant dense<0.000000e+00> : vector<8x32xf32>
    %407 = tpu.matmul %386, %406, %cst_203 {dimension_numbers = #tpu.dot_dimension_numbers<[1], [0], [0], [1], [0, 0, 1, 1], [], []>} : vector<8x32xf32>, vector<32x32xf32>, vector<8x32xf32> -> vector<8x32xf32>
    %408 = arith.addf %404, %407 : vector<8x32xf32>
    %c0_204 = arith.constant 0 : index
    %c2_205 = arith.constant 2 : index
    %c0_206 = arith.constant 0 : index
    %c0_207 = arith.constant 0 : index
    %409 = vector.load %arg11[%c0_204, %c2_205, %c0_206, %c0_207] : memref<2x3x32x32xf32, #tpu.memory_space<vmem>>, vector<1x1x32x32xf32>
    %410 = vector.shape_cast %409 : vector<1x1x32x32xf32> to vector<32x32xf32>
    %c7_i32_208 = arith.constant 7 : i32
    %411 = tpu.dynamic_rotate %386 by %c7_i32_208 dim 0 : vector<8x32xf32>, i32 -> vector<8x32xf32>
    %c-1_i32_209 = arith.constant -1 : i32
    %412 = vector.broadcast %c-1_i32_209 : i32 to vector<8x1xi32>
    %413 = arith.cmpi sge, %391, %412 : vector<8x1xi32>
    %c7_i32_210 = arith.constant 7 : i32
    %414 = vector.broadcast %c7_i32_210 : i32 to vector<8x1xi32>
    %415 = arith.cmpi slt, %391, %414 : vector<8x1xi32>
    %416 = arith.andi %413, %415 : vector<8x1xi1>
    %cst_211 = arith.constant 0.000000e+00 : f32
    %417 = vector.shape_cast %416 : vector<8x1xi1> to vector<8x1xi1>
    %418 = vector.broadcast %417 : vector<8x1xi1> to vector<8x32xi1>
    %419 = vector.broadcast %cst_211 : f32 to vector<8x32xf32>
    %420 = arith.select %418, %411, %419 : vector<8x32xi1>, vector<8x32xf32>
    %cst_212 = arith.constant dense<0.000000e+00> : vector<8x32xf32>
    %421 = tpu.matmul %420, %410, %cst_212 {dimension_numbers = #tpu.dot_dimension_numbers<[1], [0], [0], [1], [0, 0, 1, 1], [], []>} : vector<8x32xf32>, vector<32x32xf32>, vector<8x32xf32> -> vector<8x32xf32>
    %422 = arith.addf %408, %421 : vector<8x32xf32>
    %423 = vector.broadcast %390 : vector<1x32xf32> to vector<8x32xf32>
    %424 = arith.addf %422, %423 : vector<8x32xf32>
    %cst_213 = arith.constant 0.000000e+00 : f32
    %425 = vector.broadcast %cst_213 : f32 to vector<8x32xf32>
    %426 = arith.maximumf %424, %425 : vector<8x32xf32>
    %c1_214 = arith.constant 1 : index
    %c0_215 = arith.constant 0 : index
    %427 = vector.load %arg12[%c1_214, %c0_215] : memref<8x32xf32, #tpu.memory_space<vmem>>, vector<1x32xf32>
    %c2_216 = arith.constant 2 : index
    %c0_217 = arith.constant 0 : index
    %428 = vector.load %arg12[%c2_216, %c0_217] : memref<8x32xf32, #tpu.memory_space<vmem>>, vector<1x32xf32>
    %cst_218 = arith.constant dense<0.000000e+00> : vector<8xf32>
    %429 = vector.multi_reduction <add>, %426, %cst_218 [1] : vector<8x32xf32> to vector<8xf32>
    %430 = vector.shape_cast %429 : vector<8xf32> to vector<8x1xf32>
    %cst_219 = arith.constant 3.200000e+01 : f32
    %431 = vector.broadcast %cst_219 : f32 to vector<8x1xf32>
    %432 = arith.divf %430, %431 : vector<8x1xf32>
    %433 = vector.broadcast %432 : vector<8x1xf32> to vector<8x32xf32>
    %434 = arith.subf %426, %433 : vector<8x32xf32>
    %435 = arith.mulf %434, %434 : vector<8x32xf32>
    %cst_220 = arith.constant dense<0.000000e+00> : vector<8xf32>
    %436 = vector.multi_reduction <add>, %435, %cst_220 [1] : vector<8x32xf32> to vector<8xf32>
    %437 = vector.shape_cast %436 : vector<8xf32> to vector<8x1xf32>
    %cst_221 = arith.constant 3.200000e+01 : f32
    %438 = vector.broadcast %cst_221 : f32 to vector<8x1xf32>
    %439 = arith.divf %437, %438 : vector<8x1xf32>
    %cst_222 = arith.constant 9.99999974E-6 : f32
    %440 = vector.broadcast %cst_222 : f32 to vector<8x1xf32>
    %441 = arith.addf %439, %440 : vector<8x1xf32>
    %442 = math.rsqrt %441 : vector<8x1xf32>
    %443 = vector.broadcast %442 : vector<8x1xf32> to vector<8x32xf32>
    %444 = arith.mulf %434, %443 : vector<8x32xf32>
    %445 = vector.broadcast %427 : vector<1x32xf32> to vector<8x32xf32>
    %446 = arith.mulf %444, %445 : vector<8x32xf32>
    %447 = vector.broadcast %428 : vector<1x32xf32> to vector<8x32xf32>
    %448 = arith.addf %446, %447 : vector<8x32xf32>
    %c3_223 = arith.constant 3 : index
    %c0_224 = arith.constant 0 : index
    %449 = vector.load %arg12[%c3_223, %c0_224] : memref<8x32xf32, #tpu.memory_space<vmem>>, vector<1x32xf32>
    %450 = tpu.iota {dimensions = array<i32: 0>} : vector<8x1xi32>
    %c1_225 = arith.constant 1 : index
    %c0_226 = arith.constant 0 : index
    %c0_227 = arith.constant 0 : index
    %c0_228 = arith.constant 0 : index
    %451 = vector.load %arg11[%c1_225, %c0_226, %c0_227, %c0_228] : memref<2x3x32x32xf32, #tpu.memory_space<vmem>>, vector<1x1x32x32xf32>
    %452 = vector.shape_cast %451 : vector<1x1x32x32xf32> to vector<32x32xf32>
    %c1_i32_229 = arith.constant 1 : i32
    %453 = tpu.dynamic_rotate %448 by %c1_i32_229 dim 0 : vector<8x32xf32>, i32 -> vector<8x32xf32>
    %c1_i32_230 = arith.constant 1 : i32
    %454 = vector.broadcast %c1_i32_230 : i32 to vector<8x1xi32>
    %455 = arith.cmpi sge, %450, %454 : vector<8x1xi32>
    %c9_i32_231 = arith.constant 9 : i32
    %456 = vector.broadcast %c9_i32_231 : i32 to vector<8x1xi32>
    %457 = arith.cmpi slt, %450, %456 : vector<8x1xi32>
    %458 = arith.andi %455, %457 : vector<8x1xi1>
    %cst_232 = arith.constant 0.000000e+00 : f32
    %459 = vector.shape_cast %458 : vector<8x1xi1> to vector<8x1xi1>
    %460 = vector.broadcast %459 : vector<8x1xi1> to vector<8x32xi1>
    %461 = vector.broadcast %cst_232 : f32 to vector<8x32xf32>
    %462 = arith.select %460, %453, %461 : vector<8x32xi1>, vector<8x32xf32>
    %cst_233 = arith.constant dense<0.000000e+00> : vector<8x32xf32>
    %463 = tpu.matmul %462, %452, %cst_233 {dimension_numbers = #tpu.dot_dimension_numbers<[1], [0], [0], [1], [0, 0, 1, 1], [], []>} : vector<8x32xf32>, vector<32x32xf32>, vector<8x32xf32> -> vector<8x32xf32>
    %c1_234 = arith.constant 1 : index
    %c1_235 = arith.constant 1 : index
    %c0_236 = arith.constant 0 : index
    %c0_237 = arith.constant 0 : index
    %464 = vector.load %arg11[%c1_234, %c1_235, %c0_236, %c0_237] : memref<2x3x32x32xf32, #tpu.memory_space<vmem>>, vector<1x1x32x32xf32>
    %465 = vector.shape_cast %464 : vector<1x1x32x32xf32> to vector<32x32xf32>
    %cst_238 = arith.constant dense<0.000000e+00> : vector<8x32xf32>
    %466 = tpu.matmul %448, %465, %cst_238 {dimension_numbers = #tpu.dot_dimension_numbers<[1], [0], [0], [1], [0, 0, 1, 1], [], []>} : vector<8x32xf32>, vector<32x32xf32>, vector<8x32xf32> -> vector<8x32xf32>
    %467 = arith.addf %463, %466 : vector<8x32xf32>
    %c1_239 = arith.constant 1 : index
    %c2_240 = arith.constant 2 : index
    %c0_241 = arith.constant 0 : index
    %c0_242 = arith.constant 0 : index
    %468 = vector.load %arg11[%c1_239, %c2_240, %c0_241, %c0_242] : memref<2x3x32x32xf32, #tpu.memory_space<vmem>>, vector<1x1x32x32xf32>
    %469 = vector.shape_cast %468 : vector<1x1x32x32xf32> to vector<32x32xf32>
    %c7_i32_243 = arith.constant 7 : i32
    %470 = tpu.dynamic_rotate %448 by %c7_i32_243 dim 0 : vector<8x32xf32>, i32 -> vector<8x32xf32>
    %c-1_i32_244 = arith.constant -1 : i32
    %471 = vector.broadcast %c-1_i32_244 : i32 to vector<8x1xi32>
    %472 = arith.cmpi sge, %450, %471 : vector<8x1xi32>
    %c7_i32_245 = arith.constant 7 : i32
    %473 = vector.broadcast %c7_i32_245 : i32 to vector<8x1xi32>
    %474 = arith.cmpi slt, %450, %473 : vector<8x1xi32>
    %475 = arith.andi %472, %474 : vector<8x1xi1>
    %cst_246 = arith.constant 0.000000e+00 : f32
    %476 = vector.shape_cast %475 : vector<8x1xi1> to vector<8x1xi1>
    %477 = vector.broadcast %476 : vector<8x1xi1> to vector<8x32xi1>
    %478 = vector.broadcast %cst_246 : f32 to vector<8x32xf32>
    %479 = arith.select %477, %470, %478 : vector<8x32xi1>, vector<8x32xf32>
    %cst_247 = arith.constant dense<0.000000e+00> : vector<8x32xf32>
    %480 = tpu.matmul %479, %469, %cst_247 {dimension_numbers = #tpu.dot_dimension_numbers<[1], [0], [0], [1], [0, 0, 1, 1], [], []>} : vector<8x32xf32>, vector<32x32xf32>, vector<8x32xf32> -> vector<8x32xf32>
    %481 = arith.addf %467, %480 : vector<8x32xf32>
    %482 = vector.broadcast %449 : vector<1x32xf32> to vector<8x32xf32>
    %483 = arith.addf %481, %482 : vector<8x32xf32>
    %cst_248 = arith.constant 0.000000e+00 : f32
    %484 = vector.broadcast %cst_248 : f32 to vector<8x32xf32>
    %485 = arith.maximumf %483, %484 : vector<8x32xf32>
    %c4_249 = arith.constant 4 : index
    %c0_250 = arith.constant 0 : index
    %486 = vector.load %arg12[%c4_249, %c0_250] : memref<8x32xf32, #tpu.memory_space<vmem>>, vector<1x32xf32>
    %c5_251 = arith.constant 5 : index
    %c0_252 = arith.constant 0 : index
    %487 = vector.load %arg12[%c5_251, %c0_252] : memref<8x32xf32, #tpu.memory_space<vmem>>, vector<1x32xf32>
    %cst_253 = arith.constant dense<0.000000e+00> : vector<8xf32>
    %488 = vector.multi_reduction <add>, %485, %cst_253 [1] : vector<8x32xf32> to vector<8xf32>
    %489 = vector.shape_cast %488 : vector<8xf32> to vector<8x1xf32>
    %cst_254 = arith.constant 3.200000e+01 : f32
    %490 = vector.broadcast %cst_254 : f32 to vector<8x1xf32>
    %491 = arith.divf %489, %490 : vector<8x1xf32>
    %492 = vector.broadcast %491 : vector<8x1xf32> to vector<8x32xf32>
    %493 = arith.subf %485, %492 : vector<8x32xf32>
    %494 = arith.mulf %493, %493 : vector<8x32xf32>
    %cst_255 = arith.constant dense<0.000000e+00> : vector<8xf32>
    %495 = vector.multi_reduction <add>, %494, %cst_255 [1] : vector<8x32xf32> to vector<8xf32>
    %496 = vector.shape_cast %495 : vector<8xf32> to vector<8x1xf32>
    %cst_256 = arith.constant 3.200000e+01 : f32
    %497 = vector.broadcast %cst_256 : f32 to vector<8x1xf32>
    %498 = arith.divf %496, %497 : vector<8x1xf32>
    %cst_257 = arith.constant 9.99999974E-6 : f32
    %499 = vector.broadcast %cst_257 : f32 to vector<8x1xf32>
    %500 = arith.addf %498, %499 : vector<8x1xf32>
    %501 = math.rsqrt %500 : vector<8x1xf32>
    %502 = vector.broadcast %501 : vector<8x1xf32> to vector<8x32xf32>
    %503 = arith.mulf %493, %502 : vector<8x32xf32>
    %504 = vector.broadcast %486 : vector<1x32xf32> to vector<8x32xf32>
    %505 = arith.mulf %503, %504 : vector<8x32xf32>
    %506 = vector.broadcast %487 : vector<1x32xf32> to vector<8x32xf32>
    %507 = arith.addf %505, %506 : vector<8x32xf32>
    %c6 = arith.constant 6 : index
    %c0_258 = arith.constant 0 : index
    %508 = vector.load %arg12[%c6, %c0_258] : memref<8x32xf32, #tpu.memory_space<vmem>>, vector<1x32xf32>
    %cst_259 = arith.constant dense<0.000000e+00> : vector<1x8xf32>
    %509 = tpu.matmul %508, %507, %cst_259 {dimension_numbers = #tpu.dot_dimension_numbers<[1], [1], [0], [0], [0, 0, 1, 0], [], []>} : vector<1x32xf32>, vector<8x32xf32>, vector<1x8xf32> -> vector<1x8xf32>
    %c7 = arith.constant 7 : index
    %c0_260 = arith.constant 0 : index
    %510 = vector.load %arg12[%c7, %c0_260] : memref<8x32xf32, #tpu.memory_space<vmem>>, vector<1x1xf32>
    %511 = vector.broadcast %510 : vector<1x1xf32> to vector<1x8xf32>
    %512 = arith.addf %509, %511 : vector<1x8xf32>
    %cst_261 = arith.constant 0.000000e+00 : f32
    %513 = vector.broadcast %cst_261 : f32 to vector<1x8xf32>
    %514 = arith.maximumf %512, %513 : vector<1x8xf32>
    %c0_262 = arith.constant 0 : index
    %c0_263 = arith.constant 0 : index
    %c0_264 = arith.constant 0 : index
    %515 = vector.load %arg14[%c0_262, %c0_263, %c0_264] : memref<1x1x8xf32, #tpu.memory_space<vmem>>, vector<1x1x8xf32>
    %516 = vector.shape_cast %515 : vector<1x1x8xf32> to vector<1x8xf32>
    %517 = vector.shape_cast %514 : vector<1x8xf32> to vector<1x1x8xf32>
    tpu.vector_store %arg14[%c0_262, %c0_263, %c0_264], %517 {strides = array<i32>} : memref<1x1x8xf32, #tpu.memory_space<vmem>>, vector<1x1x8xf32>,
    return
  }
  func.func @transform_0(%arg0: i32) -> (i32, i32, i32) {
    %c0_i32 = arith.constant 0 : i32
    %c0_i32_0 = arith.constant 0 : i32
    %c0_i32_1 = arith.constant 0 : i32
    return %arg0, %c0_i32, %c0_i32_0 : i32, i32, i32
  }
  func.func @transform_1(%arg0: i32) -> (i32, i32) {
    %c0_i32 = arith.constant 0 : i32
    %c0_i32_0 = arith.constant 0 : i32
    %c0_i32_1 = arith.constant 0 : i32
    return %c0_i32, %c0_i32_0 : i32, i32
  }
  func.func @transform_2(%arg0: i32) -> (i32, i32) {
    %c0_i32 = arith.constant 0 : i32
    %c0_i32_0 = arith.constant 0 : i32
    %c0_i32_1 = arith.constant 0 : i32
    return %c0_i32, %c0_i32_0 : i32, i32
  }
  func.func @transform_3(%arg0: i32) -> (i32, i32, i32) {
    %c0_i32 = arith.constant 0 : i32
    %c0_i32_0 = arith.constant 0 : i32
    %c0_i32_1 = arith.constant 0 : i32
    %c0_i32_2 = arith.constant 0 : i32
    return %c0_i32, %c0_i32_0, %c0_i32_1 : i32, i32, i32
  }
  func.func @transform_4(%arg0: i32) -> (i32, i32, i32) {
    %c0_i32 = arith.constant 0 : i32
    %c0_i32_0 = arith.constant 0 : i32
    %c0_i32_1 = arith.constant 0 : i32
    %c0_i32_2 = arith.constant 0 : i32
    return %c0_i32, %c0_i32_0, %c0_i32_1 : i32, i32, i32
  }
  func.func @transform_5(%arg0: i32) -> (i32, i32, i32, i32) {
    %c0_i32 = arith.constant 0 : i32
    %c0_i32_0 = arith.constant 0 : i32
    %c0_i32_1 = arith.constant 0 : i32
    %c0_i32_2 = arith.constant 0 : i32
    %c0_i32_3 = arith.constant 0 : i32
    return %c0_i32, %c0_i32_0, %c0_i32_1, %c0_i32_2 : i32, i32, i32, i32
  }
  func.func @transform_6(%arg0: i32) -> (i32, i32, i32, i32) {
    %c0_i32 = arith.constant 0 : i32
    %c0_i32_0 = arith.constant 0 : i32
    %c0_i32_1 = arith.constant 0 : i32
    %c0_i32_2 = arith.constant 0 : i32
    %c0_i32_3 = arith.constant 0 : i32
    return %c0_i32, %c0_i32_0, %c0_i32_1, %c0_i32_2 : i32, i32, i32, i32
  }
  func.func @transform_7(%arg0: i32) -> (i32, i32, i32) {
    %c0_i32 = arith.constant 0 : i32
    %c0_i32_0 = arith.constant 0 : i32
    %c0_i32_1 = arith.constant 0 : i32
    %c0_i32_2 = arith.constant 0 : i32
    return %c0_i32, %c0_i32_0, %c0_i32_1 : i32, i32, i32
  }
  func.func @transform_8(%arg0: i32) -> (i32, i32, i32) {
    %c0_i32 = arith.constant 0 : i32
    %c0_i32_0 = arith.constant 0 : i32
    %c0_i32_1 = arith.constant 0 : i32
    %c0_i32_2 = arith.constant 0 : i32
    return %c0_i32, %c0_i32_0, %c0_i32_1 : i32, i32, i32
  }
  func.func @transform_9(%arg0: i32) -> (i32, i32, i32) {
    %c0_i32 = arith.constant 0 : i32
    %c0_i32_0 = arith.constant 0 : i32
    %c0_i32_1 = arith.constant 0 : i32
    %c0_i32_2 = arith.constant 0 : i32
    return %c0_i32, %c0_i32_0, %c0_i32_1 : i32, i32, i32
  }
  func.func @transform_10(%arg0: i32) -> (i32, i32, i32, i32) {
    %c0_i32 = arith.constant 0 : i32
    %c0_i32_0 = arith.constant 0 : i32
    %c0_i32_1 = arith.constant 0 : i32
    %c0_i32_2 = arith.constant 0 : i32
    %c0_i32_3 = arith.constant 0 : i32
    return %c0_i32, %c0_i32_0, %c0_i32_1, %c0_i32_2 : i32, i32, i32, i32
  }
  func.func @transform_11(%arg0: i32) -> (i32, i32) {
    %c0_i32 = arith.constant 0 : i32
    %c0_i32_0 = arith.constant 0 : i32
    %c0_i32_1 = arith.constant 0 : i32
    return %c0_i32, %c0_i32_0 : i32, i32
  }
  func.func @transform_12(%arg0: i32) -> (i32, i32, i32) {
    %c0_i32 = arith.constant 0 : i32
    %c0_i32_0 = arith.constant 0 : i32
    %c0_i32_1 = arith.constant 0 : i32
    return %arg0, %c0_i32, %c0_i32_0 : i32, i32, i32
  }
  func.func @transform_13(%arg0: i32) -> (i32, i32, i32) {
    %c0_i32 = arith.constant 0 : i32
    %c0_i32_0 = arith.constant 0 : i32
    %c0_i32_1 = arith.constant 0 : i32
    return %arg0, %c0_i32, %c0_i32_0 : i32, i32, i32
  }
}

module attributes {stable_mosaic.version = 11 : i64} {
  func.func @_adaptor_decoder_kernel(%arg0: i32, %arg1: memref<1x8x32xf32, #tpu.memory_space<vmem>>, %arg2: memref<1x1x8xi32, #tpu.memory_space<vmem>>, %arg3: memref<1x1x8xi32, #tpu.memory_space<vmem>>, %arg4: memref<1x16x1xi32, #tpu.memory_space<vmem>>, %arg5: memref<1x16x1xi32, #tpu.memory_space<vmem>>, %arg6: memref<32x32xf32, #tpu.memory_space<vmem>>, %arg7: memref<32x32xf32, #tpu.memory_space<vmem>>, %arg8: memref<16x32xf32, #tpu.memory_space<vmem>>, %arg9: memref<2x32x96xf32, #tpu.memory_space<vmem>>, %arg10: memref<2x32x32xf32, #tpu.memory_space<vmem>>, %arg11: memref<2x3x32x64xf32, #tpu.memory_space<vmem>>, %arg12: memref<2x3x64x32xf32, #tpu.memory_space<vmem>>, %arg13: memref<2x1x96xf32, #tpu.memory_space<vmem>>, %arg14: memref<2x1x64xf32, #tpu.memory_space<vmem>>, %arg15: memref<2x6x32xf32, #tpu.memory_space<vmem>>, %arg16: memref<4x3x32x32xf32, #tpu.memory_space<vmem>>, %arg17: memref<16x32xf32, #tpu.memory_space<vmem>>, %arg18: memref<32x16xf32, #tpu.memory_space<vmem>>, %arg19: memref<1x16xf32, #tpu.memory_space<vmem>>, %arg20: memref<1x16x16xf32, #tpu.memory_space<vmem>>, %arg21: memref<1x1x16xf32, #tpu.memory_space<vmem>>, %arg22: memref<1x1x16xf32, #tpu.memory_space<vmem>>) attributes {dimension_semantics = [#tpu.dimension_semantics<parallel>], iteration_bounds = array<i64: 2>, scalar_prefetch = 0 : i64, scratch_operands = 0 : i64, tpu.core_type = #tpu.core_type<tc>, window_params = [{transform_indices = @transform_0, window_bounds = array<i64: 1, 8, 32>}, {transform_indices = @transform_1, window_bounds = array<i64: 1, 1, 8>}, {transform_indices = @transform_2, window_bounds = array<i64: 1, 1, 8>}, {transform_indices = @transform_3, window_bounds = array<i64: 1, 16, 1>}, {transform_indices = @transform_4, window_bounds = array<i64: 1, 16, 1>}, {pipeline_mode = #tpu.pipeline_mode<synchronous>, transform_indices = @transform_5, window_bounds = array<i64: 32, 32>}, {pipeline_mode = #tpu.pipeline_mode<synchronous>, transform_indices = @transform_6, window_bounds = array<i64: 32, 32>}, {pipeline_mode = #tpu.pipeline_mode<synchronous>, transform_indices = @transform_7, window_bounds = array<i64: 16, 32>}, {pipeline_mode = #tpu.pipeline_mode<synchronous>, transform_indices = @transform_8, window_bounds = array<i64: 2, 32, 96>}, {pipeline_mode = #tpu.pipeline_mode<synchronous>, transform_indices = @transform_9, window_bounds = array<i64: 2, 32, 32>}, {pipeline_mode = #tpu.pipeline_mode<synchronous>, transform_indices = @transform_10, window_bounds = array<i64: 2, 3, 32, 64>}, {pipeline_mode = #tpu.pipeline_mode<synchronous>, transform_indices = @transform_11, window_bounds = array<i64: 2, 3, 64, 32>}, {pipeline_mode = #tpu.pipeline_mode<synchronous>, transform_indices = @transform_12, window_bounds = array<i64: 2, 1, 96>}, {pipeline_mode = #tpu.pipeline_mode<synchronous>, transform_indices = @transform_13, window_bounds = array<i64: 2, 1, 64>}, {pipeline_mode = #tpu.pipeline_mode<synchronous>, transform_indices = @transform_14, window_bounds = array<i64: 2, 6, 32>}, {pipeline_mode = #tpu.pipeline_mode<synchronous>, transform_indices = @transform_15, window_bounds = array<i64: 4, 3, 32, 32>}, {pipeline_mode = #tpu.pipeline_mode<synchronous>, transform_indices = @transform_16, window_bounds = array<i64: 16, 32>}, {pipeline_mode = #tpu.pipeline_mode<synchronous>, transform_indices = @transform_17, window_bounds = array<i64: 32, 16>}, {pipeline_mode = #tpu.pipeline_mode<synchronous>, transform_indices = @transform_18, window_bounds = array<i64: 1, 16>}, {transform_indices = @transform_19, window_bounds = array<i64: 1, 16, 16>}, {transform_indices = @transform_20, window_bounds = array<i64: 1, 1, 16>}, {transform_indices = @transform_21, window_bounds = array<i64: 1, 1, 16>}]} {
    %c0 = arith.constant 0 : index
    %c0_0 = arith.constant 0 : index
    %c0_1 = arith.constant 0 : index
    %0 = vector.load %arg1[%c0, %c0_0, %c0_1] : memref<1x8x32xf32, #tpu.memory_space<vmem>>, vector<1x8x32xf32>
    %1 = vector.shape_cast %0 : vector<1x8x32xf32> to vector<8x32xf32>
    %c0_2 = arith.constant 0 : index
    %c0_3 = arith.constant 0 : index
    %c0_4 = arith.constant 0 : index
    %2 = vector.load %arg2[%c0_2, %c0_3, %c0_4] : memref<1x1x8xi32, #tpu.memory_space<vmem>>, vector<1x1x8xi32>
    %3 = vector.shape_cast %2 : vector<1x1x8xi32> to vector<1x8xi32>
    %c0_5 = arith.constant 0 : index
    %c0_6 = arith.constant 0 : index
    %c0_7 = arith.constant 0 : index
    %4 = vector.load %arg3[%c0_5, %c0_6, %c0_7] : memref<1x1x8xi32, #tpu.memory_space<vmem>>, vector<1x1x8xi32>
    %5 = vector.shape_cast %4 : vector<1x1x8xi32> to vector<1x8xi32>
    %6 = tpu.iota {dimensions = array<i32: 0>} : vector<16x8xi32>
    %7 = vector.broadcast %3 : vector<1x8xi32> to vector<16x8xi32>
    %8 = arith.cmpi sge, %6, %7 : vector<16x8xi32>
    %9 = vector.broadcast %5 : vector<1x8xi32> to vector<16x8xi32>
    %10 = arith.cmpi slt, %6, %9 : vector<16x8xi32>
    %11 = arith.andi %8, %10 : vector<16x8xi1>
    %cst = arith.constant 1.000000e+00 : f32
    %cst_8 = arith.constant 0.000000e+00 : f32
    %12 = vector.broadcast %cst : f32 to vector<16x8xf32>
    %13 = vector.broadcast %cst_8 : f32 to vector<16x8xf32>
    %14 = arith.select %11, %12, %13 : vector<16x8xi1>, vector<16x8xf32>
    %cst_9 = arith.constant dense<0.000000e+00> : vector<16x32xf32>
    %15 = tpu.matmul %14, %1, %cst_9 {dimension_numbers = #tpu.dot_dimension_numbers<[1], [0], [0], [1], [0, 0, 1, 1], [], []>} : vector<16x8xf32>, vector<8x32xf32>, vector<16x32xf32> -> vector<16x32xf32>
    %c0_10 = arith.constant 0 : index
    %c0_11 = arith.constant 0 : index
    %16 = vector.load %arg17[%c0_10, %c0_11] : memref<16x32xf32, #tpu.memory_space<vmem>>, vector<1x32xf32>
    %17 = tpu.iota {dimensions = array<i32: 0>} : vector<16x1xi32>
    %c0_12 = arith.constant 0 : index
    %c0_13 = arith.constant 0 : index
    %c0_14 = arith.constant 0 : index
    %c0_15 = arith.constant 0 : index
    %18 = vector.load %arg16[%c0_12, %c0_13, %c0_14, %c0_15] : memref<4x3x32x32xf32, #tpu.memory_space<vmem>>, vector<1x1x32x32xf32>
    %19 = vector.shape_cast %18 : vector<1x1x32x32xf32> to vector<32x32xf32>
    %c1_i32 = arith.constant 1 : i32
    %20 = tpu.dynamic_rotate %15 by %c1_i32 dim 0 : vector<16x32xf32>, i32 -> vector<16x32xf32>
    %c1_i32_16 = arith.constant 1 : i32
    %21 = vector.broadcast %c1_i32_16 : i32 to vector<16x1xi32>
    %22 = arith.cmpi sge, %17, %21 : vector<16x1xi32>
    %c17_i32 = arith.constant 17 : i32
    %23 = vector.broadcast %c17_i32 : i32 to vector<16x1xi32>
    %24 = arith.cmpi slt, %17, %23 : vector<16x1xi32>
    %25 = arith.andi %22, %24 : vector<16x1xi1>
    %cst_17 = arith.constant 0.000000e+00 : f32
    %26 = vector.shape_cast %25 : vector<16x1xi1> to vector<16x1xi1>
    %27 = vector.broadcast %26 : vector<16x1xi1> to vector<16x32xi1>
    %28 = vector.broadcast %cst_17 : f32 to vector<16x32xf32>
    %29 = arith.select %27, %20, %28 : vector<16x32xi1>, vector<16x32xf32>
    %cst_18 = arith.constant dense<0.000000e+00> : vector<16x32xf32>
    %30 = tpu.matmul %29, %19, %cst_18 {dimension_numbers = #tpu.dot_dimension_numbers<[1], [0], [0], [1], [0, 0, 1, 1], [], []>} : vector<16x32xf32>, vector<32x32xf32>, vector<16x32xf32> -> vector<16x32xf32>
    %c0_19 = arith.constant 0 : index
    %c1 = arith.constant 1 : index
    %c0_20 = arith.constant 0 : index
    %c0_21 = arith.constant 0 : index
    %31 = vector.load %arg16[%c0_19, %c1, %c0_20, %c0_21] : memref<4x3x32x32xf32, #tpu.memory_space<vmem>>, vector<1x1x32x32xf32>
    %32 = vector.shape_cast %31 : vector<1x1x32x32xf32> to vector<32x32xf32>
    %cst_22 = arith.constant dense<0.000000e+00> : vector<16x32xf32>
    %33 = tpu.matmul %15, %32, %cst_22 {dimension_numbers = #tpu.dot_dimension_numbers<[1], [0], [0], [1], [0, 0, 1, 1], [], []>} : vector<16x32xf32>, vector<32x32xf32>, vector<16x32xf32> -> vector<16x32xf32>
    %34 = arith.addf %30, %33 : vector<16x32xf32>
    %c0_23 = arith.constant 0 : index
    %c2 = arith.constant 2 : index
    %c0_24 = arith.constant 0 : index
    %c0_25 = arith.constant 0 : index
    %35 = vector.load %arg16[%c0_23, %c2, %c0_24, %c0_25] : memref<4x3x32x32xf32, #tpu.memory_space<vmem>>, vector<1x1x32x32xf32>
    %36 = vector.shape_cast %35 : vector<1x1x32x32xf32> to vector<32x32xf32>
    %c15_i32 = arith.constant 15 : i32
    %37 = tpu.dynamic_rotate %15 by %c15_i32 dim 0 : vector<16x32xf32>, i32 -> vector<16x32xf32>
    %c-1_i32 = arith.constant -1 : i32
    %38 = vector.broadcast %c-1_i32 : i32 to vector<16x1xi32>
    %39 = arith.cmpi sge, %17, %38 : vector<16x1xi32>
    %c15_i32_26 = arith.constant 15 : i32
    %40 = vector.broadcast %c15_i32_26 : i32 to vector<16x1xi32>
    %41 = arith.cmpi slt, %17, %40 : vector<16x1xi32>
    %42 = arith.andi %39, %41 : vector<16x1xi1>
    %cst_27 = arith.constant 0.000000e+00 : f32
    %43 = vector.shape_cast %42 : vector<16x1xi1> to vector<16x1xi1>
    %44 = vector.broadcast %43 : vector<16x1xi1> to vector<16x32xi1>
    %45 = vector.broadcast %cst_27 : f32 to vector<16x32xf32>
    %46 = arith.select %44, %37, %45 : vector<16x32xi1>, vector<16x32xf32>
    %cst_28 = arith.constant dense<0.000000e+00> : vector<16x32xf32>
    %47 = tpu.matmul %46, %36, %cst_28 {dimension_numbers = #tpu.dot_dimension_numbers<[1], [0], [0], [1], [0, 0, 1, 1], [], []>} : vector<16x32xf32>, vector<32x32xf32>, vector<16x32xf32> -> vector<16x32xf32>
    %48 = arith.addf %34, %47 : vector<16x32xf32>
    %49 = vector.broadcast %16 : vector<1x32xf32> to vector<16x32xf32>
    %50 = arith.addf %48, %49 : vector<16x32xf32>
    %cst_29 = arith.constant 0.000000e+00 : f32
    %51 = vector.broadcast %cst_29 : f32 to vector<16x32xf32>
    %52 = arith.maximumf %50, %51 : vector<16x32xf32>
    %c1_30 = arith.constant 1 : index
    %c0_31 = arith.constant 0 : index
    %53 = vector.load %arg17[%c1_30, %c0_31] : memref<16x32xf32, #tpu.memory_space<vmem>>, vector<1x32xf32>
    %c2_32 = arith.constant 2 : index
    %c0_33 = arith.constant 0 : index
    %54 = vector.load %arg17[%c2_32, %c0_33] : memref<16x32xf32, #tpu.memory_space<vmem>>, vector<1x32xf32>
    %cst_34 = arith.constant dense<0.000000e+00> : vector<16xf32>
    %55 = vector.multi_reduction <add>, %52, %cst_34 [1] : vector<16x32xf32> to vector<16xf32>
    %56 = vector.shape_cast %55 : vector<16xf32> to vector<16x1xf32>
    %cst_35 = arith.constant 3.200000e+01 : f32
    %57 = vector.broadcast %cst_35 : f32 to vector<16x1xf32>
    %58 = arith.divf %56, %57 : vector<16x1xf32>
    %59 = vector.broadcast %58 : vector<16x1xf32> to vector<16x32xf32>
    %60 = arith.subf %52, %59 : vector<16x32xf32>
    %61 = arith.mulf %60, %60 : vector<16x32xf32>
    %cst_36 = arith.constant dense<0.000000e+00> : vector<16xf32>
    %62 = vector.multi_reduction <add>, %61, %cst_36 [1] : vector<16x32xf32> to vector<16xf32>
    %63 = vector.shape_cast %62 : vector<16xf32> to vector<16x1xf32>
    %cst_37 = arith.constant 3.200000e+01 : f32
    %64 = vector.broadcast %cst_37 : f32 to vector<16x1xf32>
    %65 = arith.divf %63, %64 : vector<16x1xf32>
    %cst_38 = arith.constant 9.99999974E-6 : f32
    %66 = vector.broadcast %cst_38 : f32 to vector<16x1xf32>
    %67 = arith.addf %65, %66 : vector<16x1xf32>
    %68 = math.rsqrt %67 : vector<16x1xf32>
    %69 = vector.broadcast %68 : vector<16x1xf32> to vector<16x32xf32>
    %70 = arith.mulf %60, %69 : vector<16x32xf32>
    %71 = vector.broadcast %53 : vector<1x32xf32> to vector<16x32xf32>
    %72 = arith.mulf %70, %71 : vector<16x32xf32>
    %73 = vector.broadcast %54 : vector<1x32xf32> to vector<16x32xf32>
    %74 = arith.addf %72, %73 : vector<16x32xf32>
    %c3 = arith.constant 3 : index
    %c0_39 = arith.constant 0 : index
    %75 = vector.load %arg17[%c3, %c0_39] : memref<16x32xf32, #tpu.memory_space<vmem>>, vector<1x32xf32>
    %76 = tpu.iota {dimensions = array<i32: 0>} : vector<16x1xi32>
    %c1_40 = arith.constant 1 : index
    %c0_41 = arith.constant 0 : index
    %c0_42 = arith.constant 0 : index
    %c0_43 = arith.constant 0 : index
    %77 = vector.load %arg16[%c1_40, %c0_41, %c0_42, %c0_43] : memref<4x3x32x32xf32, #tpu.memory_space<vmem>>, vector<1x1x32x32xf32>
    %78 = vector.shape_cast %77 : vector<1x1x32x32xf32> to vector<32x32xf32>
    %c1_i32_44 = arith.constant 1 : i32
    %79 = tpu.dynamic_rotate %74 by %c1_i32_44 dim 0 : vector<16x32xf32>, i32 -> vector<16x32xf32>
    %c1_i32_45 = arith.constant 1 : i32
    %80 = vector.broadcast %c1_i32_45 : i32 to vector<16x1xi32>
    %81 = arith.cmpi sge, %76, %80 : vector<16x1xi32>
    %c17_i32_46 = arith.constant 17 : i32
    %82 = vector.broadcast %c17_i32_46 : i32 to vector<16x1xi32>
    %83 = arith.cmpi slt, %76, %82 : vector<16x1xi32>
    %84 = arith.andi %81, %83 : vector<16x1xi1>
    %cst_47 = arith.constant 0.000000e+00 : f32
    %85 = vector.shape_cast %84 : vector<16x1xi1> to vector<16x1xi1>
    %86 = vector.broadcast %85 : vector<16x1xi1> to vector<16x32xi1>
    %87 = vector.broadcast %cst_47 : f32 to vector<16x32xf32>
    %88 = arith.select %86, %79, %87 : vector<16x32xi1>, vector<16x32xf32>
    %cst_48 = arith.constant dense<0.000000e+00> : vector<16x32xf32>
    %89 = tpu.matmul %88, %78, %cst_48 {dimension_numbers = #tpu.dot_dimension_numbers<[1], [0], [0], [1], [0, 0, 1, 1], [], []>} : vector<16x32xf32>, vector<32x32xf32>, vector<16x32xf32> -> vector<16x32xf32>
    %c1_49 = arith.constant 1 : index
    %c1_50 = arith.constant 1 : index
    %c0_51 = arith.constant 0 : index
    %c0_52 = arith.constant 0 : index
    %90 = vector.load %arg16[%c1_49, %c1_50, %c0_51, %c0_52] : memref<4x3x32x32xf32, #tpu.memory_space<vmem>>, vector<1x1x32x32xf32>
    %91 = vector.shape_cast %90 : vector<1x1x32x32xf32> to vector<32x32xf32>
    %cst_53 = arith.constant dense<0.000000e+00> : vector<16x32xf32>
    %92 = tpu.matmul %74, %91, %cst_53 {dimension_numbers = #tpu.dot_dimension_numbers<[1], [0], [0], [1], [0, 0, 1, 1], [], []>} : vector<16x32xf32>, vector<32x32xf32>, vector<16x32xf32> -> vector<16x32xf32>
    %93 = arith.addf %89, %92 : vector<16x32xf32>
    %c1_54 = arith.constant 1 : index
    %c2_55 = arith.constant 2 : index
    %c0_56 = arith.constant 0 : index
    %c0_57 = arith.constant 0 : index
    %94 = vector.load %arg16[%c1_54, %c2_55, %c0_56, %c0_57] : memref<4x3x32x32xf32, #tpu.memory_space<vmem>>, vector<1x1x32x32xf32>
    %95 = vector.shape_cast %94 : vector<1x1x32x32xf32> to vector<32x32xf32>
    %c15_i32_58 = arith.constant 15 : i32
    %96 = tpu.dynamic_rotate %74 by %c15_i32_58 dim 0 : vector<16x32xf32>, i32 -> vector<16x32xf32>
    %c-1_i32_59 = arith.constant -1 : i32
    %97 = vector.broadcast %c-1_i32_59 : i32 to vector<16x1xi32>
    %98 = arith.cmpi sge, %76, %97 : vector<16x1xi32>
    %c15_i32_60 = arith.constant 15 : i32
    %99 = vector.broadcast %c15_i32_60 : i32 to vector<16x1xi32>
    %100 = arith.cmpi slt, %76, %99 : vector<16x1xi32>
    %101 = arith.andi %98, %100 : vector<16x1xi1>
    %cst_61 = arith.constant 0.000000e+00 : f32
    %102 = vector.shape_cast %101 : vector<16x1xi1> to vector<16x1xi1>
    %103 = vector.broadcast %102 : vector<16x1xi1> to vector<16x32xi1>
    %104 = vector.broadcast %cst_61 : f32 to vector<16x32xf32>
    %105 = arith.select %103, %96, %104 : vector<16x32xi1>, vector<16x32xf32>
    %cst_62 = arith.constant dense<0.000000e+00> : vector<16x32xf32>
    %106 = tpu.matmul %105, %95, %cst_62 {dimension_numbers = #tpu.dot_dimension_numbers<[1], [0], [0], [1], [0, 0, 1, 1], [], []>} : vector<16x32xf32>, vector<32x32xf32>, vector<16x32xf32> -> vector<16x32xf32>
    %107 = arith.addf %93, %106 : vector<16x32xf32>
    %108 = vector.broadcast %75 : vector<1x32xf32> to vector<16x32xf32>
    %109 = arith.addf %107, %108 : vector<16x32xf32>
    %cst_63 = arith.constant 0.000000e+00 : f32
    %110 = vector.broadcast %cst_63 : f32 to vector<16x32xf32>
    %111 = arith.maximumf %109, %110 : vector<16x32xf32>
    %c4 = arith.constant 4 : index
    %c0_64 = arith.constant 0 : index
    %112 = vector.load %arg17[%c4, %c0_64] : memref<16x32xf32, #tpu.memory_space<vmem>>, vector<1x32xf32>
    %c5 = arith.constant 5 : index
    %c0_65 = arith.constant 0 : index
    %113 = vector.load %arg17[%c5, %c0_65] : memref<16x32xf32, #tpu.memory_space<vmem>>, vector<1x32xf32>
    %cst_66 = arith.constant dense<0.000000e+00> : vector<16xf32>
    %114 = vector.multi_reduction <add>, %111, %cst_66 [1] : vector<16x32xf32> to vector<16xf32>
    %115 = vector.shape_cast %114 : vector<16xf32> to vector<16x1xf32>
    %cst_67 = arith.constant 3.200000e+01 : f32
    %116 = vector.broadcast %cst_67 : f32 to vector<16x1xf32>
    %117 = arith.divf %115, %116 : vector<16x1xf32>
    %118 = vector.broadcast %117 : vector<16x1xf32> to vector<16x32xf32>
    %119 = arith.subf %111, %118 : vector<16x32xf32>
    %120 = arith.mulf %119, %119 : vector<16x32xf32>
    %cst_68 = arith.constant dense<0.000000e+00> : vector<16xf32>
    %121 = vector.multi_reduction <add>, %120, %cst_68 [1] : vector<16x32xf32> to vector<16xf32>
    %122 = vector.shape_cast %121 : vector<16xf32> to vector<16x1xf32>
    %cst_69 = arith.constant 3.200000e+01 : f32
    %123 = vector.broadcast %cst_69 : f32 to vector<16x1xf32>
    %124 = arith.divf %122, %123 : vector<16x1xf32>
    %cst_70 = arith.constant 9.99999974E-6 : f32
    %125 = vector.broadcast %cst_70 : f32 to vector<16x1xf32>
    %126 = arith.addf %124, %125 : vector<16x1xf32>
    %127 = math.rsqrt %126 : vector<16x1xf32>
    %128 = vector.broadcast %127 : vector<16x1xf32> to vector<16x32xf32>
    %129 = arith.mulf %119, %128 : vector<16x32xf32>
    %130 = vector.broadcast %112 : vector<1x32xf32> to vector<16x32xf32>
    %131 = arith.mulf %129, %130 : vector<16x32xf32>
    %132 = vector.broadcast %113 : vector<1x32xf32> to vector<16x32xf32>
    %133 = arith.addf %131, %132 : vector<16x32xf32>
    %c6 = arith.constant 6 : index
    %c0_71 = arith.constant 0 : index
    %134 = vector.load %arg17[%c6, %c0_71] : memref<16x32xf32, #tpu.memory_space<vmem>>, vector<1x32xf32>
    %cst_72 = arith.constant dense<0.000000e+00> : vector<1x16xf32>
    %135 = tpu.matmul %134, %133, %cst_72 {dimension_numbers = #tpu.dot_dimension_numbers<[1], [1], [0], [0], [0, 0, 1, 0], [], []>} : vector<1x32xf32>, vector<16x32xf32>, vector<1x16xf32> -> vector<1x16xf32>
    %c7 = arith.constant 7 : index
    %c0_73 = arith.constant 0 : index
    %136 = vector.load %arg17[%c7, %c0_73] : memref<16x32xf32, #tpu.memory_space<vmem>>, vector<1x1xf32>
    %137 = vector.broadcast %136 : vector<1x1xf32> to vector<1x16xf32>
    %138 = arith.addf %135, %137 : vector<1x16xf32>
    %c8 = arith.constant 8 : index
    %c0_74 = arith.constant 0 : index
    %139 = vector.load %arg17[%c8, %c0_74] : memref<16x32xf32, #tpu.memory_space<vmem>>, vector<1x32xf32>
    %140 = tpu.iota {dimensions = array<i32: 0>} : vector<16x1xi32>
    %c2_75 = arith.constant 2 : index
    %c0_76 = arith.constant 0 : index
    %c0_77 = arith.constant 0 : index
    %c0_78 = arith.constant 0 : index
    %141 = vector.load %arg16[%c2_75, %c0_76, %c0_77, %c0_78] : memref<4x3x32x32xf32, #tpu.memory_space<vmem>>, vector<1x1x32x32xf32>
    %142 = vector.shape_cast %141 : vector<1x1x32x32xf32> to vector<32x32xf32>
    %c1_i32_79 = arith.constant 1 : i32
    %143 = tpu.dynamic_rotate %15 by %c1_i32_79 dim 0 : vector<16x32xf32>, i32 -> vector<16x32xf32>
    %c1_i32_80 = arith.constant 1 : i32
    %144 = vector.broadcast %c1_i32_80 : i32 to vector<16x1xi32>
    %145 = arith.cmpi sge, %140, %144 : vector<16x1xi32>
    %c17_i32_81 = arith.constant 17 : i32
    %146 = vector.broadcast %c17_i32_81 : i32 to vector<16x1xi32>
    %147 = arith.cmpi slt, %140, %146 : vector<16x1xi32>
    %148 = arith.andi %145, %147 : vector<16x1xi1>
    %cst_82 = arith.constant 0.000000e+00 : f32
    %149 = vector.shape_cast %148 : vector<16x1xi1> to vector<16x1xi1>
    %150 = vector.broadcast %149 : vector<16x1xi1> to vector<16x32xi1>
    %151 = vector.broadcast %cst_82 : f32 to vector<16x32xf32>
    %152 = arith.select %150, %143, %151 : vector<16x32xi1>, vector<16x32xf32>
    %cst_83 = arith.constant dense<0.000000e+00> : vector<16x32xf32>
    %153 = tpu.matmul %152, %142, %cst_83 {dimension_numbers = #tpu.dot_dimension_numbers<[1], [0], [0], [1], [0, 0, 1, 1], [], []>} : vector<16x32xf32>, vector<32x32xf32>, vector<16x32xf32> -> vector<16x32xf32>
    %c2_84 = arith.constant 2 : index
    %c1_85 = arith.constant 1 : index
    %c0_86 = arith.constant 0 : index
    %c0_87 = arith.constant 0 : index
    %154 = vector.load %arg16[%c2_84, %c1_85, %c0_86, %c0_87] : memref<4x3x32x32xf32, #tpu.memory_space<vmem>>, vector<1x1x32x32xf32>
    %155 = vector.shape_cast %154 : vector<1x1x32x32xf32> to vector<32x32xf32>
    %cst_88 = arith.constant dense<0.000000e+00> : vector<16x32xf32>
    %156 = tpu.matmul %15, %155, %cst_88 {dimension_numbers = #tpu.dot_dimension_numbers<[1], [0], [0], [1], [0, 0, 1, 1], [], []>} : vector<16x32xf32>, vector<32x32xf32>, vector<16x32xf32> -> vector<16x32xf32>
    %157 = arith.addf %153, %156 : vector<16x32xf32>
    %c2_89 = arith.constant 2 : index
    %c2_90 = arith.constant 2 : index
    %c0_91 = arith.constant 0 : index
    %c0_92 = arith.constant 0 : index
    %158 = vector.load %arg16[%c2_89, %c2_90, %c0_91, %c0_92] : memref<4x3x32x32xf32, #tpu.memory_space<vmem>>, vector<1x1x32x32xf32>
    %159 = vector.shape_cast %158 : vector<1x1x32x32xf32> to vector<32x32xf32>
    %c15_i32_93 = arith.constant 15 : i32
    %160 = tpu.dynamic_rotate %15 by %c15_i32_93 dim 0 : vector<16x32xf32>, i32 -> vector<16x32xf32>
    %c-1_i32_94 = arith.constant -1 : i32
    %161 = vector.broadcast %c-1_i32_94 : i32 to vector<16x1xi32>
    %162 = arith.cmpi sge, %140, %161 : vector<16x1xi32>
    %c15_i32_95 = arith.constant 15 : i32
    %163 = vector.broadcast %c15_i32_95 : i32 to vector<16x1xi32>
    %164 = arith.cmpi slt, %140, %163 : vector<16x1xi32>
    %165 = arith.andi %162, %164 : vector<16x1xi1>
    %cst_96 = arith.constant 0.000000e+00 : f32
    %166 = vector.shape_cast %165 : vector<16x1xi1> to vector<16x1xi1>
    %167 = vector.broadcast %166 : vector<16x1xi1> to vector<16x32xi1>
    %168 = vector.broadcast %cst_96 : f32 to vector<16x32xf32>
    %169 = arith.select %167, %160, %168 : vector<16x32xi1>, vector<16x32xf32>
    %cst_97 = arith.constant dense<0.000000e+00> : vector<16x32xf32>
    %170 = tpu.matmul %169, %159, %cst_97 {dimension_numbers = #tpu.dot_dimension_numbers<[1], [0], [0], [1], [0, 0, 1, 1], [], []>} : vector<16x32xf32>, vector<32x32xf32>, vector<16x32xf32> -> vector<16x32xf32>
    %171 = arith.addf %157, %170 : vector<16x32xf32>
    %172 = vector.broadcast %139 : vector<1x32xf32> to vector<16x32xf32>
    %173 = arith.addf %171, %172 : vector<16x32xf32>
    %cst_98 = arith.constant 0.000000e+00 : f32
    %174 = vector.broadcast %cst_98 : f32 to vector<16x32xf32>
    %175 = arith.maximumf %173, %174 : vector<16x32xf32>
    %c9 = arith.constant 9 : index
    %c0_99 = arith.constant 0 : index
    %176 = vector.load %arg17[%c9, %c0_99] : memref<16x32xf32, #tpu.memory_space<vmem>>, vector<1x32xf32>
    %c10 = arith.constant 10 : index
    %c0_100 = arith.constant 0 : index
    %177 = vector.load %arg17[%c10, %c0_100] : memref<16x32xf32, #tpu.memory_space<vmem>>, vector<1x32xf32>
    %cst_101 = arith.constant dense<0.000000e+00> : vector<16xf32>
    %178 = vector.multi_reduction <add>, %175, %cst_101 [1] : vector<16x32xf32> to vector<16xf32>
    %179 = vector.shape_cast %178 : vector<16xf32> to vector<16x1xf32>
    %cst_102 = arith.constant 3.200000e+01 : f32
    %180 = vector.broadcast %cst_102 : f32 to vector<16x1xf32>
    %181 = arith.divf %179, %180 : vector<16x1xf32>
    %182 = vector.broadcast %181 : vector<16x1xf32> to vector<16x32xf32>
    %183 = arith.subf %175, %182 : vector<16x32xf32>
    %184 = arith.mulf %183, %183 : vector<16x32xf32>
    %cst_103 = arith.constant dense<0.000000e+00> : vector<16xf32>
    %185 = vector.multi_reduction <add>, %184, %cst_103 [1] : vector<16x32xf32> to vector<16xf32>
    %186 = vector.shape_cast %185 : vector<16xf32> to vector<16x1xf32>
    %cst_104 = arith.constant 3.200000e+01 : f32
    %187 = vector.broadcast %cst_104 : f32 to vector<16x1xf32>
    %188 = arith.divf %186, %187 : vector<16x1xf32>
    %cst_105 = arith.constant 9.99999974E-6 : f32
    %189 = vector.broadcast %cst_105 : f32 to vector<16x1xf32>
    %190 = arith.addf %188, %189 : vector<16x1xf32>
    %191 = math.rsqrt %190 : vector<16x1xf32>
    %192 = vector.broadcast %191 : vector<16x1xf32> to vector<16x32xf32>
    %193 = arith.mulf %183, %192 : vector<16x32xf32>
    %194 = vector.broadcast %176 : vector<1x32xf32> to vector<16x32xf32>
    %195 = arith.mulf %193, %194 : vector<16x32xf32>
    %196 = vector.broadcast %177 : vector<1x32xf32> to vector<16x32xf32>
    %197 = arith.addf %195, %196 : vector<16x32xf32>
    %c11 = arith.constant 11 : index
    %c0_106 = arith.constant 0 : index
    %198 = vector.load %arg17[%c11, %c0_106] : memref<16x32xf32, #tpu.memory_space<vmem>>, vector<1x32xf32>
    %199 = tpu.iota {dimensions = array<i32: 0>} : vector<16x1xi32>
    %c3_107 = arith.constant 3 : index
    %c0_108 = arith.constant 0 : index
    %c0_109 = arith.constant 0 : index
    %c0_110 = arith.constant 0 : index
    %200 = vector.load %arg16[%c3_107, %c0_108, %c0_109, %c0_110] : memref<4x3x32x32xf32, #tpu.memory_space<vmem>>, vector<1x1x32x32xf32>
    %201 = vector.shape_cast %200 : vector<1x1x32x32xf32> to vector<32x32xf32>
    %c1_i32_111 = arith.constant 1 : i32
    %202 = tpu.dynamic_rotate %197 by %c1_i32_111 dim 0 : vector<16x32xf32>, i32 -> vector<16x32xf32>
    %c1_i32_112 = arith.constant 1 : i32
    %203 = vector.broadcast %c1_i32_112 : i32 to vector<16x1xi32>
    %204 = arith.cmpi sge, %199, %203 : vector<16x1xi32>
    %c17_i32_113 = arith.constant 17 : i32
    %205 = vector.broadcast %c17_i32_113 : i32 to vector<16x1xi32>
    %206 = arith.cmpi slt, %199, %205 : vector<16x1xi32>
    %207 = arith.andi %204, %206 : vector<16x1xi1>
    %cst_114 = arith.constant 0.000000e+00 : f32
    %208 = vector.shape_cast %207 : vector<16x1xi1> to vector<16x1xi1>
    %209 = vector.broadcast %208 : vector<16x1xi1> to vector<16x32xi1>
    %210 = vector.broadcast %cst_114 : f32 to vector<16x32xf32>
    %211 = arith.select %209, %202, %210 : vector<16x32xi1>, vector<16x32xf32>
    %cst_115 = arith.constant dense<0.000000e+00> : vector<16x32xf32>
    %212 = tpu.matmul %211, %201, %cst_115 {dimension_numbers = #tpu.dot_dimension_numbers<[1], [0], [0], [1], [0, 0, 1, 1], [], []>} : vector<16x32xf32>, vector<32x32xf32>, vector<16x32xf32> -> vector<16x32xf32>
    %c3_116 = arith.constant 3 : index
    %c1_117 = arith.constant 1 : index
    %c0_118 = arith.constant 0 : index
    %c0_119 = arith.constant 0 : index
    %213 = vector.load %arg16[%c3_116, %c1_117, %c0_118, %c0_119] : memref<4x3x32x32xf32, #tpu.memory_space<vmem>>, vector<1x1x32x32xf32>
    %214 = vector.shape_cast %213 : vector<1x1x32x32xf32> to vector<32x32xf32>
    %cst_120 = arith.constant dense<0.000000e+00> : vector<16x32xf32>
    %215 = tpu.matmul %197, %214, %cst_120 {dimension_numbers = #tpu.dot_dimension_numbers<[1], [0], [0], [1], [0, 0, 1, 1], [], []>} : vector<16x32xf32>, vector<32x32xf32>, vector<16x32xf32> -> vector<16x32xf32>
    %216 = arith.addf %212, %215 : vector<16x32xf32>
    %c3_121 = arith.constant 3 : index
    %c2_122 = arith.constant 2 : index
    %c0_123 = arith.constant 0 : index
    %c0_124 = arith.constant 0 : index
    %217 = vector.load %arg16[%c3_121, %c2_122, %c0_123, %c0_124] : memref<4x3x32x32xf32, #tpu.memory_space<vmem>>, vector<1x1x32x32xf32>
    %218 = vector.shape_cast %217 : vector<1x1x32x32xf32> to vector<32x32xf32>
    %c15_i32_125 = arith.constant 15 : i32
    %219 = tpu.dynamic_rotate %197 by %c15_i32_125 dim 0 : vector<16x32xf32>, i32 -> vector<16x32xf32>
    %c-1_i32_126 = arith.constant -1 : i32
    %220 = vector.broadcast %c-1_i32_126 : i32 to vector<16x1xi32>
    %221 = arith.cmpi sge, %199, %220 : vector<16x1xi32>
    %c15_i32_127 = arith.constant 15 : i32
    %222 = vector.broadcast %c15_i32_127 : i32 to vector<16x1xi32>
    %223 = arith.cmpi slt, %199, %222 : vector<16x1xi32>
    %224 = arith.andi %221, %223 : vector<16x1xi1>
    %cst_128 = arith.constant 0.000000e+00 : f32
    %225 = vector.shape_cast %224 : vector<16x1xi1> to vector<16x1xi1>
    %226 = vector.broadcast %225 : vector<16x1xi1> to vector<16x32xi1>
    %227 = vector.broadcast %cst_128 : f32 to vector<16x32xf32>
    %228 = arith.select %226, %219, %227 : vector<16x32xi1>, vector<16x32xf32>
    %cst_129 = arith.constant dense<0.000000e+00> : vector<16x32xf32>
    %229 = tpu.matmul %228, %218, %cst_129 {dimension_numbers = #tpu.dot_dimension_numbers<[1], [0], [0], [1], [0, 0, 1, 1], [], []>} : vector<16x32xf32>, vector<32x32xf32>, vector<16x32xf32> -> vector<16x32xf32>
    %230 = arith.addf %216, %229 : vector<16x32xf32>
    %231 = vector.broadcast %198 : vector<1x32xf32> to vector<16x32xf32>
    %232 = arith.addf %230, %231 : vector<16x32xf32>
    %cst_130 = arith.constant 0.000000e+00 : f32
    %233 = vector.broadcast %cst_130 : f32 to vector<16x32xf32>
    %234 = arith.maximumf %232, %233 : vector<16x32xf32>
    %c12 = arith.constant 12 : index
    %c0_131 = arith.constant 0 : index
    %235 = vector.load %arg17[%c12, %c0_131] : memref<16x32xf32, #tpu.memory_space<vmem>>, vector<1x32xf32>
    %c13 = arith.constant 13 : index
    %c0_132 = arith.constant 0 : index
    %236 = vector.load %arg17[%c13, %c0_132] : memref<16x32xf32, #tpu.memory_space<vmem>>, vector<1x32xf32>
    %cst_133 = arith.constant dense<0.000000e+00> : vector<16xf32>
    %237 = vector.multi_reduction <add>, %234, %cst_133 [1] : vector<16x32xf32> to vector<16xf32>
    %238 = vector.shape_cast %237 : vector<16xf32> to vector<16x1xf32>
    %cst_134 = arith.constant 3.200000e+01 : f32
    %239 = vector.broadcast %cst_134 : f32 to vector<16x1xf32>
    %240 = arith.divf %238, %239 : vector<16x1xf32>
    %241 = vector.broadcast %240 : vector<16x1xf32> to vector<16x32xf32>
    %242 = arith.subf %234, %241 : vector<16x32xf32>
    %243 = arith.mulf %242, %242 : vector<16x32xf32>
    %cst_135 = arith.constant dense<0.000000e+00> : vector<16xf32>
    %244 = vector.multi_reduction <add>, %243, %cst_135 [1] : vector<16x32xf32> to vector<16xf32>
    %245 = vector.shape_cast %244 : vector<16xf32> to vector<16x1xf32>
    %cst_136 = arith.constant 3.200000e+01 : f32
    %246 = vector.broadcast %cst_136 : f32 to vector<16x1xf32>
    %247 = arith.divf %245, %246 : vector<16x1xf32>
    %cst_137 = arith.constant 9.99999974E-6 : f32
    %248 = vector.broadcast %cst_137 : f32 to vector<16x1xf32>
    %249 = arith.addf %247, %248 : vector<16x1xf32>
    %250 = math.rsqrt %249 : vector<16x1xf32>
    %251 = vector.broadcast %250 : vector<16x1xf32> to vector<16x32xf32>
    %252 = arith.mulf %242, %251 : vector<16x32xf32>
    %253 = vector.broadcast %235 : vector<1x32xf32> to vector<16x32xf32>
    %254 = arith.mulf %252, %253 : vector<16x32xf32>
    %255 = vector.broadcast %236 : vector<1x32xf32> to vector<16x32xf32>
    %256 = arith.addf %254, %255 : vector<16x32xf32>
    %c14 = arith.constant 14 : index
    %c0_138 = arith.constant 0 : index
    %257 = vector.load %arg17[%c14, %c0_138] : memref<16x32xf32, #tpu.memory_space<vmem>>, vector<1x32xf32>
    %cst_139 = arith.constant dense<0.000000e+00> : vector<1x16xf32>
    %258 = tpu.matmul %257, %256, %cst_139 {dimension_numbers = #tpu.dot_dimension_numbers<[1], [1], [0], [0], [0, 0, 1, 0], [], []>} : vector<1x32xf32>, vector<16x32xf32>, vector<1x16xf32> -> vector<1x16xf32>
    %c15 = arith.constant 15 : index
    %c0_140 = arith.constant 0 : index
    %259 = vector.load %arg17[%c15, %c0_140] : memref<16x32xf32, #tpu.memory_space<vmem>>, vector<1x1xf32>
    %260 = vector.broadcast %259 : vector<1x1xf32> to vector<1x16xf32>
    %261 = arith.addf %258, %260 : vector<1x16xf32>
    %c0_141 = arith.constant 0 : index
    %c0_142 = arith.constant 0 : index
    %c0_143 = arith.constant 0 : index
    %262 = vector.load %arg21[%c0_141, %c0_142, %c0_143] : memref<1x1x16xf32, #tpu.memory_space<vmem>>, vector<1x1x16xf32>
    %263 = vector.shape_cast %262 : vector<1x1x16xf32> to vector<1x16xf32>
    %264 = vector.shape_cast %138 : vector<1x16xf32> to vector<1x1x16xf32>
    tpu.vector_store %arg21[%c0_141, %c0_142, %c0_143], %264 {strides = array<i32>} : memref<1x1x16xf32, #tpu.memory_space<vmem>>, vector<1x1x16xf32>,
    %c0_144 = arith.constant 0 : index
    %c0_145 = arith.constant 0 : index
    %c0_146 = arith.constant 0 : index
    %265 = vector.load %arg22[%c0_144, %c0_145, %c0_146] : memref<1x1x16xf32, #tpu.memory_space<vmem>>, vector<1x1x16xf32>
    %266 = vector.shape_cast %265 : vector<1x1x16xf32> to vector<1x16xf32>
    %267 = vector.shape_cast %261 : vector<1x16xf32> to vector<1x1x16xf32>
    tpu.vector_store %arg22[%c0_144, %c0_145, %c0_146], %267 {strides = array<i32>} : memref<1x1x16xf32, #tpu.memory_space<vmem>>, vector<1x1x16xf32>,
    %268 = tpu.iota {dimensions = array<i32: 1>} : vector<16x32xi32>
    %c0_147 = arith.constant 0 : index
    %c0_148 = arith.constant 0 : index
    %c0_149 = arith.constant 0 : index
    %269 = vector.load %arg4[%c0_147, %c0_148, %c0_149] : memref<1x16x1xi32, #tpu.memory_space<vmem>>, vector<1x16x1xi32>
    %270 = vector.shape_cast %269 : vector<1x16x1xi32> to vector<16x1xi32>
    %271 = vector.broadcast %270 : vector<16x1xi32> to vector<16x32xi32>
    %272 = arith.cmpi eq, %268, %271 : vector<16x32xi32>
    %273 = arith.extui %272 : vector<16x32xi1> to vector<16x32xi32>
    %274 = arith.sitofp %273 : vector<16x32xi32> to vector<16x32xf32>
    %275 = tpu.iota {dimensions = array<i32: 1>} : vector<16x32xi32>
    %c0_150 = arith.constant 0 : index
    %c0_151 = arith.constant 0 : index
    %c0_152 = arith.constant 0 : index
    %276 = vector.load %arg5[%c0_150, %c0_151, %c0_152] : memref<1x16x1xi32, #tpu.memory_space<vmem>>, vector<1x16x1xi32>
    %277 = vector.shape_cast %276 : vector<1x16x1xi32> to vector<16x1xi32>
    %278 = vector.broadcast %277 : vector<16x1xi32> to vector<16x32xi32>
    %279 = arith.cmpi eq, %275, %278 : vector<16x32xi32>
    %280 = arith.extui %279 : vector<16x32xi1> to vector<16x32xi32>
    %281 = arith.sitofp %280 : vector<16x32xi32> to vector<16x32xf32>
    %c0_153 = arith.constant 0 : index
    %c0_154 = arith.constant 0 : index
    %282 = vector.load %arg6[%c0_153, %c0_154] : memref<32x32xf32, #tpu.memory_space<vmem>>, vector<32x32xf32>
    %cst_155 = arith.constant dense<0.000000e+00> : vector<16x32xf32>
    %283 = tpu.matmul %274, %282, %cst_155 {dimension_numbers = #tpu.dot_dimension_numbers<[1], [0], [0], [1], [0, 0, 1, 1], [], []>} : vector<16x32xf32>, vector<32x32xf32>, vector<16x32xf32> -> vector<16x32xf32>
    %c0_156 = arith.constant 0 : index
    %c0_157 = arith.constant 0 : index
    %284 = vector.load %arg7[%c0_156, %c0_157] : memref<32x32xf32, #tpu.memory_space<vmem>>, vector<32x32xf32>
    %cst_158 = arith.constant dense<0.000000e+00> : vector<16x32xf32>
    %285 = tpu.matmul %281, %284, %cst_158 {dimension_numbers = #tpu.dot_dimension_numbers<[1], [0], [0], [1], [0, 0, 1, 1], [], []>} : vector<16x32xf32>, vector<32x32xf32>, vector<16x32xf32> -> vector<16x32xf32>
    %cst_159 = arith.constant 1.000000e+00 : f32
    %286 = vector.broadcast %cst_159 : f32 to vector<16x32xf32>
    %287 = arith.mulf %286, %283 : vector<16x32xf32>
    %288 = arith.addf %15, %287 : vector<16x32xf32>
    %cst_160 = arith.constant 9.99999997E-7 : f32
    %289 = vector.broadcast %cst_160 : f32 to vector<16x32xf32>
    %290 = arith.mulf %289, %285 : vector<16x32xf32>
    %291 = arith.addf %288, %290 : vector<16x32xf32>
    %c0_161 = arith.constant 0 : index
    %c0_162 = arith.constant 0 : index
    %292 = vector.load %arg8[%c0_161, %c0_162] : memref<16x32xf32, #tpu.memory_space<vmem>>, vector<16x32xf32>
    %293 = arith.addf %291, %292 : vector<16x32xf32>
    %c0_163 = arith.constant 0 : index
    %c0_164 = arith.constant 0 : index
    %c0_165 = arith.constant 0 : index
    %294 = vector.load %arg9[%c0_163, %c0_164, %c0_165] : memref<2x32x96xf32, #tpu.memory_space<vmem>>, vector<1x32x96xf32>
    %295 = vector.shape_cast %294 : vector<1x32x96xf32> to vector<32x96xf32>
    %cst_166 = arith.constant dense<0.000000e+00> : vector<16x96xf32>
    %296 = tpu.matmul %293, %295, %cst_166 {dimension_numbers = #tpu.dot_dimension_numbers<[1], [0], [0], [1], [0, 0, 1, 1], [], []>} : vector<16x32xf32>, vector<32x96xf32>, vector<16x96xf32> -> vector<16x96xf32>
    %c0_167 = arith.constant 0 : index
    %c0_168 = arith.constant 0 : index
    %c0_169 = arith.constant 0 : index
    %297 = vector.load %arg13[%c0_167, %c0_168, %c0_169] : memref<2x1x96xf32, #tpu.memory_space<vmem>>, vector<1x1x96xf32>
    %298 = vector.shape_cast %297 : vector<1x1x96xf32> to vector<1x96xf32>
    %299 = vector.broadcast %298 : vector<1x96xf32> to vector<16x96xf32>
    %300 = arith.addf %296, %299 : vector<16x96xf32>
    %301 = vector.extract_strided_slice %300 {offsets = [0, 0], sizes = [16, 8], strides = [1, 1]} : vector<16x96xf32> to vector<16x8xf32>
    %302 = vector.shape_cast %301 : vector<16x8xf32> to vector<1x16x8xf32>
    %303 = vector.extract_strided_slice %300 {offsets = [0, 8], sizes = [16, 8], strides = [1, 1]} : vector<16x96xf32> to vector<16x8xf32>
    %304 = vector.shape_cast %303 : vector<16x8xf32> to vector<1x16x8xf32>
    %305 = vector.extract_strided_slice %300 {offsets = [0, 16], sizes = [16, 8], strides = [1, 1]} : vector<16x96xf32> to vector<16x8xf32>
    %306 = vector.shape_cast %305 : vector<16x8xf32> to vector<1x16x8xf32>
    %307 = vector.extract_strided_slice %300 {offsets = [0, 24], sizes = [16, 8], strides = [1, 1]} : vector<16x96xf32> to vector<16x8xf32>
    %308 = vector.shape_cast %307 : vector<16x8xf32> to vector<1x16x8xf32>
    %309 = tpu.concatenate %302, %304, %306, %308 in 0 : vector<1x16x8xf32>, vector<1x16x8xf32>, vector<1x16x8xf32>, vector<1x16x8xf32> -> vector<4x16x8xf32>
    %cst_170 = arith.constant 0.353553385 : f32
    %310 = vector.broadcast %cst_170 : f32 to vector<4x16x8xf32>
    %311 = arith.mulf %309, %310 : vector<4x16x8xf32>
    %312 = vector.extract_strided_slice %300 {offsets = [0, 32], sizes = [16, 8], strides = [1, 1]} : vector<16x96xf32> to vector<16x8xf32>
    %313 = vector.shape_cast %312 : vector<16x8xf32> to vector<1x16x8xf32>
    %314 = vector.extract_strided_slice %300 {offsets = [0, 40], sizes = [16, 8], strides = [1, 1]} : vector<16x96xf32> to vector<16x8xf32>
    %315 = vector.shape_cast %314 : vector<16x8xf32> to vector<1x16x8xf32>
    %316 = vector.extract_strided_slice %300 {offsets = [0, 48], sizes = [16, 8], strides = [1, 1]} : vector<16x96xf32> to vector<16x8xf32>
    %317 = vector.shape_cast %316 : vector<16x8xf32> to vector<1x16x8xf32>
    %318 = vector.extract_strided_slice %300 {offsets = [0, 56], sizes = [16, 8], strides = [1, 1]} : vector<16x96xf32> to vector<16x8xf32>
    %319 = vector.shape_cast %318 : vector<16x8xf32> to vector<1x16x8xf32>
    %320 = tpu.concatenate %313, %315, %317, %319 in 0 : vector<1x16x8xf32>, vector<1x16x8xf32>, vector<1x16x8xf32>, vector<1x16x8xf32> -> vector<4x16x8xf32>
    %321 = vector.extract_strided_slice %300 {offsets = [0, 64], sizes = [16, 8], strides = [1, 1]} : vector<16x96xf32> to vector<16x8xf32>
    %322 = vector.shape_cast %321 : vector<16x8xf32> to vector<1x16x8xf32>
    %323 = vector.extract_strided_slice %300 {offsets = [0, 72], sizes = [16, 8], strides = [1, 1]} : vector<16x96xf32> to vector<16x8xf32>
    %324 = vector.shape_cast %323 : vector<16x8xf32> to vector<1x16x8xf32>
    %325 = vector.extract_strided_slice %300 {offsets = [0, 80], sizes = [16, 8], strides = [1, 1]} : vector<16x96xf32> to vector<16x8xf32>
    %326 = vector.shape_cast %325 : vector<16x8xf32> to vector<1x16x8xf32>
    %327 = vector.extract_strided_slice %300 {offsets = [0, 88], sizes = [16, 8], strides = [1, 1]} : vector<16x96xf32> to vector<16x8xf32>
    %328 = vector.shape_cast %327 : vector<16x8xf32> to vector<1x16x8xf32>
    %329 = tpu.concatenate %322, %324, %326, %328 in 0 : vector<1x16x8xf32>, vector<1x16x8xf32>, vector<1x16x8xf32>, vector<1x16x8xf32> -> vector<4x16x8xf32>
    %cst_171 = arith.constant dense<0.000000e+00> : vector<4x16x16xf32>
    %330 = tpu.matmul %311, %320, %cst_171 {dimension_numbers = #tpu.dot_dimension_numbers<[2], [2], [1], [1], [0, 0, 0, 1, 1, 1], [0], [0]>} : vector<4x16x8xf32>, vector<4x16x8xf32>, vector<4x16x16xf32> -> vector<4x16x16xf32>
    %cst_172 = arith.constant dense<0xFF800000> : vector<4x16xf32>
    %331 = vector.multi_reduction <maximumf>, %330, %cst_172 [2] : vector<4x16x16xf32> to vector<4x16xf32>
    %332 = vector.shape_cast %331 : vector<4x16xf32> to vector<4x16x1xf32>
    %333 = vector.broadcast %332 : vector<4x16x1xf32> to vector<4x16x16xf32>
    %334 = arith.subf %330, %333 : vector<4x16x16xf32>
    %335 = math.exp %334 : vector<4x16x16xf32>
    %cst_173 = arith.constant dense<0.000000e+00> : vector<4x16xf32>
    %336 = vector.multi_reduction <add>, %335, %cst_173 [2] : vector<4x16x16xf32> to vector<4x16xf32>
    %337 = vector.shape_cast %336 : vector<4x16xf32> to vector<4x16x1xf32>
    %338 = tpu.reciprocal %337 {approx = true} : vector<4x16x1xf32> -> vector<4x16x1xf32>
    %339 = vector.broadcast %338 : vector<4x16x1xf32> to vector<4x16x16xf32>
    %340 = arith.mulf %335, %339 : vector<4x16x16xf32>
    %cst_174 = arith.constant dense<0.000000e+00> : vector<4x16x8xf32>
    %341 = tpu.matmul %340, %329, %cst_174 {dimension_numbers = #tpu.dot_dimension_numbers<[2], [1], [1], [2], [0, 0, 0, 1, 1, 2], [0], [0]>} : vector<4x16x16xf32>, vector<4x16x8xf32>, vector<4x16x8xf32> -> vector<4x16x8xf32>
    %342 = vector.extract_strided_slice %341 {offsets = [0, 0, 0], sizes = [1, 16, 8], strides = [1, 1, 1]} : vector<4x16x8xf32> to vector<1x16x8xf32>
    %343 = vector.shape_cast %342 : vector<1x16x8xf32> to vector<16x8xf32>
    %344 = vector.extract_strided_slice %341 {offsets = [1, 0, 0], sizes = [1, 16, 8], strides = [1, 1, 1]} : vector<4x16x8xf32> to vector<1x16x8xf32>
    %345 = vector.shape_cast %344 : vector<1x16x8xf32> to vector<16x8xf32>
    %346 = vector.extract_strided_slice %341 {offsets = [2, 0, 0], sizes = [1, 16, 8], strides = [1, 1, 1]} : vector<4x16x8xf32> to vector<1x16x8xf32>
    %347 = vector.shape_cast %346 : vector<1x16x8xf32> to vector<16x8xf32>
    %348 = vector.extract_strided_slice %341 {offsets = [3, 0, 0], sizes = [1, 16, 8], strides = [1, 1, 1]} : vector<4x16x8xf32> to vector<1x16x8xf32>
    %349 = vector.shape_cast %348 : vector<1x16x8xf32> to vector<16x8xf32>
    %350 = tpu.concatenate %343, %345, %347, %349 in 1 : vector<16x8xf32>, vector<16x8xf32>, vector<16x8xf32>, vector<16x8xf32> -> vector<16x32xf32>
    %c0_175 = arith.constant 0 : index
    %c0_176 = arith.constant 0 : index
    %c0_177 = arith.constant 0 : index
    %351 = vector.load %arg10[%c0_175, %c0_176, %c0_177] : memref<2x32x32xf32, #tpu.memory_space<vmem>>, vector<1x32x32xf32>
    %352 = vector.shape_cast %351 : vector<1x32x32xf32> to vector<32x32xf32>
    %cst_178 = arith.constant dense<0.000000e+00> : vector<16x32xf32>
    %353 = tpu.matmul %350, %352, %cst_178 {dimension_numbers = #tpu.dot_dimension_numbers<[1], [0], [0], [1], [0, 0, 1, 1], [], []>} : vector<16x32xf32>, vector<32x32xf32>, vector<16x32xf32> -> vector<16x32xf32>
    %c0_179 = arith.constant 0 : index
    %c0_180 = arith.constant 0 : index
    %c0_181 = arith.constant 0 : index
    %354 = vector.load %arg15[%c0_179, %c0_180, %c0_181] : memref<2x6x32xf32, #tpu.memory_space<vmem>>, vector<1x1x32xf32>
    %355 = vector.shape_cast %354 : vector<1x1x32xf32> to vector<1x32xf32>
    %356 = vector.broadcast %355 : vector<1x32xf32> to vector<16x32xf32>
    %357 = arith.addf %353, %356 : vector<16x32xf32>
    %358 = arith.addf %293, %357 : vector<16x32xf32>
    %c0_182 = arith.constant 0 : index
    %c1_183 = arith.constant 1 : index
    %c0_184 = arith.constant 0 : index
    %359 = vector.load %arg15[%c0_182, %c1_183, %c0_184] : memref<2x6x32xf32, #tpu.memory_space<vmem>>, vector<1x1x32xf32>
    %360 = vector.shape_cast %359 : vector<1x1x32xf32> to vector<1x32xf32>
    %c0_185 = arith.constant 0 : index
    %c2_186 = arith.constant 2 : index
    %c0_187 = arith.constant 0 : index
    %361 = vector.load %arg15[%c0_185, %c2_186, %c0_187] : memref<2x6x32xf32, #tpu.memory_space<vmem>>, vector<1x1x32xf32>
    %362 = vector.shape_cast %361 : vector<1x1x32xf32> to vector<1x32xf32>
    %cst_188 = arith.constant dense<0.000000e+00> : vector<16xf32>
    %363 = vector.multi_reduction <add>, %358, %cst_188 [1] : vector<16x32xf32> to vector<16xf32>
    %364 = vector.shape_cast %363 : vector<16xf32> to vector<16x1xf32>
    %cst_189 = arith.constant 3.200000e+01 : f32
    %365 = vector.broadcast %cst_189 : f32 to vector<16x1xf32>
    %366 = arith.divf %364, %365 : vector<16x1xf32>
    %367 = vector.broadcast %366 : vector<16x1xf32> to vector<16x32xf32>
    %368 = arith.subf %358, %367 : vector<16x32xf32>
    %369 = arith.mulf %368, %368 : vector<16x32xf32>
    %cst_190 = arith.constant dense<0.000000e+00> : vector<16xf32>
    %370 = vector.multi_reduction <add>, %369, %cst_190 [1] : vector<16x32xf32> to vector<16xf32>
    %371 = vector.shape_cast %370 : vector<16xf32> to vector<16x1xf32>
    %cst_191 = arith.constant 3.200000e+01 : f32
    %372 = vector.broadcast %cst_191 : f32 to vector<16x1xf32>
    %373 = arith.divf %371, %372 : vector<16x1xf32>
    %cst_192 = arith.constant 9.99999974E-6 : f32
    %374 = vector.broadcast %cst_192 : f32 to vector<16x1xf32>
    %375 = arith.addf %373, %374 : vector<16x1xf32>
    %376 = math.rsqrt %375 : vector<16x1xf32>
    %377 = vector.broadcast %376 : vector<16x1xf32> to vector<16x32xf32>
    %378 = arith.mulf %368, %377 : vector<16x32xf32>
    %379 = vector.broadcast %360 : vector<1x32xf32> to vector<16x32xf32>
    %380 = arith.mulf %378, %379 : vector<16x32xf32>
    %381 = vector.broadcast %362 : vector<1x32xf32> to vector<16x32xf32>
    %382 = arith.addf %380, %381 : vector<16x32xf32>
    %c0_193 = arith.constant 0 : index
    %c0_194 = arith.constant 0 : index
    %c0_195 = arith.constant 0 : index
    %383 = vector.load %arg14[%c0_193, %c0_194, %c0_195] : memref<2x1x64xf32, #tpu.memory_space<vmem>>, vector<1x1x64xf32>
    %384 = vector.shape_cast %383 : vector<1x1x64xf32> to vector<1x64xf32>
    %385 = tpu.iota {dimensions = array<i32: 0>} : vector<16x1xi32>
    %c0_196 = arith.constant 0 : index
    %c0_197 = arith.constant 0 : index
    %c0_198 = arith.constant 0 : index
    %c0_199 = arith.constant 0 : index
    %386 = vector.load %arg11[%c0_196, %c0_197, %c0_198, %c0_199] : memref<2x3x32x64xf32, #tpu.memory_space<vmem>>, vector<1x1x32x64xf32>
    %387 = vector.shape_cast %386 : vector<1x1x32x64xf32> to vector<32x64xf32>
    %c1_i32_200 = arith.constant 1 : i32
    %388 = tpu.dynamic_rotate %382 by %c1_i32_200 dim 0 : vector<16x32xf32>, i32 -> vector<16x32xf32>
    %c1_i32_201 = arith.constant 1 : i32
    %389 = vector.broadcast %c1_i32_201 : i32 to vector<16x1xi32>
    %390 = arith.cmpi sge, %385, %389 : vector<16x1xi32>
    %c17_i32_202 = arith.constant 17 : i32
    %391 = vector.broadcast %c17_i32_202 : i32 to vector<16x1xi32>
    %392 = arith.cmpi slt, %385, %391 : vector<16x1xi32>
    %393 = arith.andi %390, %392 : vector<16x1xi1>
    %cst_203 = arith.constant 0.000000e+00 : f32
    %394 = vector.shape_cast %393 : vector<16x1xi1> to vector<16x1xi1>
    %395 = vector.broadcast %394 : vector<16x1xi1> to vector<16x32xi1>
    %396 = vector.broadcast %cst_203 : f32 to vector<16x32xf32>
    %397 = arith.select %395, %388, %396 : vector<16x32xi1>, vector<16x32xf32>
    %cst_204 = arith.constant dense<0.000000e+00> : vector<16x64xf32>
    %398 = tpu.matmul %397, %387, %cst_204 {dimension_numbers = #tpu.dot_dimension_numbers<[1], [0], [0], [1], [0, 0, 1, 1], [], []>} : vector<16x32xf32>, vector<32x64xf32>, vector<16x64xf32> -> vector<16x64xf32>
    %c0_205 = arith.constant 0 : index
    %c1_206 = arith.constant 1 : index
    %c0_207 = arith.constant 0 : index
    %c0_208 = arith.constant 0 : index
    %399 = vector.load %arg11[%c0_205, %c1_206, %c0_207, %c0_208] : memref<2x3x32x64xf32, #tpu.memory_space<vmem>>, vector<1x1x32x64xf32>
    %400 = vector.shape_cast %399 : vector<1x1x32x64xf32> to vector<32x64xf32>
    %cst_209 = arith.constant dense<0.000000e+00> : vector<16x64xf32>
    %401 = tpu.matmul %382, %400, %cst_209 {dimension_numbers = #tpu.dot_dimension_numbers<[1], [0], [0], [1], [0, 0, 1, 1], [], []>} : vector<16x32xf32>, vector<32x64xf32>, vector<16x64xf32> -> vector<16x64xf32>
    %402 = arith.addf %398, %401 : vector<16x64xf32>
    %c0_210 = arith.constant 0 : index
    %c2_211 = arith.constant 2 : index
    %c0_212 = arith.constant 0 : index
    %c0_213 = arith.constant 0 : index
    %403 = vector.load %arg11[%c0_210, %c2_211, %c0_212, %c0_213] : memref<2x3x32x64xf32, #tpu.memory_space<vmem>>, vector<1x1x32x64xf32>
    %404 = vector.shape_cast %403 : vector<1x1x32x64xf32> to vector<32x64xf32>
    %c15_i32_214 = arith.constant 15 : i32
    %405 = tpu.dynamic_rotate %382 by %c15_i32_214 dim 0 : vector<16x32xf32>, i32 -> vector<16x32xf32>
    %c-1_i32_215 = arith.constant -1 : i32
    %406 = vector.broadcast %c-1_i32_215 : i32 to vector<16x1xi32>
    %407 = arith.cmpi sge, %385, %406 : vector<16x1xi32>
    %c15_i32_216 = arith.constant 15 : i32
    %408 = vector.broadcast %c15_i32_216 : i32 to vector<16x1xi32>
    %409 = arith.cmpi slt, %385, %408 : vector<16x1xi32>
    %410 = arith.andi %407, %409 : vector<16x1xi1>
    %cst_217 = arith.constant 0.000000e+00 : f32
    %411 = vector.shape_cast %410 : vector<16x1xi1> to vector<16x1xi1>
    %412 = vector.broadcast %411 : vector<16x1xi1> to vector<16x32xi1>
    %413 = vector.broadcast %cst_217 : f32 to vector<16x32xf32>
    %414 = arith.select %412, %405, %413 : vector<16x32xi1>, vector<16x32xf32>
    %cst_218 = arith.constant dense<0.000000e+00> : vector<16x64xf32>
    %415 = tpu.matmul %414, %404, %cst_218 {dimension_numbers = #tpu.dot_dimension_numbers<[1], [0], [0], [1], [0, 0, 1, 1], [], []>} : vector<16x32xf32>, vector<32x64xf32>, vector<16x64xf32> -> vector<16x64xf32>
    %416 = arith.addf %402, %415 : vector<16x64xf32>
    %417 = vector.broadcast %384 : vector<1x64xf32> to vector<16x64xf32>
    %418 = arith.addf %416, %417 : vector<16x64xf32>
    %cst_219 = arith.constant 0.000000e+00 : f32
    %419 = vector.broadcast %cst_219 : f32 to vector<16x64xf32>
    %420 = arith.maximumf %418, %419 : vector<16x64xf32>
    %c0_220 = arith.constant 0 : index
    %c3_221 = arith.constant 3 : index
    %c0_222 = arith.constant 0 : index
    %421 = vector.load %arg15[%c0_220, %c3_221, %c0_222] : memref<2x6x32xf32, #tpu.memory_space<vmem>>, vector<1x1x32xf32>
    %422 = vector.shape_cast %421 : vector<1x1x32xf32> to vector<1x32xf32>
    %423 = tpu.iota {dimensions = array<i32: 0>} : vector<16x1xi32>
    %c0_223 = arith.constant 0 : index
    %c0_224 = arith.constant 0 : index
    %c0_225 = arith.constant 0 : index
    %c0_226 = arith.constant 0 : index
    %424 = vector.load %arg12[%c0_223, %c0_224, %c0_225, %c0_226] : memref<2x3x64x32xf32, #tpu.memory_space<vmem>>, vector<1x1x64x32xf32>
    %425 = vector.shape_cast %424 : vector<1x1x64x32xf32> to vector<64x32xf32>
    %c1_i32_227 = arith.constant 1 : i32
    %426 = tpu.dynamic_rotate %420 by %c1_i32_227 dim 0 : vector<16x64xf32>, i32 -> vector<16x64xf32>
    %c1_i32_228 = arith.constant 1 : i32
    %427 = vector.broadcast %c1_i32_228 : i32 to vector<16x1xi32>
    %428 = arith.cmpi sge, %423, %427 : vector<16x1xi32>
    %c17_i32_229 = arith.constant 17 : i32
    %429 = vector.broadcast %c17_i32_229 : i32 to vector<16x1xi32>
    %430 = arith.cmpi slt, %423, %429 : vector<16x1xi32>
    %431 = arith.andi %428, %430 : vector<16x1xi1>
    %cst_230 = arith.constant 0.000000e+00 : f32
    %432 = vector.shape_cast %431 : vector<16x1xi1> to vector<16x1xi1>
    %433 = vector.broadcast %432 : vector<16x1xi1> to vector<16x64xi1>
    %434 = vector.broadcast %cst_230 : f32 to vector<16x64xf32>
    %435 = arith.select %433, %426, %434 : vector<16x64xi1>, vector<16x64xf32>
    %cst_231 = arith.constant dense<0.000000e+00> : vector<16x32xf32>
    %436 = tpu.matmul %435, %425, %cst_231 {dimension_numbers = #tpu.dot_dimension_numbers<[1], [0], [0], [1], [0, 0, 1, 1], [], []>} : vector<16x64xf32>, vector<64x32xf32>, vector<16x32xf32> -> vector<16x32xf32>
    %c0_232 = arith.constant 0 : index
    %c1_233 = arith.constant 1 : index
    %c0_234 = arith.constant 0 : index
    %c0_235 = arith.constant 0 : index
    %437 = vector.load %arg12[%c0_232, %c1_233, %c0_234, %c0_235] : memref<2x3x64x32xf32, #tpu.memory_space<vmem>>, vector<1x1x64x32xf32>
    %438 = vector.shape_cast %437 : vector<1x1x64x32xf32> to vector<64x32xf32>
    %cst_236 = arith.constant dense<0.000000e+00> : vector<16x32xf32>
    %439 = tpu.matmul %420, %438, %cst_236 {dimension_numbers = #tpu.dot_dimension_numbers<[1], [0], [0], [1], [0, 0, 1, 1], [], []>} : vector<16x64xf32>, vector<64x32xf32>, vector<16x32xf32> -> vector<16x32xf32>
    %440 = arith.addf %436, %439 : vector<16x32xf32>
    %c0_237 = arith.constant 0 : index
    %c2_238 = arith.constant 2 : index
    %c0_239 = arith.constant 0 : index
    %c0_240 = arith.constant 0 : index
    %441 = vector.load %arg12[%c0_237, %c2_238, %c0_239, %c0_240] : memref<2x3x64x32xf32, #tpu.memory_space<vmem>>, vector<1x1x64x32xf32>
    %442 = vector.shape_cast %441 : vector<1x1x64x32xf32> to vector<64x32xf32>
    %c15_i32_241 = arith.constant 15 : i32
    %443 = tpu.dynamic_rotate %420 by %c15_i32_241 dim 0 : vector<16x64xf32>, i32 -> vector<16x64xf32>
    %c-1_i32_242 = arith.constant -1 : i32
    %444 = vector.broadcast %c-1_i32_242 : i32 to vector<16x1xi32>
    %445 = arith.cmpi sge, %423, %444 : vector<16x1xi32>
    %c15_i32_243 = arith.constant 15 : i32
    %446 = vector.broadcast %c15_i32_243 : i32 to vector<16x1xi32>
    %447 = arith.cmpi slt, %423, %446 : vector<16x1xi32>
    %448 = arith.andi %445, %447 : vector<16x1xi1>
    %cst_244 = arith.constant 0.000000e+00 : f32
    %449 = vector.shape_cast %448 : vector<16x1xi1> to vector<16x1xi1>
    %450 = vector.broadcast %449 : vector<16x1xi1> to vector<16x64xi1>
    %451 = vector.broadcast %cst_244 : f32 to vector<16x64xf32>
    %452 = arith.select %450, %443, %451 : vector<16x64xi1>, vector<16x64xf32>
    %cst_245 = arith.constant dense<0.000000e+00> : vector<16x32xf32>
    %453 = tpu.matmul %452, %442, %cst_245 {dimension_numbers = #tpu.dot_dimension_numbers<[1], [0], [0], [1], [0, 0, 1, 1], [], []>} : vector<16x64xf32>, vector<64x32xf32>, vector<16x32xf32> -> vector<16x32xf32>
    %454 = arith.addf %440, %453 : vector<16x32xf32>
    %455 = vector.broadcast %422 : vector<1x32xf32> to vector<16x32xf32>
    %456 = arith.addf %454, %455 : vector<16x32xf32>
    %457 = arith.addf %382, %456 : vector<16x32xf32>
    %c0_246 = arith.constant 0 : index
    %c4_247 = arith.constant 4 : index
    %c0_248 = arith.constant 0 : index
    %458 = vector.load %arg15[%c0_246, %c4_247, %c0_248] : memref<2x6x32xf32, #tpu.memory_space<vmem>>, vector<1x1x32xf32>
    %459 = vector.shape_cast %458 : vector<1x1x32xf32> to vector<1x32xf32>
    %c0_249 = arith.constant 0 : index
    %c5_250 = arith.constant 5 : index
    %c0_251 = arith.constant 0 : index
    %460 = vector.load %arg15[%c0_249, %c5_250, %c0_251] : memref<2x6x32xf32, #tpu.memory_space<vmem>>, vector<1x1x32xf32>
    %461 = vector.shape_cast %460 : vector<1x1x32xf32> to vector<1x32xf32>
    %cst_252 = arith.constant dense<0.000000e+00> : vector<16xf32>
    %462 = vector.multi_reduction <add>, %457, %cst_252 [1] : vector<16x32xf32> to vector<16xf32>
    %463 = vector.shape_cast %462 : vector<16xf32> to vector<16x1xf32>
    %cst_253 = arith.constant 3.200000e+01 : f32
    %464 = vector.broadcast %cst_253 : f32 to vector<16x1xf32>
    %465 = arith.divf %463, %464 : vector<16x1xf32>
    %466 = vector.broadcast %465 : vector<16x1xf32> to vector<16x32xf32>
    %467 = arith.subf %457, %466 : vector<16x32xf32>
    %468 = arith.mulf %467, %467 : vector<16x32xf32>
    %cst_254 = arith.constant dense<0.000000e+00> : vector<16xf32>
    %469 = vector.multi_reduction <add>, %468, %cst_254 [1] : vector<16x32xf32> to vector<16xf32>
    %470 = vector.shape_cast %469 : vector<16xf32> to vector<16x1xf32>
    %cst_255 = arith.constant 3.200000e+01 : f32
    %471 = vector.broadcast %cst_255 : f32 to vector<16x1xf32>
    %472 = arith.divf %470, %471 : vector<16x1xf32>
    %cst_256 = arith.constant 9.99999974E-6 : f32
    %473 = vector.broadcast %cst_256 : f32 to vector<16x1xf32>
    %474 = arith.addf %472, %473 : vector<16x1xf32>
    %475 = math.rsqrt %474 : vector<16x1xf32>
    %476 = vector.broadcast %475 : vector<16x1xf32> to vector<16x32xf32>
    %477 = arith.mulf %467, %476 : vector<16x32xf32>
    %478 = vector.broadcast %459 : vector<1x32xf32> to vector<16x32xf32>
    %479 = arith.mulf %477, %478 : vector<16x32xf32>
    %480 = vector.broadcast %461 : vector<1x32xf32> to vector<16x32xf32>
    %481 = arith.addf %479, %480 : vector<16x32xf32>
    %c1_257 = arith.constant 1 : index
    %c0_258 = arith.constant 0 : index
    %c0_259 = arith.constant 0 : index
    %482 = vector.load %arg9[%c1_257, %c0_258, %c0_259] : memref<2x32x96xf32, #tpu.memory_space<vmem>>, vector<1x32x96xf32>
    %483 = vector.shape_cast %482 : vector<1x32x96xf32> to vector<32x96xf32>
    %cst_260 = arith.constant dense<0.000000e+00> : vector<16x96xf32>
    %484 = tpu.matmul %481, %483, %cst_260 {dimension_numbers = #tpu.dot_dimension_numbers<[1], [0], [0], [1], [0, 0, 1, 1], [], []>} : vector<16x32xf32>, vector<32x96xf32>, vector<16x96xf32> -> vector<16x96xf32>
    %c1_261 = arith.constant 1 : index
    %c0_262 = arith.constant 0 : index
    %c0_263 = arith.constant 0 : index
    %485 = vector.load %arg13[%c1_261, %c0_262, %c0_263] : memref<2x1x96xf32, #tpu.memory_space<vmem>>, vector<1x1x96xf32>
    %486 = vector.shape_cast %485 : vector<1x1x96xf32> to vector<1x96xf32>
    %487 = vector.broadcast %486 : vector<1x96xf32> to vector<16x96xf32>
    %488 = arith.addf %484, %487 : vector<16x96xf32>
    %489 = vector.extract_strided_slice %488 {offsets = [0, 0], sizes = [16, 8], strides = [1, 1]} : vector<16x96xf32> to vector<16x8xf32>
    %490 = vector.shape_cast %489 : vector<16x8xf32> to vector<1x16x8xf32>
    %491 = vector.extract_strided_slice %488 {offsets = [0, 8], sizes = [16, 8], strides = [1, 1]} : vector<16x96xf32> to vector<16x8xf32>
    %492 = vector.shape_cast %491 : vector<16x8xf32> to vector<1x16x8xf32>
    %493 = vector.extract_strided_slice %488 {offsets = [0, 16], sizes = [16, 8], strides = [1, 1]} : vector<16x96xf32> to vector<16x8xf32>
    %494 = vector.shape_cast %493 : vector<16x8xf32> to vector<1x16x8xf32>
    %495 = vector.extract_strided_slice %488 {offsets = [0, 24], sizes = [16, 8], strides = [1, 1]} : vector<16x96xf32> to vector<16x8xf32>
    %496 = vector.shape_cast %495 : vector<16x8xf32> to vector<1x16x8xf32>
    %497 = tpu.concatenate %490, %492, %494, %496 in 0 : vector<1x16x8xf32>, vector<1x16x8xf32>, vector<1x16x8xf32>, vector<1x16x8xf32> -> vector<4x16x8xf32>
    %cst_264 = arith.constant 0.353553385 : f32
    %498 = vector.broadcast %cst_264 : f32 to vector<4x16x8xf32>
    %499 = arith.mulf %497, %498 : vector<4x16x8xf32>
    %500 = vector.extract_strided_slice %488 {offsets = [0, 32], sizes = [16, 8], strides = [1, 1]} : vector<16x96xf32> to vector<16x8xf32>
    %501 = vector.shape_cast %500 : vector<16x8xf32> to vector<1x16x8xf32>
    %502 = vector.extract_strided_slice %488 {offsets = [0, 40], sizes = [16, 8], strides = [1, 1]} : vector<16x96xf32> to vector<16x8xf32>
    %503 = vector.shape_cast %502 : vector<16x8xf32> to vector<1x16x8xf32>
    %504 = vector.extract_strided_slice %488 {offsets = [0, 48], sizes = [16, 8], strides = [1, 1]} : vector<16x96xf32> to vector<16x8xf32>
    %505 = vector.shape_cast %504 : vector<16x8xf32> to vector<1x16x8xf32>
    %506 = vector.extract_strided_slice %488 {offsets = [0, 56], sizes = [16, 8], strides = [1, 1]} : vector<16x96xf32> to vector<16x8xf32>
    %507 = vector.shape_cast %506 : vector<16x8xf32> to vector<1x16x8xf32>
    %508 = tpu.concatenate %501, %503, %505, %507 in 0 : vector<1x16x8xf32>, vector<1x16x8xf32>, vector<1x16x8xf32>, vector<1x16x8xf32> -> vector<4x16x8xf32>
    %509 = vector.extract_strided_slice %488 {offsets = [0, 64], sizes = [16, 8], strides = [1, 1]} : vector<16x96xf32> to vector<16x8xf32>
    %510 = vector.shape_cast %509 : vector<16x8xf32> to vector<1x16x8xf32>
    %511 = vector.extract_strided_slice %488 {offsets = [0, 72], sizes = [16, 8], strides = [1, 1]} : vector<16x96xf32> to vector<16x8xf32>
    %512 = vector.shape_cast %511 : vector<16x8xf32> to vector<1x16x8xf32>
    %513 = vector.extract_strided_slice %488 {offsets = [0, 80], sizes = [16, 8], strides = [1, 1]} : vector<16x96xf32> to vector<16x8xf32>
    %514 = vector.shape_cast %513 : vector<16x8xf32> to vector<1x16x8xf32>
    %515 = vector.extract_strided_slice %488 {offsets = [0, 88], sizes = [16, 8], strides = [1, 1]} : vector<16x96xf32> to vector<16x8xf32>
    %516 = vector.shape_cast %515 : vector<16x8xf32> to vector<1x16x8xf32>
    %517 = tpu.concatenate %510, %512, %514, %516 in 0 : vector<1x16x8xf32>, vector<1x16x8xf32>, vector<1x16x8xf32>, vector<1x16x8xf32> -> vector<4x16x8xf32>
    %cst_265 = arith.constant dense<0.000000e+00> : vector<4x16x16xf32>
    %518 = tpu.matmul %499, %508, %cst_265 {dimension_numbers = #tpu.dot_dimension_numbers<[2], [2], [1], [1], [0, 0, 0, 1, 1, 1], [0], [0]>} : vector<4x16x8xf32>, vector<4x16x8xf32>, vector<4x16x16xf32> -> vector<4x16x16xf32>
    %cst_266 = arith.constant dense<0xFF800000> : vector<4x16xf32>
    %519 = vector.multi_reduction <maximumf>, %518, %cst_266 [2] : vector<4x16x16xf32> to vector<4x16xf32>
    %520 = vector.shape_cast %519 : vector<4x16xf32> to vector<4x16x1xf32>
    %521 = vector.broadcast %520 : vector<4x16x1xf32> to vector<4x16x16xf32>
    %522 = arith.subf %518, %521 : vector<4x16x16xf32>
    %523 = math.exp %522 : vector<4x16x16xf32>
    %cst_267 = arith.constant dense<0.000000e+00> : vector<4x16xf32>
    %524 = vector.multi_reduction <add>, %523, %cst_267 [2] : vector<4x16x16xf32> to vector<4x16xf32>
    %525 = vector.shape_cast %524 : vector<4x16xf32> to vector<4x16x1xf32>
    %526 = tpu.reciprocal %525 {approx = true} : vector<4x16x1xf32> -> vector<4x16x1xf32>
    %527 = vector.broadcast %526 : vector<4x16x1xf32> to vector<4x16x16xf32>
    %528 = arith.mulf %523, %527 : vector<4x16x16xf32>
    %cst_268 = arith.constant dense<0.000000e+00> : vector<4x16x8xf32>
    %529 = tpu.matmul %528, %517, %cst_268 {dimension_numbers = #tpu.dot_dimension_numbers<[2], [1], [1], [2], [0, 0, 0, 1, 1, 2], [0], [0]>} : vector<4x16x16xf32>, vector<4x16x8xf32>, vector<4x16x8xf32> -> vector<4x16x8xf32>
    %530 = vector.extract_strided_slice %529 {offsets = [0, 0, 0], sizes = [1, 16, 8], strides = [1, 1, 1]} : vector<4x16x8xf32> to vector<1x16x8xf32>
    %531 = vector.shape_cast %530 : vector<1x16x8xf32> to vector<16x8xf32>
    %532 = vector.extract_strided_slice %529 {offsets = [1, 0, 0], sizes = [1, 16, 8], strides = [1, 1, 1]} : vector<4x16x8xf32> to vector<1x16x8xf32>
    %533 = vector.shape_cast %532 : vector<1x16x8xf32> to vector<16x8xf32>
    %534 = vector.extract_strided_slice %529 {offsets = [2, 0, 0], sizes = [1, 16, 8], strides = [1, 1, 1]} : vector<4x16x8xf32> to vector<1x16x8xf32>
    %535 = vector.shape_cast %534 : vector<1x16x8xf32> to vector<16x8xf32>
    %536 = vector.extract_strided_slice %529 {offsets = [3, 0, 0], sizes = [1, 16, 8], strides = [1, 1, 1]} : vector<4x16x8xf32> to vector<1x16x8xf32>
    %537 = vector.shape_cast %536 : vector<1x16x8xf32> to vector<16x8xf32>
    %538 = tpu.concatenate %531, %533, %535, %537 in 1 : vector<16x8xf32>, vector<16x8xf32>, vector<16x8xf32>, vector<16x8xf32> -> vector<16x32xf32>
    %c1_269 = arith.constant 1 : index
    %c0_270 = arith.constant 0 : index
    %c0_271 = arith.constant 0 : index
    %539 = vector.load %arg10[%c1_269, %c0_270, %c0_271] : memref<2x32x32xf32, #tpu.memory_space<vmem>>, vector<1x32x32xf32>
    %540 = vector.shape_cast %539 : vector<1x32x32xf32> to vector<32x32xf32>
    %cst_272 = arith.constant dense<0.000000e+00> : vector<16x32xf32>
    %541 = tpu.matmul %538, %540, %cst_272 {dimension_numbers = #tpu.dot_dimension_numbers<[1], [0], [0], [1], [0, 0, 1, 1], [], []>} : vector<16x32xf32>, vector<32x32xf32>, vector<16x32xf32> -> vector<16x32xf32>
    %c1_273 = arith.constant 1 : index
    %c0_274 = arith.constant 0 : index
    %c0_275 = arith.constant 0 : index
    %542 = vector.load %arg15[%c1_273, %c0_274, %c0_275] : memref<2x6x32xf32, #tpu.memory_space<vmem>>, vector<1x1x32xf32>
    %543 = vector.shape_cast %542 : vector<1x1x32xf32> to vector<1x32xf32>
    %544 = vector.broadcast %543 : vector<1x32xf32> to vector<16x32xf32>
    %545 = arith.addf %541, %544 : vector<16x32xf32>
    %546 = arith.addf %481, %545 : vector<16x32xf32>
    %c1_276 = arith.constant 1 : index
    %c1_277 = arith.constant 1 : index
    %c0_278 = arith.constant 0 : index
    %547 = vector.load %arg15[%c1_276, %c1_277, %c0_278] : memref<2x6x32xf32, #tpu.memory_space<vmem>>, vector<1x1x32xf32>
    %548 = vector.shape_cast %547 : vector<1x1x32xf32> to vector<1x32xf32>
    %c1_279 = arith.constant 1 : index
    %c2_280 = arith.constant 2 : index
    %c0_281 = arith.constant 0 : index
    %549 = vector.load %arg15[%c1_279, %c2_280, %c0_281] : memref<2x6x32xf32, #tpu.memory_space<vmem>>, vector<1x1x32xf32>
    %550 = vector.shape_cast %549 : vector<1x1x32xf32> to vector<1x32xf32>
    %cst_282 = arith.constant dense<0.000000e+00> : vector<16xf32>
    %551 = vector.multi_reduction <add>, %546, %cst_282 [1] : vector<16x32xf32> to vector<16xf32>
    %552 = vector.shape_cast %551 : vector<16xf32> to vector<16x1xf32>
    %cst_283 = arith.constant 3.200000e+01 : f32
    %553 = vector.broadcast %cst_283 : f32 to vector<16x1xf32>
    %554 = arith.divf %552, %553 : vector<16x1xf32>
    %555 = vector.broadcast %554 : vector<16x1xf32> to vector<16x32xf32>
    %556 = arith.subf %546, %555 : vector<16x32xf32>
    %557 = arith.mulf %556, %556 : vector<16x32xf32>
    %cst_284 = arith.constant dense<0.000000e+00> : vector<16xf32>
    %558 = vector.multi_reduction <add>, %557, %cst_284 [1] : vector<16x32xf32> to vector<16xf32>
    %559 = vector.shape_cast %558 : vector<16xf32> to vector<16x1xf32>
    %cst_285 = arith.constant 3.200000e+01 : f32
    %560 = vector.broadcast %cst_285 : f32 to vector<16x1xf32>
    %561 = arith.divf %559, %560 : vector<16x1xf32>
    %cst_286 = arith.constant 9.99999974E-6 : f32
    %562 = vector.broadcast %cst_286 : f32 to vector<16x1xf32>
    %563 = arith.addf %561, %562 : vector<16x1xf32>
    %564 = math.rsqrt %563 : vector<16x1xf32>
    %565 = vector.broadcast %564 : vector<16x1xf32> to vector<16x32xf32>
    %566 = arith.mulf %556, %565 : vector<16x32xf32>
    %567 = vector.broadcast %548 : vector<1x32xf32> to vector<16x32xf32>
    %568 = arith.mulf %566, %567 : vector<16x32xf32>
    %569 = vector.broadcast %550 : vector<1x32xf32> to vector<16x32xf32>
    %570 = arith.addf %568, %569 : vector<16x32xf32>
    %c1_287 = arith.constant 1 : index
    %c0_288 = arith.constant 0 : index
    %c0_289 = arith.constant 0 : index
    %571 = vector.load %arg14[%c1_287, %c0_288, %c0_289] : memref<2x1x64xf32, #tpu.memory_space<vmem>>, vector<1x1x64xf32>
    %572 = vector.shape_cast %571 : vector<1x1x64xf32> to vector<1x64xf32>
    %573 = tpu.iota {dimensions = array<i32: 0>} : vector<16x1xi32>
    %c1_290 = arith.constant 1 : index
    %c0_291 = arith.constant 0 : index
    %c0_292 = arith.constant 0 : index
    %c0_293 = arith.constant 0 : index
    %574 = vector.load %arg11[%c1_290, %c0_291, %c0_292, %c0_293] : memref<2x3x32x64xf32, #tpu.memory_space<vmem>>, vector<1x1x32x64xf32>
    %575 = vector.shape_cast %574 : vector<1x1x32x64xf32> to vector<32x64xf32>
    %c1_i32_294 = arith.constant 1 : i32
    %576 = tpu.dynamic_rotate %570 by %c1_i32_294 dim 0 : vector<16x32xf32>, i32 -> vector<16x32xf32>
    %c1_i32_295 = arith.constant 1 : i32
    %577 = vector.broadcast %c1_i32_295 : i32 to vector<16x1xi32>
    %578 = arith.cmpi sge, %573, %577 : vector<16x1xi32>
    %c17_i32_296 = arith.constant 17 : i32
    %579 = vector.broadcast %c17_i32_296 : i32 to vector<16x1xi32>
    %580 = arith.cmpi slt, %573, %579 : vector<16x1xi32>
    %581 = arith.andi %578, %580 : vector<16x1xi1>
    %cst_297 = arith.constant 0.000000e+00 : f32
    %582 = vector.shape_cast %581 : vector<16x1xi1> to vector<16x1xi1>
    %583 = vector.broadcast %582 : vector<16x1xi1> to vector<16x32xi1>
    %584 = vector.broadcast %cst_297 : f32 to vector<16x32xf32>
    %585 = arith.select %583, %576, %584 : vector<16x32xi1>, vector<16x32xf32>
    %cst_298 = arith.constant dense<0.000000e+00> : vector<16x64xf32>
    %586 = tpu.matmul %585, %575, %cst_298 {dimension_numbers = #tpu.dot_dimension_numbers<[1], [0], [0], [1], [0, 0, 1, 1], [], []>} : vector<16x32xf32>, vector<32x64xf32>, vector<16x64xf32> -> vector<16x64xf32>
    %c1_299 = arith.constant 1 : index
    %c1_300 = arith.constant 1 : index
    %c0_301 = arith.constant 0 : index
    %c0_302 = arith.constant 0 : index
    %587 = vector.load %arg11[%c1_299, %c1_300, %c0_301, %c0_302] : memref<2x3x32x64xf32, #tpu.memory_space<vmem>>, vector<1x1x32x64xf32>
    %588 = vector.shape_cast %587 : vector<1x1x32x64xf32> to vector<32x64xf32>
    %cst_303 = arith.constant dense<0.000000e+00> : vector<16x64xf32>
    %589 = tpu.matmul %570, %588, %cst_303 {dimension_numbers = #tpu.dot_dimension_numbers<[1], [0], [0], [1], [0, 0, 1, 1], [], []>} : vector<16x32xf32>, vector<32x64xf32>, vector<16x64xf32> -> vector<16x64xf32>
    %590 = arith.addf %586, %589 : vector<16x64xf32>
    %c1_304 = arith.constant 1 : index
    %c2_305 = arith.constant 2 : index
    %c0_306 = arith.constant 0 : index
    %c0_307 = arith.constant 0 : index
    %591 = vector.load %arg11[%c1_304, %c2_305, %c0_306, %c0_307] : memref<2x3x32x64xf32, #tpu.memory_space<vmem>>, vector<1x1x32x64xf32>
    %592 = vector.shape_cast %591 : vector<1x1x32x64xf32> to vector<32x64xf32>
    %c15_i32_308 = arith.constant 15 : i32
    %593 = tpu.dynamic_rotate %570 by %c15_i32_308 dim 0 : vector<16x32xf32>, i32 -> vector<16x32xf32>
    %c-1_i32_309 = arith.constant -1 : i32
    %594 = vector.broadcast %c-1_i32_309 : i32 to vector<16x1xi32>
    %595 = arith.cmpi sge, %573, %594 : vector<16x1xi32>
    %c15_i32_310 = arith.constant 15 : i32
    %596 = vector.broadcast %c15_i32_310 : i32 to vector<16x1xi32>
    %597 = arith.cmpi slt, %573, %596 : vector<16x1xi32>
    %598 = arith.andi %595, %597 : vector<16x1xi1>
    %cst_311 = arith.constant 0.000000e+00 : f32
    %599 = vector.shape_cast %598 : vector<16x1xi1> to vector<16x1xi1>
    %600 = vector.broadcast %599 : vector<16x1xi1> to vector<16x32xi1>
    %601 = vector.broadcast %cst_311 : f32 to vector<16x32xf32>
    %602 = arith.select %600, %593, %601 : vector<16x32xi1>, vector<16x32xf32>
    %cst_312 = arith.constant dense<0.000000e+00> : vector<16x64xf32>
    %603 = tpu.matmul %602, %592, %cst_312 {dimension_numbers = #tpu.dot_dimension_numbers<[1], [0], [0], [1], [0, 0, 1, 1], [], []>} : vector<16x32xf32>, vector<32x64xf32>, vector<16x64xf32> -> vector<16x64xf32>
    %604 = arith.addf %590, %603 : vector<16x64xf32>
    %605 = vector.broadcast %572 : vector<1x64xf32> to vector<16x64xf32>
    %606 = arith.addf %604, %605 : vector<16x64xf32>
    %cst_313 = arith.constant 0.000000e+00 : f32
    %607 = vector.broadcast %cst_313 : f32 to vector<16x64xf32>
    %608 = arith.maximumf %606, %607 : vector<16x64xf32>
    %c1_314 = arith.constant 1 : index
    %c3_315 = arith.constant 3 : index
    %c0_316 = arith.constant 0 : index
    %609 = vector.load %arg15[%c1_314, %c3_315, %c0_316] : memref<2x6x32xf32, #tpu.memory_space<vmem>>, vector<1x1x32xf32>
    %610 = vector.shape_cast %609 : vector<1x1x32xf32> to vector<1x32xf32>
    %611 = tpu.iota {dimensions = array<i32: 0>} : vector<16x1xi32>
    %c1_317 = arith.constant 1 : index
    %c0_318 = arith.constant 0 : index
    %c0_319 = arith.constant 0 : index
    %c0_320 = arith.constant 0 : index
    %612 = vector.load %arg12[%c1_317, %c0_318, %c0_319, %c0_320] : memref<2x3x64x32xf32, #tpu.memory_space<vmem>>, vector<1x1x64x32xf32>
    %613 = vector.shape_cast %612 : vector<1x1x64x32xf32> to vector<64x32xf32>
    %c1_i32_321 = arith.constant 1 : i32
    %614 = tpu.dynamic_rotate %608 by %c1_i32_321 dim 0 : vector<16x64xf32>, i32 -> vector<16x64xf32>
    %c1_i32_322 = arith.constant 1 : i32
    %615 = vector.broadcast %c1_i32_322 : i32 to vector<16x1xi32>
    %616 = arith.cmpi sge, %611, %615 : vector<16x1xi32>
    %c17_i32_323 = arith.constant 17 : i32
    %617 = vector.broadcast %c17_i32_323 : i32 to vector<16x1xi32>
    %618 = arith.cmpi slt, %611, %617 : vector<16x1xi32>
    %619 = arith.andi %616, %618 : vector<16x1xi1>
    %cst_324 = arith.constant 0.000000e+00 : f32
    %620 = vector.shape_cast %619 : vector<16x1xi1> to vector<16x1xi1>
    %621 = vector.broadcast %620 : vector<16x1xi1> to vector<16x64xi1>
    %622 = vector.broadcast %cst_324 : f32 to vector<16x64xf32>
    %623 = arith.select %621, %614, %622 : vector<16x64xi1>, vector<16x64xf32>
    %cst_325 = arith.constant dense<0.000000e+00> : vector<16x32xf32>
    %624 = tpu.matmul %623, %613, %cst_325 {dimension_numbers = #tpu.dot_dimension_numbers<[1], [0], [0], [1], [0, 0, 1, 1], [], []>} : vector<16x64xf32>, vector<64x32xf32>, vector<16x32xf32> -> vector<16x32xf32>
    %c1_326 = arith.constant 1 : index
    %c1_327 = arith.constant 1 : index
    %c0_328 = arith.constant 0 : index
    %c0_329 = arith.constant 0 : index
    %625 = vector.load %arg12[%c1_326, %c1_327, %c0_328, %c0_329] : memref<2x3x64x32xf32, #tpu.memory_space<vmem>>, vector<1x1x64x32xf32>
    %626 = vector.shape_cast %625 : vector<1x1x64x32xf32> to vector<64x32xf32>
    %cst_330 = arith.constant dense<0.000000e+00> : vector<16x32xf32>
    %627 = tpu.matmul %608, %626, %cst_330 {dimension_numbers = #tpu.dot_dimension_numbers<[1], [0], [0], [1], [0, 0, 1, 1], [], []>} : vector<16x64xf32>, vector<64x32xf32>, vector<16x32xf32> -> vector<16x32xf32>
    %628 = arith.addf %624, %627 : vector<16x32xf32>
    %c1_331 = arith.constant 1 : index
    %c2_332 = arith.constant 2 : index
    %c0_333 = arith.constant 0 : index
    %c0_334 = arith.constant 0 : index
    %629 = vector.load %arg12[%c1_331, %c2_332, %c0_333, %c0_334] : memref<2x3x64x32xf32, #tpu.memory_space<vmem>>, vector<1x1x64x32xf32>
    %630 = vector.shape_cast %629 : vector<1x1x64x32xf32> to vector<64x32xf32>
    %c15_i32_335 = arith.constant 15 : i32
    %631 = tpu.dynamic_rotate %608 by %c15_i32_335 dim 0 : vector<16x64xf32>, i32 -> vector<16x64xf32>
    %c-1_i32_336 = arith.constant -1 : i32
    %632 = vector.broadcast %c-1_i32_336 : i32 to vector<16x1xi32>
    %633 = arith.cmpi sge, %611, %632 : vector<16x1xi32>
    %c15_i32_337 = arith.constant 15 : i32
    %634 = vector.broadcast %c15_i32_337 : i32 to vector<16x1xi32>
    %635 = arith.cmpi slt, %611, %634 : vector<16x1xi32>
    %636 = arith.andi %633, %635 : vector<16x1xi1>
    %cst_338 = arith.constant 0.000000e+00 : f32
    %637 = vector.shape_cast %636 : vector<16x1xi1> to vector<16x1xi1>
    %638 = vector.broadcast %637 : vector<16x1xi1> to vector<16x64xi1>
    %639 = vector.broadcast %cst_338 : f32 to vector<16x64xf32>
    %640 = arith.select %638, %631, %639 : vector<16x64xi1>, vector<16x64xf32>
    %cst_339 = arith.constant dense<0.000000e+00> : vector<16x32xf32>
    %641 = tpu.matmul %640, %630, %cst_339 {dimension_numbers = #tpu.dot_dimension_numbers<[1], [0], [0], [1], [0, 0, 1, 1], [], []>} : vector<16x64xf32>, vector<64x32xf32>, vector<16x32xf32> -> vector<16x32xf32>
    %642 = arith.addf %628, %641 : vector<16x32xf32>
    %643 = vector.broadcast %610 : vector<1x32xf32> to vector<16x32xf32>
    %644 = arith.addf %642, %643 : vector<16x32xf32>
    %645 = arith.addf %570, %644 : vector<16x32xf32>
    %c1_340 = arith.constant 1 : index
    %c4_341 = arith.constant 4 : index
    %c0_342 = arith.constant 0 : index
    %646 = vector.load %arg15[%c1_340, %c4_341, %c0_342] : memref<2x6x32xf32, #tpu.memory_space<vmem>>, vector<1x1x32xf32>
    %647 = vector.shape_cast %646 : vector<1x1x32xf32> to vector<1x32xf32>
    %c1_343 = arith.constant 1 : index
    %c5_344 = arith.constant 5 : index
    %c0_345 = arith.constant 0 : index
    %648 = vector.load %arg15[%c1_343, %c5_344, %c0_345] : memref<2x6x32xf32, #tpu.memory_space<vmem>>, vector<1x1x32xf32>
    %649 = vector.shape_cast %648 : vector<1x1x32xf32> to vector<1x32xf32>
    %cst_346 = arith.constant dense<0.000000e+00> : vector<16xf32>
    %650 = vector.multi_reduction <add>, %645, %cst_346 [1] : vector<16x32xf32> to vector<16xf32>
    %651 = vector.shape_cast %650 : vector<16xf32> to vector<16x1xf32>
    %cst_347 = arith.constant 3.200000e+01 : f32
    %652 = vector.broadcast %cst_347 : f32 to vector<16x1xf32>
    %653 = arith.divf %651, %652 : vector<16x1xf32>
    %654 = vector.broadcast %653 : vector<16x1xf32> to vector<16x32xf32>
    %655 = arith.subf %645, %654 : vector<16x32xf32>
    %656 = arith.mulf %655, %655 : vector<16x32xf32>
    %cst_348 = arith.constant dense<0.000000e+00> : vector<16xf32>
    %657 = vector.multi_reduction <add>, %656, %cst_348 [1] : vector<16x32xf32> to vector<16xf32>
    %658 = vector.shape_cast %657 : vector<16xf32> to vector<16x1xf32>
    %cst_349 = arith.constant 3.200000e+01 : f32
    %659 = vector.broadcast %cst_349 : f32 to vector<16x1xf32>
    %660 = arith.divf %658, %659 : vector<16x1xf32>
    %cst_350 = arith.constant 9.99999974E-6 : f32
    %661 = vector.broadcast %cst_350 : f32 to vector<16x1xf32>
    %662 = arith.addf %660, %661 : vector<16x1xf32>
    %663 = math.rsqrt %662 : vector<16x1xf32>
    %664 = vector.broadcast %663 : vector<16x1xf32> to vector<16x32xf32>
    %665 = arith.mulf %655, %664 : vector<16x32xf32>
    %666 = vector.broadcast %647 : vector<1x32xf32> to vector<16x32xf32>
    %667 = arith.mulf %665, %666 : vector<16x32xf32>
    %668 = vector.broadcast %649 : vector<1x32xf32> to vector<16x32xf32>
    %669 = arith.addf %667, %668 : vector<16x32xf32>
    %c0_351 = arith.constant 0 : index
    %c0_352 = arith.constant 0 : index
    %670 = vector.load %arg18[%c0_351, %c0_352] : memref<32x16xf32, #tpu.memory_space<vmem>>, vector<32x16xf32>
    %cst_353 = arith.constant dense<0.000000e+00> : vector<16x16xf32>
    %671 = tpu.matmul %669, %670, %cst_353 {dimension_numbers = #tpu.dot_dimension_numbers<[1], [0], [0], [1], [0, 0, 1, 1], [], []>} : vector<16x32xf32>, vector<32x16xf32>, vector<16x16xf32> -> vector<16x16xf32>
    %c0_354 = arith.constant 0 : index
    %c0_355 = arith.constant 0 : index
    %672 = vector.load %arg19[%c0_354, %c0_355] : memref<1x16xf32, #tpu.memory_space<vmem>>, vector<1x16xf32>
    %673 = vector.broadcast %672 : vector<1x16xf32> to vector<16x16xf32>
    %674 = arith.addf %671, %673 : vector<16x16xf32>
    %c0_356 = arith.constant 0 : index
    %c0_357 = arith.constant 0 : index
    %c0_358 = arith.constant 0 : index
    %675 = vector.load %arg20[%c0_356, %c0_357, %c0_358] : memref<1x16x16xf32, #tpu.memory_space<vmem>>, vector<1x16x16xf32>
    %676 = vector.shape_cast %675 : vector<1x16x16xf32> to vector<16x16xf32>
    %677 = vector.shape_cast %674 : vector<16x16xf32> to vector<1x16x16xf32>
    tpu.vector_store %arg20[%c0_356, %c0_357, %c0_358], %677 {strides = array<i32>} : memref<1x16x16xf32, #tpu.memory_space<vmem>>, vector<1x16x16xf32>,
    return
  }
  func.func @transform_0(%arg0: i32) -> (i32, i32, i32) {
    %c0_i32 = arith.constant 0 : i32
    %c0_i32_0 = arith.constant 0 : i32
    %c0_i32_1 = arith.constant 0 : i32
    return %arg0, %c0_i32, %c0_i32_0 : i32, i32, i32
  }
  func.func @transform_1(%arg0: i32) -> (i32, i32, i32) {
    %c0_i32 = arith.constant 0 : i32
    %c0_i32_0 = arith.constant 0 : i32
    %c0_i32_1 = arith.constant 0 : i32
    return %arg0, %c0_i32, %c0_i32_0 : i32, i32, i32
  }
  func.func @transform_2(%arg0: i32) -> (i32, i32, i32) {
    %c0_i32 = arith.constant 0 : i32
    %c0_i32_0 = arith.constant 0 : i32
    %c0_i32_1 = arith.constant 0 : i32
    return %arg0, %c0_i32, %c0_i32_0 : i32, i32, i32
  }
  func.func @transform_3(%arg0: i32) -> (i32, i32, i32) {
    %c0_i32 = arith.constant 0 : i32
    %c0_i32_0 = arith.constant 0 : i32
    %c0_i32_1 = arith.constant 0 : i32
    return %arg0, %c0_i32, %c0_i32_0 : i32, i32, i32
  }
  func.func @transform_4(%arg0: i32) -> (i32, i32, i32) {
    %c0_i32 = arith.constant 0 : i32
    %c0_i32_0 = arith.constant 0 : i32
    %c0_i32_1 = arith.constant 0 : i32
    return %arg0, %c0_i32, %c0_i32_0 : i32, i32, i32
  }
  func.func @transform_5(%arg0: i32) -> (i32, i32) {
    %c0_i32 = arith.constant 0 : i32
    %c0_i32_0 = arith.constant 0 : i32
    %c0_i32_1 = arith.constant 0 : i32
    return %c0_i32, %c0_i32_0 : i32, i32
  }
  func.func @transform_6(%arg0: i32) -> (i32, i32) {
    %c0_i32 = arith.constant 0 : i32
    %c0_i32_0 = arith.constant 0 : i32
    %c0_i32_1 = arith.constant 0 : i32
    return %c0_i32, %c0_i32_0 : i32, i32
  }
  func.func @transform_7(%arg0: i32) -> (i32, i32) {
    %c0_i32 = arith.constant 0 : i32
    %c0_i32_0 = arith.constant 0 : i32
    %c0_i32_1 = arith.constant 0 : i32
    return %c0_i32, %c0_i32_0 : i32, i32
  }
  func.func @transform_8(%arg0: i32) -> (i32, i32, i32) {
    %c0_i32 = arith.constant 0 : i32
    %c0_i32_0 = arith.constant 0 : i32
    %c0_i32_1 = arith.constant 0 : i32
    %c0_i32_2 = arith.constant 0 : i32
    return %c0_i32, %c0_i32_0, %c0_i32_1 : i32, i32, i32
  }
  func.func @transform_9(%arg0: i32) -> (i32, i32, i32) {
    %c0_i32 = arith.constant 0 : i32
    %c0_i32_0 = arith.constant 0 : i32
    %c0_i32_1 = arith.constant 0 : i32
    %c0_i32_2 = arith.constant 0 : i32
    return %c0_i32, %c0_i32_0, %c0_i32_1 : i32, i32, i32
  }
  func.func @transform_10(%arg0: i32) -> (i32, i32, i32, i32) {
    %c0_i32 = arith.constant 0 : i32
    %c0_i32_0 = arith.constant 0 : i32
    %c0_i32_1 = arith.constant 0 : i32
    %c0_i32_2 = arith.constant 0 : i32
    %c0_i32_3 = arith.constant 0 : i32
    return %c0_i32, %c0_i32_0, %c0_i32_1, %c0_i32_2 : i32, i32, i32, i32
  }
  func.func @transform_11(%arg0: i32) -> (i32, i32, i32, i32) {
    %c0_i32 = arith.constant 0 : i32
    %c0_i32_0 = arith.constant 0 : i32
    %c0_i32_1 = arith.constant 0 : i32
    %c0_i32_2 = arith.constant 0 : i32
    %c0_i32_3 = arith.constant 0 : i32
    return %c0_i32, %c0_i32_0, %c0_i32_1, %c0_i32_2 : i32, i32, i32, i32
  }
  func.func @transform_12(%arg0: i32) -> (i32, i32, i32) {
    %c0_i32 = arith.constant 0 : i32
    %c0_i32_0 = arith.constant 0 : i32
    %c0_i32_1 = arith.constant 0 : i32
    %c0_i32_2 = arith.constant 0 : i32
    return %c0_i32, %c0_i32_0, %c0_i32_1 : i32, i32, i32
  }
  func.func @transform_13(%arg0: i32) -> (i32, i32, i32) {
    %c0_i32 = arith.constant 0 : i32
    %c0_i32_0 = arith.constant 0 : i32
    %c0_i32_1 = arith.constant 0 : i32
    %c0_i32_2 = arith.constant 0 : i32
    return %c0_i32, %c0_i32_0, %c0_i32_1 : i32, i32, i32
  }
  func.func @transform_14(%arg0: i32) -> (i32, i32, i32) {
    %c0_i32 = arith.constant 0 : i32
    %c0_i32_0 = arith.constant 0 : i32
    %c0_i32_1 = arith.constant 0 : i32
    %c0_i32_2 = arith.constant 0 : i32
    return %c0_i32, %c0_i32_0, %c0_i32_1 : i32, i32, i32
  }
  func.func @transform_15(%arg0: i32) -> (i32, i32, i32, i32) {
    %c0_i32 = arith.constant 0 : i32
    %c0_i32_0 = arith.constant 0 : i32
    %c0_i32_1 = arith.constant 0 : i32
    %c0_i32_2 = arith.constant 0 : i32
    %c0_i32_3 = arith.constant 0 : i32
    return %c0_i32, %c0_i32_0, %c0_i32_1, %c0_i32_2 : i32, i32, i32, i32
  }
  func.func @transform_16(%arg0: i32) -> (i32, i32) {
    %c0_i32 = arith.constant 0 : i32
    %c0_i32_0 = arith.constant 0 : i32
    %c0_i32_1 = arith.constant 0 : i32
    return %c0_i32, %c0_i32_0 : i32, i32
  }
  func.func @transform_17(%arg0: i32) -> (i32, i32) {
    %c0_i32 = arith.constant 0 : i32
    %c0_i32_0 = arith.constant 0 : i32
    %c0_i32_1 = arith.constant 0 : i32
    return %c0_i32, %c0_i32_0 : i32, i32
  }
  func.func @transform_18(%arg0: i32) -> (i32, i32) {
    %c0_i32 = arith.constant 0 : i32
    %c0_i32_0 = arith.constant 0 : i32
    %c0_i32_1 = arith.constant 0 : i32
    return %c0_i32, %c0_i32_0 : i32, i32
  }
  func.func @transform_19(%arg0: i32) -> (i32, i32, i32) {
    %c0_i32 = arith.constant 0 : i32
    %c0_i32_0 = arith.constant 0 : i32
    %c0_i32_1 = arith.constant 0 : i32
    return %arg0, %c0_i32, %c0_i32_0 : i32, i32, i32
  }
  func.func @transform_20(%arg0: i32) -> (i32, i32, i32) {
    %c0_i32 = arith.constant 0 : i32
    %c0_i32_0 = arith.constant 0 : i32
    %c0_i32_1 = arith.constant 0 : i32
    return %arg0, %c0_i32, %c0_i32_0 : i32, i32, i32
  }
  func.func @transform_21(%arg0: i32) -> (i32, i32, i32) {
    %c0_i32 = arith.constant 0 : i32
    %c0_i32_0 = arith.constant 0 : i32
    %c0_i32_1 = arith.constant 0 : i32
    return %arg0, %c0_i32, %c0_i32_0 : i32, i32, i32
  }
}

</mosaic_0001>

<bundles_post_ra>
// kernel: sub.7
= control target key start
LH: loop header
LB: loop body
LE: loop exit
PB: predicated region body
PF: predicated region fallthrough
CT: control target
= control target key end

     0   :  { %s34_s0 = inlined_call_operand.vmem [shape: s32[2,8], index: 0, kind: input, shape index: {}]   ;;  %s35_s1 = inlined_call_operand.vmem [shape: s32[2,8], index: 1, kind: input, shape index: {}]   ;;  %s36_s2 = inlined_call_operand.vmem [shape: s32[2,8], index: 2, kind: output, shape index: {}]  }
   0x1   :  { %v3_v0 = vld [vmem:[%s34_s0] sm:$0x3] }
   0x2   :  { %v4_v1 = vld [vmem:[%s35_s1] sm:$0x3] }
   0x3   :  { %v7_v2 = vsub.s32 %v3_v0, %v4_v1 }
   0x5   :  { %9 = vst [vmem:[%s36_s2] sm:$0x3] %v7_v2 }

// kernel: custom-call
= control target key start
LH: loop header
LB: loop body
LE: loop exit
PB: predicated region body
PF: predicated region fallthrough
CT: control target
= control target key end

     0   :  { %s6_s0 = inlined_call_operand.vmem [shape: u32[2,16], index: 0, kind: output, shape index: {}]  }

// kernel: ne.4
= control target key start
LH: loop header
LB: loop body
LE: loop exit
PB: predicated region body
PF: predicated region fallthrough
CT: control target
= control target key end

     0   :  { %v15_v2 = vmov 0   ;;  %s40_s0 = inlined_call_operand.vmem [shape: f32[2,16], index: 0, kind: input, shape index: {}, may-alias: {0,1}]   ;;  %s41_s1 = inlined_call_operand.vmem [shape: f32[2,16], index: 1, kind: input, shape index: {}, may-alias: {0,1}]   ;;  %s42_s2 = inlined_call_operand.vmem [shape: pred[2,16], index: 2, kind: output, shape index: {}]  }
   0x1   :  { %v3_v0 = vld [vmem:[%s40_s0] sm:$0x3] }
   0x2   :  { %v4_v1 = vld [vmem:[%s41_s1] sm:$0x3] }
   0x3   :  { %vm7_vm0 = vcmp.ne.f32.partialorder %v3_v0, %v4_v1 }
   0x4   :  { %v8_v3 = vsel %vm7_vm0, 1, %v15_v2 }
   0x5   :  { %v10_v4 = vpack.c.b16 %v15_v2, %v8_v3 }
   0x7   :  { %v11_v5 = vpack.c.b8 %v15_v2, %v10_v4 }
   0x9   :  { %13 = vst [vmem:[%s42_s2] sm:$0x1] %v11_v5 }

// kernel: squeeze.12
= control target key start
LH: loop header
LB: loop body
LE: loop exit
PB: predicated region body
PF: predicated region fallthrough
CT: control target
= control target key end

     0   :  { %vm7_vm0 = vcmask 130048   ;;  %s39_s0 = inlined_call_operand.vmem [shape: f32[32], index: 0, kind: input, shape index: {}]   ;;  %s40_s1 = inlined_call_operand.vmem [shape: f32[2,16], index: 1, kind: output, shape index: {}]  }
   0x1   :  { %v4_v0 = vld [vmem:[%s39_s0] sm:$0x1]  ;;  %s22_s0 = smov 112  }
   0x2   :  { %5 = vst [vmem:[#allocation1] sm:$0x1] %v4_v0 }
   0x9   :  { %v9_v1 = vld [vmem:[#allocation1] sm:$0x1]  }
   0xa   :  { %v6_v2 = vld [vmem:[#allocation1] sm:$0x1]   ;;  %10 = vrot.lane.b32.xlu0 %v9_v1, %s22_s0 }
   0xb   :  { %8 = vst.msk [vmem:[#allocation0] sm:$0x1] %vm7_vm0, %v6_v2  }
  0x7c   :  { %v11_v3 = vpop.permute.xlu0 %10  }
  0x7d   :  { %14 = vst.msk [vmem:[#allocation0 + $0x1] sm:$0x1] %vm7_vm0, %v11_v3  }
  0x84   :  { %v18_v4 = vld [vmem:[#allocation0] sm:$0x3] }
  0x85   :  { %20 = vst [vmem:[%s40_s1] sm:$0x3] %v18_v4 }

// kernel: fastspeech2_forward.2
= control target key start
LH: loop header
LB: loop body
LE: loop exit
PB: predicated region body
PF: predicated region fallthrough
CT: control target
= control target key end

     0   :  { %s6139_s0 = inlined_call_operand.vmem [shape: s32[2,8,1], index: 0, kind: input, shape index: {}]   ;;  %s6140_s1 = inlined_call_operand.vmem [shape: f32[40,32], index: 1, kind: input, shape index: {}]   ;;  %s6141_s2 = inlined_call_operand.vmem [shape: f32[8,32], index: 2, kind: input, shape index: {}]   ;;  %s6142_s3 = inlined_call_operand.vmem [shape: f32[2,32,96], index: 3, kind: input, shape index: {}]   ;;  %s6143_s4 = inlined_call_operand.vmem [shape: f32[2,32,32], index: 4, kind: input, shape index: {}]   ;;  %s6144_s5 = inlined_call_operand.vmem [shape: f32[2,3,32,64], index: 5, kind: input, shape index: {}]   ;;  %s6145_s6 = inlined_call_operand.vmem [shape: f32[2,3,64,32], index: 6, kind: input, shape index: {}]   ;;  %s6146_s7 = inlined_call_operand.vmem [shape: f32[2,1,96], index: 7, kind: input, shape index: {}]   ;;  %s6147_s8 = inlined_call_operand.vmem [shape: f32[2,1,64], index: 8, kind: input, shape index: {}]   ;;  %s6148_s9 = inlined_call_operand.vmem [shape: f32[2,6,32], index: 9, kind: input, shape index: {}]   ;;  %s6149_s10 = inlined_call_operand.vmem [shape: f32[2,3,32,32], index: 10, kind: input, shape index: {}]   ;;  %s6150_s11 = inlined_call_operand.vmem [shape: f32[8,32], index: 11, kind: input, shape index: {}]   ;;  %s6151_s12 = inlined_call_operand.vmem [shape: f32[2,8,32], index: 12, kind: output, shape index: {0}]   ;;  %s6152_s13 = inlined_call_operand.hbm [shape: f32[2,1,8], index: 13, kind: output, shape index: {1}]  }
   0x1   :  { %6164 = sst [smem:[#allocation6_spill]] %s6139_s0 }
   0x2   :  { %6165 = sst [smem:[#allocation7_spill]] %s6140_s1 }
   0x3   :  { %6166 = sst [smem:[#allocation8_spill]] %s6141_s2 }
   0x4   :  { %6167 = sst [smem:[#allocation9_spill]] %s6142_s3 }
   0x5   :  { %19 = vsyncpa [#allocation3], 0 }
   0x6   :  { %21 = vsyncpa [#allocation3 + $0x1], 0  ;;  %s5255_s25 = smov 0   ;;  %s5257_s26 = smov 0  }
   0x7   :  { %s5259_s27 = smov 0   ;;  %s5261_s28 = smov 0  }
   0x8 LB: > { %s5276_s29 = sadd.s32 4294967295, %s5170_s28   ;;  %s4099_s30 = sadd.s32 4294967294, %s5170_s28   ;;  %s5170_s28 = sphi %s5261_s28, %s6188_s28   ;;  %s5166_s27 = sphi %s5259_s27, %s6187_s27   ;;  %s5162_s26 = sphi %s5257_s26, %s6186_s26   ;;  %s5158_s25 = sphi %s5255_s25, %s6185_s25  }
   0x9   : > { %s5280_s14 = sadd.s32 1, %s5170_s28   ;;  %s317_s15 = sadd.s32 1, %s5166_s27 }
   0xa   : > { %s314_s16 = ssub.s32 %s5170_s28, %s5280_s14  ;;  %p327_p0 = scmp.ne.s32.totalorder %s5166_s27, %s5162_s26 }
   0xb   : > { %p315_p1 = scmp.eq.s32.totalorder %s314_s16, 0  ;;  %p328_p2 = scmp.eq.s32.totalorder %s5276_s29, 1 }
   0xc   : > { %p333_p3 = scmp.ne.s32.totalorder %s5162_s26, %s5158_s25  ;;  %p334_p4 = scmp.eq.s32.totalorder %s4099_s30, 1 }
   0xd   : > { %s5291_s17 = scalar_select %p315_p1, %s5166_s27, %s317_s15  }
   0xe   : > { %p5293_p5 = por %p328_p2, %p327_p0  ;;  %p5297_p6 = por %p334_p4, %p333_p3 }
   0xf   : > { %6168 = sst [smem:[#allocation5_spill]] %s5291_s17  ;;  %p4102_p7 = scmp.ge.s32.totalorder %s5170_s28, 1 }
  0x10   : > { %p392_p8 = scmp.lt.s32.totalorder %s5170_s28, 3 }
  0x12   : > { %p393_p9 = pnand %p4102_p7, %p392_p8 }
  0x13   : > { %p438_p10 = scmp.lt.s32.totalorder (!%p393_p9), %s5276_s29, 1  ;;  %s6171_s1 = sld [smem:[#allocation7_spill]] (!%p393_p9)  ;;  %v5172_v3 = vmov (!%p393_p9), 0   ;;  %v5173_v4 = vmov (!%p393_p9), 0.0|0.0   ;;  %v5174_v9 = vmov (!%p393_p9), 0.0   ;;  %vm5175_vm0 = vmmov (!%p393_p9), 0  }
  0x14   : > { %396 = sbr.rel (%p393_p9) target bundleno = 6905 (0x1af9), region = 68  ;;  %5063 = vset.pattern.permute.xlu0 (!%p393_p9), %v5172_v3  ;;  %4838 = vmatprep.subr.bf16.mxu0 (!%p393_p9), %v5173_v4  ;;  %s6172_s0 = sld [smem:[#allocation6_spill]] (!%p393_p9)  ;;  %v447_v14 = vlaneseq (!%p393_p9)  ;;  %vm461_vm1 = vcmask (!%p393_p9), 326656   ;;  %vm546_vm3 = vcmask (!%p393_p9), 261120   ;;  %v4107_v25 = vld [vmem:[%s6146_s7] ss:$0 sm:$0xff] (!%p393_p9) }
  0x15   : > { %4844 = vmatprep.subr.bf16.mxu1 (!%p393_p9), %v5173_v4  ;;  %4460 = vmatprep.mubr.msk.f32.mxu0 (!%p393_p9), %vm5175_vm0, %v5174_v9  ;;  %s6173_s3 = sld [smem:[#allocation9_spill]] (!%p393_p9)  ;;  %s6174_s2 = sld [smem:[#allocation8_spill]] (!%p393_p9)  ;;  %vm636_vm4 = vcmask (!%p393_p9), 64512   ;;  %vm1304_vm5 = vcmask (!%p393_p9), 130048   ;;  %vm1306_vm6 = vcmask (!%p393_p9), 195584   ;;  %vm1696_vm9 = vcmask (!%p393_p9), 523264  }
  0x16   : > { %4471 = vmatprep.mubr.msk.f32.mxu1 (!%p393_p9), %vm5175_vm0, %v5174_v9  ;;  %v448_v15 = vand.u32 (!%p393_p9), 127, %v447_v14  ;;  %s6159_s30 = smov (!%p393_p9), 120   ;;  %s6158_s15 = smov (!%p393_p9), 104   ;;  %vm3998_vm10 = vcmask (!%p393_p9), 57344  }
  0x17   : > { %s6156_s16 = smov (!%p393_p9), 96   ;;  %s6154_s22 = smov (!%p393_p9), 64  }
  0x19   : > { %v455_v0 = vld [vmem:[%s6171_s1] sm:$0xff] (!%p393_p9)  ;;  %v456_v1 = vld [vmem:[%s6171_s1 + $0x8] sm:$0xff] (!%p393_p9)  ;;  %v457_v2 = vld [vmem:[%s6171_s1 + $0x10] sm:$0xff] (!%p393_p9) }
  0x1a   : > { %v4839_v5 = vpack.c.bf16 (!%p393_p9), %v456_v1, %v455_v0  ;;  %v458_v6 = vld [vmem:[%s6171_s1 + $0x18] sm:$0xff] (!%p393_p9)  ;;  %v459_v10 = vld [vmem:[%s6171_s1 + $0x20] sm:$0xff] (!%p393_p9)  ;;  %s6178_s1 = smov (!%p393_p9), 96  }
  0x1b   : > { %s5318_s20 = scalar_select %p438_p10, %s5276_s29, 1  ;;  %v4842_v7 = vpack.c.bf16 %v458_v6, %v457_v2  ;;  %v535_v11 = vld [vmem:[%s6173_s3] sm:$0xff]  ;;  %v536_v12 = vld [vmem:[%s6173_s3 + $0x8] sm:$0xff]  ;;  %v537_v18 = vld [vmem:[%s6173_s3 + $0x10] sm:$0xff] }
  0x1c   : > { %4840 = vmatpush3.bf16.msra.mxu0 %v4839_v5  ;;  %v4845_v13 = vpack.c.bf16 %v536_v12, %v535_v11  ;;  %v538_v19 = vld [vmem:[%s6173_s3 + $0x18] sm:$0xff]  ;;  %v460_v21 = vld [vmem:[%s6174_s2] sm:$0xff] }
  0x1d   : > { %s6153_s21 = sshll.u32 %s5318_s20, 3  ;;  %4841 = vmatprep.subr.bf16.mxu0 %v5173_v4  ;;  %v4848_v20 = vpack.c.bf16 %v538_v19, %v537_v18 }
  0x1e   : > { %s441_s24 = scalar_lea.vmem %s6172_s0, %s6153_s21  ;;  %4846 = vmatpush3.bf16.msra.mxu1 %v4845_v13  ;;  %s6163_s21 = smov 16  }
  0x1f   : > { %v446_v8 = vld [vmem:[%s441_s24] sm:$0xff]  ;;  %4847 = vmatprep.subr.bf16.mxu1 %v5173_v4  ;;  %s6160_s24 = smov 112   ;;  %s6177_s0 = smov 104  }
  0x20   : > { %450 = vperm.xlu0 %5063, %v446_v8   ;;  %4843 = vmatpush3.bf16.msra.mxu0 %v4842_v7 }
  0x21   : > { %4458 = vmatprep.subr.mxu0 %v5174_v9 }
  0x22   : > { %4849 = vmatpush3.bf16.msra.mxu1 %v4848_v20 }
  0x23   : > { %4474 = vmatprep.subr.mxu1 %v5174_v9 }
  0x24   : > { %4459 = vmatpush3.msra.mxu0 %v459_v10 }
  0x25   : > { %4479 = vmatprep.subr.mxu0 %v5174_v9 }
  0x9f   : > { %v451_v16 = vpop.permute.xlu0 %450 }
  0xa0   : > { %vm452_vm2 = vcmp.eq.s32.totalorder %v448_v15, %v451_v16 }
  0xa1   : > { %v4105_v17 = vsel %vm452_vm2, 1.0, %v5174_v9 }
  0xa2   : > { %4461 = vmatmul.mubr.msk.f32.vlgmr.msra.gmra.mrb[0].mxu0 %vm461_vm1, %v4105_v17 }
  0xa3   : > { %4481 = vmatprep.mubr.msk.f32.mxu0 %vm5175_vm0, %v5174_v9 }
 0x175   : > { %v531_v22 = vpop.f32.mrb[0].mxu0 }
 0x176   : > { %v5358_v23 = vadd.f32 %v531_v22, %v460_v21  ;;  %v4462_v24 = vpop.f32.mrb[1].mxu0 }
 0x178   : > { %4472 = vmatmul.mubr.msk.f32.vlgmr.msra.gmra.mrb[0].mxu1 %vm546_vm3, %v5358_v23 }
 0x179   : > { %4476 = vmatprep.mubr.msk.f32.mxu1 %vm5175_vm0, %v5174_v9 }
 0x24b   : > { %v616_v26 = vpop.f32.mrb[0].mxu1 }
 0x24c   : > { %v617_v27 = vadd.f32 %v4107_v25, %v616_v26  ;;  %v4473_v28 = vpop.f32.mrb[1].mxu1 }
 0x24d   : > { %v1308_v28 = vld [vmem:[%s6143_s4] sm:$0xff] }
 0x24e   : > { %624 = vrot.lane.b32.xlu1 %v617_v27, %s6160_s24  ;;  %621 = vrot.lane.b32.xlu0 %v617_v27, %s6159_s30  ;;  %v630_v33 = vmul.f32 0.35355338, %v617_v27  ;;  %s6179_s24 = smov 64   ;;  %s6182_s30 = smov 24  }
 0x252   : > { %627 = vrot.lane.b32.xlu1 %v617_v27, %s6158_s15  ;;  %634 = vrot.lane.b32.xlu0 %v617_v27, %s6156_s16  ;;  %s6161_s15 = smov 24  }
 0x2c0   : > { %v5371_v29 = vpop.permute.xlu1 %624  ;;  %v5373_v30 = vpop.permute.xlu0 %621 }
 0x2c1   : > { %789 = vrot.lane.b32.xlu0 %v5371_v29, %s6156_s16  ;;  %712 = vrot.lane.b32.xlu1 %v5373_v30, %s6156_s16  ;;  %v632_v36 = vmul.f32 0.35355338, %v5371_v29  ;;  %v631_v37 = vmul.f32 0.35355338, %v5373_v30 }
 0x2c4   : > { %v5379_v31 = vpop.permute.xlu1 %627  ;;  %v635_v32 = vpop.permute.xlu0 %634 }
 0x2c5   : > { %866 = vrot.lane.b32.xlu1 %v5379_v31, %s6156_s16  ;;  %4475 = vmatpush3.xpose.msk.msra.mxu1 %vm636_vm4, %v635_v32  ;;  %v633_v39 = vmul.f32 0.35355338, %v5379_v31 }
 0x2c6   : > { %4484 = vmatprep.subr.mxu1 %v5174_v9 }
 0x2c8   : > { %4477 = vmatmul.mubr.msk.f32.vlgmr.msra.gmra.mrb[2].mxu1 %vm636_vm4, %v630_v33  ;;  %v1310_v33 = vld [vmem:[%s6143_s4 + $0x10] sm:$0xff] }
 0x2c9   : > { %4486 = vmatprep.mubr.msk.f32.mxu1 %vm5175_vm0, %v5174_v9 }
 0x333   : > { %v713_v34 = vpop.permute.xlu1 %712  ;;  %v790_v35 = vpop.permute.xlu0 %789 }
 0x334   : > { %4480 = vmatpush3.xpose.msk.msra.mxu0 %vm636_vm4, %v713_v34  ;;  %4485 = vmatpush3.xpose.msk.msra.mxu1 %vm636_vm4, %v790_v35  ;;  %v1311_v34 = vld [vmem:[%s6143_s4 + $0x18] sm:$0xff] }
 0x335   : > { %4489 = vmatprep.subr.mxu0 %v5174_v9  ;;  %4494 = vmatprep.subr.mxu1 %v5174_v9  ;;  %v4854_v35 = vpack.c.bf16 %v1311_v34, %v1310_v33  ;;  %v4140_v33 = vld [vmem:[%s6145_s6 + $0x58] sm:$0xff]  ;;  %v1677_v34 = vld [vmem:[%s6145_s6] sm:$0xff] }
 0x337   : > { %4482 = vmatmul.mubr.msk.f32.vlgmr.msra.gmra.mrb[2].mxu0 %vm636_vm4, %v631_v37  ;;  %v867_v38 = vpop.permute.xlu1 %866  ;;  %4487 = vmatmul.mubr.msk.f32.vlgmr.msra.gmra.mrb[4].mxu1 %vm636_vm4, %v632_v36 }
 0x338   : > { %4490 = vmatpush3.xpose.msk.msra.mxu0 %vm636_vm4, %v867_v38  ;;  %4491 = vmatprep.mubr.msk.f32.mxu0 %vm5175_vm0, %v5174_v9 }
 0x339   : > { %4496 = vmatprep.mubr.msk.f32.mxu1 %vm5175_vm0, %v5174_v9  ;;  %4499 = vmatprep.subr.mxu0 %v5174_v9 }
 0x33b   : > { %4492 = vmatmul.mubr.msk.f32.vlgmr.msra.gmra.mrb[4].mxu0 %vm636_vm4, %v633_v39 }
 0x33c   : > { %4501 = vmatprep.mubr.msk.f32.mxu0 %vm5175_vm0, %v5174_v9 }
 0x39b   : > { %v708_v40 = vpop.f32.mrb[2].mxu1 }
 0x39c   : > { %v4478_v41 = vpop.f32.mrb[3].mxu1  ;;  %v943_v42 = vsel %vm636_vm4, %v708_v40, -inf }
 0x39d   : > { %944 = vmax.xlane.f32.xlu0 %v943_v42 }
 0x40a   : > { %v785_v43 = vpop.f32.mrb[2].mxu0  ;;  %v862_v44 = vpop.f32.mrb[4].mxu1 }
 0x40b   : > { %v4483_v45 = vpop.f32.mrb[3].mxu0  ;;  %v4488_v46 = vpop.f32.mrb[5].mxu1  ;;  %v949_v47 = vsel %vm636_vm4, %v862_v44, -inf  ;;  %v946_v48 = vsel %vm636_vm4, %v785_v43, -inf }
 0x40c   : > { %950 = vmax.xlane.f32.xlu0 %v949_v47  ;;  %947 = vmax.xlane.f32.xlu1 %v946_v48  ;;  %v4121_v48 = vld [vmem:[%s6148_s9] ss:$0 sm:$0xff] }
 0x40e   : > { %v939_v49 = vpop.f32.mrb[4].mxu0 }
 0x40f   : > { %v4493_v50 = vpop.f32.mrb[5].mxu0  ;;  %v952_v51 = vsel %vm636_vm4, %v939_v49, -inf }
 0x410   : > { %953 = vmax.xlane.f32.xlu0 %v952_v51 }
 0x41d   : > { %987 = vrot.lane.b32.xlu1 %v617_v27, %s6154_s22 }
 0x42a   : > { %v945_v52 = vpop.xlane.xlu0 %944 }
 0x42b   : > { %v955_v53 = vsub.f32 %v708_v40, %v945_v52 }
 0x42d   : > { %v959_v54 = vmul.f32 1.442695, %v955_v53 }
 0x42f   : > { %5064 = vpow2.f32 %v959_v54 }
 0x439   : > { %v5065_v55 = vpop.eup %5064 }
 0x43a   : > { %v967_v56 = vsel %vm636_vm4, %v5065_v55, 0.0 }
 0x441   : > { %968 = vadd.xlane.f32.xlu1 %v967_v56 }
 0x499   : > { %v951_v57 = vpop.xlane.xlu0 %950  ;;  %v948_v58 = vpop.xlane.xlu1 %947 }
 0x49a   : > { %v957_v59 = vsub.f32 %v862_v44, %v951_v57  ;;  %v956_v60 = vsub.f32 %v785_v43, %v948_v58 }
 0x49c   : > { %v963_v61 = vmul.f32 1.442695, %v957_v59  ;;  %v961_v62 = vmul.f32 1.442695, %v956_v60  ;;  %v4125_v59 = vld [vmem:[%s6144_s5 + $0x20] sm:$0xff]  ;;  %v4126_v60 = vld [vmem:[%s6144_s5 + $0x28] sm:$0xff] }
 0x49d   : > { %v988_v63 = vpop.permute.xlu1 %987  ;;  %v954_v0 = vpop.xlane.xlu0 %953 }
 0x49e   : > { %5066 = vpow2.f32 %v963_v61  ;;  %v958_v1 = vsub.f32 %v939_v49, %v954_v0  ;;  %4495 = vmatpush3.msra.mxu1 %v988_v63  ;;  %v4857_v61 = vpack.c.bf16 %v4126_v60, %v4125_v59  ;;  %v1420_v63 = vld [vmem:[%s6144_s5] sm:$0xff] }
 0x49f   : > { %5068 = vpow2.f32 %v961_v62  ;;  %4504 = vmatprep.subr.mxu1 %v5174_v9  ;;  %v4128_v62 = vld [vmem:[%s6144_s5 + $0x38] sm:$0xff] }
 0x4a0   : > { %v965_v2 = vmul.f32 1.442695, %v958_v1  ;;  %v1421_v1 = vld [vmem:[%s6144_s5 + $0x8] sm:$0xff] }
 0x4a2   : > { %5070 = vpow2.f32 %v965_v2  ;;  %v4863_v2 = vpack.c.bf16 %v1421_v1, %v1420_v63 }
 0x4a8   : > { %v5067_v3 = vpop.eup %5066 }
 0x4a9   : > { %v5069_v5 = vpop.eup %5068  ;;  %v973_v6 = vsel %vm636_vm4, %v5067_v3, 0.0 }
 0x4aa   : > { %974 = vadd.xlane.f32.xlu1 %v973_v6  ;;  %v970_v7 = vsel %vm636_vm4, %v5069_v5, 0.0 }
 0x4ab   : > { %971 = vadd.xlane.f32.xlu0 %v970_v7 }
 0x4ac   : > { %v5071_v8 = vpop.eup %5070 }
 0x4ad   : > { %v976_v10 = vsel %vm636_vm4, %v5071_v8, 0.0 }
 0x4af   : > { %977 = vadd.xlane.f32.xlu0 %v976_v10 }
 0x4bb   : > { %1139 = vrot.lane.b32.xlu1 %v5371_v29, %s6154_s22  ;;  %v1309_v29 = vld [vmem:[%s6143_s4 + $0x8] sm:$0xff] }
 0x4bf   : > { %1215 = vrot.lane.b32.xlu1 %v5379_v31, %s6154_s22 }
 0x4c5   : > { %1063 = vrot.lane.b32.xlu0 %v5373_v30, %s6154_s22  ;;  %v4851_v30 = vpack.c.bf16 %v1309_v29, %v1308_v28  ;;  %s6162_s22 = smov 8  }
 0x4ce   : > { %v969_v11 = vpop.xlane.xlu1 %968 }
 0x4cf   : > { %5072 = vrcp.f32 %v969_v11 }
 0x4d9   : > { %v5073_v12 = vpop.eup %5072 }
 0x4da   : > { %v983_v13 = vmul.f32 %v5073_v12, %v5065_v55  ;;  %v4123_v12 = vld [vmem:[%s6148_s9 + $0x1] ss:$0 sm:$0xff] }
 0x4dc   : > { %4497 = vmatmul.mubr.msk.f32.vlgmr.msra.gmra.mrb[6].mxu1 %vm636_vm4, %v983_v13 }
 0x4dd   : > { %4506 = vmatprep.mubr.msk.f32.mxu1 %vm5175_vm0, %v5174_v9 }
 0x537   : > { %v975_v15 = vpop.xlane.xlu1 %974 }
 0x538   : > { %5074 = vrcp.f32 %v975_v15  ;;  %v972_v16 = vpop.xlane.xlu0 %971  ;;  %v4131_v15 = vld [vmem:[%s6144_s5 + $0x40] sm:$0xff] }
 0x539   : > { %5076 = vrcp.f32 %v972_v16  ;;  %v4132_v16 = vld [vmem:[%s6144_s5 + $0x48] sm:$0xff] }
 0x53b   : > { %v1140_v17 = vpop.permute.xlu1 %1139 }
 0x53c   : > { %v978_v18 = vpop.xlane.xlu0 %977  ;;  %4505 = vmatpush3.msra.mxu1 %v1140_v17  ;;  %v5504_v17 = vshrl.u32 %v447_v14, 7  ;;  %v4133_v14 = vld [vmem:[%s6144_s5 + $0x50] sm:$0xff] }
 0x53d   : > { %5078 = vrcp.f32 %v978_v18  ;;  %4850 = vmatprep.subr.bf16.mxu1 %v5173_v4  ;;  %v4124_v18 = vld [vmem:[%s6148_s9 + $0x2] ss:$0 sm:$0xff] }
 0x53e   : > { %vm1425_vm7 = vcmp.ge.s32.totalorder %v5504_v17, 1  ;;  %vm1589_vm8 = vcmp.lt.s32.totalorder %v5504_v17, 7  ;;  %v3915_v17 = vld [vmem:[%s6150_s11 + $0x7] sm:$0x1] }
 0x53f   : > { %v1216_v25 = vpop.permute.xlu1 %1215 }
 0x540   : > { %v1064_v19 = vpop.permute.xlu0 %1063 }
 0x541   : > { %4500 = vmatpush3.msra.mxu0 %v1064_v19 }
 0x542   : > { %v5075_v20 = vpop.eup %5074  ;;  %4509 = vmatprep.subr.mxu0 %v5174_v9 }
 0x543   : > { %v5077_v21 = vpop.eup %5076  ;;  %v985_v22 = vmul.f32 %v5075_v20, %v5067_v3  ;;  %v1422_v3 = vld [vmem:[%s6144_s5 + $0x10] sm:$0xff]  ;;  %v4869_v20 = vpack.c.bf16 %v4132_v16, %v4131_v15 }
 0x544   : > { %v984_v24 = vmul.f32 %v5077_v21, %v5069_v5  ;;  %v1423_v5 = vld [vmem:[%s6144_s5 + $0x18] sm:$0xff]  ;;  %v4137_v21 = vld [vmem:[%s6145_s6 + $0x40] sm:$0xff] }
 0x545   : > { %4507 = vmatmul.mubr.msk.f32.vlgmr.msra.gmra.mrb[8].mxu1 %vm636_vm4, %v985_v22  ;;  %v4866_v6 = vpack.c.bf16 %v1423_v5, %v1422_v3  ;;  %v4138_v22 = vld [vmem:[%s6145_s6 + $0x48] sm:$0xff]  ;;  %v4150_v3 = vld [vmem:[%s6145_s6 + $0x98] sm:$0xff] }
 0x546   : > { %4502 = vmatmul.mubr.msk.f32.vlgmr.msra.gmra.mrb[6].mxu0 %vm636_vm4, %v984_v24  ;;  %4522 = vmatprep.mubr.msk.f32.mxu1 %vm5175_vm0, %v5174_v9 }
 0x547   : > { %v5079_v26 = vpop.eup %5078  ;;  %4510 = vmatpush3.msra.mxu0 %v1216_v25  ;;  %4511 = vmatprep.mubr.msk.f32.mxu0 %vm5175_vm0, %v5174_v9  ;;  %v4134_v25 = vld [vmem:[%s6144_s5 + $0x58] sm:$0xff] }
 0x548   : > { %v986_v27 = vmul.f32 %v5079_v26, %v5071_v8  ;;  %4856 = vmatprep.subr.bf16.mxu0 %v5173_v4  ;;  %4852 = vmatpush3.bf16.msra.mxu1 %v4851_v30  ;;  %v4872_v28 = vpack.c.bf16 %v4134_v25, %v4133_v14  ;;  %v4156_v25 = vld [vmem:[%s6148_s9 + $0x3] ss:$0 sm:$0xff] }
 0x549   : > { %4853 = vmatprep.subr.bf16.mxu1 %v5173_v4 }
 0x54a   : > { %4512 = vmatmul.mubr.msk.f32.vlgmr.msra.gmra.mrb[8].mxu0 %vm636_vm4, %v986_v27  ;;  %v4875_v27 = vpack.c.bf16 %v4138_v22, %v4137_v21 }
 0x54b   : > { %4533 = vmatprep.mubr.msk.f32.mxu0 %vm5175_vm0, %v5174_v9  ;;  %4858 = vmatpush3.bf16.msra.mxu0 %v4857_v61 }
 0x54c   : > { %4855 = vmatpush3.bf16.msra.mxu1 %v4854_v35  ;;  %4859 = vmatprep.subr.bf16.mxu0 %v5173_v4 }
 0x54d   : > { %4862 = vmatprep.subr.bf16.mxu1 %v5173_v4 }
 0x5af   : > { %v1059_v31 = vpop.f32.mrb[6].mxu1 }
 0x5b0   : > { %v4498_v32 = vpop.f32.mrb[7].mxu1 }
 0x5b1   : > { %v4139_v32 = vld [vmem:[%s6145_s6 + $0x50] sm:$0xff] }
 0x5b2   : > { %v4878_v35 = vpack.c.bf16 %v4140_v33, %v4139_v32 }
 0x618   : > { %v1211_v36 = vpop.f32.mrb[8].mxu1 }
 0x619   : > { %v1135_v37 = vpop.f32.mrb[6].mxu0  ;;  %1296 = vrot.lane.b32.xlu1 %v1211_v36, %s6163_s21  ;;  %v4508_v38 = vpop.f32.mrb[9].mxu1  ;;  %v1678_v36 = vld [vmem:[%s6145_s6 + $0x8] sm:$0xff]  ;;  %s6175_s21 = smov 112  }
 0x61a   : > { %1292 = vrot.lane.b32.xlu0 %v1135_v37, %s6162_s22  ;;  %v4503_v39 = vpop.f32.mrb[7].mxu0  ;;  %v4887_v37 = vpack.c.bf16 %v1678_v36, %v1677_v34  ;;  %v4141_v38 = vld [vmem:[%s6145_s6 + $0x60] sm:$0xff]  ;;  %s6176_s22 = smov 120  }
 0x61b   : > { %v4142_v39 = vld [vmem:[%s6145_s6 + $0x68] sm:$0xff] }
 0x61d   : > { %v1287_v40 = vpop.f32.mrb[8].mxu0 }
 0x61e   : > { %1300 = vrot.lane.b32.xlu0 %v1287_v40, %s6161_s15  ;;  %v4513_v41 = vpop.f32.mrb[9].mxu0  ;;  %v1679_v40 = vld [vmem:[%s6145_s6 + $0x10] sm:$0xff] }
 0x61f   : > { %v4881_v41 = vpack.c.bf16 %v4142_v39, %v4141_v38  ;;  %v4160_v38 = vld [vmem:[%s6173_s3 + $0x28] sm:$0xff] }
 0x68b   : > { %v1297_v43 = vpop.permute.xlu1 %1296 }
 0x68c   : > { %v1293_v42 = vpop.permute.xlu0 %1292 }
 0x68d   : > { %v1303_v44 = vsel %vm636_vm4, %v1059_v31, %v1293_v42  ;;  %v1680_v42 = vld [vmem:[%s6145_s6 + $0x18] sm:$0xff] }
 0x68e   : > { %v1305_v45 = vsel %vm1304_vm5, %v1303_v44, %v1297_v43  ;;  %v4890_v43 = vpack.c.bf16 %v1680_v42, %v1679_v40  ;;  %v4143_v44 = vld [vmem:[%s6145_s6 + $0x70] sm:$0xff]  ;;  %v4162_v40 = vld [vmem:[%s6173_s3 + $0x38] sm:$0xff] }
 0x690   : > { %v1301_v46 = vpop.permute.xlu0 %1300 }
 0x691   : > { %v1307_v47 = vsel %vm1306_vm6, %v1305_v45, %v1301_v46  ;;  %v4144_v45 = vld [vmem:[%s6145_s6 + $0x78] sm:$0xff]  ;;  %v1681_v46 = vld [vmem:[%s6145_s6 + $0x20] sm:$0xff] }
 0x692   : > { %4523 = vmatmul.mubr.msk.f32.vlgmr.msra.gmra.mrb[10].mxu1 %vm546_vm3, %v1307_v47  ;;  %v4884_v47 = vpack.c.bf16 %v4144_v45, %v4143_v44 }
 0x693   : > { %4544 = vmatprep.mubr.msk.f32.mxu1 %vm5175_vm0, %v5174_v9  ;;  %4864 = vmatpush3.bf16.msra.mxu1 %v4863_v2  ;;  %v4149_v2 = vld [vmem:[%s6145_s6 + $0x90] sm:$0xff] }
 0x694   : > { %4865 = vmatprep.subr.bf16.mxu1 %v5173_v4 }
 0x697   : > { %4867 = vmatpush3.bf16.msra.mxu1 %v4866_v6  ;;  %v4902_v6 = vpack.c.bf16 %v4150_v3, %v4149_v2 }
 0x698   : > { %4874 = vmatprep.subr.bf16.mxu1 %v5173_v4 }
 0x765   : > { %v1386_v49 = vpop.f32.mrb[10].mxu1 }
 0x766   : > { %v1387_v50 = vadd.f32 %v4121_v48, %v1386_v49  ;;  %v4524_v51 = vpop.f32.mrb[11].mxu1  ;;  %v1682_v48 = vld [vmem:[%s6145_s6 + $0x28] sm:$0xff] }
 0x767   : > { %v4893_v49 = vpack.c.bf16 %v1682_v48, %v1681_v46  ;;  %v1684_v51 = vld [vmem:[%s6145_s6 + $0x38] sm:$0xff]  ;;  %v4157_v46 = vld [vmem:[%s6148_s9 + $0x4] ss:$0 sm:$0xff]  ;;  %v4158_v48 = vld [vmem:[%s6148_s9 + $0x5] ss:$0 sm:$0xff] }
 0x768   : > { %v1390_v52 = vadd.f32 %v1387_v50, %v5358_v23  ;;  %v4127_v23 = vld [vmem:[%s6144_s5 + $0x30] sm:$0xff] }
 0x769   : > { %v4860_v0 = vpack.c.bf16 %v4128_v62, %v4127_v23  ;;  %v1683_v50 = vld [vmem:[%s6145_s6 + $0x30] sm:$0xff]  ;;  %v4147_v23 = vld [vmem:[%s6145_s6 + $0x80] sm:$0xff]  ;;  %v4148_v62 = vld [vmem:[%s6145_s6 + $0x88] sm:$0xff] }
 0x76a   : > { %v1393_v53 = vsel %vm546_vm3, %v1390_v52, 0.0 }
 0x76b   : > { %1394 = vadd.xlane.f32.xlu1 %v1393_v53  ;;  %4861 = vmatpush3.bf16.msra.mxu0 %v4860_v0  ;;  %v4899_v0 = vpack.c.bf16 %v4148_v62, %v4147_v23 }
 0x76c   : > { %4868 = vmatprep.subr.bf16.mxu0 %v5173_v4 }
 0x7f8   : > { %v1395_v54 = vpop.xlane.xlu1 %1394 }
 0x7f9   : > { %v1397_v55 = vmul.f32 0.03125, %v1395_v54 }
 0x7fb   : > { %v1398_v56 = vsub.f32 %v1390_v52, %v1397_v55  ;;  %v4896_v52 = vpack.c.bf16 %v1684_v51, %v1683_v50  ;;  %v4164_v51 = vld [vmem:[%s6146_s7 + $0x1] ss:$0 sm:$0xff] }
 0x7fd   : > { %v1399_v57 = vmul.f32 %v1398_v56, %v1398_v56 }
 0x7ff   : > { %v1400_v58 = vsel %vm546_vm3, %v1399_v57, 0.0 }
 0x800   : > { %1401 = vadd.xlane.f32.xlu0 %v1400_v58  ;;  %v4136_v58 = vld [vmem:[%s6147_s8] ss:$0 sm:$0xff] }
 0x88d   : > { %v1402_v7 = vpop.xlane.xlu0 %1401 }
 0x88e   : > { %v1403_v8 = vmul.f32 0.03125, %v1402_v7 }
 0x890   : > { %v1404_v10 = vadd.f32 1e-05, %v1403_v8  ;;  %v4151_v8 = vld [vmem:[%s6145_s6 + $0xa0] sm:$0xff] }
 0x892   : > { %5080 = vrsqrt.f32 %v1404_v10  ;;  %v4152_v10 = vld [vmem:[%s6145_s6 + $0xa8] sm:$0xff] }
 0x89c   : > { %v5081_v11 = vpop.eup %5080 }
 0x89d   : > { %v1406_v13 = vmul.f32 %v5081_v11, %v1398_v56  ;;  %v4905_v11 = vpack.c.bf16 %v4152_v10, %v4151_v8 }
 0x89f   : > { %v1411_v19 = vmul.f32 %v4123_v12, %v1406_v13  ;;  %v4153_v12 = vld [vmem:[%s6145_s6 + $0xb0] sm:$0xff]  ;;  %v4154_v13 = vld [vmem:[%s6145_s6 + $0xb8] sm:$0xff] }
 0x8a0   : > { %v4908_v15 = vpack.c.bf16 %v4154_v13, %v4153_v12 }
 0x8a1   : > { %v5515_v24 = vadd.f32 %v4124_v18, %v1411_v19 }
 0x8a3   : > { %4534 = vmatmul.mubr.msk.f32.vlgmr.msra.gmra.mrb[10].mxu0 %vm546_vm3, %v5515_v24  ;;  %v1424_v26 = vrot.slane %v5515_v24, 7  ;;  %v1587_v30 = vrot.slane %v5515_v24, 1 }
 0x8a4   : > { %4870 = vmatpush3.bf16.msra.mxu0 %v4869_v20  ;;  %4555 = vmatprep.mubr.msk.f32.mxu0 %vm5175_vm0, %v5174_v9 }
 0x8a5   : > { %v1430_v29 = vsel %vm1425_vm7, %v1424_v26, 0.0  ;;  %4871 = vmatprep.subr.bf16.mxu0 %v5173_v4  ;;  %v1593_v31 = vsel %vm1589_vm8, %v1587_v30, 0.0 }
 0x8a6   : > { %4545 = vmatmul.mubr.msk.f32.vlgmr.msra.gmra.mrb[12].mxu1 %vm546_vm3, %v1430_v29 }
 0x8a7   : > { %4876 = vmatpush3.bf16.msra.mxu1 %v4875_v27  ;;  %4574 = vmatprep.mubr.msk.f32.mxu1 %vm5175_vm0, %v5174_v9 }
 0x8a8   : > { %4873 = vmatpush3.bf16.msra.mxu0 %v4872_v28  ;;  %4877 = vmatprep.subr.bf16.mxu1 %v5173_v4 }
 0x8a9   : > { %4886 = vmatprep.subr.bf16.mxu0 %v5173_v4 }
 0x8ab   : > { %4556 = vmatmul.mubr.msk.f32.vlgmr.msra.gmra.mrb[12].mxu0 %vm546_vm3, %v1593_v31  ;;  %4879 = vmatpush3.bf16.msra.mxu1 %v4878_v35 }
 0x8ac   : > { %4593 = vmatprep.mubr.msk.f32.mxu0 %vm5175_vm0, %v5174_v9  ;;  %4888 = vmatpush3.bf16.msra.mxu0 %v4887_v37  ;;  %v4159_v37 = vld [vmem:[%s6173_s3 + $0x20] sm:$0xff] }
 0x8ad   : > { %4880 = vmatprep.subr.bf16.mxu1 %v5173_v4  ;;  %4889 = vmatprep.subr.bf16.mxu0 %v5173_v4  ;;  %v4911_v39 = vpack.c.bf16 %v4160_v38, %v4159_v37 }
 0x8af   : > { %4882 = vmatpush3.bf16.msra.mxu1 %v4881_v41 }
 0x8b0   : > { %4891 = vmatpush3.bf16.msra.mxu0 %v4890_v43  ;;  %4883 = vmatprep.subr.bf16.mxu1 %v5173_v4 }
 0x8b1   : > { %4892 = vmatprep.subr.bf16.mxu0 %v5173_v4 }
 0x8b3   : > { %4885 = vmatpush3.bf16.msra.mxu1 %v4884_v47 }
 0x8b4   : > { %4894 = vmatpush3.bf16.msra.mxu0 %v4893_v49  ;;  %4898 = vmatprep.subr.bf16.mxu1 %v5173_v4 }
 0x8b5   : > { %4895 = vmatprep.subr.bf16.mxu0 %v5173_v4 }
 0x8b8   : > { %4897 = vmatpush3.bf16.msra.mxu0 %v4896_v52 }
 0x8b9   : > { %4910 = vmatprep.subr.bf16.mxu0 %v5173_v4 }
 0x976   : > { %v1505_v53 = vpop.f32.mrb[10].mxu0 }
 0x977   : > { %v4535_v54 = vpop.f32.mrb[11].mxu0 }
 0x979   : > { %v1578_v55 = vpop.f32.mrb[12].mxu1 }
 0x97a   : > { %v1579_v56 = vadd.f32 %v1578_v55, %v1505_v53  ;;  %v4546_v57 = vpop.f32.mrb[13].mxu1 }
 0x97e   : > { %v1663_v59 = vpop.f32.mrb[12].mxu0 }
 0x97f   : > { %v1667_v60 = vadd.f32 %v1663_v59, %v1579_v56  ;;  %v4557_v61 = vpop.f32.mrb[13].mxu0 }
 0x981   : > { %v1674_v63 = vadd.f32 %v4136_v58, %v1667_v60 }
 0x983   : > { %v1675_v1 = vmax.f32 %v1674_v63, 0.0 }
 0x985   : > { %v1685_v5 = vrot.slane %v1675_v1, 7  ;;  %4575 = vmatmul.mubr.msk.f32.vlgmr.msra.gmra.mrb[14].mxu1 %vm1696_vm9, %v1675_v1  ;;  %v1852_v16 = vrot.slane %v1675_v1, 1 }
 0x986   : > { %4900 = vmatpush3.bf16.msra.mxu1 %v4899_v0  ;;  %4612 = vmatprep.mubr.msk.f32.mxu1 %vm5175_vm0, %v5174_v9 }
 0x987   : > { %v1686_v7 = vsel %vm1425_vm7, %v1685_v5, 0.0  ;;  %4901 = vmatprep.subr.bf16.mxu1 %v5173_v4  ;;  %v1853_v18 = vsel %vm1589_vm8, %v1852_v16, 0.0 }
 0x988   : > { %4594 = vmatmul.mubr.msk.f32.vlgmr.msra.gmra.mrb[14].mxu0 %vm1696_vm9, %v1686_v7 }
 0x989   : > { %4623 = vmatprep.mubr.msk.f32.mxu0 %vm5175_vm0, %v5174_v9  ;;  %4912 = vmatpush3.bf16.msra.mxu0 %v4911_v39 }
 0x98a   : > { %4903 = vmatpush3.bf16.msra.mxu1 %v4902_v6  ;;  %4913 = vmatprep.subr.bf16.mxu0 %v5173_v4 }
 0x98b   : > { %4904 = vmatprep.subr.bf16.mxu1 %v5173_v4 }
 0x98e   : > { %4906 = vmatpush3.bf16.msra.mxu1 %v4905_v11 }
 0x98f   : > { %4907 = vmatprep.subr.bf16.mxu1 %v5173_v4 }
 0x992   : > { %4909 = vmatpush3.bf16.msra.mxu1 %v4908_v15 }
 0x993   : > { %4636 = vmatprep.subr.mxu1 %v5174_v9 }
 0x995   : > { %4613 = vmatmul.mubr.msk.f32.vlgmr.msra.gmra.mrb[16].mxu1 %vm1696_vm9, %v1853_v18 }
 0x996   : > { %4638 = vmatprep.mubr.msk.f32.mxu1 %vm5175_vm0, %v5174_v9 }
 0xa58   : > { %v1766_v19 = vpop.f32.mrb[14].mxu1 }
 0xa59   : > { %v4576_v20 = vpop.f32.mrb[15].mxu1 }
 0xa5b   : > { %v1839_v21 = vpop.f32.mrb[14].mxu0 }
 0xa5c   : > { %v1840_v22 = vadd.f32 %v1839_v21, %v1766_v19  ;;  %v4595_v14 = vpop.f32.mrb[15].mxu0 }
 0xa68   : > { %v1923_v26 = vpop.f32.mrb[16].mxu1 }
 0xa69   : > { %v1927_v27 = vadd.f32 %v1923_v26, %v1840_v22  ;;  %v4614_v28 = vpop.f32.mrb[17].mxu1 }
 0xa6b   : > { %v1932_v29 = vadd.f32 %v4156_v25, %v1927_v27 }
 0xa6d   : > { %v1933_v30 = vadd.f32 %v1932_v29, %v5515_v24  ;;  %v4161_v24 = vld [vmem:[%s6173_s3 + $0x30] sm:$0xff]  ;;  %s436_s3 = sand.u32 1, %s5162_s26  }
 0xa6e   : > { %v4914_v41 = vpack.c.bf16 %v4162_v40, %v4161_v24  ;;  %s437_s15 = scalar_lea.vmem [#allocation2], %s436_s3 }
 0xa6f   : > { %v1936_v31 = vsel %vm546_vm3, %v1933_v30, 0.0  ;;  %s4020_s17 = sshll.u32 %s437_s15, 4  ;;  %s6099_s17 = int_to_ptr.vmem [resolvable:$true] %s4020_s17 }
 0xa70   : > { %1937 = vadd.xlane.f32.xlu0 %v1936_v31  ;;  %4915 = vmatpush3.bf16.msra.mxu0 %v4914_v41 }
 0xa71   : > { %4626 = vmatprep.subr.mxu0 %v5174_v9 }
 0xafd   : > { %v1938_v32 = vpop.xlane.xlu0 %1937 }
 0xafe   : > { %v1939_v33 = vmul.f32 0.03125, %v1938_v32 }
 0xb00   : > { %v1940_v34 = vsub.f32 %v1933_v30, %v1939_v33 }
 0xb02   : > { %v1941_v35 = vmul.f32 %v1940_v34, %v1940_v34 }
 0xb04   : > { %v1942_v36 = vsel %vm546_vm3, %v1941_v35, 0.0 }
 0xb05   : > { %1943 = vadd.xlane.f32.xlu1 %v1942_v36 }
 0xb92   : > { %v1944_v42 = vpop.xlane.xlu1 %1943 }
 0xb93   : > { %v1945_v43 = vmul.f32 0.03125, %v1944_v42 }
 0xb95   : > { %v1946_v44 = vadd.f32 1e-05, %v1945_v43 }
 0xb97   : > { %5082 = vrsqrt.f32 %v1946_v44 }
 0xba1   : > { %v5083_v45 = vpop.eup %5082 }
 0xba2   : > { %v1948_v47 = vmul.f32 %v5083_v45, %v1940_v34 }
 0xba4   : > { %v1953_v49 = vmul.f32 %v4157_v46, %v1948_v47 }
 0xba6   : > { %v5663_v50 = vadd.f32 %v4158_v48, %v1953_v49 }
 0xba8   : > { %4624 = vmatmul.mubr.msk.f32.vlgmr.msra.gmra.mrb[16].mxu0 %vm546_vm3, %v5663_v50 }
 0xba9   : > { %4628 = vmatprep.mubr.msk.f32.mxu0 %vm5175_vm0, %v5174_v9 }
 0xc7b   : > { %v2041_v52 = vpop.f32.mrb[16].mxu0 }
 0xc7c   : > { %v2042_v53 = vadd.f32 %v4164_v51, %v2041_v52  ;;  %v4625_v54 = vpop.f32.mrb[17].mxu0 }
 0xc7d   : > { %v4178_v54 = vld [vmem:[%s6143_s4 + $0x20] sm:$0xff] }
 0xc7e   : > { %2049 = vrot.lane.b32.xlu1 %v2042_v53, %s6175_s21  ;;  %2046 = vrot.lane.b32.xlu0 %v2042_v53, %s6176_s22  ;;  %v2055_v59 = vmul.f32 0.35355338, %v2042_v53 }
 0xc82   : > { %2052 = vrot.lane.b32.xlu1 %v2042_v53, %s6177_s0  ;;  %2059 = vrot.lane.b32.xlu0 %v2042_v53, %s6178_s1  ;;  %s6183_s0 = sshll.u32 %s5318_s20, 3  ;;  %s4273_s20 = sshll.u32 %s5276_s29, 4 }
 0xc83   : > { %s5184_s29 = smov [#allocation2]  }
 0xcf0   : > { %v5676_v55 = vpop.permute.xlu1 %2049  ;;  %v5678_v56 = vpop.permute.xlu0 %2046 }
 0xcf1   : > { %2213 = vrot.lane.b32.xlu0 %v5676_v55, %s6178_s1  ;;  %2136 = vrot.lane.b32.xlu1 %v5678_v56, %s6178_s1  ;;  %v2057_v23 = vmul.f32 0.35355338, %v5676_v55  ;;  %v2056_v62 = vmul.f32 0.35355338, %v5678_v56 }
 0xcf4   : > { %v5684_v57 = vpop.permute.xlu1 %2052  ;;  %v2060_v58 = vpop.permute.xlu0 %2059 }
 0xcf5   : > { %2290 = vrot.lane.b32.xlu1 %v5684_v57, %s6178_s1  ;;  %4627 = vmatpush3.xpose.msk.msra.mxu0 %vm636_vm4, %v2060_v58  ;;  %v2058_v0 = vmul.f32 0.35355338, %v5684_v57  ;;  %s6180_s1 = smov 16  }
 0xcf6   : > { %4631 = vmatprep.subr.mxu0 %v5174_v9 }
 0xcf8   : > { %4629 = vmatmul.mubr.msk.f32.vlgmr.msra.gmra.mrb[18].mxu0 %vm636_vm4, %v2055_v59  ;;  %v4180_v59 = vld [vmem:[%s6143_s4 + $0x30] sm:$0xff] }
 0xcf9   : > { %4633 = vmatprep.mubr.msk.f32.mxu0 %vm5175_vm0, %v5174_v9 }
 0xd63   : > { %v2137_v60 = vpop.permute.xlu1 %2136  ;;  %v2214_v61 = vpop.permute.xlu0 %2213 }
 0xd64   : > { %4632 = vmatpush3.xpose.msk.msra.mxu0 %vm636_vm4, %v2137_v60  ;;  %4637 = vmatpush3.xpose.msk.msra.mxu1 %vm636_vm4, %v2214_v61  ;;  %v4181_v60 = vld [vmem:[%s6143_s4 + $0x38] sm:$0xff] }
 0xd65   : > { %4641 = vmatprep.subr.mxu0 %v5174_v9  ;;  %4646 = vmatprep.subr.mxu1 %v5174_v9  ;;  %v4920_v61 = vpack.c.bf16 %v4181_v60, %v4180_v59  ;;  %v4218_v59 = vld [vmem:[%s6145_s6 + $0x118] sm:$0xff]  ;;  %v4207_v60 = vld [vmem:[%s6145_s6 + $0xc0] sm:$0xff] }
 0xd67   : > { %v2291_v63 = vpop.permute.xlu1 %2290  ;;  %4634 = vmatmul.mubr.msk.f32.vlgmr.msra.gmra.mrb[20].mxu0 %vm636_vm4, %v2056_v62  ;;  %4639 = vmatmul.mubr.msk.f32.vlgmr.msra.gmra.mrb[18].mxu1 %vm636_vm4, %v2057_v23 }
 0xd68   : > { %4642 = vmatpush3.xpose.msk.msra.mxu0 %vm636_vm4, %v2291_v63  ;;  %4643 = vmatprep.mubr.msk.f32.mxu0 %vm5175_vm0, %v5174_v9 }
 0xd69   : > { %4648 = vmatprep.mubr.msk.f32.mxu1 %vm5175_vm0, %v5174_v9  ;;  %4651 = vmatprep.subr.mxu0 %v5174_v9 }
 0xd6b   : > { %4644 = vmatmul.mubr.msk.f32.vlgmr.msra.gmra.mrb[22].mxu0 %vm636_vm4, %v2058_v0 }
 0xd6c   : > { %4653 = vmatprep.mubr.msk.f32.mxu0 %vm5175_vm0, %v5174_v9 }
 0xdcb   : > { %v2132_v1 = vpop.f32.mrb[18].mxu0 }
 0xdcc   : > { %v4630_v2 = vpop.f32.mrb[19].mxu0  ;;  %v2367_v3 = vsel %vm636_vm4, %v2132_v1, -inf }
 0xdcd   : > { %2368 = vmax.xlane.f32.xlu0 %v2367_v3 }
 0xe3a   : > { %v2209_v5 = vpop.f32.mrb[20].mxu0  ;;  %v2286_v6 = vpop.f32.mrb[18].mxu1 }
 0xe3b   : > { %v4635_v7 = vpop.f32.mrb[21].mxu0  ;;  %v4640_v8 = vpop.f32.mrb[19].mxu1  ;;  %v2373_v10 = vsel %vm636_vm4, %v2286_v6, -inf  ;;  %v2370_v11 = vsel %vm636_vm4, %v2209_v5, -inf }
 0xe3c   : > { %2374 = vmax.xlane.f32.xlu0 %v2373_v10  ;;  %2371 = vmax.xlane.f32.xlu1 %v2370_v11  ;;  %v4183_v11 = vld [vmem:[%s6148_s9 + $0x8] ss:$0 sm:$0xff] }
 0xe3e   : > { %v2363_v12 = vpop.f32.mrb[22].mxu0 }
 0xe3f   : > { %v4645_v13 = vpop.f32.mrb[23].mxu0  ;;  %v2376_v15 = vsel %vm636_vm4, %v2363_v12, -inf }
 0xe40   : > { %2377 = vmax.xlane.f32.xlu0 %v2376_v15 }
 0xe4d   : > { %2411 = vrot.lane.b32.xlu1 %v2042_v53, %s6179_s24 }
 0xe5a   : > { %v2369_v16 = vpop.xlane.xlu0 %2368 }
 0xe5b   : > { %v2379_v18 = vsub.f32 %v2132_v1, %v2369_v16 }
 0xe5d   : > { %v2383_v19 = vmul.f32 1.442695, %v2379_v18 }
 0xe5f   : > { %5084 = vpow2.f32 %v2383_v19 }
 0xe69   : > { %v5085_v20 = vpop.eup %5084 }
 0xe6a   : > { %v2391_v21 = vsel %vm636_vm4, %v5085_v20, 0.0 }
 0xe71   : > { %2392 = vadd.xlane.f32.xlu1 %v2391_v21 }
 0xec9   : > { %v2375_v22 = vpop.xlane.xlu0 %2374  ;;  %v2372_v14 = vpop.xlane.xlu1 %2371 }
 0xeca   : > { %v2381_v25 = vsub.f32 %v2286_v6, %v2375_v22  ;;  %v2380_v26 = vsub.f32 %v2209_v5, %v2372_v14 }
 0xecc   : > { %v2387_v27 = vmul.f32 1.442695, %v2381_v25  ;;  %v2385_v28 = vmul.f32 1.442695, %v2380_v26  ;;  %v4194_v25 = vld [vmem:[%s6144_s5 + $0x80] sm:$0xff]  ;;  %v4195_v26 = vld [vmem:[%s6144_s5 + $0x88] sm:$0xff] }
 0xecd   : > { %v2412_v29 = vpop.permute.xlu1 %2411  ;;  %v2378_v30 = vpop.xlane.xlu0 %2377 }
 0xece   : > { %5086 = vpow2.f32 %v2387_v27  ;;  %v2382_v31 = vsub.f32 %v2363_v12, %v2378_v30  ;;  %4647 = vmatpush3.msra.mxu1 %v2412_v29  ;;  %v4923_v27 = vpack.c.bf16 %v4195_v26, %v4194_v25  ;;  %v4190_v29 = vld [vmem:[%s6144_s5 + $0x60] sm:$0xff] }
 0xecf   : > { %5088 = vpow2.f32 %v2385_v28  ;;  %4656 = vmatprep.subr.mxu1 %v5174_v9  ;;  %v4197_v28 = vld [vmem:[%s6144_s5 + $0x98] sm:$0xff] }
 0xed0   : > { %v2389_v32 = vmul.f32 1.442695, %v2382_v31  ;;  %v4191_v31 = vld [vmem:[%s6144_s5 + $0x68] sm:$0xff] }
 0xed2   : > { %5090 = vpow2.f32 %v2389_v32  ;;  %v4929_v32 = vpack.c.bf16 %v4191_v31, %v4190_v29 }
 0xed8   : > { %v5087_v33 = vpop.eup %5086 }
 0xed9   : > { %v5089_v34 = vpop.eup %5088  ;;  %v2397_v35 = vsel %vm636_vm4, %v5087_v33, 0.0 }
 0xeda   : > { %2398 = vadd.xlane.f32.xlu1 %v2397_v35  ;;  %v2394_v36 = vsel %vm636_vm4, %v5089_v34, 0.0 }
 0xedb   : > { %2395 = vadd.xlane.f32.xlu0 %v2394_v36 }
 0xedc   : > { %v5091_v37 = vpop.eup %5090 }
 0xedd   : > { %v2400_v38 = vsel %vm636_vm4, %v5091_v37, 0.0 }
 0xedf   : > { %2401 = vadd.xlane.f32.xlu0 %v2400_v38 }
 0xeeb   : > { %2563 = vrot.lane.b32.xlu1 %v5676_v55, %s6179_s24  ;;  %v4179_v55 = vld [vmem:[%s6143_s4 + $0x28] sm:$0xff] }
 0xeef   : > { %2639 = vrot.lane.b32.xlu1 %v5684_v57, %s6179_s24 }
 0xef5   : > { %2487 = vrot.lane.b32.xlu0 %v5678_v56, %s6179_s24  ;;  %v4917_v56 = vpack.c.bf16 %v4179_v55, %v4178_v54  ;;  %s6181_s24 = smov 8  }
 0xefe   : > { %v2393_v39 = vpop.xlane.xlu1 %2392 }
 0xeff   : > { %5092 = vrcp.f32 %v2393_v39 }
 0xf09   : > { %v5093_v24 = vpop.eup %5092 }
 0xf0a   : > { %v2407_v40 = vmul.f32 %v5093_v24, %v5085_v20  ;;  %v4187_v24 = vld [vmem:[%s6148_s9 + $0x9] ss:$0 sm:$0xff] }
 0xf0c   : > { %4649 = vmatmul.mubr.msk.f32.vlgmr.msra.gmra.mrb[20].mxu1 %vm636_vm4, %v2407_v40 }
 0xf0d   : > { %4658 = vmatprep.mubr.msk.f32.mxu1 %vm5175_vm0, %v5174_v9 }
 0xf67   : > { %v2399_v41 = vpop.xlane.xlu1 %2398 }
 0xf68   : > { %5094 = vrcp.f32 %v2399_v41  ;;  %v2396_v42 = vpop.xlane.xlu0 %2395  ;;  %v4200_v41 = vld [vmem:[%s6144_s5 + $0xa0] sm:$0xff] }
 0xf69   : > { %5096 = vrcp.f32 %v2396_v42  ;;  %v4201_v42 = vld [vmem:[%s6144_s5 + $0xa8] sm:$0xff] }
 0xf6b   : > { %v2564_v43 = vpop.permute.xlu1 %2563 }
 0xf6c   : > { %v2402_v44 = vpop.xlane.xlu0 %2401  ;;  %4657 = vmatpush3.msra.mxu1 %v2564_v43  ;;  %v4188_v43 = vld [vmem:[%s6148_s9 + $0xa] ss:$0 sm:$0xff] }
 0xf6d   : > { %5098 = vrcp.f32 %v2402_v44  ;;  %4916 = vmatprep.subr.bf16.mxu1 %v5173_v4 }
 0xf6f   : > { %v2640_v51 = vpop.permute.xlu1 %2639 }
 0xf70   : > { %v2488_v45 = vpop.permute.xlu0 %2487 }
 0xf71   : > { %4652 = vmatpush3.msra.mxu0 %v2488_v45  ;;  %v4935_v45 = vpack.c.bf16 %v4201_v42, %v4200_v41 }
 0xf72   : > { %v5095_v46 = vpop.eup %5094  ;;  %4661 = vmatprep.subr.mxu0 %v5174_v9 }
 0xf73   : > { %v5097_v47 = vpop.eup %5096  ;;  %v2409_v48 = vmul.f32 %v5095_v46, %v5087_v33  ;;  %v4192_v33 = vld [vmem:[%s6144_s5 + $0x70] sm:$0xff]  ;;  %v4215_v46 = vld [vmem:[%s6145_s6 + $0x100] sm:$0xff] }
 0xf74   : > { %v2408_v49 = vmul.f32 %v5097_v47, %v5089_v34  ;;  %v4193_v34 = vld [vmem:[%s6144_s5 + $0x78] sm:$0xff]  ;;  %v4216_v47 = vld [vmem:[%s6145_s6 + $0x108] sm:$0xff] }
 0xf75   : > { %4659 = vmatmul.mubr.msk.f32.vlgmr.msra.gmra.mrb[22].mxu1 %vm636_vm4, %v2409_v48  ;;  %v4932_v35 = vpack.c.bf16 %v4193_v34, %v4192_v33  ;;  %v4228_v33 = vld [vmem:[%s6145_s6 + $0x158] sm:$0xff] }
 0xf76   : > { %4654 = vmatmul.mubr.msk.f32.vlgmr.msra.gmra.mrb[24].mxu0 %vm636_vm4, %v2408_v49  ;;  %4674 = vmatprep.mubr.msk.f32.mxu1 %vm5175_vm0, %v5174_v9  ;;  %v4202_v49 = vld [vmem:[%s6144_s5 + $0xb0] sm:$0xff] }
 0xf77   : > { %v5099_v52 = vpop.eup %5098  ;;  %4662 = vmatpush3.msra.mxu0 %v2640_v51  ;;  %4663 = vmatprep.mubr.msk.f32.mxu0 %vm5175_vm0, %v5174_v9  ;;  %v4203_v51 = vld [vmem:[%s6144_s5 + $0xb8] sm:$0xff] }
 0xf78   : > { %v2410_v53 = vmul.f32 %v5099_v52, %v5091_v37  ;;  %4922 = vmatprep.subr.bf16.mxu0 %v5173_v4  ;;  %4918 = vmatpush3.bf16.msra.mxu1 %v4917_v56  ;;  %v4938_v54 = vpack.c.bf16 %v4203_v51, %v4202_v49  ;;  %v4234_v51 = vld [vmem:[%s6148_s9 + $0xb] ss:$0 sm:$0xff] }
 0xf79   : > { %4919 = vmatprep.subr.bf16.mxu1 %v5173_v4 }
 0xf7a   : > { %4664 = vmatmul.mubr.msk.f32.vlgmr.msra.gmra.mrb[26].mxu0 %vm636_vm4, %v2410_v53  ;;  %v4941_v53 = vpack.c.bf16 %v4216_v47, %v4215_v46 }
 0xf7b   : > { %4685 = vmatprep.mubr.msk.f32.mxu0 %vm5175_vm0, %v5174_v9  ;;  %4924 = vmatpush3.bf16.msra.mxu0 %v4923_v27 }
 0xf7c   : > { %4921 = vmatpush3.bf16.msra.mxu1 %v4920_v61  ;;  %4925 = vmatprep.subr.bf16.mxu0 %v5173_v4 }
 0xf7d   : > { %4928 = vmatprep.subr.bf16.mxu1 %v5173_v4 }
 0xfdf   : > { %v2483_v57 = vpop.f32.mrb[20].mxu1 }
 0xfe0   : > { %v4650_v58 = vpop.f32.mrb[21].mxu1 }
 0xfe1   : > { %v4217_v58 = vld [vmem:[%s6145_s6 + $0x110] sm:$0xff] }
 0xfe2   : > { %v4944_v61 = vpack.c.bf16 %v4218_v59, %v4217_v58 }
0x1048   : > { %v2635_v23 = vpop.f32.mrb[22].mxu1 }
0x1049   : > { %v2559_v62 = vpop.f32.mrb[24].mxu0  ;;  %2720 = vrot.lane.b32.xlu1 %v2635_v23, %s6180_s1  ;;  %v4660_v63 = vpop.f32.mrb[23].mxu1  ;;  %v4208_v23 = vld [vmem:[%s6145_s6 + $0xc8] sm:$0xff]  ;;  %s4005_s1 = scalar_lea.sflag [#allocation3], %s436_s3 }
0x104a   : > { %2716 = vrot.lane.b32.xlu0 %v2559_v62, %s6181_s24  ;;  %v4655_v0 = vpop.f32.mrb[25].mxu0  ;;  %v4953_v62 = vpack.c.bf16 %v4208_v23, %v4207_v60  ;;  %v4219_v63 = vld [vmem:[%s6145_s6 + $0x120] sm:$0xff]  ;;  %s445_s24 = scalar_lea.vmem %s6151_s12, %s6183_s0  ;;  %s6097_s0 = scalar_lea.hbm %s6152_s13, %s4273_s20 }
0x104b   : > { %v4220_v0 = vld [vmem:[%s6145_s6 + $0x128] sm:$0xff] }
0x104d   : > { %v2711_v1 = vpop.f32.mrb[26].mxu0 }
0x104e   : > { %2724 = vrot.lane.b32.xlu0 %v2711_v1, %s6182_s30  ;;  %v4665_v2 = vpop.f32.mrb[27].mxu0  ;;  %v4209_v1 = vld [vmem:[%s6145_s6 + $0xd0] sm:$0xff]  ;;  %s5112_s30 = sshll.u32 %s5184_s29, 4  ;;  %s5113_s30 = int_to_ptr.vmem [resolvable:$false] %s5112_s30 }
0x104f   : > { %v4947_v2 = vpack.c.bf16 %v4220_v0, %v4219_v63  ;;  %v4240_v63 = vld [vmem:[%s6149_s10 + $0x28] sm:$0xff]  ;;  %s5114_s16 = scalar_lea.vmem %s5113_s30, 32  ;;  %p5115_p0 = scmp.lt.s32.totalorder %s6099_s17, %s5113_s30 }
0x10bb   : > { %v2721_v5 = vpop.permute.xlu1 %2720 }
0x10bc   : > { %v2717_v3 = vpop.permute.xlu0 %2716 }
0x10bd   : > { %v2727_v6 = vsel %vm636_vm4, %v2483_v57, %v2717_v3  ;;  %v4210_v3 = vld [vmem:[%s6145_s6 + $0xd8] sm:$0xff] }
0x10be   : > { %v2728_v7 = vsel %vm1304_vm5, %v2727_v6, %v2721_v5  ;;  %v4956_v5 = vpack.c.bf16 %v4210_v3, %v4209_v1  ;;  %v4221_v6 = vld [vmem:[%s6145_s6 + $0x130] sm:$0xff]  ;;  %v4242_v1 = vld [vmem:[%s6149_s10 + $0x38] sm:$0xff] }
0x10c0   : > { %v2725_v8 = vpop.permute.xlu0 %2724 }
0x10c1   : > { %v2729_v10 = vsel %vm1306_vm6, %v2728_v7, %v2725_v8  ;;  %v4222_v7 = vld [vmem:[%s6145_s6 + $0x138] sm:$0xff]  ;;  %v4211_v8 = vld [vmem:[%s6145_s6 + $0xe0] sm:$0xff] }
0x10c2   : > { %4675 = vmatmul.mubr.msk.f32.vlgmr.msra.gmra.mrb[24].mxu1 %vm546_vm3, %v2729_v10  ;;  %v4950_v10 = vpack.c.bf16 %v4222_v7, %v4221_v6  ;;  %v4247_v7 = vld [vmem:[%s6149_s10 + $0x50] sm:$0xff] }
0x10c3   : > { %4696 = vmatprep.mubr.msk.f32.mxu1 %vm5175_vm0, %v5174_v9  ;;  %4930 = vmatpush3.bf16.msra.mxu1 %v4929_v32  ;;  %v4227_v32 = vld [vmem:[%s6145_s6 + $0x150] sm:$0xff] }
0x10c4   : > { %4931 = vmatprep.subr.bf16.mxu1 %v5173_v4 }
0x10c7   : > { %4933 = vmatpush3.bf16.msra.mxu1 %v4932_v35  ;;  %v4968_v35 = vpack.c.bf16 %v4228_v33, %v4227_v32 }
0x10c8   : > { %4940 = vmatprep.subr.bf16.mxu1 %v5173_v4 }
0x1195   : > { %v2810_v12 = vpop.f32.mrb[24].mxu1 }
0x1196   : > { %v2811_v13 = vadd.f32 %v4183_v11, %v2810_v12  ;;  %v4676_v15 = vpop.f32.mrb[25].mxu1  ;;  %v4212_v11 = vld [vmem:[%s6145_s6 + $0xe8] sm:$0xff] }
0x1197   : > { %v4959_v12 = vpack.c.bf16 %v4212_v11, %v4211_v8  ;;  %v4214_v15 = vld [vmem:[%s6145_s6 + $0xf8] sm:$0xff] }
0x1198   : > { %v2814_v16 = vadd.f32 %v2811_v13, %v5663_v50  ;;  %v4196_v50 = vld [vmem:[%s6144_s5 + $0x90] sm:$0xff]  ;;  %v4248_v8 = vld [vmem:[%s6149_s10 + $0x58] sm:$0xff] }
0x1199   : > { %v4926_v30 = vpack.c.bf16 %v4197_v28, %v4196_v50  ;;  %v4213_v13 = vld [vmem:[%s6145_s6 + $0xf0] sm:$0xff]  ;;  %v4225_v50 = vld [vmem:[%s6145_s6 + $0x140] sm:$0xff]  ;;  %v4226_v28 = vld [vmem:[%s6145_s6 + $0x148] sm:$0xff] }
0x119a   : > { %v2817_v18 = vsel %vm546_vm3, %v2814_v16, 0.0 }
0x119b   : > { %2818 = vadd.xlane.f32.xlu1 %v2817_v18  ;;  %4927 = vmatpush3.bf16.msra.mxu0 %v4926_v30  ;;  %v4965_v30 = vpack.c.bf16 %v4226_v28, %v4225_v50 }
0x119c   : > { %4934 = vmatprep.subr.bf16.mxu0 %v5173_v4 }
0x1228   : > { %v2819_v19 = vpop.xlane.xlu1 %2818 }
0x1229   : > { %v2820_v20 = vmul.f32 0.03125, %v2819_v19 }
0x122b   : > { %v2821_v21 = vsub.f32 %v2814_v16, %v2820_v20  ;;  %v4962_v16 = vpack.c.bf16 %v4214_v15, %v4213_v13 }
0x122d   : > { %v2822_v22 = vmul.f32 %v2821_v21, %v2821_v21 }
0x122f   : > { %v2823_v14 = vsel %vm546_vm3, %v2822_v22, 0.0 }
0x1230   : > { %2824 = vadd.xlane.f32.xlu0 %v2823_v14  ;;  %v4205_v14 = vld [vmem:[%s6147_s8 + $0x1] ss:$0 sm:$0xff] }
0x12bd   : > { %v2825_v36 = vpop.xlane.xlu0 %2824 }
0x12be   : > { %v2826_v37 = vmul.f32 0.03125, %v2825_v36 }
0x12c0   : > { %v2827_v38 = vadd.f32 1e-05, %v2826_v37  ;;  %v4229_v37 = vld [vmem:[%s6145_s6 + $0x160] sm:$0xff] }
0x12c2   : > { %5100 = vrsqrt.f32 %v2827_v38  ;;  %v4230_v38 = vld [vmem:[%s6145_s6 + $0x168] sm:$0xff] }
0x12cc   : > { %v5101_v39 = vpop.eup %5100 }
0x12cd   : > { %v2829_v40 = vmul.f32 %v5101_v39, %v2821_v21  ;;  %v4971_v39 = vpack.c.bf16 %v4230_v38, %v4229_v37 }
0x12cf   : > { %v2834_v44 = vmul.f32 %v4187_v24, %v2829_v40  ;;  %v4231_v24 = vld [vmem:[%s6145_s6 + $0x170] sm:$0xff]  ;;  %v4232_v40 = vld [vmem:[%s6145_s6 + $0x178] sm:$0xff] }
0x12d0   : > { %v4974_v41 = vpack.c.bf16 %v4232_v40, %v4231_v24 }
0x12d1   : > { %v5817_v48 = vadd.f32 %v4188_v43, %v2834_v44 }
0x12d3   : > { %4686 = vmatmul.mubr.msk.f32.vlgmr.msra.gmra.mrb[28].mxu0 %vm546_vm3, %v5817_v48  ;;  %v2847_v52 = vrot.slane %v5817_v48, 7  ;;  %v3005_v56 = vrot.slane %v5817_v48, 1 }
0x12d4   : > { %4936 = vmatpush3.bf16.msra.mxu0 %v4935_v45  ;;  %4707 = vmatprep.mubr.msk.f32.mxu0 %vm5175_vm0, %v5174_v9 }
0x12d5   : > { %v2848_v55 = vsel %vm1425_vm7, %v2847_v52, 0.0  ;;  %4937 = vmatprep.subr.bf16.mxu0 %v5173_v4  ;;  %v3006_v57 = vsel %vm1589_vm8, %v3005_v56, 0.0 }
0x12d6   : > { %4697 = vmatmul.mubr.msk.f32.vlgmr.msra.gmra.mrb[26].mxu1 %vm546_vm3, %v2848_v55 }
0x12d7   : > { %4942 = vmatpush3.bf16.msra.mxu1 %v4941_v53  ;;  %4726 = vmatprep.mubr.msk.f32.mxu1 %vm5175_vm0, %v5174_v9 }
0x12d8   : > { %4939 = vmatpush3.bf16.msra.mxu0 %v4938_v54  ;;  %4943 = vmatprep.subr.bf16.mxu1 %v5173_v4 }
0x12d9   : > { %4952 = vmatprep.subr.bf16.mxu0 %v5173_v4 }
0x12db   : > { %4708 = vmatmul.mubr.msk.f32.vlgmr.msra.gmra.mrb[30].mxu0 %vm546_vm3, %v3006_v57  ;;  %4945 = vmatpush3.bf16.msra.mxu1 %v4944_v61 }
0x12dc   : > { %4745 = vmatprep.mubr.msk.f32.mxu0 %vm5175_vm0, %v5174_v9  ;;  %4954 = vmatpush3.bf16.msra.mxu0 %v4953_v62  ;;  %v4239_v62 = vld [vmem:[%s6149_s10 + $0x20] sm:$0xff] }
0x12dd   : > { %4946 = vmatprep.subr.bf16.mxu1 %v5173_v4  ;;  %4955 = vmatprep.subr.bf16.mxu0 %v5173_v4  ;;  %v4977_v0 = vpack.c.bf16 %v4240_v63, %v4239_v62 }
0x12df   : > { %4948 = vmatpush3.bf16.msra.mxu1 %v4947_v2  ;;  %v4245_v2 = vld [vmem:[%s6149_s10 + $0x40] sm:$0xff] }
0x12e0   : > { %4957 = vmatpush3.bf16.msra.mxu0 %v4956_v5  ;;  %4949 = vmatprep.subr.bf16.mxu1 %v5173_v4  ;;  %v4246_v5 = vld [vmem:[%s6149_s10 + $0x48] sm:$0xff] }
0x12e1   : > { %4958 = vmatprep.subr.bf16.mxu0 %v5173_v4  ;;  %v4989_v6 = vpack.c.bf16 %v4246_v5, %v4245_v2  ;;  %v4263_v2 = vld [vmem:[%s6149_s10 + $0xa0] sm:$0xff] }
0x12e2   : > { %v4252_v5 = vld [vmem:[%s6150_s11 + $0x2] ss:$0 sm:$0xff] }
0x12e3   : > { %4951 = vmatpush3.bf16.msra.mxu1 %v4950_v10  ;;  %v4992_v10 = vpack.c.bf16 %v4248_v8, %v4247_v7 }
0x12e4   : > { %4960 = vmatpush3.bf16.msra.mxu0 %v4959_v12  ;;  %4964 = vmatprep.subr.bf16.mxu1 %v5173_v4 }
0x12e5   : > { %4961 = vmatprep.subr.bf16.mxu0 %v5173_v4 }
0x12e8   : > { %4963 = vmatpush3.bf16.msra.mxu0 %v4962_v16  ;;  %v4237_v16 = vld [vmem:[%s6148_s9 + $0xc] ss:$0 sm:$0xff] }
0x12e9   : > { %4976 = vmatprep.subr.bf16.mxu0 %v5173_v4 }
0x13a6   : > { %v2923_v18 = vpop.f32.mrb[28].mxu0 }
0x13a7   : > { %v4687_v19 = vpop.f32.mrb[29].mxu0 }
0x13a8   : > { %v3374_v19 = vld [vmem:[%s6149_s10] sm:$0xff] }
0x13a9   : > { %v2996_v20 = vpop.f32.mrb[26].mxu1 }
0x13aa   : > { %v2997_v21 = vadd.f32 %v2996_v20, %v2923_v18  ;;  %v4698_v22 = vpop.f32.mrb[27].mxu1  ;;  %v3375_v20 = vld [vmem:[%s6149_s10 + $0x8] sm:$0xff] }
0x13ae   : > { %v3076_v25 = vpop.f32.mrb[30].mxu0 }
0x13af   : > { %v3080_v26 = vadd.f32 %v3076_v25, %v2997_v21  ;;  %v4709_v27 = vpop.f32.mrb[31].mxu0  ;;  %v4238_v21 = vld [vmem:[%s6148_s9 + $0xd] ss:$0 sm:$0xff] }
0x13b0   : > { %v3377_v27 = vld [vmem:[%s6149_s10 + $0x18] sm:$0xff] }
0x13b1   : > { %v3087_v29 = vadd.f32 %v4205_v14, %v3080_v26  ;;  %v4983_v14 = vpack.c.bf16 %v3375_v20, %v3374_v19  ;;  %v3376_v26 = vld [vmem:[%s6149_s10 + $0x10] sm:$0xff] }
0x13b2   : > { %v4986_v28 = vpack.c.bf16 %v3377_v27, %v3376_v26 }
0x13b3   : > { %v3088_v31 = vmax.f32 %v3087_v29, 0.0 }
0x13b5   : > { %v3099_v34 = vrot.slane %v3088_v31, 7  ;;  %4727 = vmatmul.mubr.msk.f32.vlgmr.msra.gmra.mrb[28].mxu1 %vm1696_vm9, %v3088_v31  ;;  %v3265_v42 = vrot.slane %v3088_v31, 1 }
0x13b6   : > { %4966 = vmatpush3.bf16.msra.mxu1 %v4965_v30  ;;  %4764 = vmatprep.mubr.msk.f32.mxu1 %vm5175_vm0, %v5174_v9 }
0x13b7   : > { %v3100_v36 = vsel %vm1425_vm7, %v3099_v34, 0.0  ;;  %4967 = vmatprep.subr.bf16.mxu1 %v5173_v4  ;;  %v3266_v43 = vsel %vm1589_vm8, %v3265_v42, 0.0 }
0x13b8   : > { %4746 = vmatmul.mubr.msk.f32.vlgmr.msra.gmra.mrb[32].mxu0 %vm1696_vm9, %v3100_v36 }
0x13b9   : > { %4775 = vmatprep.mubr.msk.f32.mxu0 %vm5175_vm0, %v5174_v9  ;;  %4978 = vmatpush3.bf16.msra.mxu0 %v4977_v0 }
0x13ba   : > { %4969 = vmatpush3.bf16.msra.mxu1 %v4968_v35  ;;  %4979 = vmatprep.subr.bf16.mxu0 %v5173_v4 }
0x13bb   : > { %4970 = vmatprep.subr.bf16.mxu1 %v5173_v4 }
0x13be   : > { %4972 = vmatpush3.bf16.msra.mxu1 %v4971_v39  ;;  %v4250_v39 = vld [vmem:[%s6150_s11] ss:$0 sm:$0xff] }
0x13bf   : > { %4973 = vmatprep.subr.bf16.mxu1 %v5173_v4 }
0x13c2   : > { %4975 = vmatpush3.bf16.msra.mxu1 %v4974_v41 }
0x13c3   : > { %4988 = vmatprep.subr.bf16.mxu1 %v5173_v4 }
0x13c5   : > { %4765 = vmatmul.mubr.msk.f32.vlgmr.msra.gmra.mrb[30].mxu1 %vm1696_vm9, %v3266_v43 }
0x13c6   : > { %4797 = vmatprep.mubr.msk.f32.mxu1 %vm5175_vm0, %v5174_v9  ;;  %4990 = vmatpush3.bf16.msra.mxu1 %v4989_v6 }
0x13c7   : > { %4991 = vmatprep.subr.bf16.mxu1 %v5173_v4 }
0x13ca   : > { %4993 = vmatpush3.bf16.msra.mxu1 %v4992_v10  ;;  %v4265_v10 = vld [vmem:[%s6149_s10 + $0xb0] sm:$0xff] }
0x13cb   : > { %5000 = vmatprep.subr.bf16.mxu1 %v5173_v4 }
0x1488   : > { %v3179_v44 = vpop.f32.mrb[28].mxu1 }
0x1489   : > { %v4728_v45 = vpop.f32.mrb[29].mxu1 }
0x148b   : > { %v3252_v46 = vpop.f32.mrb[32].mxu0 }
0x148c   : > { %v3253_v47 = vadd.f32 %v3252_v46, %v3179_v44  ;;  %v4747_v49 = vpop.f32.mrb[33].mxu0 }
0x148d   : > { %v4257_v49 = vld [vmem:[%s6149_s10 + $0x80] sm:$0xff] }
0x1498   : > { %v3336_v52 = vpop.f32.mrb[30].mxu1 }
0x1499   : > { %v3340_v53 = vadd.f32 %v3336_v52, %v3253_v47  ;;  %v4766_v54 = vpop.f32.mrb[31].mxu1 }
0x149a   : > { %v4260_v54 = vld [vmem:[%s6149_s10 + $0x98] sm:$0xff] }
0x149b   : > { %v3345_v55 = vadd.f32 %v4234_v51, %v3340_v53  ;;  %v4258_v51 = vld [vmem:[%s6149_s10 + $0x88] sm:$0xff]  ;;  %v4259_v53 = vld [vmem:[%s6149_s10 + $0x90] sm:$0xff] }
0x149c   : > { %v4995_v52 = vpack.c.bf16 %v4258_v51, %v4257_v49 }
0x149d   : > { %v3346_v56 = vadd.f32 %v3345_v55, %v5817_v48  ;;  %v4241_v48 = vld [vmem:[%s6149_s10 + $0x30] sm:$0xff]  ;;  %v4253_v55 = vld [vmem:[%s6149_s10 + $0x60] sm:$0xff] }
0x149e   : > { %v4980_v3 = vpack.c.bf16 %v4242_v1, %v4241_v48  ;;  %v4251_v48 = vld [vmem:[%s6150_s11 + $0x1] ss:$0 sm:$0xff] }
0x149f   : > { %v3349_v57 = vsel %vm546_vm3, %v3346_v56, 0.0 }
0x14a0   : > { %3350 = vadd.xlane.f32.xlu0 %v3349_v57  ;;  %4981 = vmatpush3.bf16.msra.mxu0 %v4980_v3  ;;  %v4254_v57 = vld [vmem:[%s6149_s10 + $0x68] sm:$0xff] }
0x14a1   : > { %4982 = vmatprep.subr.bf16.mxu0 %v5173_v4  ;;  %v4264_v3 = vld [vmem:[%s6149_s10 + $0xa8] sm:$0xff] }
0x14a2   : > { %v5007_v7 = vpack.c.bf16 %v4264_v3, %v4263_v2 }
0x152d   : > { %v3351_v58 = vpop.xlane.xlu0 %3350 }
0x152e   : > { %v3352_v59 = vmul.f32 0.03125, %v3351_v58  ;;  %v5001_v58 = vpack.c.bf16 %v4254_v57, %v4253_v55 }
0x1530   : > { %v3353_v60 = vsub.f32 %v3346_v56, %v3352_v59  ;;  %v4998_v56 = vpack.c.bf16 %v4260_v54, %v4259_v53  ;;  %v4255_v59 = vld [vmem:[%s6149_s10 + $0x70] sm:$0xff] }
0x1532   : > { %v3354_v61 = vmul.f32 %v3353_v60, %v3353_v60 }
0x1534   : > { %v3355_v23 = vsel %vm546_vm3, %v3354_v61, 0.0 }
0x1535   : > { %3356 = vadd.xlane.f32.xlu1 %v3355_v23 }
0x15c2   : > { %v3357_v11 = vpop.xlane.xlu1 %3356 }
0x15c3   : > { %v3358_v12 = vmul.f32 0.03125, %v3357_v11  ;;  %v4266_v11 = vld [vmem:[%s6149_s10 + $0xb8] sm:$0xff] }
0x15c5   : > { %v3359_v13 = vadd.f32 1e-05, %v3358_v12 }
0x15c7   : > { %5102 = vrsqrt.f32 %v3359_v13  ;;  %v5010_v13 = vpack.c.bf16 %v4266_v11, %v4265_v10 }
0x15d1   : > { %v5103_v15 = vpop.eup %5102 }
0x15d2   : > { %v3361_v18 = vmul.f32 %v5103_v15, %v3353_v60  ;;  %v4256_v60 = vld [vmem:[%s6149_s10 + $0x78] sm:$0xff] }
0x15d3   : > { %v5004_v61 = vpack.c.bf16 %v4256_v60, %v4255_v59 }
0x15d4   : > { %v3366_v22 = vmul.f32 %v4237_v16, %v3361_v18 }
0x15d6   : > { %v3371_v25 = vadd.f32 %v4238_v21, %v3366_v22 }
0x15d8   : > { %3372 = vst.msk [vmem:[%s445_s24] sm:$0xff] %vm546_vm3, %v3371_v25  ;;  %4776 = vmatmul.mubr.msk.f32.vlgmr.msra.gmra.mrb[34].mxu0 %vm546_vm3, %v3371_v25  ;;  %v3536_v50 = vrot.slane %v3371_v25, 1  ;;  %v3378_v30 = vrot.slane %v3371_v25, 7  ;;  %s5108_s24 = scalar_lea.vmem %s6099_s17, 16 }
0x15d9   : > { %4984 = vmatpush3.bf16.msra.mxu0 %v4983_v14  ;;  %4786 = vmatprep.mubr.msk.f32.mxu0 %vm5175_vm0, %v5174_v9  ;;  %p5109_p11 = scmp.ne.s32.totalorder %s6099_s17, %s5108_s24  ;;  %p5116_p1 = scmp.lt.s32.totalorder %s5114_s16, %s5108_s24 }
0x15da   : > { %4985 = vmatprep.subr.bf16.mxu0 %v5173_v4  ;;  %v3537_v29 = vsel %vm1589_vm8, %v3536_v50, 0.0  ;;  %v3379_v31 = vsel %vm1425_vm7, %v3378_v30, 0.0 }
0x15db   : > { %4798 = vmatmul.mubr.msk.f32.vlgmr.msra.gmra.mrb[32].mxu1 %vm546_vm3, %v3537_v29  ;;  %p5110_p12 = pnand %p5109_p11, %p5293_p5  ;;  %p5117_p2 = por %p5116_p1, %p5115_p0 }
0x15dc   : > { %4819 = vmatprep.mubr.msk.f32.mxu1 %vm5175_vm0, %v5174_v9  ;;  %5002 = vmatpush3.bf16.msra.mxu1 %v5001_v58 }
0x15dd   : > { %4987 = vmatpush3.bf16.msra.mxu0 %v4986_v28  ;;  %5003 = vmatprep.subr.bf16.mxu1 %v5173_v4  ;;  %p5111_p13 = pneg %p5110_p12 }
0x15de   : > { %4994 = vmatprep.subr.bf16.mxu0 %v5173_v4 }
0x15df   : > { %p5118_p3 = pnand %p5117_p2, %p5111_p13 }
0x15e0   : > { %4787 = vmatmul.mubr.msk.f32.vlgmr.msra.gmra.mrb[36].mxu0 %vm546_vm3, %v3379_v31  ;;  %5005 = vmatpush3.bf16.msra.mxu1 %v5004_v61 }
0x15e1   : > { %4808 = vmatprep.mubr.msk.f32.mxu0 %vm5175_vm0, %v5174_v9  ;;  %4996 = vmatpush3.bf16.msra.mxu0 %v4995_v52 }
0x15e2   : > { %4997 = vmatprep.subr.bf16.mxu0 %v5173_v4  ;;  %4833 = vmatprep.subr.mxu1 %v5174_v9 }
0x15e5   : > { %4999 = vmatpush3.bf16.msra.mxu0 %v4998_v56 }
0x15e6   : > { %5006 = vmatprep.subr.bf16.mxu0 %v5173_v4 }
0x16ab   : > { %v3454_v32 = vpop.f32.mrb[34].mxu0 }
0x16ac   : > { %v4777_v33 = vpop.f32.mrb[35].mxu0 }
0x16ae   : > { %v3607_v34 = vpop.f32.mrb[32].mxu1 }
0x16af   : > { %v4799_v35 = vpop.f32.mrb[33].mxu1 }
0x16b3   : > { %v3527_v36 = vpop.f32.mrb[36].mxu0 }
0x16b4   : > { %v3528_v37 = vadd.f32 %v3527_v36, %v3454_v32  ;;  %v4788_v38 = vpop.f32.mrb[37].mxu0 }
0x16b5   : > { %v4269_v38 = vld [vmem:[%s6150_s11 + $0x4] ss:$0 sm:$0xff] }
0x16b6   : > { %v3611_v24 = vadd.f32 %v3607_v34, %v3528_v37 }
0x16b8   : > { %v3616_v40 = vadd.f32 %v4250_v39, %v3611_v24  ;;  %v4270_v24 = vld [vmem:[%s6150_s11 + $0x5] ss:$0 sm:$0xff] }
0x16ba   : > { %v3617_v41 = vmax.f32 %v3616_v40, 0.0 }
0x16bc   : > { %v3620_v42 = vsel %vm546_vm3, %v3617_v41, 0.0 }
0x16bd   : > { %3621 = vadd.xlane.f32.xlu0 %v3620_v42  ;;  %v3914_v42 = vld [vmem:[%s6150_s11 + $0x6] sm:$0x1] }
0x174a   : > { %v3622_v43 = vpop.xlane.xlu0 %3621 }
0x174b   : > { %v3623_v44 = vmul.f32 0.03125, %v3622_v43 }
0x174d   : > { %v3624_v45 = vsub.f32 %v3617_v41, %v3623_v44 }
0x174f   : > { %v3625_v46 = vmul.f32 %v3624_v45, %v3624_v45 }
0x1751   : > { %v3626_v47 = vsel %vm546_vm3, %v3625_v46, 0.0 }
0x1752   : > { %3627 = vadd.xlane.f32.xlu1 %v3626_v47 }
0x17df   : > { %v3628_v23 = vpop.xlane.xlu1 %3627 }
0x17e0   : > { %v3629_v62 = vmul.f32 0.03125, %v3628_v23 }
0x17e2   : > { %v3630_v63 = vadd.f32 1e-05, %v3629_v62 }
0x17e4   : > { %5104 = vrsqrt.f32 %v3630_v63 }
0x17ee   : > { %v5105_v0 = vpop.eup %5104 }
0x17ef   : > { %v3632_v1 = vmul.f32 %v5105_v0, %v3624_v45 }
0x17f1   : > { %v3637_v6 = vmul.f32 %v4251_v48, %v3632_v1 }
0x17f3   : > { %v3642_v8 = vadd.f32 %v4252_v5, %v3637_v6 }
0x17f5   : > { %4809 = vmatmul.mubr.msk.f32.vlgmr.msra.gmra.mrb[38].mxu0 %vm546_vm3, %v3642_v8  ;;  %v3649_v12 = vrot.slane %v3642_v8, 7  ;;  %v3807_v16 = vrot.slane %v3642_v8, 1 }
0x17f6   : > { %5008 = vmatpush3.bf16.msra.mxu0 %v5007_v7  ;;  %4830 = vmatprep.mubr.msk.f32.mxu0 %vm5175_vm0, %v5174_v9 }
0x17f7   : > { %v3650_v15 = vsel %vm1425_vm7, %v3649_v12, 0.0  ;;  %5009 = vmatprep.subr.bf16.mxu0 %v5173_v4  ;;  %v3808_v18 = vsel %vm1589_vm8, %v3807_v16, 0.0  ;;  %v4268_v4 = vld [vmem:[%s6150_s11 + $0x3] ss:$0 sm:$0xff] }
0x17f8   : > { %4820 = vmatmul.mubr.msk.f32.vlgmr.msra.gmra.mrb[34].mxu1 %vm546_vm3, %v3650_v15 }
0x17f9   : > { %4835 = vmatprep.mubr.msk.f32.mxu1 %vm5175_vm0, %v5174_v9 }
0x17fa   : > { %5011 = vmatpush3.bf16.msra.mxu0 %v5010_v13 }
0x17fd   : > { %4831 = vmatmul.mubr.msk.f32.vlgmr.msra.gmra.mrb[40].mxu0 %vm546_vm3, %v3808_v18 }
0x18c8   : > { %v3725_v19 = vpop.f32.mrb[38].mxu0 }
0x18c9   : > { %v4810_v20 = vpop.f32.mrb[39].mxu0 }
0x18cb   : > { %v3798_v21 = vpop.f32.mrb[34].mxu1 }
0x18cc   : > { %v3799_v22 = vadd.f32 %v3798_v21, %v3725_v19  ;;  %v4821_v14 = vpop.f32.mrb[35].mxu1 }
0x18d0   : > { %v3878_v25 = vpop.f32.mrb[40].mxu0 }
0x18d1   : > { %v3882_v26 = vadd.f32 %v3878_v25, %v3799_v22  ;;  %v4832_v27 = vpop.f32.mrb[41].mxu0 }
0x18d3   : > { %v3887_v50 = vadd.f32 %v4268_v4, %v3882_v26 }
0x18d5   : > { %v3888_v9 = vmax.f32 %v3887_v50, 0.0 }
0x18d7   : > { %v3891_v28 = vsel %vm546_vm3, %v3888_v9, 0.0 }
0x18d8   : > { %3892 = vadd.xlane.f32.xlu0 %v3891_v28 }
0x18ee   : > { %3918 = vperm.xlu0 %5063, %v3915_v17  }
0x1965   : > { %v3893_v29 = vpop.xlane.xlu0 %3892 }
0x1966   : > { %v3894_v30 = vmul.f32 0.03125, %v3893_v29 }
0x1968   : > { %v3895_v31 = vsub.f32 %v3888_v9, %v3894_v30 }
0x196a   : > { %v3896_v32 = vmul.f32 %v3895_v31, %v3895_v31 }
0x196c   : > { %v3897_v33 = vsel %vm546_vm3, %v3896_v32, 0.0 }
0x196d   : > { %3898 = vadd.xlane.f32.xlu1 %v3897_v33  ;;  %v3919_v43 = vpop.permute.xlu0 %3918 }
0x19fa   : > { %v3899_v34 = vpop.xlane.xlu1 %3898 }
0x19fb   : > { %v3900_v35 = vmul.f32 0.03125, %v3899_v34 }
0x19fd   : > { %v3901_v36 = vadd.f32 1e-05, %v3900_v35 }
0x19ff   : > { %5106 = vrsqrt.f32 %v3901_v36 }
0x1a09   : > { %v5107_v37 = vpop.eup %5106 }
0x1a0a   : > { %v3903_v39 = vmul.f32 %v5107_v37, %v3895_v31 }
0x1a0c   : > { %v3908_v40 = vmul.f32 %v4269_v38, %v3903_v39 }
0x1a0e   : > { %v3913_v41 = vadd.f32 %v4270_v24, %v3908_v40 }
0x1a10   : > { %4834 = vmatpush3.xpose.msk.msra.mxu1 %vm546_vm3, %v3913_v41 }
0x1a13   : > { %4836 = vmatmul.mubr.msk.f32.vlgmr.msra.gmra.mrb[36].mxu1 %vm546_vm3, %v3914_v42 }
0x1ae6   : > { %v3993_v44 = vpop.f32.mrb[36].mxu1 }
0x1ae7   : > { %v3994_v45 = vadd.f32 %v3993_v44, %v3919_v43  ;;  %v4837_v46 = vpop.f32.mrb[37].mxu1 }
0x1ae9   : > { %v3997_v47 = vmax.f32 %v3994_v45, 0.0 }
0x1aeb   : > { %3999 = vst.msk [vmem:[%s437_s15] sm:$0x1] %vm3998_vm10, %v3997_v47 }
0x1aec   : > { %5121 = shalt.err (!%p5118_p3)
}
0x1aed   : > { %s5122_s23 = scalar_lea.hbm %s6097_s0, 16  ;;  %s5126_s20 = scalar_lea.hbm %s6152_s13, 32 }
0x1aee   : > { %p5123_p4 = scmp.ne.s32.totalorder %s6097_s0, %s5122_s23  ;;  %p5127_p9 = scmp.lt.u32.totalorder %s6097_s0, %s6152_s13 }
0x1aef   : > { %p5128_p10 = scmp.lt.u32.totalorder %s5126_s20, %s5122_s23  ;;  %p5130_p12 = scmp.lt.u32.totalorder %s5122_s23, %s6097_s0 }
0x1af0   : > { %p5124_p7 = pnand %p5123_p4, %p5293_p5 }
0x1af1   : > { %p5129_p11 = por %p5128_p10, %p5127_p9 }
0x1af2   : > { %p5125_p8 = pneg %p5124_p7 }
0x1af3   : > { %p5131_p13 = por %p5130_p12, %p5129_p11 }
0x1af5   : > { %p5132_p0 = pnand %p5131_p13, %p5125_p8 }
0x1af7   : > { %5135 = shalt.err (!%p5132_p0)
}
0x1af8   : > { %5012 = dma.vmem_to_hbm [thread:$0]  (%p5293_p5), %s6099_s17, 16, %s6097_s0, %s4005_s1  }
0x1af9 PF: > { %p5018_p1 = scmp.ge.s32.totalorder %s5170_s28, 2  ;;  %s4039_s22 = sand.u32 1, %s5158_s25  }
0x1afa   : > { %s4040_s24 = scalar_lea.sflag [#allocation3], %s4039_s22 }
0x1afb   : > { %p5015_p2 = pnand %p5018_p1, %p5297_p6 }
0x1afd   : > { %5153 = dma.done.wait (!%p5015_p2), %s4040_s24, 16  }
0x1afe   : > { %5155 = vsyncadd (!%p5015_p2), %s4040_s24, 4294967280  ;;  %s6184_s29 = sld [smem:[#allocation5_spill]]  ;;  %p24_p3 = scmp.ge.s32.totalorder %s5280_s14, 4  }
0x1aff   : > { %s6185_s25 = smov %s5162_s26  ;;  %s6186_s26 = smov %s5166_s27 }
0x1b00   : > { %s6188_s28 = smov %s5280_s14  ;;  %26 = sbr.rel (!%p24_p3) target bundleno = 8 (0x8), region = 135 }
0x1b04   : > { %s6187_s27 = smov %s6184_s29 }
0x1b07   :  { %4044 = vsyncpa [#allocation3], 1 }
0x1b08   :  { %4046 = vsyncpa [#allocation3 + $0x1], 1 }

// kernel: fastspeech2_forward.3
= control target key start
LH: loop header
LB: loop body
LE: loop exit
PB: predicated region body
PF: predicated region fallthrough
CT: control target
= control target key end

     0   :  { %s9344_s0 = inlined_call_operand.vmem [shape: f32[2,8,32], index: 0, kind: input, shape index: {}]   ;;  %s9345_s1 = inlined_call_operand.vmem [shape: s32[2,1,8], index: 1, kind: input, shape index: {}]   ;;  %s9346_s2 = inlined_call_operand.vmem [shape: s32[2,1,8], index: 2, kind: input, shape index: {}]   ;;  %s9347_s3 = inlined_call_operand.vmem [shape: s32[2,16,1], index: 3, kind: input, shape index: {}]   ;;  %s9348_s4 = inlined_call_operand.vmem [shape: s32[2,16,1], index: 4, kind: input, shape index: {}]   ;;  %s9349_s5 = inlined_call_operand.vmem [shape: f32[32,32], index: 5, kind: input, shape index: {}]   ;;  %s9350_s6 = inlined_call_operand.vmem [shape: f32[32,32], index: 6, kind: input, shape index: {}]   ;;  %s9351_s7 = inlined_call_operand.vmem [shape: f32[16,32], index: 7, kind: input, shape index: {}]   ;;  %s9352_s8 = inlined_call_operand.vmem [shape: f32[2,32,96], index: 8, kind: input, shape index: {}]   ;;  %s9353_s9 = inlined_call_operand.vmem [shape: f32[2,32,32], index: 9, kind: input, shape index: {}]   ;;  %s9354_s10 = inlined_call_operand.vmem [shape: f32[2,3,32,64], index: 10, kind: input, shape index: {}]   ;;  %s9355_s11 = inlined_call_operand.vmem [shape: f32[2,3,64,32], index: 11, kind: input, shape index: {}]   ;;  %s9356_s12 = inlined_call_operand.vmem [shape: f32[2,1,96], index: 12, kind: input, shape index: {}]   ;;  %s9357_s13 = inlined_call_operand.vmem [shape: f32[2,1,64], index: 13, kind: input, shape index: {}]   ;;  %s9358_s14 = inlined_call_operand.vmem [shape: f32[2,6,32], index: 14, kind: input, shape index: {}]   ;;  %s9359_s15 = inlined_call_operand.vmem [shape: f32[4,3,32,32], index: 15, kind: input, shape index: {}]   ;;  %s9360_s16 = inlined_call_operand.vmem [shape: f32[16,32], index: 16, kind: input, shape index: {}]   ;;  %s9361_s17 = inlined_call_operand.vmem [shape: f32[32,16], index: 17, kind: input, shape index: {}]   ;;  %s9362_s18 = inlined_call_operand.vmem [shape: f32[1,16], index: 18, kind: input, shape index: {}]   ;;  %s9363_s19 = inlined_call_operand.vmem [shape: f32[2,16,16], index: 19, kind: output, shape index: {0}]   ;;  %s9364_s20 = inlined_call_operand.hbm [shape: f32[2,1,16], index: 20, kind: output, shape index: {1}]   ;;  %s9365_s21 = inlined_call_operand.hbm [shape: f32[2,1,16], index: 21, kind: output, shape index: {2}]  }
   0x1   :  { %9384 = sst [smem:[#allocation14_spill]] %s9344_s0 }
   0x2   :  { %9385 = sst [smem:[#allocation15_spill]] %s9345_s1 }
   0x3   :  { %9386 = sst [smem:[#allocation16_spill]] %s9346_s2 }
   0x4   :  { %9387 = sst [smem:[#allocation17_spill]] %s9347_s3 }
   0x5   :  { %9388 = sst [smem:[#allocation18_spill]] %s9348_s4 }
   0x6   :  { %9389 = sst [smem:[#allocation19_spill]] %s9349_s5 }
   0x7   :  { %9390 = sst [smem:[#allocation20_spill]] %s9350_s6 }
   0x8   :  { %9391 = sst [smem:[#allocation21_spill]] %s9351_s7 }
   0x9   :  { %9392 = sst [smem:[#allocation22_spill]] %s9352_s8 }
   0xa   :  { %9393 = sst [smem:[#allocation23_spill]] %s9362_s18 }
   0xb   :  { %9394 = sst [smem:[#allocation24_spill]] %s9363_s19 }
   0xc   :  { %9395 = sst [smem:[#allocation25_spill]] %s9364_s20 }
   0xd   :  { %9396 = sst [smem:[#allocation26_spill]] %s9365_s21 }
   0xe   :  { %27 = vsyncpa [#allocation3], 0 }
   0xf   :  { %29 = vsyncpa [#allocation3 + $0x1], 0 }
  0x10   :  { %30 = vsyncpa [#allocation5], 0 }
  0x11   :  { %32 = vsyncpa [#allocation5 + $0x1], 0  ;;  %s8139_s2 = smov 0   ;;  %s8141_s25 = smov 0  }
  0x12   :  { %s8143_s26 = smov 0   ;;  %s8145_s27 = smov 0  }
  0x13 LB: > { %9397 = sst [smem:[#allocation8_spill]] %s8001_s2  ;;  %s8160_s3 = sadd.s32 4294967295, %s8013_s27   ;;  %s8013_s27 = sphi %s8145_s27, %s9430_s27   ;;  %s8009_s26 = sphi %s8143_s26, %s9432_s26   ;;  %s8005_s25 = sphi %s8141_s25, %s9434_s25   ;;  %s8001_s2 = sphi %s8139_s2, %s9433_s2  }
  0x14   : > { %9398 = sst [smem:[#allocation9_spill]] %s8009_s26  ;;  %s6175_s28 = sadd.s32 4294967294, %s8013_s27  }
  0x15   : > { %9399 = sst [smem:[#allocation10_spill]] %s8013_s27  ;;  %s8164_s29 = sadd.s32 1, %s8013_s27  }
  0x16   : > { %9400 = sst [smem:[#allocation11_spill]] %s8164_s29  ;;  %s495_s0 = sadd.s32 1, %s8009_s26 }
  0x17   : > { %s492_s4 = ssub.s32 %s8013_s27, %s8164_s29  ;;  %p505_p0 = scmp.ne.s32.totalorder %s8009_s26, %s8005_s25 }
  0x18   : > { %p493_p1 = scmp.eq.s32.totalorder %s492_s4, 0  ;;  %p506_p2 = scmp.eq.s32.totalorder %s8160_s3, 1 }
  0x19   : > { %p511_p3 = scmp.ne.s32.totalorder %s8005_s25, %s8001_s2  ;;  %p512_p4 = scmp.eq.s32.totalorder %s6175_s28, 1 }
  0x1a   : > { %s8175_s30 = scalar_select %p493_p1, %s8009_s26, %s495_s0  }
  0x1b   : > { %p8177_p5 = por %p506_p2, %p505_p0  ;;  %p8181_p6 = por %p512_p4, %p511_p3 }
  0x1c   : > { %9401 = sst [smem:[#allocation12_spill]] %s8175_s30  ;;  %p6178_p7 = scmp.ge.s32.totalorder %s8013_s27, 1 }
  0x1d   : > { %s9403_s22 = scalar_select %p8181_p6, 1, 0 }
  0x1e   : > { %p633_p8 = scmp.lt.s32.totalorder %s8013_s27, 3 }
  0x1f   : > { %9404 = sst [smem:[#allocation13_spill]] %s9403_s22 }
  0x20   : > { %p634_p9 = pnand %p6178_p7, %p633_p8 }
  0x21   : > { %p716_p10 = scmp.lt.s32.totalorder (!%p634_p9), %s8160_s3, 1  ;;  %v744_v0 = vlaneseq (!%p634_p9)  ;;  %v846_v1 = vld [vmem:[%s9359_s15] sm:$0xff] (!%p634_p9)  ;;  %v847_v2 = vld [vmem:[%s9359_s15 + $0x8] sm:$0xff] (!%p634_p9)  ;;  %s9405_s28 = sld [smem:[#allocation15_spill]] (!%p634_p9)  ;;  %v6192_v10 = vld [vmem:[%s9359_s15 + $0x30] sm:$0xff] (!%p634_p9)  ;;  %vm763_vm4 = vcmask (!%p634_p9), 64512  }
  0x22   : > { %637 = sbr.rel (%p634_p9) target bundleno = 7709 (0x1e1d), region = 96  ;;  %v6190_v4 = vld [vmem:[%s9359_s15 + $0x20] sm:$0xff] (!%p634_p9)  ;;  %v6191_v5 = vld [vmem:[%s9359_s15 + $0x28] sm:$0xff] (!%p634_p9)  ;;  %v7277_v6 = vpack.c.bf16 (!%p634_p9), %v847_v2, %v846_v1  ;;  %s9406_s19 = sld [smem:[#allocation14_spill]] (!%p634_p9)  ;;  %v6193_v13 = vld [vmem:[%s9359_s15 + $0x38] sm:$0xff] (!%p634_p9)  ;;  %v8015_v14 = vmov (!%p634_p9), 0.0  }
  0x23   : > { %v8198_v3 = vshrl.u32 (!%p634_p9), %v744_v0, 7  ;;  %s9407_s21 = sld [smem:[#allocation16_spill]] (!%p634_p9)  ;;  %v7269_v9 = vpack.c.bf16 (!%p634_p9), %v6191_v5, %v6190_v4  ;;  %v7273_v16 = vpack.c.bf16 (!%p634_p9), %v6193_v13, %v6192_v10  ;;  %v848_v18 = vld [vmem:[%s9359_s15 + $0x10] sm:$0xff] (!%p634_p9)  ;;  %v849_v19 = vld [vmem:[%s9359_s15 + $0x18] sm:$0xff] (!%p634_p9)  ;;  %v6198_v21 = vld [vmem:[%s9359_s15 + $0x40] sm:$0xff] (!%p634_p9)  ;;  %vm872_vm7 = vcmask (!%p634_p9), 261120  }
  0x24   : > { %7278 = vmatprep.subr.bf16.mxu1 (!%p634_p9), %v7277_v6  ;;  %v7281_v20 = vpack.c.bf16 (!%p634_p9), %v849_v19, %v848_v18  ;;  %v6199_v22 = vld [vmem:[%s9359_s15 + $0x48] sm:$0xff] (!%p634_p9)  ;;  %v6200_v30 = vld [vmem:[%s9359_s15 + $0x50] sm:$0xff] (!%p634_p9)  ;;  %v6201_v31 = vld [vmem:[%s9359_s15 + $0x58] sm:$0xff] (!%p634_p9)  ;;  %vm8017_vm12 = vmmov (!%p634_p9), 0   ;;  %s9410_s27 = sld [smem:[#allocation18_spill]] (!%p634_p9)  ;;  %s9412_s29 = sld [smem:[#allocation19_spill]] (!%p634_p9) }
  0x25   : > { %v8212_v7 = vadd.s32 (!%p634_p9), 8, %v8198_v3  ;;  %7280 = vmatpush3.bf16.msra.mxu1 (!%p634_p9), %v7277_v6  ;;  %v7285_v23 = vpack.c.bf16 (!%p634_p9), %v6199_v22, %v6198_v21  ;;  %vm852_vm8 = vcmp.lt.s32.totalorder (!%p634_p9), %v8198_v3, 1  ;;  %vm1042_vm9 = vcmp.lt.s32.totalorder (!%p634_p9), %v8198_v3, 7  ;;  %v6204_v42 = vld [vmem:[%s9360_s16] ss:$0 sm:$0xff] (!%p634_p9)  ;;  %v6212_v63 = vld [vmem:[%s9359_s15 + $0x88] sm:$0xff] (!%p634_p9)  ;;  %vm8446_vm13 = vmpackc.low (!%p634_p9), %vm872_vm7, %vm872_vm7 }
  0x26   : > { %7282 = vmatprep.subr.bf16.mxu1 (!%p634_p9), %v7281_v20  ;;  %vm855_vm10 = vcmp.ge.s32.totalorder (!%p634_p9), %v8198_v3, 1  ;;  %v7289_v37 = vpack.c.bf16 (!%p634_p9), %v6201_v31, %v6200_v30  ;;  %v6211_v62 = vld [vmem:[%s9359_s15 + $0x80] sm:$0xff] (!%p634_p9)  ;;  %v6213_v1 = vld [vmem:[%s9359_s15 + $0x90] sm:$0xff] (!%p634_p9)  ;;  %v6214_v4 = vld [vmem:[%s9359_s15 + $0x98] sm:$0xff] (!%p634_p9)  ;;  %s9413_s6 = sld [smem:[#allocation20_spill]] (!%p634_p9)  ;;  %s9414_s8 = sld [smem:[#allocation22_spill]] (!%p634_p9) }
  0x27   : > { %vm1048_vm11 = vcmp.lt.s32.totalorder (!%p634_p9), %v8212_v7, 15  ;;  %v7293_v2 = vpack.c.bf16 (!%p634_p9), %v6212_v63, %v6211_v62  ;;  %v7297_v5 = vpack.c.bf16 (!%p634_p9), %v6214_v4, %v6213_v1  ;;  %v6207_v6 = vld [vmem:[%s9359_s15 + $0x60] sm:$0xff] (!%p634_p9)  ;;  %v6234_v62 = vld [vmem:[%s9359_s15 + $0xd8] sm:$0xff] (!%p634_p9)  ;;  %s9415_s7 = sld [smem:[#allocation21_spill]] (!%p634_p9)  ;;  %s8022_s24 = smov (!%p634_p9), 96  }
  0x28   : > { %v6205_v18 = vld [vmem:[%s9360_s16 + $0x1] ss:$0 sm:$0xff] (!%p634_p9)  ;;  %s9375_s4 = smov (!%p634_p9), 24   ;;  %s9249_s2 = sand.u32 (!%p634_p9), 1, %s8005_s25  }
  0x29   : > { %s8195_s0 = scalar_select %p716_p10, %s8160_s3, 1  ;;  %7284 = vmatpush3.bf16.msra.mxu1 %v7281_v20  ;;  %v6206_v20 = vld [vmem:[%s9360_s16 + $0x2] ss:$0 sm:$0xff] }
  0x2a   : > { %7286 = vmatprep.subr.bf16.mxu1 %v7285_v23  ;;  %v6243_v1 = vld [vmem:[%s9359_s15 + $0x100] sm:$0xff]  ;;  %s8027_s26 = smov [#allocation2]  }
  0x2b   : > { %s6179_s23 = sshll.u32 %s8195_s0, 3  ;;  %s722_s22 = scalar_lea.vmem %s9405_s28, %s8195_s0 }
  0x2c   : > { %s719_s18 = scalar_lea.vmem %s9406_s19, %s6179_s23  ;;  %s725_s20 = scalar_lea.vmem %s9407_s21, %s8195_s0  ;;  %v6186_v8 = vld [vmem:[%s722_s22] ss:$0 sm:$0xff] }
  0x2d   : > { %v741_v11 = vld [vmem:[%s719_s18] sm:$0xff]  ;;  %vm751_vm0 = vcmp.ge.s32.totalorder %v8198_v3, %v6186_v8  ;;  %vm752_vm1 = vcmp.ge.s32.totalorder %v8212_v7, %v6186_v8  ;;  %v6208_v8 = vld [vmem:[%s9359_s15 + $0x68] sm:$0xff]  ;;  %s8521_s19 = sshll.u32 %s8195_s0, 4  ;;  %s9411_s28 = sld [smem:[#allocation17_spill]] }
  0x2e   : > { %v6187_v12 = vld [vmem:[%s725_s20] ss:$0 sm:$0xff]  ;;  %6749 = vmatprep.subr.mxu0 %v741_v11  ;;  %s735_s22 = scalar_lea.vmem %s9410_s27, %s8521_s19  ;;  %s8019_s27 = smov 104  }
  0x2f   : > { %vm757_vm2 = vcmp.lt.s32.totalorder %v8198_v3, %v6187_v12  ;;  %vm758_vm3 = vcmp.lt.s32.totalorder %v8212_v7, %v6187_v12  ;;  %6750 = vmatpush3.msra.mxu0 %v741_v11  ;;  %s8021_s23 = smov 112   ;;  %s9379_s21 = smov 8   ;;  %v6442_v3 = vld [vmem:[%s9355_s11 + $0x148] sm:$0xff] }
  0x30   : > { %vm759_vm5 = vmand %vm751_vm0, %vm757_vm2  ;;  %7270 = vmatprep.subr.bf16.mxu0 %v7269_v9  ;;  %s9420_s18 = smov 16   ;;  %s9421_s20 = smov 24  }
  0x31   : > { %v761_v15 = vsel %vm759_vm5, 1.0, %v8015_v14  ;;  %vm760_vm6 = vmand %vm752_vm1, %vm758_vm3  ;;  %vm2983_vm3 = vcmask 130048   ;;  %vm3448_vm5 = vcmask 195584   ;;  %s9383_s0 = scalar_lea.vmem [#allocation4], %s9249_s2  ;;  %s7923_s1 = sshll.u32 %s8027_s26, 4  ;;  %s7924_s1 = int_to_ptr.vmem [resolvable:$false] %s7923_s1 }
  0x32   : > { %6751 = vmatprep.mubr.msk.f32.mxu0 %vm763_vm4, %v761_v15  ;;  %v762_v17 = vsel %vm760_vm6, 1.0, %v8015_v14  ;;  %vm8635_vm2 = vmpackc.low %vm763_vm4, %vm763_vm4  ;;  %vm3889_vm6 = vcmask 523264  }
  0x33   : > { %6752 = vmatmul.mubr.msk.f32.vlgmr.msra.gmra.mrb[0].mxu0 %vm763_vm4, %v762_v17  ;;  %s730_s30 = scalar_lea.vmem %s9411_s28, %s8521_s19  ;;  %s9381_s28 = smov 64  }
  0x34   : > { %7272 = vmatpush3.bf16.msra.mxu0 %v7269_v9  ;;  %v7301_v9 = vpack.c.bf16 %v6208_v8, %v6207_v6  ;;  %v6246_v6 = vld [vmem:[%s9359_s15 + $0x118] sm:$0xff] }
  0x35   : > { %7274 = vmatprep.subr.bf16.mxu0 %v7273_v16 }
  0x38   : > { %7276 = vmatpush3.bf16.msra.mxu0 %v7273_v16 }
  0x39   : > { %7294 = vmatprep.subr.bf16.mxu0 %v7293_v2 }
 0x106   : > { %v8247_v24 = vpop.f32.mrb[0].mxu0 }
 0x107   : > { %v8251_v25 = vpop.f32.mrb[1].mxu0  ;;  %v851_v26 = vrot.slane %v8247_v24, 7  ;;  %v1041_v27 = vrot.slane %v8247_v24, 1 }
 0x108   : > { %6762 = vmatprep.mubr.msk.f32.mxu0 %vm872_vm7, %v8251_v25  ;;  %v850_v28 = vrot.slane %v8251_v25, 7  ;;  %v1040_v29 = vrot.slane %v8251_v25, 1 }
 0x109   : > { %6763 = vmatmul.mubr.msk.f32.vlgmr.msra.gmra.mrb[2].mxu0 %vm872_vm7, %v8247_v24 }
 0x10a   : > { %v854_v32 = vsel %vm852_vm8, %v851_v26, %v850_v28  ;;  %v8272_v33 = vsel %vm852_vm8, %v850_v28, %v851_v26  ;;  %v8276_v34 = vsel %vm1042_vm9, %v1040_v29, %v1041_v27  ;;  %v1044_v35 = vsel %vm1042_vm9, %v1041_v27, %v1040_v29  ;;  %7296 = vmatpush3.bf16.msra.mxu0 %v7293_v2  ;;  %v6209_v27 = vld [vmem:[%s9359_s15 + $0x70] sm:$0xff]  ;;  %v6210_v28 = vld [vmem:[%s9359_s15 + $0x78] sm:$0xff]  ;;  %v6244_v2 = vld [vmem:[%s9359_s15 + $0x108] sm:$0xff] }
 0x10b   : > { %v8282_v36 = vsel %vm855_vm10, %v854_v32, 0.0  ;;  %v8293_v38 = vsel %vm1048_vm11, %v1044_v35, 0.0  ;;  %7298 = vmatprep.subr.bf16.mxu0 %v7297_v5  ;;  %v7305_v31 = vpack.c.bf16 %v6210_v28, %v6209_v27  ;;  %v6219_v32 = vld [vmem:[%s9359_s15 + $0xa0] sm:$0xff]  ;;  %v6220_v35 = vld [vmem:[%s9359_s15 + $0xa8] sm:$0xff]  ;;  %v7337_v4 = vpack.c.bf16 %v6244_v2, %v6243_v1 }
 0x10c   : > { %6773 = vmatprep.mubr.msk.f32.mxu1 %vm872_vm7, %v8282_v36  ;;  %v6256_v2 = vld [vmem:[%s9359_s15 + $0x140] sm:$0xff] }
 0x10d   : > { %6774 = vmatmul.mubr.msk.f32.vlgmr.msra.gmra.mrb[0].mxu1 %vm872_vm7, %v8272_v33 }
 0x10e   : > { %7288 = vmatpush3.bf16.msra.mxu1 %v7285_v23  ;;  %6784 = vmatprep.mubr.msk.f32.mxu1 %vm872_vm7, %v8276_v34 }
 0x10f   : > { %7290 = vmatprep.subr.bf16.mxu1 %v7289_v37  ;;  %7300 = vmatpush3.bf16.msra.mxu0 %v7297_v5  ;;  %v6245_v5 = vld [vmem:[%s9359_s15 + $0x110] sm:$0xff] }
 0x110   : > { %7302 = vmatprep.subr.bf16.mxu0 %v7301_v9  ;;  %v7341_v8 = vpack.c.bf16 %v6246_v6, %v6245_v5 }
 0x112   : > { %7292 = vmatpush3.bf16.msra.mxu1 %v7289_v37 }
 0x115   : > { %6785 = vmatmul.mubr.msk.f32.vlgmr.msra.gmra.mrb[0].mxu1 %vm872_vm7, %v8293_v38 }
 0x116   : > { %6824 = vmatprep.mubr.msk.f32.mxu1 %vm8017_vm12, %v8015_v14 }
 0x1dc   : > { %v6764_v39 = vpop.f32.mrb[2].mxu0 }
 0x1dd   : > { %v945_v40 = vpop.f32.mrb[3].mxu0 }
 0x1e8   : > { %v6786_v41 = vpop.f32.mrb[0].mxu1 }
 0x1e9   : > { %v7653_v43 = vadd.f32 %v6786_v41, %v6764_v39  ;;  %v1129_v44 = vpop.f32.mrb[1].mxu1  ;;  %v7309_v41 = vpack.c.bf16 %v6220_v35, %v6219_v32 }
 0x1ea   : > { %v7654_v45 = vadd.f32 %v1129_v44, %v945_v40  ;;  %v6222_v44 = vld [vmem:[%s9359_s15 + $0xb8] sm:$0xff] }
 0x1eb   : > { %v1145_v46 = vadd.f32 %v7653_v43, %v6204_v42  ;;  %v6221_v43 = vld [vmem:[%s9359_s15 + $0xb0] sm:$0xff] }
 0x1ec   : > { %v1144_v47 = vadd.f32 %v7654_v45, %v6204_v42 }
 0x1ed   : > { %v1147_v50 = vmax.f32 %v1145_v46, 0.0 }
 0x1ee   : > { %v1146_v48 = vmax.f32 %v1144_v47, 0.0  ;;  %v7313_v47 = vpack.c.bf16 %v6222_v44, %v6221_v43 }
 0x1ef   : > { %v1153_v51 = vsel %vm872_vm7, %v1147_v50, 0.0 }
 0x1f0   : > { %v1150_v49 = vsel %vm872_vm7, %v1146_v48, 0.0 }
 0x1f1   : > { %1151 = vadd.xlane.f32.xlu0 %v1150_v49  ;;  %v6235_v49 = vld [vmem:[%s9359_s15 + $0xe0] sm:$0xff] }
 0x1f5   : > { %1154 = vadd.xlane.f32.xlu0 %v1153_v51 }
 0x27e   : > { %v1152_v52 = vpop.xlane.xlu0 %1151 }
 0x27f   : > { %v1157_v53 = vmul.f32 0.03125, %v1152_v52 }
 0x281   : > { %v1159_v54 = vsub.f32 %v1146_v48, %v1157_v53  ;;  %v6237_v53 = vld [vmem:[%s9359_s15 + $0xf0] sm:$0xff] }
 0x282   : > { %v1155_v55 = vpop.xlane.xlu0 %1154 }
 0x283   : > { %v1158_v56 = vmul.f32 0.03125, %v1155_v55  ;;  %v1161_v57 = vmul.f32 %v1159_v54, %v1159_v54 }
 0x285   : > { %v1160_v58 = vsub.f32 %v1147_v50, %v1158_v56  ;;  %v1163_v59 = vsel %vm872_vm7, %v1161_v57, 0.0  ;;  %v6236_v50 = vld [vmem:[%s9359_s15 + $0xe8] sm:$0xff] }
 0x286   : > { %1164 = vadd.xlane.f32.xlu1 %v1163_v59  ;;  %v7321_v52 = vpack.c.bf16 %v6236_v50, %v6235_v49  ;;  %v6232_v59 = vld [vmem:[%s9359_s15 + $0xc8] sm:$0xff]  ;;  %v8016_v50 = vmov 0.0|0.0  }
 0x287   : > { %v1162_v60 = vmul.f32 %v1160_v58, %v1160_v58  ;;  %7317 = vmatprep.subr.bf16.mxu1 %v8016_v50 }
 0x289   : > { %v1166_v61 = vsel %vm872_vm7, %v1162_v60, 0.0 }
 0x28a   : > { %1167 = vadd.xlane.f32.xlu1 %v1166_v61  ;;  %v6233_v61 = vld [vmem:[%s9359_s15 + $0xd0] sm:$0xff] }
 0x28b   : > { %v7333_v63 = vpack.c.bf16 %v6234_v62, %v6233_v61  ;;  %v6227_v62 = vld [vmem:[%s9360_s16 + $0x5] ss:$0 sm:$0xff] }
 0x313   : > { %v1165_v10 = vpop.xlane.xlu1 %1164 }
 0x314   : > { %v1169_v11 = vmul.f32 0.03125, %v1165_v10 }
 0x316   : > { %v1171_v12 = vadd.f32 1e-05, %v1169_v11 }
 0x317   : > { %v1168_v13 = vpop.xlane.xlu1 %1167 }
 0x318   : > { %7823 = vrsqrt.f32 %v1171_v12  ;;  %v1170_v15 = vmul.f32 0.03125, %v1168_v13 }
 0x31a   : > { %v1172_v16 = vadd.f32 1e-05, %v1170_v15 }
 0x31c   : > { %7825 = vrsqrt.f32 %v1172_v16 }
 0x322   : > { %v7824_v17 = vpop.eup %7823 }
 0x323   : > { %v1175_v19 = vmul.f32 %v7824_v17, %v1159_v54  ;;  %v6238_v54 = vld [vmem:[%s9359_s15 + $0xf8] sm:$0xff] }
 0x324   : > { %v7325_v56 = vpack.c.bf16 %v6238_v54, %v6237_v53 }
 0x325   : > { %v1181_v21 = vmul.f32 %v6205_v18, %v1175_v19 }
 0x326   : > { %v7826_v22 = vpop.eup %7825 }
 0x327   : > { %v1176_v23 = vmul.f32 %v7826_v22, %v1160_v58  ;;  %v1187_v26 = vadd.f32 %v6206_v20, %v1181_v21  ;;  %v6231_v58 = vld [vmem:[%s9359_s15 + $0xc0] sm:$0xff] }
 0x328   : > { %v7329_v60 = vpack.c.bf16 %v6232_v59, %v6231_v58  ;;  %v6226_v58 = vld [vmem:[%s9360_s16 + $0x4] ss:$0 sm:$0xff] }
 0x329   : > { %v1182_v29 = vmul.f32 %v6205_v18, %v1176_v23  ;;  %6795 = vmatprep.mubr.msk.f32.mxu0 %vm872_vm7, %v1187_v26  ;;  %v1195_v37 = vrot.slane %v1187_v26, 7  ;;  %v1373_v46 = vrot.slane %v1187_v26, 1 }
 0x32b   : > { %v1188_v30 = vadd.f32 %v6206_v20, %v1182_v29 }
 0x32d   : > { %6796 = vmatmul.mubr.msk.f32.vlgmr.msra.gmra.mrb[4].mxu0 %vm872_vm7, %v1188_v30  ;;  %v1196_v39 = vrot.slane %v1188_v30, 7  ;;  %v1374_v45 = vrot.slane %v1188_v30, 1 }
 0x32e   : > { %7304 = vmatpush3.bf16.msra.mxu0 %v7301_v9 }
 0x32f   : > { %7306 = vmatprep.subr.bf16.mxu0 %v7305_v31  ;;  %v1198_v40 = vsel %vm852_vm8, %v1196_v39, %v1195_v37  ;;  %v1197_v48 = vsel %vm852_vm8, %v1195_v37, %v1196_v39  ;;  %v1375_v51 = vsel %vm1042_vm9, %v1373_v46, %v1374_v45  ;;  %v1376_v55 = vsel %vm1042_vm9, %v1374_v45, %v1373_v46 }
 0x330   : > { %v1199_v42 = vsel %vm855_vm10, %v1198_v40, 0.0  ;;  %v1378_v57 = vsel %vm1048_vm11, %v1376_v55, 0.0 }
 0x331   : > { %6806 = vmatprep.mubr.msk.f32.mxu0 %vm872_vm7, %v1199_v42 }
 0x332   : > { %7308 = vmatpush3.bf16.msra.mxu0 %v7305_v31 }
 0x333   : > { %7310 = vmatprep.subr.bf16.mxu0 %v7309_v41 }
 0x335   : > { %6807 = vmatmul.mubr.msk.f32.vlgmr.msra.gmra.mrb[4].mxu0 %vm872_vm7, %v1197_v48 }
 0x336   : > { %7312 = vmatpush3.bf16.msra.mxu0 %v7309_v41  ;;  %6817 = vmatprep.mubr.msk.f32.mxu0 %vm872_vm7, %v1375_v51 }
 0x337   : > { %7314 = vmatprep.subr.bf16.mxu0 %v7313_v47 }
 0x33a   : > { %7316 = vmatpush3.bf16.msra.mxu0 %v7313_v47 }
 0x33b   : > { %7322 = vmatprep.subr.bf16.mxu0 %v7321_v52 }
 0x33d   : > { %6818 = vmatmul.mubr.msk.f32.vlgmr.msra.gmra.mrb[4].mxu0 %vm872_vm7, %v1378_v57 }
 0x33e   : > { %7324 = vmatpush3.bf16.msra.mxu0 %v7321_v52  ;;  %6835 = vmatprep.mubr.msk.f32.mxu0 %vm872_vm7, %v8251_v25 }
 0x33f   : > { %7326 = vmatprep.subr.bf16.mxu0 %v7325_v56 }
 0x342   : > { %7328 = vmatpush3.bf16.msra.mxu0 %v7325_v56 }
 0x343   : > { %7330 = vmatprep.subr.bf16.mxu0 %v7329_v60 }
 0x345   : > { %6836 = vmatmul.mubr.msk.f32.vlgmr.msra.gmra.mrb[6].mxu0 %vm872_vm7, %v8247_v24 }
 0x346   : > { %7332 = vmatpush3.bf16.msra.mxu0 %v7329_v60  ;;  %6846 = vmatprep.mubr.msk.f32.mxu0 %vm872_vm7, %v8282_v36  ;;  %v6225_v36 = vld [vmem:[%s9360_s16 + $0x3] ss:$0 sm:$0xff] }
 0x347   : > { %7334 = vmatprep.subr.bf16.mxu0 %v7333_v63 }
 0x34a   : > { %7336 = vmatpush3.bf16.msra.mxu0 %v7333_v63 }
 0x34b   : > { %7338 = vmatprep.subr.bf16.mxu0 %v7337_v4 }
 0x34d   : > { %6847 = vmatmul.mubr.msk.f32.vlgmr.msra.gmra.mrb[6].mxu0 %vm872_vm7, %v8272_v33 }
 0x34e   : > { %7340 = vmatpush3.bf16.msra.mxu0 %v7337_v4  ;;  %6857 = vmatprep.mubr.msk.f32.mxu0 %vm872_vm7, %v8276_v34  ;;  %v6257_v4 = vld [vmem:[%s9359_s15 + $0x148] sm:$0xff] }
 0x34f   : > { %7342 = vmatprep.subr.bf16.mxu0 %v7341_v8 }
 0x352   : > { %7344 = vmatpush3.bf16.msra.mxu0 %v7341_v8 }
 0x353   : > { %7369 = vmatprep.subr.bf16.mxu0 %v8016_v50 }
 0x355   : > { %6858 = vmatmul.mubr.msk.f32.vlgmr.msra.gmra.mrb[6].mxu0 %vm872_vm7, %v8293_v38  ;;  %v6249_v38 = vld [vmem:[%s9360_s16 + $0x8] ss:$0 sm:$0xff] }
 0x356   : > { %6897 = vmatprep.mubr.msk.f32.mxu0 %vm8017_vm12, %v8015_v14 }
 0x410   : > { %v6819_v9 = vpop.f32.mrb[4].mxu0 }
 0x411   : > { %v1467_v10 = vadd.f32 %v6819_v9, %v6225_v36  ;;  %v1451_v11 = vpop.f32.mrb[5].mxu0 }
 0x412   : > { %v1466_v12 = vadd.f32 %v6225_v36, %v1451_v11  ;;  %v7345_v36 = vpack.c.bf16 %v6257_v4, %v6256_v2 }
 0x413   : > { %v1469_v13 = vmax.f32 %v1467_v10, 0.0 }
 0x414   : > { %v1468_v15 = vmax.f32 %v1466_v12, 0.0 }
 0x415   : > { %v1475_v33 = vsel %vm872_vm7, %v1469_v13, 0.0 }
 0x416   : > { %1476 = vadd.xlane.f32.xlu1 %v1475_v33  ;;  %v1472_v34 = vsel %vm872_vm7, %v1468_v15, 0.0  ;;  %v6258_v33 = vld [vmem:[%s9359_s15 + $0x150] sm:$0xff] }
 0x417   : > { %1473 = vadd.xlane.f32.xlu0 %v1472_v34  ;;  %v6259_v34 = vld [vmem:[%s9359_s15 + $0x158] sm:$0xff] }
 0x428   : > { %v6859_v16 = vpop.f32.mrb[6].mxu0 }
 0x429   : > { %v1844_v17 = vadd.f32 %v6859_v16, %v6249_v38  ;;  %v1828_v18 = vpop.f32.mrb[7].mxu0  ;;  %v1510_v16 = vld [vmem:[%s9360_s16 + $0x6] sm:$0x1] }
 0x42a   : > { %v1843_v19 = vadd.f32 %v6249_v38, %v1828_v18  ;;  %v6252_v18 = vld [vmem:[%s9359_s15 + $0x120] sm:$0xff] }
 0x42b   : > { %v1846_v20 = vmax.f32 %v1844_v17, 0.0  ;;  %v7349_v17 = vpack.c.bf16 %v6259_v34, %v6258_v33 }
 0x42c   : > { %v1845_v21 = vmax.f32 %v1843_v19, 0.0  ;;  %v6253_v19 = vld [vmem:[%s9359_s15 + $0x128] sm:$0xff] }
 0x42d   : > { %v1852_v22 = vsel %vm872_vm7, %v1846_v20, 0.0 }
 0x42e   : > { %1853 = vadd.xlane.f32.xlu1 %v1852_v22  ;;  %v1849_v23 = vsel %vm872_vm7, %v1845_v21, 0.0  ;;  %v6250_v22 = vld [vmem:[%s9360_s16 + $0x9] ss:$0 sm:$0xff] }
 0x42f   : > { %1850 = vadd.xlane.f32.xlu0 %v1849_v23 }
 0x4a3   : > { %v1477_v26 = vpop.xlane.xlu1 %1476 }
 0x4a4   : > { %v1479_v27 = vmul.f32 0.03125, %v1477_v26  ;;  %v1474_v28 = vpop.xlane.xlu0 %1473 }
 0x4a5   : > { %v1478_v29 = vmul.f32 0.03125, %v1474_v28 }
 0x4a6   : > { %v1481_v30 = vsub.f32 %v1469_v13, %v1479_v27  ;;  %v6251_v27 = vld [vmem:[%s9360_s16 + $0xa] ss:$0 sm:$0xff] }
 0x4a7   : > { %v1480_v31 = vsub.f32 %v1468_v15, %v1478_v29 }
 0x4a8   : > { %v1483_v32 = vmul.f32 %v1481_v30, %v1481_v30 }
 0x4a9   : > { %v1482_v35 = vmul.f32 %v1480_v31, %v1480_v31 }
 0x4aa   : > { %v1487_v37 = vsel %vm872_vm7, %v1483_v32, 0.0  ;;  %v6255_v32 = vld [vmem:[%s9359_s15 + $0x138] sm:$0xff] }
 0x4ab   : > { %1488 = vadd.xlane.f32.xlu1 %v1487_v37  ;;  %v1484_v39 = vsel %vm872_vm7, %v1482_v35, 0.0 }
 0x4ac   : > { %1485 = vadd.xlane.f32.xlu0 %v1484_v39 }
 0x4bb   : > { %v1854_v40 = vpop.xlane.xlu1 %1853 }
 0x4bc   : > { %v1856_v41 = vmul.f32 0.03125, %v1854_v40  ;;  %v1851_v42 = vpop.xlane.xlu0 %1850 }
 0x4bd   : > { %v1855_v43 = vmul.f32 0.03125, %v1851_v42  ;;  %v6264_v42 = vld [vmem:[%s9359_s15 + $0x160] sm:$0xff] }
 0x4be   : > { %v1858_v44 = vsub.f32 %v1846_v20, %v1856_v41  ;;  %v7353_v20 = vpack.c.bf16 %v6253_v19, %v6252_v18  ;;  %v2300_v19 = vld [vmem:[%s730_s30 + $0x8] sm:$0xff] }
 0x4bf   : > { %v8424_v45 = vsub.f32 %v1845_v21, %v1855_v43  ;;  %v6265_v43 = vld [vmem:[%s9359_s15 + $0x168] sm:$0xff] }
 0x4c0   : > { %v1860_v46 = vmul.f32 %v1858_v44, %v1858_v44 }
 0x4c1   : > { %v1859_v47 = vmul.f32 %v8424_v45, %v8424_v45 }
 0x4c2   : > { %v1864_v48 = vsel %vm872_vm7, %v1860_v46, 0.0  ;;  %v7361_v46 = vpack.c.bf16 %v6265_v43, %v6264_v42 }
 0x4c3   : > { %1865 = vadd.xlane.f32.xlu1 %v1864_v48  ;;  %v1861_v49 = vsel %vm872_vm7, %v1859_v47, 0.0  ;;  %v6266_v47 = vld [vmem:[%s9359_s15 + $0x170] sm:$0xff]  ;;  %v6267_v48 = vld [vmem:[%s9359_s15 + $0x178] sm:$0xff] }
 0x4c4   : > { %1862 = vadd.xlane.f32.xlu0 %v1861_v49 }
 0x538   : > { %v1489_v51 = vpop.xlane.xlu1 %1488 }
 0x539   : > { %v1491_v52 = vmul.f32 0.03125, %v1489_v51  ;;  %v1486_v53 = vpop.xlane.xlu0 %1485  ;;  %v7365_v51 = vpack.c.bf16 %v6267_v48, %v6266_v47  ;;  %v6272_v47 = vld [vmem:[%s9360_s16 + $0xd] ss:$0 sm:$0xff] }
 0x53a   : > { %v1490_v54 = vmul.f32 0.03125, %v1486_v53 }
 0x53b   : > { %v1493_v55 = vadd.f32 1e-05, %v1491_v52 }
 0x53c   : > { %v1492_v56 = vadd.f32 1e-05, %v1490_v54 }
 0x53d   : > { %7827 = vrsqrt.f32 %v1493_v55 }
 0x53e   : > { %7829 = vrsqrt.f32 %v1492_v56 }
 0x547   : > { %v7828_v57 = vpop.eup %7827 }
 0x548   : > { %v7830_v59 = vpop.eup %7829  ;;  %v1497_v60 = vmul.f32 %v7828_v57, %v1481_v30 }
 0x549   : > { %v1496_v61 = vmul.f32 %v7830_v59, %v1480_v31  ;;  %v6254_v31 = vld [vmem:[%s9359_s15 + $0x130] sm:$0xff] }
 0x54a   : > { %v1503_v63 = vmul.f32 %v6226_v58, %v1497_v60  ;;  %v7357_v40 = vpack.c.bf16 %v6255_v32, %v6254_v31 }
 0x54b   : > { %v1502_v1 = vmul.f32 %v6226_v58, %v1496_v61  ;;  %v6270_v58 = vld [vmem:[%s9360_s16 + $0xb] ss:$0 sm:$0xff] }
 0x54c   : > { %v1509_v5 = vadd.f32 %v6227_v62, %v1503_v63 }
 0x54d   : > { %v1508_v6 = vadd.f32 %v6227_v62, %v1502_v1 }
 0x54f   : > { %v7318_v9 = vpack.c.bf16 %v1509_v5, %v1508_v6  ;;  %v8018_v5 = vmov 0  }
 0x550   : > { %v1866_v10 = vpop.xlane.xlu1 %1865  ;;  %7742 = vset.pattern.permute.xlu1 %v8018_v5  ;;  %7741 = vset.pattern.permute.xlu0 %v8018_v5 }
 0x551   : > { %v1868_v11 = vmul.f32 0.03125, %v1866_v10  ;;  %v1863_v12 = vpop.xlane.xlu0 %1862  ;;  %7320 = vmatpush3.bf16.xpose.msk.msra.mxu1 %vm8446_vm13, %v7318_v9 }
 0x552   : > { %v1867_v13 = vmul.f32 0.03125, %v1863_v12  ;;  %7346 = vmatprep.subr.bf16.mxu1 %v7345_v36 }
 0x553   : > { %v1870_v15 = vadd.f32 1e-05, %v1868_v11 }
 0x554   : > { %v1869_v38 = vadd.f32 1e-05, %v1867_v13 }
 0x555   : > { %7831 = vrsqrt.f32 %v1870_v15 }
 0x556   : > { %7833 = vrsqrt.f32 %v1869_v38  ;;  %v2313_v38 = vld [vmem:[%s735_s22] sm:$0xff] }
 0x558   : > { %6825 = vmatmul.mubr.msk.f32.vlgmr.msra.gmra.mrb[2].mxu1 %vm872_vm7, %v1510_v16  ;;  %v2327_v16 = vld [vmem:[%s9412_s29] sm:$0xff] }
 0x559   : > { %7348 = vmatpush3.bf16.msra.mxu1 %v7345_v36 }
 0x55a   : > { %7350 = vmatprep.subr.bf16.mxu1 %v7349_v17 }
 0x55d   : > { %7352 = vmatpush3.bf16.msra.mxu1 %v7349_v17  ;;  %v2328_v17 = vld [vmem:[%s9412_s29 + $0x8] sm:$0xff] }
 0x55e   : > { %7354 = vmatprep.subr.bf16.mxu1 %v7353_v20  ;;  %v7373_v18 = vpack.c.bf16 %v2328_v17, %v2327_v16  ;;  %v2503_v16 = vld [vmem:[%s9415_s7] sm:$0xff]  ;;  %v2504_v17 = vld [vmem:[%s9415_s7 + $0x8] sm:$0xff] }
 0x55f   : > { %v7832_v21 = vpop.eup %7831 }
 0x560   : > { %v7834_v23 = vpop.eup %7833  ;;  %v1874_v26 = vmul.f32 %v7832_v21, %v1858_v44  ;;  %v2330_v21 = vld [vmem:[%s9412_s29 + $0x18] sm:$0xff] }
 0x561   : > { %v1873_v28 = vmul.f32 %v7834_v23, %v8424_v45 }
 0x562   : > { %v1880_v29 = vmul.f32 %v6250_v22, %v1874_v26  ;;  %v2314_v26 = vld [vmem:[%s735_s22 + $0x8] sm:$0xff]  ;;  %s8020_s22 = smov 120  }
 0x563   : > { %v1879_v30 = vmul.f32 %v6250_v22, %v1873_v28  ;;  %v2299_v22 = vld [vmem:[%s730_s30] sm:$0xff]  ;;  %s9377_s30 = smov 16  }
 0x564   : > { %v1886_v35 = vadd.f32 %v6251_v27, %v1880_v29 }
 0x565   : > { %v1885_v37 = vadd.f32 %v6251_v27, %v1879_v30 }
 0x566   : > { %v1894_v39 = vrot.slane %v1886_v35, 7  ;;  %v2072_v50 = vrot.slane %v1886_v35, 1 }
 0x567   : > { %6868 = vmatprep.mubr.msk.f32.mxu1 %vm872_vm7, %v1885_v37  ;;  %v1893_v41 = vrot.slane %v1885_v37, 7  ;;  %v2071_v49 = vrot.slane %v1885_v37, 1  ;;  %v2298_v37 = vand.u32 127, %v744_v0 }
 0x568   : > { %6869 = vmatmul.mubr.msk.f32.vlgmr.msra.gmra.mrb[4].mxu1 %vm872_vm7, %v1886_v35 }
 0x569   : > { %7356 = vmatpush3.bf16.msra.mxu1 %v7353_v20  ;;  %v1896_v44 = vsel %vm852_vm8, %v1894_v39, %v1893_v41  ;;  %v1895_v52 = vsel %vm852_vm8, %v1893_v41, %v1894_v39  ;;  %v2073_v53 = vsel %vm1042_vm9, %v2071_v49, %v2072_v50  ;;  %v2074_v54 = vsel %vm1042_vm9, %v2072_v50, %v2071_v49  ;;  %v2329_v20 = vld [vmem:[%s9412_s29 + $0x10] sm:$0xff]  ;;  %v2412_v50 = vld [vmem:[%s9413_s6] sm:$0xff] }
 0x56a   : > { %v1897_v45 = vsel %vm855_vm10, %v1896_v44, 0.0  ;;  %7358 = vmatprep.subr.bf16.mxu1 %v7357_v40  ;;  %v2076_v55 = vsel %vm1048_vm11, %v2074_v54, 0.0  ;;  %v7377_v23 = vpack.c.bf16 %v2330_v21, %v2329_v20  ;;  %v6271_v44 = vld [vmem:[%s9360_s16 + $0xc] ss:$0 sm:$0xff] }
 0x56b   : > { %6879 = vmatprep.mubr.msk.f32.mxu1 %vm872_vm7, %v1897_v45 }
 0x56d   : > { %7360 = vmatpush3.bf16.msra.mxu1 %v7357_v40 }
 0x56e   : > { %7362 = vmatprep.subr.bf16.mxu1 %v7361_v46 }
 0x570   : > { %6880 = vmatmul.mubr.msk.f32.vlgmr.msra.gmra.mrb[4].mxu1 %vm872_vm7, %v1895_v52 }
 0x571   : > { %7364 = vmatpush3.bf16.msra.mxu1 %v7361_v46  ;;  %6890 = vmatprep.mubr.msk.f32.mxu1 %vm872_vm7, %v2073_v53 }
 0x572   : > { %7366 = vmatprep.subr.bf16.mxu1 %v7365_v51 }
 0x575   : > { %7368 = vmatpush3.bf16.msra.mxu1 %v7365_v51  ;;  %v2413_v51 = vld [vmem:[%s9413_s6 + $0x8] sm:$0xff] }
 0x576   : > { %7374 = vmatprep.subr.bf16.mxu1 %v7373_v18  ;;  %v7381_v54 = vpack.c.bf16 %v2413_v51, %v2412_v50 }
 0x578   : > { %6891 = vmatmul.mubr.msk.f32.vlgmr.msra.gmra.mrb[4].mxu1 %vm872_vm7, %v2076_v55 }
 0x579   : > { %7376 = vmatpush3.bf16.msra.mxu1 %v7373_v18 }
 0x57a   : > { %7378 = vmatprep.subr.bf16.mxu1 %v7377_v23 }
 0x57d   : > { %7380 = vmatpush3.bf16.msra.mxu1 %v7377_v23 }
 0x62b   : > { %v8511_v56 = vpop.f32.mrb[2].mxu1 }
 0x62c   : > { %v6826_v57 = vpop.f32.mrb[3].mxu1 }
 0x62d   : > { %v2414_v57 = vld [vmem:[%s9413_s6 + $0x10] sm:$0xff] }
 0x64b   : > { %v6892_v59 = vpop.f32.mrb[4].mxu1 }
 0x64c   : > { %v2165_v60 = vadd.f32 %v6892_v59, %v6270_v58  ;;  %v2149_v61 = vpop.f32.mrb[5].mxu1  ;;  %v2208_v59 = vld [vmem:[%s9360_s16 + $0xe] sm:$0x1] }
 0x64d   : > { %v2164_v62 = vadd.f32 %v6270_v58, %v2149_v61  ;;  %v2415_v58 = vld [vmem:[%s9413_s6 + $0x18] sm:$0xff] }
 0x64e   : > { %v2167_v63 = vmax.f32 %v2165_v60, 0.0  ;;  %v7385_v61 = vpack.c.bf16 %v2415_v58, %v2414_v57 }
 0x64f   : > { %v2166_v1 = vmax.f32 %v2164_v62, 0.0 }
 0x650   : > { %v2173_v2 = vsel %vm872_vm7, %v2167_v63, 0.0 }
 0x651   : > { %2174 = vadd.xlane.f32.xlu1 %v2173_v2  ;;  %v2170_v4 = vsel %vm872_vm7, %v2166_v1, 0.0 }
 0x652   : > { %2171 = vadd.xlane.f32.xlu0 %v2170_v4  ;;  %v2509_v4 = vld [vmem:[%s9414_s8 + $0x10] sm:$0xff] }
 0x6de   : > { %v2175_v6 = vpop.xlane.xlu1 %2174 }
 0x6df   : > { %v2177_v36 = vmul.f32 0.03125, %v2175_v6  ;;  %v2172_v9 = vpop.xlane.xlu0 %2171 }
 0x6e0   : > { %v2176_v10 = vmul.f32 0.03125, %v2172_v9 }
 0x6e1   : > { %v2179_v11 = vsub.f32 %v2167_v63, %v2177_v36  ;;  %v2507_v63 = vld [vmem:[%s9414_s8] sm:$0xff] }
 0x6e2   : > { %v2178_v12 = vsub.f32 %v2166_v1, %v2176_v10  ;;  %v2508_v1 = vld [vmem:[%s9414_s8 + $0x8] sm:$0xff] }
 0x6e3   : > { %v2181_v13 = vmul.f32 %v2179_v11, %v2179_v11  ;;  %v7389_v2 = vpack.c.bf16 %v2508_v1, %v2507_v63 }
 0x6e4   : > { %v2180_v15 = vmul.f32 %v2178_v12, %v2178_v12 }
 0x6e5   : > { %v2185_v33 = vsel %vm872_vm7, %v2181_v13, 0.0  ;;  %7390 = vmatprep.subr.bf16.mxu1 %v7389_v2 }
 0x6e6   : > { %2186 = vadd.xlane.f32.xlu1 %v2185_v33  ;;  %v2182_v34 = vsel %vm872_vm7, %v2180_v15, 0.0 }
 0x6e7   : > { %2183 = vadd.xlane.f32.xlu0 %v2182_v34 }
 0x6f7   : > { %2316 = vperm.xlu1 %7742, %v2313_v38  }
 0x6fb   : > { %2305 = vperm.xlu1 %7742, %v2300_v19   ;;  %v6284_v19 = vld [vmem:[%s9356_s12] ss:$0 sm:$0xff] }
 0x6fd   : > { %2302 = vperm.xlu0 %7741, %v2299_v22  }
 0x6ff   : > { %2319 = vperm.xlu1 %7742, %v2314_v26  }
 0x773   : > { %v2187_v27 = vpop.xlane.xlu1 %2186 }
 0x774   : > { %v2189_v28 = vmul.f32 0.03125, %v2187_v27  ;;  %v2184_v29 = vpop.xlane.xlu0 %2183 }
 0x775   : > { %v2188_v30 = vmul.f32 0.03125, %v2184_v29 }
 0x776   : > { %v2191_v31 = vadd.f32 1e-05, %v2189_v28 }
 0x777   : > { %v2190_v32 = vadd.f32 1e-05, %v2188_v30  ;;  %v2317_v35 = vpop.permute.xlu1 %2316 }
 0x778   : > { %7835 = vrsqrt.f32 %v2191_v31  ;;  %vm2321_vm0 = vcmp.eq.s32.totalorder %v2298_v37, %v2317_v35 }
 0x779   : > { %7837 = vrsqrt.f32 %v2190_v32  ;;  %v6278_v60 = vsel %vm2321_vm0, 1.0, %v8015_v14 }
 0x77b   : > { %v2306_v39 = vpop.permute.xlu1 %2305 }
 0x77c   : > { %v2303_v40 = vpop.permute.xlu0 %2302  ;;  %vm2308_vm14 = vcmp.eq.s32.totalorder %v2298_v37, %v2306_v39 }
 0x77d   : > { %vm2307_vm15 = vcmp.eq.s32.totalorder %v2298_v37, %v2303_v40  ;;  %v6277_v41 = vsel %vm2308_vm14, 1.0, %v8015_v14 }
 0x77e   : > { %v6276_v42 = vsel %vm2307_vm15, 1.0, %v8015_v14 }
 0x77f   : > { %6908 = vmatprep.mubr.msk.f32.mxu1 %vm872_vm7, %v6276_v42  ;;  %v2320_v8 = vpop.permute.xlu1 %2319 }
 0x780   : > { %6909 = vmatmul.mubr.msk.f32.vlgmr.msra.gmra.mrb[6].mxu1 %vm872_vm7, %v6277_v41  ;;  %vm2322_vm1 = vcmp.eq.s32.totalorder %v2298_v37, %v2320_v8 }
 0x781   : > { %v6279_v62 = vsel %vm2322_vm1, 1.0, %v8015_v14  ;;  %7392 = vmatpush3.bf16.msra.mxu1 %v7389_v2  ;;  %v2510_v14 = vld [vmem:[%s9414_s8 + $0x18] sm:$0xff] }
 0x782   : > { %v7836_v43 = vpop.eup %7835  ;;  %v7393_v5 = vpack.c.bf16 %v2510_v14, %v2509_v4 }
 0x783   : > { %v7838_v45 = vpop.eup %7837  ;;  %v2195_v0 = vmul.f32 %v7836_v43, %v2179_v11 }
 0x784   : > { %v2194_v46 = vmul.f32 %v7838_v45, %v2178_v12  ;;  %7394 = vmatprep.subr.bf16.mxu1 %v7393_v5 }
 0x785   : > { %v2201_v48 = vmul.f32 %v6271_v44, %v2195_v0  ;;  %7396 = vmatpush3.bf16.msra.mxu1 %v7393_v5 }
 0x786   : > { %v2200_v49 = vmul.f32 %v6271_v44, %v2194_v46 }
 0x787   : > { %v2207_v52 = vadd.f32 %v6272_v47, %v2201_v48 }
 0x788   : > { %v2206_v53 = vadd.f32 %v6272_v47, %v2200_v49 }
 0x78a   : > { %v7370_v55 = vpack.c.bf16 %v2207_v52, %v2206_v53 }
 0x78c   : > { %7372 = vmatpush3.bf16.xpose.msk.msra.mxu0 %vm8446_vm13, %v7370_v55 }
 0x78d   : > { %7382 = vmatprep.subr.bf16.mxu0 %v7381_v54 }
 0x793   : > { %6898 = vmatmul.mubr.msk.f32.vlgmr.msra.gmra.mrb[8].mxu0 %vm872_vm7, %v2208_v59 }
 0x794   : > { %7384 = vmatpush3.bf16.msra.mxu0 %v7381_v54  ;;  %6919 = vmatprep.mubr.msk.f32.mxu0 %vm872_vm7, %v6278_v60 }
 0x795   : > { %7386 = vmatprep.subr.bf16.mxu0 %v7385_v61 }
 0x798   : > { %7388 = vmatpush3.bf16.msra.mxu0 %v7385_v61 }
 0x79b   : > { %6920 = vmatmul.mubr.msk.f32.vlgmr.msra.gmra.mrb[10].mxu0 %vm872_vm7, %v6279_v62 }
 0x853   : > { %v6910_v6 = vpop.f32.mrb[6].mxu1 }
 0x854   : > { %v2498_v36 = vadd.f32 %v6910_v6, %v8247_v24  ;;  %v2403_v9 = vpop.f32.mrb[7].mxu1 }
 0x855   : > { %v2497_v10 = vadd.f32 %v2403_v9, %v8251_v25 }
 0x866   : > { %v8590_v11 = vpop.f32.mrb[8].mxu0 }
 0x867   : > { %v6899_v12 = vpop.f32.mrb[9].mxu0 }
 0x86e   : > { %v6921_v13 = vpop.f32.mrb[10].mxu0 }
 0x86f   : > { %v2500_v15 = vmul.f32 1e-06, %v6921_v13  ;;  %v2488_v33 = vpop.f32.mrb[11].mxu0 }
 0x870   : > { %v2499_v34 = vmul.f32 1e-06, %v2488_v33 }
 0x871   : > { %v2502_v38 = vadd.f32 %v2500_v15, %v2498_v36 }
 0x872   : > { %v2501_v24 = vadd.f32 %v2499_v34, %v2497_v10 }
 0x873   : > { %v8600_v25 = vadd.f32 %v2504_v17, %v2502_v38 }
 0x874   : > { %v8598_v18 = vadd.f32 %v2503_v16, %v2501_v24 }
 0x876   : > { %6930 = vmatprep.mubr.msk.f32.mxu1 %vm872_vm7, %v8598_v18 }
 0x877   : > { %6931 = vmatmul.mubr.msk.f32.vlgmr.msra.gmra.mrb[8].mxu1 %vm872_vm7, %v8600_v25 }
 0x94a   : > { %v6932_v20 = vpop.f32.mrb[8].mxu1 }
 0x94b   : > { %v2596_v21 = vadd.f32 %v6932_v20, %v6284_v19  ;;  %v2590_v22 = vpop.f32.mrb[9].mxu1 }
 0x94c   : > { %v2591_v23 = vadd.f32 %v6284_v19, %v2590_v22 }
 0x94d   : > { %2615 = vrot.lane.b32.xlu0 %v2596_v21, %s8019_s27  ;;  %2603 = vrot.lane.b32.xlu1 %v2596_v21, %s8020_s22  ;;  %v2620_v46 = vmul.f32 0.35355338, %v2596_v21 }
 0x94e   : > { %v2619_v26 = vmul.f32 0.35355338, %v2591_v23  ;;  %v8611_v27 = vpack.i.bf16 %v2596_v21, %v2591_v23 }
 0x950   : > { %6937 = vmatprep.mubr.msk.f32.mxu0 %vm763_vm4, %v2619_v26 }
 0x951   : > { %2609 = vrot.lane.b32.xlu1 %v2596_v21, %s8021_s23 }
 0x955   : > { %2601 = vrot.lane.b32.xlu1 %v2591_v23, %s8020_s22 }
 0x959   : > { %2607 = vrot.lane.b32.xlu1 %v2591_v23, %s8021_s23 }
 0x95d   : > { %2613 = vrot.lane.b32.xlu1 %v2591_v23, %s8019_s27 }
 0x961   : > { %7744 = vrot.lane.b32.xlu1 %v8611_v27, %s8022_s24 }
 0x9bf   : > { %v2604_v28 = vpop.permute.xlu1 %2603  ;;  %v2616_v39 = vpop.permute.xlu0 %2615 }
 0x9c0   : > { %v2622_v60 = vmul.f32 0.35355338, %v2604_v28  ;;  %v2626_v63 = vmul.f32 0.35355338, %v2616_v39 }
 0x9c3   : > { %v2610_v29 = vpop.permute.xlu1 %2609 }
 0x9c4   : > { %v2624_v62 = vmul.f32 0.35355338, %v2610_v29 }
 0x9c7   : > { %v2602_v30 = vpop.permute.xlu1 %2601 }
 0x9c8   : > { %v2621_v31 = vmul.f32 0.35355338, %v2602_v30  ;;  %v8620_v32 = vpack.i.bf16 %v2604_v28, %v2602_v30 }
 0x9ca   : > { %6944 = vmatprep.mubr.msk.f32.mxu1 %vm763_vm4, %v2621_v31  ;;  %7749 = vrot.lane.b32.xlu0 %v8620_v32, %s8022_s24 }
 0x9cb   : > { %v2608_v35 = vpop.permute.xlu1 %2607 }
 0x9cc   : > { %v8625_v37 = vpack.i.bf16 %v2610_v29, %v2608_v35  ;;  %v2623_v47 = vmul.f32 0.35355338, %v2608_v35 }
 0x9ce   : > { %7754 = vrot.lane.b32.xlu1 %v8625_v37, %s8022_s24 }
 0x9cf   : > { %v2614_v40 = vpop.permute.xlu1 %2613 }
 0x9d0   : > { %v8629_v41 = vpack.i.bf16 %v2616_v39, %v2614_v40  ;;  %v2625_v8 = vmul.f32 0.35355338, %v2614_v40 }
 0x9d2   : > { %7759 = vrot.lane.b32.xlu0 %v8629_v41, %s8022_s24 }
 0x9d3   : > { %v7745_v42 = vpop.permute.xlu1 %7744 }
 0x9d4   : > { %v7747_v43 = vunpack.i.h.bf16 %v7745_v42  ;;  %v7746_v44 = vunpack.i.l.bf16 %v7745_v42 }
 0x9d6   : > { %v7397_v0 = vpack.c.bf16 %v7747_v43, %v7746_v44 }
 0x9d8   : > { %7399 = vmatprep.subr.msk.bf16.mxu0 %vm8635_vm2, %v7397_v0 }
 0x9d9   : > { %7402 = vmatpush3.bf16.xpose.msk.msra.mxu0 %vm8635_vm2, %v7397_v0 }
 0x9e0   : > { %6938 = vmatmul.mubr.msk.f32.vlgmr.msra.gmra.mrb[12].mxu0 %vm763_vm4, %v2620_v46 }
 0x9e1   : > { %6951 = vmatprep.mubr.msk.f32.mxu0 %vm763_vm4, %v2623_v47 }
 0xa3c   : > { %v7750_v48 = vpop.permute.xlu0 %7749 }
 0xa3d   : > { %v7752_v49 = vunpack.i.h.bf16 %v7750_v48  ;;  %v7751_v50 = vunpack.i.l.bf16 %v7750_v48 }
 0xa3f   : > { %v7403_v51 = vpack.c.bf16 %v7752_v49, %v7751_v50 }
 0xa40   : > { %v7755_v52 = vpop.permute.xlu1 %7754 }
 0xa41   : > { %v7757_v53 = vunpack.i.h.bf16 %v7755_v52  ;;  %v7756_v54 = vunpack.i.l.bf16 %v7755_v52  ;;  %7405 = vmatprep.subr.msk.bf16.mxu1 %vm8635_vm2, %v7403_v51 }
 0xa42   : > { %7408 = vmatpush3.bf16.xpose.msk.msra.mxu1 %vm8635_vm2, %v7403_v51 }
 0xa43   : > { %v7409_v55 = vpack.c.bf16 %v7757_v53, %v7756_v54 }
 0xa44   : > { %v7760_v57 = vpop.permute.xlu0 %7759 }
 0xa45   : > { %v7762_v58 = vunpack.i.h.bf16 %v7760_v57  ;;  %v7761_v59 = vunpack.i.l.bf16 %v7760_v57  ;;  %7411 = vmatprep.subr.msk.bf16.mxu0 %vm8635_vm2, %v7409_v55 }
 0xa46   : > { %7414 = vmatpush3.bf16.xpose.msk.msra.mxu0 %vm8635_vm2, %v7409_v55 }
 0xa47   : > { %v7415_v61 = vpack.c.bf16 %v7762_v58, %v7761_v59 }
 0xa49   : > { %6945 = vmatmul.mubr.msk.f32.vlgmr.msra.gmra.mrb[10].mxu1 %vm763_vm4, %v2622_v60  ;;  %7417 = vmatprep.subr.msk.bf16.mxu1 %vm8635_vm2, %v7415_v61 }
 0xa4a   : > { %7420 = vmatpush3.bf16.xpose.msk.msra.mxu1 %vm8635_vm2, %v7415_v61  ;;  %6958 = vmatprep.mubr.msk.f32.mxu1 %vm763_vm4, %v2625_v8 }
 0xa4d   : > { %6952 = vmatmul.mubr.msk.f32.vlgmr.msra.gmra.mrb[14].mxu0 %vm763_vm4, %v2624_v62 }
 0xa51   : > { %6959 = vmatmul.mubr.msk.f32.vlgmr.msra.gmra.mrb[12].mxu1 %vm763_vm4, %v2626_v63 }
 0xab3   : > { %v6939_v1 = vpop.f32.mrb[12].mxu0 }
 0xab4   : > { %v2707_v2 = vpop.f32.mrb[13].mxu0  ;;  %v2987_v4 = vsel %vm2983_vm3, %v6939_v1, -inf }
 0xab5   : > { %2988 = vmax.xlane.f32.xlu0 %v2987_v4  ;;  %v2984_v14 = vsel %vm2983_vm3, %v2707_v2, -inf }
 0xab6   : > { %2985 = vmax.xlane.f32.xlu1 %v2984_v14 }
 0xb1c   : > { %v6946_v5 = vpop.f32.mrb[10].mxu1 }
 0xb1d   : > { %v2796_v6 = vpop.f32.mrb[11].mxu1  ;;  %v2993_v36 = vsel %vm2983_vm3, %v6946_v5, -inf }
 0xb1e   : > { %2994 = vmax.xlane.f32.xlu1 %v2993_v36  ;;  %v2990_v9 = vsel %vm2983_vm3, %v2796_v6, -inf }
 0xb1f   : > { %2991 = vmax.xlane.f32.xlu0 %v2990_v9 }
 0xb20   : > { %v6953_v10 = vpop.f32.mrb[14].mxu0 }
 0xb21   : > { %v2885_v12 = vpop.f32.mrb[15].mxu0  ;;  %v2999_v13 = vsel %vm2983_vm3, %v6953_v10, -inf }
 0xb22   : > { %3000 = vmax.xlane.f32.xlu1 %v2999_v13  ;;  %v2996_v15 = vsel %vm2983_vm3, %v2885_v12, -inf }
 0xb23   : > { %2997 = vmax.xlane.f32.xlu0 %v2996_v15 }
 0xb24   : > { %v6960_v33 = vpop.f32.mrb[12].mxu1 }
 0xb25   : > { %v2974_v34 = vpop.f32.mrb[13].mxu1  ;;  %v3005_v38 = vsel %vm2983_vm3, %v6960_v33, -inf }
 0xb26   : > { %3006 = vmax.xlane.f32.xlu1 %v3005_v38  ;;  %v3002_v16 = vsel %vm2983_vm3, %v2974_v34, -inf }
 0xb27   : > { %3003 = vmax.xlane.f32.xlu0 %v3002_v16 }
 0xb37   : > { %7769 = vrot.lane.b32.xlu1 %v8620_v32, %s9381_s28 }
 0xb3d   : > { %7764 = vrot.lane.b32.xlu0 %v8611_v27, %s9381_s28 }
 0xb42   : > { %v2989_v17 = vpop.xlane.xlu0 %2988 }
 0xb43   : > { %v2986_v24 = vpop.xlane.xlu1 %2985  ;;  %v3009_v19 = vsub.f32 %v6939_v1, %v2989_v17 }
 0xb44   : > { %v3008_v20 = vsub.f32 %v2707_v2, %v2986_v24 }
 0xb45   : > { %v3018_v21 = vmul.f32 1.442695, %v3009_v19 }
 0xb46   : > { %v3016_v22 = vmul.f32 1.442695, %v3008_v20 }
 0xb47   : > { %7839 = vpow2.f32 %v3018_v21 }
 0xb48   : > { %7841 = vpow2.f32 %v3016_v22 }
 0xb51   : > { %v8673_v23 = vpop.eup %7839 }
 0xb52   : > { %v8675_v26 = vpop.eup %7841  ;;  %v3035_v28 = vsel %vm2983_vm3, %v8673_v23, 0.0 }
 0xb53   : > { %v3032_v29 = vsel %vm2983_vm3, %v8675_v26, 0.0 }
 0xb5b   : > { %3036 = vadd.xlane.f32.xlu1 %v3035_v28 }
 0xb5c   : > { %3033 = vadd.xlane.f32.xlu0 %v3032_v29 }
 0xbab   : > { %v2995_v27 = vpop.xlane.xlu1 %2994 }
 0xbac   : > { %v3011_v30 = vsub.f32 %v6946_v5, %v2995_v27  ;;  %v2992_v31 = vpop.xlane.xlu0 %2991 }
 0xbad   : > { %v3010_v32 = vsub.f32 %v2796_v6, %v2992_v31 }
 0xbae   : > { %v3022_v35 = vmul.f32 1.442695, %v3011_v30 }
 0xbaf   : > { %v3020_v39 = vmul.f32 1.442695, %v3010_v32  ;;  %v3001_v40 = vpop.xlane.xlu1 %3000 }
 0xbb0   : > { %7843 = vpow2.f32 %v3022_v35  ;;  %v3013_v42 = vsub.f32 %v6953_v10, %v3001_v40  ;;  %v2998_v43 = vpop.xlane.xlu0 %2997 }
 0xbb1   : > { %7845 = vpow2.f32 %v3020_v39  ;;  %v3012_v44 = vsub.f32 %v2885_v12, %v2998_v43 }
 0xbb2   : > { %v3026_v0 = vmul.f32 1.442695, %v3013_v42 }
 0xbb3   : > { %v3024_v46 = vmul.f32 1.442695, %v3012_v44  ;;  %v3007_v47 = vpop.xlane.xlu1 %3006 }
 0xbb4   : > { %7847 = vpow2.f32 %v3026_v0  ;;  %v3015_v48 = vsub.f32 %v6960_v33, %v3007_v47  ;;  %v3004_v49 = vpop.xlane.xlu0 %3003 }
 0xbb5   : > { %7849 = vpow2.f32 %v3024_v46  ;;  %v3014_v50 = vsub.f32 %v2974_v34, %v3004_v49 }
 0xbb6   : > { %v3030_v51 = vmul.f32 1.442695, %v3015_v48 }
 0xbb7   : > { %v3028_v52 = vmul.f32 1.442695, %v3014_v50  ;;  %v7770_v53 = vpop.permute.xlu1 %7769  ;;  %v3451_v50 = vld [vmem:[%s9353_s9] sm:$0xff] }
 0xbb8   : > { %7851 = vpow2.f32 %v3030_v51  ;;  %v7772_v54 = vunpack.i.h.bf16 %v7770_v53  ;;  %v7765_v55 = vpop.permute.xlu0 %7764  ;;  %v7771_v57 = vunpack.i.l.bf16 %v7770_v53  ;;  %v3452_v51 = vld [vmem:[%s9353_s9 + $0x8] sm:$0xff]  ;;  %v3453_v53 = vld [vmem:[%s9353_s9 + $0x10] sm:$0xff] }
 0xbb9   : > { %7853 = vpow2.f32 %v3028_v52  ;;  %v7767_v58 = vunpack.i.h.bf16 %v7765_v55  ;;  %v7766_v59 = vunpack.i.l.bf16 %v7765_v55  ;;  %v7437_v52 = vpack.c.bf16 %v3452_v51, %v3451_v50  ;;  %v6336_v50 = vld [vmem:[%s9355_s11 + $0x68] sm:$0xff] }
 0xbba   : > { %v7844_v60 = vpop.eup %7843  ;;  %v7425_v1 = vpack.c.bf16 %v7772_v54, %v7771_v57  ;;  %v3454_v54 = vld [vmem:[%s9353_s9 + $0x18] sm:$0xff] }
 0xbbb   : > { %v7846_v61 = vpop.eup %7845  ;;  %v7421_v8 = vpack.c.bf16 %v7767_v58, %v7766_v59  ;;  %v3041_v62 = vsel %vm2983_vm3, %v7844_v60, 0.0  ;;  %7438 = vmatprep.subr.bf16.mxu1 %v7437_v52  ;;  %v7441_v55 = vpack.c.bf16 %v3454_v54, %v3453_v53 }
 0xbbc   : > { %3042 = vadd.xlane.f32.xlu1 %v3041_v62  ;;  %v3038_v63 = vsel %vm2983_vm3, %v7846_v61, 0.0  ;;  %7440 = vmatpush3.bf16.msra.mxu1 %v7437_v52 }
 0xbbd   : > { %3039 = vadd.xlane.f32.xlu0 %v3038_v63  ;;  %7422 = vmatprep.subr.bf16.mxu0 %v7421_v8 }
 0xbbe   : > { %v7848_v2 = vpop.eup %7847  ;;  %7424 = vmatpush3.bf16.msra.mxu0 %v7421_v8  ;;  %7442 = vmatprep.subr.bf16.mxu1 %v7441_v55 }
 0xbbf   : > { %v7850_v4 = vpop.eup %7849  ;;  %7426 = vmatprep.subr.bf16.mxu0 %v7425_v1  ;;  %v3047_v14 = vsel %vm2983_vm3, %v7848_v2, 0.0 }
 0xbc0   : > { %3048 = vadd.xlane.f32.xlu1 %v3047_v14  ;;  %v3044_v5 = vsel %vm2983_vm3, %v7850_v4, 0.0  ;;  %7444 = vmatpush3.bf16.msra.mxu1 %v7441_v55 }
 0xbc1   : > { %3045 = vadd.xlane.f32.xlu0 %v3044_v5 }
 0xbc2   : > { %v7852_v6 = vpop.eup %7851 }
 0xbc3   : > { %v7854_v36 = vpop.eup %7853  ;;  %v3053_v9 = vsel %vm2983_vm3, %v7852_v6, 0.0 }
 0xbc4   : > { %3054 = vadd.xlane.f32.xlu1 %v3053_v9  ;;  %v3050_v10 = vsel %vm2983_vm3, %v7854_v36, 0.0 }
 0xbc5   : > { %3051 = vadd.xlane.f32.xlu0 %v3050_v10 }
 0xbd5   : > { %7774 = vrot.lane.b32.xlu1 %v8625_v37, %s9381_s28 }
 0xbdb   : > { %7779 = vrot.lane.b32.xlu0 %v8629_v41, %s9381_s28 }
 0xbe8   : > { %v3037_v12 = vpop.xlane.xlu1 %3036 }
 0xbe9   : > { %7855 = vrcp.f32 %v3037_v12  ;;  %v3034_v13 = vpop.xlane.xlu0 %3033 }
 0xbea   : > { %7857 = vrcp.f32 %v3034_v13  ;;  %v6311_v13 = vld [vmem:[%s9358_s14] ss:$0 sm:$0xff] }
 0xbf3   : > { %v7856_v15 = vpop.eup %7855 }
 0xbf4   : > { %v7858_v33 = vpop.eup %7857  ;;  %v3065_v38 = vmul.f32 %v7856_v15, %v8673_v23 }
 0xbf5   : > { %v3064_v34 = vmul.f32 %v7858_v33, %v8675_v26 }
 0xbf7   : > { %6965 = vmatprep.mubr.msk.f32.mxu0 %vm2983_vm3, %v3064_v34 }
 0xbf8   : > { %6966 = vmatmul.mubr.msk.f32.vlgmr.msra.gmra.mrb[16].mxu0 %vm2983_vm3, %v3065_v38 }
 0xbf9   : > { %7428 = vmatpush3.bf16.msra.mxu0 %v7425_v1 }
 0xc49   : > { %v3043_v16 = vpop.xlane.xlu1 %3042 }
 0xc4a   : > { %7859 = vrcp.f32 %v3043_v16  ;;  %v3040_v37 = vpop.xlane.xlu0 %3039 }
 0xc4b   : > { %7861 = vrcp.f32 %v3040_v37 }
 0xc4d   : > { %v3049_v41 = vpop.xlane.xlu1 %3048 }
 0xc4e   : > { %7863 = vrcp.f32 %v3049_v41  ;;  %v3046_v17 = vpop.xlane.xlu0 %3045 }
 0xc4f   : > { %7865 = vrcp.f32 %v3046_v17 }
 0xc51   : > { %v3055_v24 = vpop.xlane.xlu1 %3054 }
 0xc52   : > { %7867 = vrcp.f32 %v3055_v24  ;;  %v3052_v19 = vpop.xlane.xlu0 %3051 }
 0xc53   : > { %7869 = vrcp.f32 %v3052_v19 }
 0xc54   : > { %v7860_v20 = vpop.eup %7859 }
 0xc55   : > { %v7862_v21 = vpop.eup %7861  ;;  %v7775_v22 = vpop.permute.xlu1 %7774  ;;  %v3067_v27 = vmul.f32 %v7860_v20, %v7844_v60 }
 0xc56   : > { %v7777_v23 = vunpack.i.h.bf16 %v7775_v22  ;;  %v7776_v26 = vunpack.i.l.bf16 %v7775_v22  ;;  %v7780_v28 = vpop.permute.xlu0 %7779  ;;  %v3066_v29 = vmul.f32 %v7862_v21, %v7846_v61 }
 0xc57   : > { %v7782_v30 = vunpack.i.h.bf16 %v7780_v28  ;;  %v7781_v31 = vunpack.i.l.bf16 %v7780_v28 }
 0xc58   : > { %v7864_v32 = vpop.eup %7863  ;;  %v7429_v35 = vpack.c.bf16 %v7777_v23, %v7776_v26  ;;  %6972 = vmatprep.mubr.msk.f32.mxu0 %vm2983_vm3, %v3066_v29 }
 0xc59   : > { %v7866_v39 = vpop.eup %7865  ;;  %v7433_v40 = vpack.c.bf16 %v7782_v30, %v7781_v31  ;;  %6973 = vmatmul.mubr.msk.f32.vlgmr.msra.gmra.mrb[18].mxu0 %vm2983_vm3, %v3067_v27  ;;  %v3069_v44 = vmul.f32 %v7864_v32, %v7848_v2  ;;  %v6317_v27 = vld [vmem:[%s9354_s10 + $0x28] sm:$0xff]  ;;  %v6318_v31 = vld [vmem:[%s9354_s10 + $0x30] sm:$0xff]  ;;  %v6319_v32 = vld [vmem:[%s9354_s10 + $0x38] sm:$0xff] }
 0xc5a   : > { %7430 = vmatprep.subr.bf16.mxu0 %v7429_v35  ;;  %v3068_v42 = vmul.f32 %v7866_v39, %v7850_v4  ;;  %v3584_v39 = vld [vmem:[%s9354_s10] sm:$0xff] }
 0xc5b   : > { %7432 = vmatpush3.bf16.msra.mxu0 %v7429_v35  ;;  %v7449_v35 = vpack.c.bf16 %v6319_v32, %v6318_v31 }
 0xc5c   : > { %v7868_v43 = vpop.eup %7867  ;;  %6979 = vmatprep.mubr.msk.f32.mxu0 %vm2983_vm3, %v3068_v42  ;;  %7434 = vmatprep.subr.bf16.mxu0 %v7433_v40 }
 0xc5d   : > { %v7870_v0 = vpop.eup %7869  ;;  %v3071_v47 = vmul.f32 %v7868_v43, %v7852_v6  ;;  %v6331_v43 = vld [vmem:[%s9355_s11 + $0x40] sm:$0xff] }
 0xc5e   : > { %6980 = vmatmul.mubr.msk.f32.vlgmr.msra.gmra.mrb[20].mxu0 %vm2983_vm3, %v3069_v44  ;;  %v3070_v46 = vmul.f32 %v7870_v0, %v7854_v36  ;;  %v6332_v44 = vld [vmem:[%s9355_s11 + $0x48] sm:$0xff]  ;;  %v6333_v0 = vld [vmem:[%s9355_s11 + $0x50] sm:$0xff] }
 0xc5f   : > { %7436 = vmatpush3.bf16.msra.mxu0 %v7433_v40  ;;  %v3585_v40 = vld [vmem:[%s9354_s10 + $0x8] sm:$0xff] }
 0xc60   : > { %6986 = vmatprep.mubr.msk.f32.mxu0 %vm2983_vm3, %v3070_v46  ;;  %v7453_v42 = vpack.c.bf16 %v3585_v40, %v3584_v39  ;;  %v7469_v46 = vpack.c.bf16 %v6332_v44, %v6331_v43  ;;  %v3869_v39 = vld [vmem:[%s9355_s11 + $0x18] sm:$0xff] }
 0xc62   : > { %6987 = vmatmul.mubr.msk.f32.vlgmr.msra.gmra.mrb[22].mxu0 %vm2983_vm3, %v3071_v47  ;;  %v6334_v47 = vld [vmem:[%s9355_s11 + $0x58] sm:$0xff]  ;;  %7470 = vmatprep.subr.bf16.mxu1 %v7469_v46 }
 0xccb   : > { %v6967_v48 = vpop.f32.mrb[16].mxu0 }
 0xccc   : > { %v3150_v49 = vpop.f32.mrb[17].mxu0 }
 0xd2c   : > { %v6974_v57 = vpop.f32.mrb[18].mxu0 }
 0xd2d   : > { %3424 = vrot.lane.b32.xlu0 %v6974_v57, %s9379_s21  ;;  %v3237_v58 = vpop.f32.mrb[19].mxu0 }
 0xd2e   : > { %3422 = vrot.lane.b32.xlu1 %v3237_v58, %s9379_s21  ;;  %s9419_s21 = smov 8  }
 0xd31   : > { %v6981_v59 = vpop.f32.mrb[20].mxu0 }
 0xd32   : > { %3432 = vrot.lane.b32.xlu0 %v6981_v59, %s9377_s30  ;;  %v3324_v60 = vpop.f32.mrb[21].mxu0 }
 0xd33   : > { %3430 = vrot.lane.b32.xlu1 %v3324_v60, %s9377_s30  ;;  %v6314_v60 = vld [vmem:[%s9358_s14 + $0x1] ss:$0 sm:$0xff] }
 0xd35   : > { %v6988_v61 = vpop.f32.mrb[22].mxu0 }
 0xd36   : > { %3440 = vrot.lane.b32.xlu0 %v6988_v61, %s9375_s4  ;;  %v3411_v8 = vpop.f32.mrb[23].mxu0 }
 0xd37   : > { %3438 = vrot.lane.b32.xlu1 %v3411_v8, %s9375_s4  ;;  %s5993_s4 = scalar_lea.sflag [#allocation3], %s9249_s2 }
 0xd9f   : > { %v3425_v62 = vpop.permute.xlu0 %3424 }
 0xda0   : > { %v3423_v63 = vpop.permute.xlu1 %3422  ;;  %v3445_v5 = vsel %vm763_vm4, %v6967_v48, %v3425_v62  ;;  %v7473_v48 = vpack.c.bf16 %v6334_v47, %v6333_v0  ;;  %v6315_v62 = vld [vmem:[%s9358_s14 + $0x2] ss:$0 sm:$0xff] }
 0xda1   : > { %v3444_v4 = vsel %vm763_vm4, %v3150_v49, %v3423_v63  ;;  %v6335_v49 = vld [vmem:[%s9355_s11 + $0x60] sm:$0xff] }
 0xda2   : > { %v7477_v51 = vpack.c.bf16 %v6336_v50, %v6335_v49  ;;  %v3871_v49 = vld [vmem:[%s9355_s11 + $0x28] sm:$0xff] }
 0xda4   : > { %v3433_v1 = vpop.permute.xlu0 %3432 }
 0xda5   : > { %v3431_v2 = vpop.permute.xlu1 %3430  ;;  %v3447_v9 = vsel %vm2983_vm3, %v3445_v5, %v3433_v1 }
 0xda6   : > { %v3446_v6 = vsel %vm2983_vm3, %v3444_v4, %v3431_v2  ;;  %v3586_v4 = vld [vmem:[%s9354_s10 + $0x10] sm:$0xff] }
 0xda8   : > { %v3441_v14 = vpop.permute.xlu0 %3440 }
 0xda9   : > { %v3439_v36 = vpop.permute.xlu1 %3438  ;;  %v3450_v12 = vsel %vm3448_vm5, %v3447_v9, %v3441_v14  ;;  %v3587_v14 = vld [vmem:[%s9354_s10 + $0x18] sm:$0xff] }
 0xdaa   : > { %v3449_v10 = vsel %vm3448_vm5, %v3446_v6, %v3439_v36  ;;  %v7457_v9 = vpack.c.bf16 %v3587_v14, %v3586_v4  ;;  %v6348_v4 = vld [vmem:[%s9355_s11 + $0xa8] sm:$0xff] }
 0xdab   : > { %6997 = vmatprep.mubr.msk.f32.mxu1 %vm872_vm7, %v3449_v10 }
 0xdac   : > { %6998 = vmatmul.mubr.msk.f32.vlgmr.msra.gmra.mrb[14].mxu1 %vm872_vm7, %v3450_v12  ;;  %v6324_v12 = vld [vmem:[%s9354_s10 + $0x40] sm:$0xff] }
 0xdad   : > { %7472 = vmatpush3.bf16.msra.mxu1 %v7469_v46 }
 0xdae   : > { %7474 = vmatprep.subr.bf16.mxu1 %v7473_v48 }
 0xdb1   : > { %7476 = vmatpush3.bf16.msra.mxu1 %v7473_v48  ;;  %v3870_v48 = vld [vmem:[%s9355_s11 + $0x20] sm:$0xff] }
 0xdb2   : > { %7478 = vmatprep.subr.bf16.mxu1 %v7477_v51 }
 0xdb5   : > { %7480 = vmatpush3.bf16.msra.mxu1 %v7477_v51 }
 0xe7f   : > { %v6999_v15 = vpop.f32.mrb[14].mxu1 }
 0xe80   : > { %v3538_v33 = vadd.f32 %v6999_v15, %v6311_v13  ;;  %v3532_v34 = vpop.f32.mrb[15].mxu1 }
 0xe81   : > { %v3533_v38 = vadd.f32 %v6311_v13, %v3532_v34  ;;  %v6325_v13 = vld [vmem:[%s9354_s10 + $0x48] sm:$0xff] }
 0xe82   : > { %v3542_v16 = vadd.f32 %v3538_v33, %v8600_v25  ;;  %v7461_v34 = vpack.c.bf16 %v6325_v13, %v6324_v12  ;;  %v6353_v13 = vld [vmem:[%s9358_s14 + $0x3] ss:$0 sm:$0xff] }
 0xe83   : > { %v3541_v37 = vadd.f32 %v3533_v38, %v8598_v18  ;;  %v6316_v18 = vld [vmem:[%s9354_s10 + $0x20] sm:$0xff]  ;;  %v6326_v38 = vld [vmem:[%s9354_s10 + $0x50] sm:$0xff] }
 0xe84   : > { %v3548_v41 = vsel %vm872_vm7, %v3542_v16, 0.0  ;;  %v7445_v30 = vpack.c.bf16 %v6317_v27, %v6316_v18  ;;  %v6330_v18 = vld [vmem:[%s9357_s13] ss:$0 sm:$0xff] }
 0xe85   : > { %3549 = vadd.xlane.f32.xlu0 %v3548_v41  ;;  %v3545_v17 = vsel %vm872_vm7, %v3541_v37, 0.0 }
 0xe86   : > { %3546 = vadd.xlane.f32.xlu1 %v3545_v17  ;;  %7446 = vmatprep.subr.bf16.mxu0 %v7445_v30 }
 0xe87   : > { %7448 = vmatpush3.bf16.msra.mxu0 %v7445_v30 }
 0xe88   : > { %7450 = vmatprep.subr.bf16.mxu0 %v7449_v35 }
 0xe8b   : > { %7452 = vmatpush3.bf16.msra.mxu0 %v7449_v35  ;;  %v3868_v35 = vld [vmem:[%s9355_s11 + $0x10] sm:$0xff] }
 0xe8c   : > { %7454 = vmatprep.subr.bf16.mxu0 %v7453_v42  ;;  %v7489_v0 = vpack.c.bf16 %v3869_v39, %v3868_v35 }
 0xf12   : > { %v3550_v24 = vpop.xlane.xlu0 %3549 }
 0xf13   : > { %v3552_v19 = vmul.f32 0.03125, %v3550_v24  ;;  %v3547_v20 = vpop.xlane.xlu1 %3546 }
 0xf14   : > { %v3551_v21 = vmul.f32 0.03125, %v3547_v20 }
 0xf15   : > { %v3554_v22 = vsub.f32 %v3542_v16, %v3552_v19  ;;  %v6327_v16 = vld [vmem:[%s9354_s10 + $0x58] sm:$0xff] }
 0xf16   : > { %v3553_v23 = vsub.f32 %v3541_v37, %v3551_v21  ;;  %v7465_v17 = vpack.c.bf16 %v6327_v16, %v6326_v38 }
 0xf17   : > { %v3556_v26 = vmul.f32 %v3554_v22, %v3554_v22 }
 0xf18   : > { %v3555_v28 = vmul.f32 %v3553_v23, %v3553_v23 }
 0xf19   : > { %v3560_v29 = vsel %vm872_vm7, %v3556_v26, 0.0 }
 0xf1a   : > { %3561 = vadd.xlane.f32.xlu1 %v3560_v29  ;;  %v3557_v25 = vsel %vm872_vm7, %v3555_v28, 0.0  ;;  %v3866_v28 = vld [vmem:[%s9355_s11] sm:$0xff]  ;;  %v3867_v29 = vld [vmem:[%s9355_s11 + $0x8] sm:$0xff] }
 0xf1b   : > { %3558 = vadd.xlane.f32.xlu0 %v3557_v25  ;;  %v7485_v25 = vpack.c.bf16 %v3867_v29, %v3866_v28 }
 0xfa7   : > { %v3562_v52 = vpop.xlane.xlu1 %3561 }
 0xfa8   : > { %v3564_v53 = vmul.f32 0.03125, %v3562_v52  ;;  %v3559_v54 = vpop.xlane.xlu0 %3558 }
 0xfa9   : > { %v3563_v55 = vmul.f32 0.03125, %v3559_v54 }
 0xfaa   : > { %v3566_v57 = vadd.f32 1e-05, %v3564_v53 }
 0xfab   : > { %v3565_v58 = vadd.f32 1e-05, %v3563_v55  ;;  %v7493_v55 = vpack.c.bf16 %v3871_v49, %v3870_v48  ;;  %v6355_v49 = vld [vmem:[%s9358_s14 + $0x5] ss:$0 sm:$0xff] }
 0xfac   : > { %7871 = vrsqrt.f32 %v3566_v57  ;;  %v3872_v57 = vld [vmem:[%s9355_s11 + $0x30] sm:$0xff] }
 0xfad   : > { %7873 = vrsqrt.f32 %v3565_v58  ;;  %v3873_v58 = vld [vmem:[%s9355_s11 + $0x38] sm:$0xff] }
 0xfb6   : > { %v7872_v59 = vpop.eup %7871 }
 0xfb7   : > { %v7874_v61 = vpop.eup %7873  ;;  %v3570_v8 = vmul.f32 %v7872_v59, %v3554_v22  ;;  %v6337_v22 = vld [vmem:[%s9355_s11 + $0x70] sm:$0xff]  ;;  %v7497_v59 = vpack.c.bf16 %v3873_v58, %v3872_v57 }
 0xfb8   : > { %v3569_v63 = vmul.f32 %v7874_v61, %v3553_v23  ;;  %v6338_v23 = vld [vmem:[%s9355_s11 + $0x78] sm:$0xff]  ;;  %v6344_v61 = vld [vmem:[%s9355_s11 + $0x88] sm:$0xff] }
 0xfb9   : > { %v3576_v1 = vmul.f32 %v6314_v60, %v3570_v8  ;;  %v7481_v26 = vpack.c.bf16 %v6338_v23, %v6337_v22 }
 0xfba   : > { %v3575_v2 = vmul.f32 %v6314_v60, %v3569_v63  ;;  %v6343_v60 = vld [vmem:[%s9355_s11 + $0x80] sm:$0xff]  ;;  %v6346_v63 = vld [vmem:[%s9355_s11 + $0x98] sm:$0xff] }
 0xfbb   : > { %v8784_v5 = vadd.f32 %v6315_v62, %v3576_v1  ;;  %7482 = vmatprep.subr.bf16.mxu1 %v7481_v26  ;;  %v7501_v8 = vpack.c.bf16 %v6344_v61, %v6343_v60 }
 0xfbc   : > { %v8786_v6 = vadd.f32 %v6315_v62, %v3575_v2  ;;  %7484 = vmatpush3.bf16.msra.mxu1 %v7481_v26  ;;  %v6345_v62 = vld [vmem:[%s9355_s11 + $0x90] sm:$0xff]  ;;  %v6347_v2 = vld [vmem:[%s9355_s11 + $0xa0] sm:$0xff] }
 0xfbd   : > { %v3589_v36 = vrot.slane %v8784_v5, 7  ;;  %v3767_v41 = vrot.slane %v8784_v5, 1  ;;  %7486 = vmatprep.subr.bf16.mxu1 %v7485_v25  ;;  %v7505_v1 = vpack.c.bf16 %v6346_v63, %v6345_v62  ;;  %v7509_v14 = vpack.c.bf16 %v6348_v4, %v6347_v2 }
 0xfbe   : > { %7008 = vmatprep.mubr.msk.f32.mxu0 %vm872_vm7, %v8786_v6  ;;  %v3588_v10 = vrot.slane %v8786_v6, 7  ;;  %v3766_v37 = vrot.slane %v8786_v6, 1 }
 0xfbf   : > { %7009 = vmatmul.mubr.msk.f32.vlgmr.msra.gmra.mrb[24].mxu0 %vm872_vm7, %v8784_v5 }
 0xfc0   : > { %7456 = vmatpush3.bf16.msra.mxu0 %v7453_v42  ;;  %v3591_v15 = vsel %vm852_vm8, %v3589_v36, %v3588_v10  ;;  %v3590_v24 = vsel %vm852_vm8, %v3588_v10, %v3589_v36  ;;  %v3768_v19 = vsel %vm1042_vm9, %v3766_v37, %v3767_v41  ;;  %v3769_v20 = vsel %vm1042_vm9, %v3767_v41, %v3766_v37  ;;  %v6349_v36 = vld [vmem:[%s9355_s11 + $0xb0] sm:$0xff] }
 0xfc1   : > { %v3592_v33 = vsel %vm855_vm10, %v3591_v15, 0.0  ;;  %7458 = vmatprep.subr.bf16.mxu0 %v7457_v9  ;;  %v3771_v21 = vsel %vm1048_vm11, %v3769_v20, 0.0 }
 0xfc2   : > { %7019 = vmatprep.mubr.msk.f32.mxu0 %vm872_vm7, %v3592_v33 }
 0xfc4   : > { %7460 = vmatpush3.bf16.msra.mxu0 %v7457_v9  ;;  %v6350_v9 = vld [vmem:[%s9355_s11 + $0xb8] sm:$0xff] }
 0xfc5   : > { %7462 = vmatprep.subr.bf16.mxu0 %v7461_v34  ;;  %v7513_v10 = vpack.c.bf16 %v6350_v9, %v6349_v36 }
 0xfc7   : > { %7020 = vmatmul.mubr.msk.f32.vlgmr.msra.gmra.mrb[24].mxu0 %vm872_vm7, %v3590_v24 }
 0xfc8   : > { %7464 = vmatpush3.bf16.msra.mxu0 %v7461_v34  ;;  %7030 = vmatprep.mubr.msk.f32.mxu0 %vm872_vm7, %v3768_v19 }
 0xfc9   : > { %7466 = vmatprep.subr.bf16.mxu0 %v7465_v17 }
 0xfcc   : > { %7468 = vmatpush3.bf16.msra.mxu0 %v7465_v17 }
 0xfcf   : > { %7031 = vmatmul.mubr.msk.f32.vlgmr.msra.gmra.mrb[24].mxu0 %vm872_vm7, %v3771_v21 }
0x10a2   : > { %v7032_v27 = vpop.f32.mrb[24].mxu0 }
0x10a3   : > { %v3862_v30 = vadd.f32 %v7032_v27, %v6330_v18  ;;  %v3844_v31 = vpop.f32.mrb[25].mxu0  ;;  %v6358_v27 = vld [vmem:[%s9414_s8 + $0x30] sm:$0xff] }
0x10a4   : > { %v3861_v32 = vadd.f32 %v6330_v18, %v3844_v31 }
0x10a5   : > { %v3864_v40 = vmax.f32 %v3862_v30, 0.0  ;;  %v6359_v30 = vld [vmem:[%s9414_s8 + $0x38] sm:$0xff] }
0x10a6   : > { %v3863_v42 = vmax.f32 %v3861_v32, 0.0  ;;  %v7521_v31 = vpack.c.bf16 %v6359_v30, %v6358_v27 }
0x10a7   : > { %v3875_v43 = vrot.slane %v3864_v40, 7  ;;  %v4062_v44 = vrot.slane %v3864_v40, 1 }
0x10a8   : > { %v3874_v46 = vrot.slane %v3863_v42, 7  ;;  %v4061_v47 = vrot.slane %v3863_v42, 1  ;;  %7049 = vmatprep.mubr.msk.f32.mxu1 %vm3889_vm6, %v3863_v42 }
0x10a9   : > { %7050 = vmatmul.mubr.msk.f32.vlgmr.msra.gmra.mrb[16].mxu1 %vm3889_vm6, %v3864_v40 }
0x10aa   : > { %7488 = vmatpush3.bf16.msra.mxu1 %v7485_v25  ;;  %v3877_v50 = vsel %vm852_vm8, %v3875_v43, %v3874_v46  ;;  %v3876_v51 = vsel %vm852_vm8, %v3874_v46, %v3875_v43  ;;  %v4063_v52 = vsel %vm1042_vm9, %v4061_v47, %v4062_v44  ;;  %v4064_v53 = vsel %vm1042_vm9, %v4062_v44, %v4061_v47  ;;  %v6357_v25 = vld [vmem:[%s9414_s8 + $0x28] sm:$0xff] }
0x10ab   : > { %7490 = vmatprep.subr.bf16.mxu1 %v7489_v0  ;;  %v3878_v54 = vsel %vm855_vm10, %v3877_v50, 0.0  ;;  %v4066_v12 = vsel %vm1048_vm11, %v4064_v53, 0.0 }
0x10ac   : > { %7068 = vmatprep.mubr.msk.f32.mxu1 %vm3889_vm6, %v3878_v54  ;;  %v6361_v54 = vld [vmem:[%s9356_s12 + $0x1] ss:$0 sm:$0xff] }
0x10ae   : > { %7492 = vmatpush3.bf16.msra.mxu1 %v7489_v0  ;;  %v6354_v0 = vld [vmem:[%s9358_s14 + $0x4] ss:$0 sm:$0xff] }
0x10af   : > { %7494 = vmatprep.subr.bf16.mxu1 %v7493_v55 }
0x10b2   : > { %7496 = vmatpush3.bf16.msra.mxu1 %v7493_v55 }
0x10b3   : > { %7498 = vmatprep.subr.bf16.mxu1 %v7497_v59 }
0x10b6   : > { %7500 = vmatpush3.bf16.msra.mxu1 %v7497_v59 }
0x10b7   : > { %7502 = vmatprep.subr.bf16.mxu1 %v7501_v8 }
0x10b9   : > { %7069 = vmatmul.mubr.msk.f32.vlgmr.msra.gmra.mrb[16].mxu1 %vm3889_vm6, %v3876_v51 }
0x10ba   : > { %7504 = vmatpush3.bf16.msra.mxu1 %v7501_v8  ;;  %7087 = vmatprep.mubr.msk.f32.mxu1 %vm3889_vm6, %v4063_v52 }
0x10bb   : > { %7506 = vmatprep.subr.bf16.mxu1 %v7505_v1 }
0x10be   : > { %7508 = vmatpush3.bf16.msra.mxu1 %v7505_v1 }
0x10bf   : > { %7510 = vmatprep.subr.bf16.mxu1 %v7509_v14 }
0x10c2   : > { %7512 = vmatpush3.bf16.msra.mxu1 %v7509_v14 }
0x10c3   : > { %7514 = vmatprep.subr.bf16.mxu1 %v7513_v10 }
0x10c6   : > { %7516 = vmatpush3.bf16.msra.mxu1 %v7513_v10 }
0x10c9   : > { %7088 = vmatmul.mubr.msk.f32.vlgmr.msra.gmra.mrb[16].mxu1 %vm3889_vm6, %v4066_v12 }
0x119c   : > { %v7089_v15 = vpop.f32.mrb[16].mxu1 }
0x119d   : > { %v4155_v33 = vadd.f32 %v7089_v15, %v6353_v13  ;;  %v4139_v34 = vpop.f32.mrb[17].mxu1 }
0x119e   : > { %v4154_v38 = vadd.f32 %v6353_v13, %v4139_v34 }
0x119f   : > { %v4157_v16 = vadd.f32 %v4155_v33, %v8784_v5 }
0x11a0   : > { %v4156_v37 = vadd.f32 %v4154_v38, %v8786_v6  ;;  %v6356_v6 = vld [vmem:[%s9414_s8 + $0x20] sm:$0xff] }
0x11a1   : > { %v4163_v41 = vsel %vm872_vm7, %v4157_v16, 0.0  ;;  %v7517_v18 = vpack.c.bf16 %v6357_v25, %v6356_v6 }
0x11a2   : > { %4164 = vadd.xlane.f32.xlu1 %v4163_v41  ;;  %v4160_v17 = vsel %vm872_vm7, %v4156_v37, 0.0 }
0x11a3   : > { %4161 = vadd.xlane.f32.xlu0 %v4160_v17  ;;  %7518 = vmatprep.subr.bf16.mxu0 %v7517_v18 }
0x11a4   : > { %7520 = vmatpush3.bf16.msra.mxu0 %v7517_v18 }
0x11a5   : > { %7522 = vmatprep.subr.bf16.mxu0 %v7521_v31 }
0x11a8   : > { %7524 = vmatpush3.bf16.msra.mxu0 %v7521_v31 }
0x122f   : > { %v4165_v24 = vpop.xlane.xlu1 %4164 }
0x1230   : > { %v4167_v19 = vmul.f32 0.03125, %v4165_v24  ;;  %v4162_v20 = vpop.xlane.xlu0 %4161 }
0x1231   : > { %v4166_v21 = vmul.f32 0.03125, %v4162_v20 }
0x1232   : > { %v4169_v22 = vsub.f32 %v4157_v16, %v4167_v19 }
0x1233   : > { %v4168_v23 = vsub.f32 %v4156_v37, %v4166_v21 }
0x1234   : > { %v4171_v26 = vmul.f32 %v4169_v22, %v4169_v22 }
0x1235   : > { %v4170_v28 = vmul.f32 %v4168_v23, %v4168_v23 }
0x1236   : > { %v4175_v29 = vsel %vm872_vm7, %v4171_v26, 0.0 }
0x1237   : > { %4176 = vadd.xlane.f32.xlu1 %v4175_v29  ;;  %v4172_v5 = vsel %vm872_vm7, %v4170_v28, 0.0 }
0x1238   : > { %4173 = vadd.xlane.f32.xlu0 %v4172_v5 }
0x12c4   : > { %v4177_v32 = vpop.xlane.xlu1 %4176 }
0x12c5   : > { %v4179_v35 = vmul.f32 0.03125, %v4177_v32  ;;  %v4174_v39 = vpop.xlane.xlu0 %4173 }
0x12c6   : > { %v4178_v40 = vmul.f32 0.03125, %v4174_v39 }
0x12c7   : > { %v4181_v42 = vadd.f32 1e-05, %v4179_v35 }
0x12c8   : > { %v4180_v43 = vadd.f32 1e-05, %v4178_v40 }
0x12c9   : > { %7875 = vrsqrt.f32 %v4181_v42 }
0x12ca   : > { %7877 = vrsqrt.f32 %v4180_v43 }
0x12d3   : > { %v7876_v44 = vpop.eup %7875 }
0x12d4   : > { %v7878_v46 = vpop.eup %7877  ;;  %v4185_v47 = vmul.f32 %v7876_v44, %v4169_v22 }
0x12d5   : > { %v4184_v48 = vmul.f32 %v7878_v46, %v4168_v23 }
0x12d6   : > { %v4191_v50 = vmul.f32 %v6354_v0, %v4185_v47 }
0x12d7   : > { %v4190_v51 = vmul.f32 %v6354_v0, %v4184_v48 }
0x12d8   : > { %v8928_v53 = vadd.f32 %v6355_v49, %v4191_v50 }
0x12d9   : > { %v8926_v52 = vadd.f32 %v6355_v49, %v4190_v51 }
0x12db   : > { %7098 = vmatprep.mubr.msk.f32.mxu0 %vm872_vm7, %v8926_v52 }
0x12dc   : > { %7099 = vmatmul.mubr.msk.f32.vlgmr.msra.gmra.mrb[26].mxu0 %vm872_vm7, %v8928_v53 }
0x13af   : > { %v7100_v55 = vpop.f32.mrb[26].mxu0 }
0x13b0   : > { %v4289_v57 = vadd.f32 %v7100_v55, %v6361_v54  ;;  %v4283_v58 = vpop.f32.mrb[27].mxu0 }
0x13b1   : > { %v4284_v59 = vadd.f32 %v6361_v54, %v4283_v58 }
0x13b2   : > { %4296 = vrot.lane.b32.xlu1 %v4289_v57, %s8020_s22  ;;  %v4313_v34 = vmul.f32 0.35355338, %v4289_v57 }
0x13b3   : > { %4294 = vrot.lane.b32.xlu0 %v4284_v59, %s8020_s22  ;;  %v4312_v60 = vmul.f32 0.35355338, %v4284_v59  ;;  %v8939_v61 = vpack.i.bf16 %v4289_v57, %v4284_v59  ;;  %s6459_s22 = sshll.u32 %s8160_s3, 4 }
0x13b5   : > { %7105 = vmatprep.mubr.msk.f32.mxu0 %vm763_vm4, %v4312_v60 }
0x13b6   : > { %4300 = vrot.lane.b32.xlu1 %v4284_v59, %s8021_s23 }
0x13b7   : > { %4302 = vrot.lane.b32.xlu0 %v4289_v57, %s8021_s23 }
0x13ba   : > { %4306 = vrot.lane.b32.xlu1 %v4284_v59, %s8019_s27 }
0x13bb   : > { %4308 = vrot.lane.b32.xlu0 %v4289_v57, %s8019_s27  ;;  %s9418_s27 = smov 64  }
0x13be   : > { %7784 = vrot.lane.b32.xlu1 %v8939_v61, %s8022_s24 }
0x1424   : > { %v4297_v8 = vpop.permute.xlu1 %4296 }
0x1425   : > { %v4295_v62 = vpop.permute.xlu0 %4294  ;;  %v4315_v28 = vmul.f32 0.35355338, %v4297_v8 }
0x1426   : > { %v8948_v63 = vpack.i.bf16 %v4297_v8, %v4295_v62  ;;  %v4314_v38 = vmul.f32 0.35355338, %v4295_v62 }
0x1428   : > { %v4301_v1 = vpop.permute.xlu1 %4300  ;;  %7789 = vrot.lane.b32.xlu0 %v8948_v63, %s8022_s24 }
0x1429   : > { %v4303_v2 = vpop.permute.xlu0 %4302  ;;  %v4316_v5 = vmul.f32 0.35355338, %v4301_v1 }
0x142a   : > { %v8952_v4 = vpack.i.bf16 %v4303_v2, %v4301_v1  ;;  %v4317_v6 = vmul.f32 0.35355338, %v4303_v2 }
0x142c   : > { %v4307_v14 = vpop.permute.xlu1 %4306  ;;  %7794 = vrot.lane.b32.xlu1 %v8952_v4, %s8022_s24 }
0x142d   : > { %v4318_v36 = vmul.f32 0.35355338, %v4307_v14  ;;  %v4309_v9 = vpop.permute.xlu0 %4308 }
0x142e   : > { %v8956_v10 = vpack.i.bf16 %v4309_v9, %v4307_v14  ;;  %v4319_v25 = vmul.f32 0.35355338, %v4309_v9 }
0x142f   : > { %7126 = vmatprep.mubr.msk.f32.mxu1 %vm763_vm4, %v4318_v36 }
0x1430   : > { %v7785_v12 = vpop.permute.xlu1 %7784  ;;  %7799 = vrot.lane.b32.xlu0 %v8956_v10, %s8022_s24 }
0x1431   : > { %v7787_v13 = vunpack.i.h.bf16 %v7785_v12  ;;  %v7786_v15 = vunpack.i.l.bf16 %v7785_v12 }
0x1433   : > { %v7525_v33 = vpack.c.bf16 %v7787_v13, %v7786_v15 }
0x1435   : > { %7527 = vmatprep.subr.msk.bf16.mxu0 %vm8635_vm2, %v7525_v33 }
0x1436   : > { %7530 = vmatpush3.bf16.xpose.msk.msra.mxu0 %vm8635_vm2, %v7525_v33 }
0x143d   : > { %7106 = vmatmul.mubr.msk.f32.vlgmr.msra.gmra.mrb[28].mxu0 %vm763_vm4, %v4313_v34 }
0x143e   : > { %7112 = vmatprep.mubr.msk.f32.mxu0 %vm763_vm4, %v4314_v38 }
0x149a   : > { %v7790_v16 = vpop.permute.xlu0 %7789 }
0x149b   : > { %v7792_v37 = vunpack.i.h.bf16 %v7790_v16  ;;  %v7791_v41 = vunpack.i.l.bf16 %v7790_v16 }
0x149d   : > { %v7531_v17 = vpack.c.bf16 %v7792_v37, %v7791_v41 }
0x149e   : > { %v7795_v24 = vpop.permute.xlu1 %7794 }
0x149f   : > { %v7797_v19 = vunpack.i.h.bf16 %v7795_v24  ;;  %v7796_v20 = vunpack.i.l.bf16 %v7795_v24  ;;  %7533 = vmatprep.subr.msk.bf16.mxu0 %vm8635_vm2, %v7531_v17 }
0x14a0   : > { %7536 = vmatpush3.bf16.xpose.msk.msra.mxu0 %vm8635_vm2, %v7531_v17 }
0x14a1   : > { %v7537_v21 = vpack.c.bf16 %v7797_v19, %v7796_v20 }
0x14a2   : > { %v7800_v22 = vpop.permute.xlu0 %7799 }
0x14a3   : > { %v7802_v23 = vunpack.i.h.bf16 %v7800_v22  ;;  %v7801_v26 = vunpack.i.l.bf16 %v7800_v22  ;;  %7539 = vmatprep.subr.msk.bf16.mxu0 %vm8635_vm2, %v7537_v21 }
0x14a5   : > { %v7543_v29 = vpack.c.bf16 %v7802_v23, %v7801_v26 }
0x14a7   : > { %7113 = vmatmul.mubr.msk.f32.vlgmr.msra.gmra.mrb[30].mxu0 %vm763_vm4, %v4315_v28  ;;  %7545 = vmatprep.subr.msk.bf16.mxu1 %vm8635_vm2, %v7543_v29 }
0x14a8   : > { %7542 = vmatpush3.bf16.xpose.msk.msra.mxu0 %vm8635_vm2, %v7537_v21  ;;  %7119 = vmatprep.mubr.msk.f32.mxu0 %vm763_vm4, %v4316_v5 }
0x14a9   : > { %7548 = vmatpush3.bf16.xpose.msk.msra.mxu1 %vm8635_vm2, %v7543_v29 }
0x14af   : > { %7120 = vmatmul.mubr.msk.f32.vlgmr.msra.gmra.mrb[32].mxu0 %vm763_vm4, %v4317_v6 }
0x14b0   : > { %7127 = vmatmul.mubr.msk.f32.vlgmr.msra.gmra.mrb[18].mxu1 %vm763_vm4, %v4319_v25 }
0x1510   : > { %v7107_v18 = vpop.f32.mrb[28].mxu0 }
0x1511   : > { %v4400_v27 = vpop.f32.mrb[29].mxu0  ;;  %v4679_v30 = vsel %vm2983_vm3, %v7107_v18, -inf }
0x1512   : > { %4680 = vmax.xlane.f32.xlu0 %v4679_v30  ;;  %v4676_v31 = vsel %vm2983_vm3, %v4400_v27, -inf }
0x1513   : > { %4677 = vmax.xlane.f32.xlu1 %v4676_v31 }
0x157a   : > { %v7114_v32 = vpop.f32.mrb[30].mxu0 }
0x157b   : > { %v4489_v35 = vpop.f32.mrb[31].mxu0  ;;  %v4685_v39 = vsel %vm2983_vm3, %v7114_v32, -inf }
0x157c   : > { %4686 = vmax.xlane.f32.xlu1 %v4685_v39  ;;  %v4682_v45 = vsel %vm2983_vm3, %v4489_v35, -inf }
0x157d   : > { %4683 = vmax.xlane.f32.xlu0 %v4682_v45 }
0x1582   : > { %v7121_v40 = vpop.f32.mrb[32].mxu0 }
0x1583   : > { %v7128_v42 = vpop.f32.mrb[18].mxu1  ;;  %v4578_v43 = vpop.f32.mrb[33].mxu0  ;;  %v4691_v44 = vsel %vm2983_vm3, %v7121_v40, -inf }
0x1584   : > { %v4667_v0 = vpop.f32.mrb[19].mxu1  ;;  %4692 = vmax.xlane.f32.xlu1 %v4691_v44  ;;  %v4688_v46 = vsel %vm2983_vm3, %v4578_v43, -inf  ;;  %v4697_v47 = vsel %vm2983_vm3, %v7128_v42, -inf }
0x1585   : > { %4689 = vmax.xlane.f32.xlu0 %v4688_v46  ;;  %v4694_v48 = vsel %vm2983_vm3, %v4667_v0, -inf }
0x1588   : > { %4698 = vmax.xlane.f32.xlu1 %v4697_v47 }
0x1589   : > { %4695 = vmax.xlane.f32.xlu0 %v4694_v48 }
0x1599   : > { %7809 = vrot.lane.b32.xlu1 %v8948_v63, %s9418_s27 }
0x159f   : > { %7804 = vrot.lane.b32.xlu0 %v8939_v61, %s9418_s27  ;;  %v4681_v49 = vpop.xlane.xlu0 %4680 }
0x15a0   : > { %v4678_v50 = vpop.xlane.xlu1 %4677  ;;  %v4701_v51 = vsub.f32 %v7107_v18, %v4681_v49 }
0x15a1   : > { %v4700_v54 = vsub.f32 %v4400_v27, %v4678_v50 }
0x15a2   : > { %v4710_v55 = vmul.f32 1.442695, %v4701_v51 }
0x15a3   : > { %v4708_v57 = vmul.f32 1.442695, %v4700_v54 }
0x15a4   : > { %7879 = vpow2.f32 %v4710_v55 }
0x15a5   : > { %7881 = vpow2.f32 %v4708_v57 }
0x15ae   : > { %v8995_v58 = vpop.eup %7879 }
0x15af   : > { %v8997_v59 = vpop.eup %7881  ;;  %v4727_v60 = vsel %vm2983_vm3, %v8995_v58, 0.0 }
0x15b0   : > { %v4724_v8 = vsel %vm2983_vm3, %v8997_v59, 0.0 }
0x15bd   : > { %4728 = vadd.xlane.f32.xlu1 %v4727_v60 }
0x15be   : > { %4725 = vadd.xlane.f32.xlu0 %v4724_v8 }
0x1609   : > { %v4687_v61 = vpop.xlane.xlu1 %4686 }
0x160a   : > { %v4703_v62 = vsub.f32 %v7114_v32, %v4687_v61  ;;  %v4684_v63 = vpop.xlane.xlu0 %4683 }
0x160b   : > { %v4702_v1 = vsub.f32 %v4489_v35, %v4684_v63 }
0x160c   : > { %v4714_v2 = vmul.f32 1.442695, %v4703_v62 }
0x160d   : > { %v4712_v14 = vmul.f32 1.442695, %v4702_v1 }
0x160e   : > { %7883 = vpow2.f32 %v4714_v2 }
0x160f   : > { %7885 = vpow2.f32 %v4712_v14 }
0x1611   : > { %v4693_v36 = vpop.xlane.xlu1 %4692 }
0x1612   : > { %v4690_v9 = vpop.xlane.xlu0 %4689  ;;  %v4705_v12 = vsub.f32 %v7121_v40, %v4693_v36 }
0x1613   : > { %v4704_v13 = vsub.f32 %v4578_v43, %v4690_v9 }
0x1614   : > { %v4718_v37 = vmul.f32 1.442695, %v4705_v12 }
0x1615   : > { %v4699_v15 = vpop.xlane.xlu1 %4698  ;;  %v4716_v24 = vmul.f32 1.442695, %v4704_v13 }
0x1616   : > { %v4707_v33 = vsub.f32 %v7128_v42, %v4699_v15  ;;  %v4696_v34 = vpop.xlane.xlu0 %4695 }
0x1617   : > { %v4706_v38 = vsub.f32 %v4667_v0, %v4696_v34 }
0x1618   : > { %v7884_v16 = vpop.eup %7883  ;;  %v4722_v41 = vmul.f32 1.442695, %v4707_v33 }
0x1619   : > { %v7886_v17 = vpop.eup %7885  ;;  %v4720_v19 = vmul.f32 1.442695, %v4706_v38  ;;  %v7810_v20 = vpop.permute.xlu1 %7809  ;;  %v4733_v21 = vsel %vm2983_vm3, %v7884_v16, 0.0 }
0x161a   : > { %7887 = vpow2.f32 %v4722_v41  ;;  %v7812_v22 = vunpack.i.h.bf16 %v7810_v20  ;;  %4734 = vadd.xlane.f32.xlu1 %v4733_v21  ;;  %v7805_v23 = vpop.permute.xlu0 %7804  ;;  %v4730_v26 = vsel %vm2983_vm3, %v7886_v17, 0.0  ;;  %v7811_v28 = vunpack.i.l.bf16 %v7810_v20  ;;  %v6391_v20 = vld [vmem:[%s9353_s9 + $0x38] sm:$0xff] }
0x161b   : > { %7889 = vpow2.f32 %v4720_v19  ;;  %v7807_v29 = vunpack.i.h.bf16 %v7805_v23  ;;  %v7806_v5 = vunpack.i.l.bf16 %v7805_v23  ;;  %4731 = vadd.xlane.f32.xlu0 %v4730_v26  ;;  %v6390_v19 = vld [vmem:[%s9353_s9 + $0x30] sm:$0xff] }
0x161c   : > { %7891 = vpow2.f32 %v4718_v37  ;;  %v7553_v25 = vpack.c.bf16 %v7812_v22, %v7811_v28  ;;  %v6389_v37 = vld [vmem:[%s9353_s9 + $0x28] sm:$0xff]  ;;  %v7569_v21 = vpack.c.bf16 %v6391_v20, %v6390_v19 }
0x161d   : > { %7893 = vpow2.f32 %v4716_v24  ;;  %v7549_v6 = vpack.c.bf16 %v7807_v29, %v7806_v5 }
0x161f   : > { %7550 = vmatprep.subr.bf16.mxu0 %v7549_v6 }
0x1620   : > { %7552 = vmatpush3.bf16.msra.mxu0 %v7549_v6 }
0x1621   : > { %7554 = vmatprep.subr.bf16.mxu0 %v7553_v25 }
0x1624   : > { %v7888_v18 = vpop.eup %7887 }
0x1625   : > { %v7890_v27 = vpop.eup %7889  ;;  %v4745_v30 = vsel %vm2983_vm3, %v7888_v18, 0.0 }
0x1626   : > { %v7892_v31 = vpop.eup %7891  ;;  %4746 = vadd.xlane.f32.xlu1 %v4745_v30  ;;  %v4742_v32 = vsel %vm2983_vm3, %v7890_v27, 0.0 }
0x1627   : > { %v7894_v35 = vpop.eup %7893  ;;  %4743 = vadd.xlane.f32.xlu0 %v4742_v32  ;;  %v4739_v39 = vsel %vm2983_vm3, %v7892_v31, 0.0 }
0x1628   : > { %v4736_v45 = vsel %vm2983_vm3, %v7894_v35, 0.0 }
0x162a   : > { %4740 = vadd.xlane.f32.xlu1 %v4739_v39 }
0x162b   : > { %4737 = vadd.xlane.f32.xlu0 %v4736_v45 }
0x163b   : > { %7814 = vrot.lane.b32.xlu1 %v8952_v4, %s9418_s27 }
0x1641   : > { %7819 = vrot.lane.b32.xlu0 %v8956_v10, %s9418_s27  ;;  %s7925_s27 = scalar_lea.vmem %s7924_s1, 32 }
0x164a   : > { %v4729_v40 = vpop.xlane.xlu1 %4728 }
0x164b   : > { %7895 = vrcp.f32 %v4729_v40  ;;  %v4726_v42 = vpop.xlane.xlu0 %4725  ;;  %v6393_v40 = vld [vmem:[%s9358_s14 + $0x8] ss:$0 sm:$0xff] }
0x164c   : > { %7897 = vrcp.f32 %v4726_v42 }
0x1655   : > { %v7896_v43 = vpop.eup %7895 }
0x1656   : > { %v7898_v44 = vpop.eup %7897  ;;  %v4757_v46 = vmul.f32 %v7896_v43, %v8995_v58 }
0x1657   : > { %v4756_v0 = vmul.f32 %v7898_v44, %v8997_v59 }
0x1659   : > { %7133 = vmatprep.mubr.msk.f32.mxu0 %vm2983_vm3, %v4756_v0 }
0x165a   : > { %7134 = vmatmul.mubr.msk.f32.vlgmr.msra.gmra.mrb[34].mxu0 %vm2983_vm3, %v4757_v46 }
0x165b   : > { %7556 = vmatpush3.bf16.msra.mxu0 %v7553_v25 }
0x16a7   : > { %v4735_v47 = vpop.xlane.xlu1 %4734 }
0x16a8   : > { %7899 = vrcp.f32 %v4735_v47  ;;  %v4732_v4 = vpop.xlane.xlu0 %4731 }
0x16a9   : > { %7901 = vrcp.f32 %v4732_v4 }
0x16b2   : > { %v7900_v10 = vpop.eup %7899 }
0x16b3   : > { %v7902_v48 = vpop.eup %7901  ;;  %v4747_v49 = vpop.xlane.xlu1 %4746  ;;  %v4759_v54 = vmul.f32 %v7900_v10, %v7884_v16  ;;  %v6388_v16 = vld [vmem:[%s9353_s9 + $0x20] sm:$0xff] }
0x16b4   : > { %v4744_v50 = vpop.xlane.xlu0 %4743  ;;  %v4758_v51 = vmul.f32 %v7902_v48, %v7886_v17  ;;  %v7565_v41 = vpack.c.bf16 %v6389_v37, %v6388_v16 }
0x16b5   : > { %7903 = vrcp.f32 %v4744_v50 }
0x16b6   : > { %7905 = vrcp.f32 %v4747_v49  ;;  %7140 = vmatprep.mubr.msk.f32.mxu0 %vm2983_vm3, %v4758_v51 }
0x16b7   : > { %v4741_v55 = vpop.xlane.xlu1 %4740  ;;  %7141 = vmatmul.mubr.msk.f32.vlgmr.msra.gmra.mrb[36].mxu0 %vm2983_vm3, %v4759_v54 }
0x16b8   : > { %7907 = vrcp.f32 %v4741_v55  ;;  %v4738_v57 = vpop.xlane.xlu0 %4737 }
0x16b9   : > { %7909 = vrcp.f32 %v4738_v57 }
0x16bb   : > { %v7815_v58 = vpop.permute.xlu1 %7814 }
0x16bc   : > { %v7817_v59 = vunpack.i.h.bf16 %v7815_v58  ;;  %v7816_v60 = vunpack.i.l.bf16 %v7815_v58  ;;  %v7820_v8 = vpop.permute.xlu0 %7819 }
0x16bd   : > { %v7822_v61 = vunpack.i.h.bf16 %v7820_v8  ;;  %v7821_v62 = vunpack.i.l.bf16 %v7820_v8 }
0x16be   : > { %v7557_v63 = vpack.c.bf16 %v7817_v59, %v7816_v60  ;;  %v6406_v60 = vld [vmem:[%s9354_s10 + $0x88] sm:$0xff] }
0x16bf   : > { %v7904_v1 = vpop.eup %7903  ;;  %v7561_v2 = vpack.c.bf16 %v7822_v61, %v7821_v62  ;;  %v6407_v61 = vld [vmem:[%s9354_s10 + $0x90] sm:$0xff]  ;;  %v6408_v62 = vld [vmem:[%s9354_s10 + $0x98] sm:$0xff] }
0x16c0   : > { %v7906_v14 = vpop.eup %7905  ;;  %7558 = vmatprep.subr.bf16.mxu1 %v7557_v63  ;;  %v4762_v36 = vmul.f32 %v7904_v1, %v7890_v27  ;;  %v6401_v1 = vld [vmem:[%s9354_s10 + $0x60] sm:$0xff] }
0x16c1   : > { %7560 = vmatpush3.bf16.msra.mxu1 %v7557_v63  ;;  %7562 = vmatprep.subr.bf16.mxu0 %v7561_v2  ;;  %v4763_v13 = vmul.f32 %v7906_v14, %v7888_v18  ;;  %v7577_v63 = vpack.c.bf16 %v6408_v62, %v6407_v61  ;;  %v6423_v62 = vld [vmem:[%s9355_s11 + $0xd0] sm:$0xff] }
0x16c2   : > { %v7908_v9 = vpop.eup %7907  ;;  %7564 = vmatpush3.bf16.msra.mxu0 %v7561_v2  ;;  %7154 = vmatprep.mubr.msk.f32.mxu0 %vm2983_vm3, %v4762_v36  ;;  %v6402_v2 = vld [vmem:[%s9354_s10 + $0x68] sm:$0xff]  ;;  %v6429_v36 = vld [vmem:[%s9355_s11 + $0x100] sm:$0xff] }
0x16c3   : > { %v7910_v12 = vpop.eup %7909  ;;  %v4761_v33 = vmul.f32 %v7908_v9, %v7892_v31  ;;  %7566 = vmatprep.subr.bf16.mxu1 %v7565_v41  ;;  %v7581_v14 = vpack.c.bf16 %v6402_v2, %v6401_v1  ;;  %v6430_v9 = vld [vmem:[%s9355_s11 + $0x108] sm:$0xff] }
0x16c4   : > { %v4760_v15 = vmul.f32 %v7910_v12, %v7894_v35  ;;  %v6431_v12 = vld [vmem:[%s9355_s11 + $0x110] sm:$0xff] }
0x16c5   : > { %7155 = vmatmul.mubr.msk.f32.vlgmr.msra.gmra.mrb[38].mxu0 %vm2983_vm3, %v4763_v13  ;;  %v7597_v13 = vpack.c.bf16 %v6430_v9, %v6429_v36 }
0x16c6   : > { %7147 = vmatprep.mubr.msk.f32.mxu1 %vm2983_vm3, %v4760_v15  ;;  %v6432_v15 = vld [vmem:[%s9355_s11 + $0x118] sm:$0xff] }
0x16c7   : > { %7148 = vmatmul.mubr.msk.f32.vlgmr.msra.gmra.mrb[20].mxu1 %vm2983_vm3, %v4761_v33  ;;  %v7601_v33 = vpack.c.bf16 %v6432_v15, %v6431_v12  ;;  %v6425_v15 = vld [vmem:[%s9355_s11 + $0xe0] sm:$0xff] }
0x16c8   : > { %7568 = vmatpush3.bf16.msra.mxu1 %v7565_v41 }
0x16c9   : > { %7570 = vmatprep.subr.bf16.mxu1 %v7569_v21 }
0x16cc   : > { %7572 = vmatpush3.bf16.msra.mxu1 %v7569_v21 }
0x16cd   : > { %7598 = vmatprep.subr.bf16.mxu1 %v7597_v13 }
0x172d   : > { %v7135_v34 = vpop.f32.mrb[34].mxu0 }
0x172e   : > { %v4842_v38 = vpop.f32.mrb[35].mxu0 }
0x178a   : > { %v7142_v17 = vpop.f32.mrb[36].mxu0 }
0x178b   : > { %5116 = vrot.lane.b32.xlu0 %v7142_v17, %s9419_s21  ;;  %v4929_v24 = vpop.f32.mrb[37].mxu0 }
0x178c   : > { %5114 = vrot.lane.b32.xlu1 %v4929_v24, %s9419_s21  ;;  %s9422_s21 = sld [smem:[#allocation25_spill]] }
0x1792   : > { %s9271_s30 = scalar_lea.hbm %s9422_s21, %s6459_s22 }
0x1798   : > { %v7156_v22 = vpop.f32.mrb[38].mxu0 }
0x1799   : > { %v5103_v23 = vpop.f32.mrb[39].mxu0 }
0x179a   : > { %v7149_v26 = vpop.f32.mrb[20].mxu1 }
0x179b   : > { %v5016_v28 = vpop.f32.mrb[21].mxu1  ;;  %5124 = vrot.lane.b32.xlu0 %v7149_v26, %s9420_s18 }
0x179c   : > { %5122 = vrot.lane.b32.xlu1 %v5016_v28, %s9420_s18  ;;  %v6399_v28 = vld [vmem:[%s9358_s14 + $0xa] ss:$0 sm:$0xff]  ;;  %s709_s18 = scalar_lea.vmem [#allocation2], %s9249_s2 }
0x179d   : > { %s6012_s23 = sshll.u32 %s709_s18, 4  ;;  %s6013_s23 = int_to_ptr.vmem [resolvable:$true] %s6012_s23 }
0x179e   : > { %p7926_p0 = scmp.lt.s32.totalorder %s6013_s23, %s7924_s1 }
0x179f   : > { %5132 = vrot.lane.b32.xlu0 %v7156_v22, %s9421_s20  ;;  %v6398_v22 = vld [vmem:[%s9358_s14 + $0x9] ss:$0 sm:$0xff] }
0x17a0   : > { %5130 = vrot.lane.b32.xlu1 %v5103_v23, %s9421_s20  ;;  %s7919_s20 = scalar_lea.vmem %s6013_s23, 16 }
0x17a1   : > { %p7920_p11 = scmp.ne.s32.totalorder %s6013_s23, %s7919_s20  ;;  %p7927_p1 = scmp.lt.s32.totalorder %s7925_s27, %s7919_s20 }
0x17a3   : > { %p7921_p12 = pnand %p7920_p11, %p8177_p5  ;;  %p7928_p2 = por %p7927_p1, %p7926_p0 }
0x17a5   : > { %p7922_p13 = pneg %p7921_p12 }
0x17a7   : > { %p7929_p3 = pnand %p7928_p2, %p7922_p13 }
0x17fd   : > { %v5117_v29 = vpop.permute.xlu0 %5116 }
0x17fe   : > { %v5115_v5 = vpop.permute.xlu1 %5114  ;;  %v5137_v30 = vsel %vm763_vm4, %v7135_v34, %v5117_v29  ;;  %v6433_v34 = vld [vmem:[%s9355_s11 + $0x120] sm:$0xff] }
0x17ff   : > { %v5136_v18 = vsel %vm763_vm4, %v4842_v38, %v5115_v5  ;;  %v6434_v38 = vld [vmem:[%s9355_s11 + $0x128] sm:$0xff]  ;;  %vm2294_vm4 = vcmask 122880  }
0x1800   : > { %v7605_v16 = vpack.c.bf16 %v6434_v38, %v6433_v34 }
0x180d   : > { %v5125_v6 = vpop.permute.xlu0 %5124 }
0x180e   : > { %v5123_v25 = vpop.permute.xlu1 %5122  ;;  %v5139_v35 = vsel %vm2983_vm3, %v5137_v30, %v5125_v6 }
0x180f   : > { %v5138_v31 = vsel %vm2983_vm3, %v5136_v18, %v5123_v25  ;;  %v6403_v25 = vld [vmem:[%s9354_s10 + $0x70] sm:$0xff]  ;;  %v6404_v18 = vld [vmem:[%s9354_s10 + $0x78] sm:$0xff] }
0x1811   : > { %v5133_v27 = vpop.permute.xlu0 %5132 }
0x1812   : > { %v5131_v32 = vpop.permute.xlu1 %5130  ;;  %v5141_v45 = vsel %vm3448_vm5, %v5139_v35, %v5133_v27 }
0x1813   : > { %v5140_v39 = vsel %vm3448_vm5, %v5138_v31, %v5131_v32  ;;  %v7585_v32 = vpack.c.bf16 %v6404_v18, %v6403_v25  ;;  %v6447_v25 = vld [vmem:[%s9355_s11 + $0x170] sm:$0xff]  ;;  %v6448_v18 = vld [vmem:[%s9355_s11 + $0x178] sm:$0xff] }
0x1814   : > { %7165 = vmatprep.mubr.msk.f32.mxu1 %vm872_vm7, %v5140_v39  ;;  %v6413_v39 = vld [vmem:[%s9354_s10 + $0xa0] sm:$0xff] }
0x1815   : > { %7166 = vmatmul.mubr.msk.f32.vlgmr.msra.gmra.mrb[22].mxu1 %vm872_vm7, %v5141_v45  ;;  %v6414_v45 = vld [vmem:[%s9354_s10 + $0xa8] sm:$0xff] }
0x1816   : > { %7600 = vmatpush3.bf16.msra.mxu1 %v7597_v13 }
0x1817   : > { %7602 = vmatprep.subr.bf16.mxu1 %v7601_v33 }
0x181a   : > { %7604 = vmatpush3.bf16.msra.mxu1 %v7601_v33  ;;  %v6426_v33 = vld [vmem:[%s9355_s11 + $0xe8] sm:$0xff] }
0x181b   : > { %7606 = vmatprep.subr.bf16.mxu1 %v7605_v16 }
0x181e   : > { %7608 = vmatpush3.bf16.msra.mxu1 %v7605_v16 }
0x18e8   : > { %v7167_v42 = vpop.f32.mrb[22].mxu1 }
0x18e9   : > { %v5231_v43 = vadd.f32 %v7167_v42, %v6393_v40  ;;  %v5225_v44 = vpop.f32.mrb[23].mxu1 }
0x18ea   : > { %v5226_v0 = vadd.f32 %v6393_v40, %v5225_v44  ;;  %v6415_v44 = vld [vmem:[%s9354_s10 + $0xb0] sm:$0xff] }
0x18eb   : > { %v5235_v46 = vadd.f32 %v5231_v43, %v8928_v53  ;;  %v7589_v43 = vpack.c.bf16 %v6414_v45, %v6413_v39 }
0x18ec   : > { %v5234_v47 = vadd.f32 %v5226_v0, %v8926_v52  ;;  %v6405_v52 = vld [vmem:[%s9354_s10 + $0x80] sm:$0xff]  ;;  %v6416_v0 = vld [vmem:[%s9354_s10 + $0xb8] sm:$0xff] }
0x18ed   : > { %v5241_v4 = vsel %vm872_vm7, %v5235_v46, 0.0  ;;  %v7573_v8 = vpack.c.bf16 %v6406_v60, %v6405_v52 }
0x18ee   : > { %5242 = vadd.xlane.f32.xlu0 %v5241_v4  ;;  %v5238_v10 = vsel %vm872_vm7, %v5234_v47, 0.0  ;;  %v7593_v4 = vpack.c.bf16 %v6416_v0, %v6415_v44 }
0x18ef   : > { %5239 = vadd.xlane.f32.xlu1 %v5238_v10  ;;  %7574 = vmatprep.subr.bf16.mxu0 %v7573_v8 }
0x18f0   : > { %7576 = vmatpush3.bf16.msra.mxu0 %v7573_v8 }
0x18f1   : > { %7578 = vmatprep.subr.bf16.mxu0 %v7577_v63 }
0x18f4   : > { %7580 = vmatpush3.bf16.msra.mxu0 %v7577_v63  ;;  %v6424_v63 = vld [vmem:[%s9355_s11 + $0xd8] sm:$0xff] }
0x18f5   : > { %7582 = vmatprep.subr.bf16.mxu0 %v7581_v14  ;;  %v7617_v9 = vpack.c.bf16 %v6424_v63, %v6423_v62 }
0x197b   : > { %v5243_v48 = vpop.xlane.xlu0 %5242 }
0x197c   : > { %v5245_v49 = vmul.f32 0.03125, %v5243_v48  ;;  %v5240_v50 = vpop.xlane.xlu1 %5239 }
0x197d   : > { %v5244_v51 = vmul.f32 0.03125, %v5240_v50 }
0x197e   : > { %v5247_v54 = vsub.f32 %v5235_v46, %v5245_v49 }
0x197f   : > { %v5246_v55 = vsub.f32 %v5234_v47, %v5244_v51  ;;  %v6435_v51 = vld [vmem:[%s9355_s11 + $0x130] sm:$0xff] }
0x1980   : > { %v5249_v57 = vmul.f32 %v5247_v54, %v5247_v54 }
0x1981   : > { %v5248_v58 = vmul.f32 %v5246_v55, %v5246_v55 }
0x1982   : > { %v5253_v59 = vsel %vm872_vm7, %v5249_v57, 0.0  ;;  %v6421_v57 = vld [vmem:[%s9355_s11 + $0xc0] sm:$0xff] }
0x1983   : > { %5254 = vadd.xlane.f32.xlu1 %v5253_v59  ;;  %v5250_v53 = vsel %vm872_vm7, %v5248_v58, 0.0  ;;  %v6422_v58 = vld [vmem:[%s9355_s11 + $0xc8] sm:$0xff] }
0x1984   : > { %5251 = vadd.xlane.f32.xlu0 %v5250_v53  ;;  %v7613_v59 = vpack.c.bf16 %v6422_v58, %v6421_v57  ;;  %v6419_v53 = vld [vmem:[%s9357_s13 + $0x1] ss:$0 sm:$0xff]  ;;  %v5894_v58 = vld [vmem:[%s9361_s17 + $0x8] sm:$0xff] }
0x1985   : > { %v5893_v57 = vld [vmem:[%s9361_s17] sm:$0xff] }
0x1a10   : > { %v5255_v37 = vpop.xlane.xlu1 %5254 }
0x1a11   : > { %v5257_v41 = vmul.f32 0.03125, %v5255_v37  ;;  %v5252_v17 = vpop.xlane.xlu0 %5251 }
0x1a12   : > { %v5256_v24 = vmul.f32 0.03125, %v5252_v17  ;;  %v7621_v17 = vpack.c.bf16 %v6426_v33, %v6425_v15  ;;  %v6454_v15 = vld [vmem:[%s9358_s14 + $0xc] ss:$0 sm:$0xff] }
0x1a13   : > { %v5259_v19 = vadd.f32 1e-05, %v5257_v41 }
0x1a14   : > { %v5258_v20 = vadd.f32 1e-05, %v5256_v24  ;;  %v6427_v24 = vld [vmem:[%s9355_s11 + $0xf0] sm:$0xff] }
0x1a15   : > { %7911 = vrsqrt.f32 %v5259_v19  ;;  %v6428_v19 = vld [vmem:[%s9355_s11 + $0xf8] sm:$0xff] }
0x1a16   : > { %7913 = vrsqrt.f32 %v5258_v20  ;;  %v7625_v20 = vpack.c.bf16 %v6428_v19, %v6427_v24 }
0x1a1f   : > { %v7912_v21 = vpop.eup %7911 }
0x1a20   : > { %v7914_v23 = vpop.eup %7913  ;;  %v5263_v26 = vmul.f32 %v7912_v21, %v5247_v54  ;;  %v6436_v54 = vld [vmem:[%s9355_s11 + $0x138] sm:$0xff]  ;;  %v6441_v21 = vld [vmem:[%s9355_s11 + $0x140] sm:$0xff] }
0x1a21   : > { %v5262_v29 = vmul.f32 %v7914_v23, %v5246_v55  ;;  %v7609_v55 = vpack.c.bf16 %v6436_v54, %v6435_v51  ;;  %v6443_v23 = vld [vmem:[%s9355_s11 + $0x150] sm:$0xff] }
0x1a22   : > { %v5269_v5 = vmul.f32 %v6398_v22, %v5263_v26  ;;  %v6444_v26 = vld [vmem:[%s9355_s11 + $0x158] sm:$0xff] }
0x1a23   : > { %v5268_v6 = vmul.f32 %v6398_v22, %v5262_v29  ;;  %7610 = vmatprep.subr.bf16.mxu1 %v7609_v55  ;;  %v7629_v22 = vpack.c.bf16 %v6442_v3, %v6441_v21  ;;  %v6445_v29 = vld [vmem:[%s9355_s11 + $0x160] sm:$0xff] }
0x1a24   : > { %v9106_v27 = vadd.f32 %v6399_v28, %v5269_v5  ;;  %7612 = vmatpush3.bf16.msra.mxu1 %v7609_v55  ;;  %v6446_v5 = vld [vmem:[%s9355_s11 + $0x168] sm:$0xff]  ;;  %v1511_v55 = vld [vmem:[%s9360_s16 + $0x7] sm:$0x1] }
0x1a25   : > { %v9108_v30 = vadd.f32 %v6399_v28, %v5268_v6  ;;  %7614 = vmatprep.subr.bf16.mxu1 %v7613_v59  ;;  %v7633_v28 = vpack.c.bf16 %v6444_v26, %v6443_v23  ;;  %v7637_v6 = vpack.c.bf16 %v6446_v5, %v6445_v29 }
0x1a26   : > { %v5284_v31 = vrot.slane %v9106_v27, 7  ;;  %v5462_v47 = vrot.slane %v9106_v27, 1 }
0x1a27   : > { %7176 = vmatprep.mubr.msk.f32.mxu0 %vm872_vm7, %v9108_v30  ;;  %v5283_v35 = vrot.slane %v9108_v30, 7  ;;  %v5461_v46 = vrot.slane %v9108_v30, 1 }
0x1a28   : > { %7177 = vmatmul.mubr.msk.f32.vlgmr.msra.gmra.mrb[40].mxu0 %vm872_vm7, %v9106_v27 }
0x1a29   : > { %7584 = vmatpush3.bf16.msra.mxu0 %v7581_v14  ;;  %v5286_v40 = vsel %vm852_vm8, %v5284_v31, %v5283_v35  ;;  %v5285_v10 = vsel %vm852_vm8, %v5283_v35, %v5284_v31  ;;  %v5463_v48 = vsel %vm1042_vm9, %v5461_v46, %v5462_v47  ;;  %v5464_v49 = vsel %vm1042_vm9, %v5462_v47, %v5461_v46  ;;  %v6451_v35 = vld [vmem:[%s9358_s14 + $0xb] ss:$0 sm:$0xff] }
0x1a2a   : > { %v5287_v42 = vsel %vm855_vm10, %v5286_v40, 0.0  ;;  %7586 = vmatprep.subr.bf16.mxu0 %v7585_v32  ;;  %v5466_v50 = vsel %vm1048_vm11, %v5464_v49, 0.0  ;;  %v7641_v31 = vpack.c.bf16 %v6448_v18, %v6447_v25 }
0x1a2b   : > { %7187 = vmatprep.mubr.msk.f32.mxu0 %vm872_vm7, %v5287_v42 }
0x1a2d   : > { %7588 = vmatpush3.bf16.msra.mxu0 %v7585_v32 }
0x1a2e   : > { %7590 = vmatprep.subr.bf16.mxu0 %v7589_v43 }
0x1a30   : > { %7188 = vmatmul.mubr.msk.f32.vlgmr.msra.gmra.mrb[40].mxu0 %vm872_vm7, %v5285_v10 }
0x1a31   : > { %7592 = vmatpush3.bf16.msra.mxu0 %v7589_v43  ;;  %7198 = vmatprep.mubr.msk.f32.mxu0 %vm872_vm7, %v5463_v48 }
0x1a32   : > { %7594 = vmatprep.subr.bf16.mxu0 %v7593_v4 }
0x1a35   : > { %7596 = vmatpush3.bf16.msra.mxu0 %v7593_v4 }
0x1a38   : > { %7199 = vmatmul.mubr.msk.f32.vlgmr.msra.gmra.mrb[40].mxu0 %vm872_vm7, %v5466_v50 }
0x1b0b   : > { %v7200_v52 = vpop.f32.mrb[40].mxu0 }
0x1b0c   : > { %v5557_v60 = vadd.f32 %v7200_v52, %v6419_v53  ;;  %v5539_v8 = vpop.f32.mrb[41].mxu0  ;;  %v5896_v52 = vld [vmem:[%s9361_s17 + $0x18] sm:$0xff] }
0x1b0d   : > { %v5556_v61 = vadd.f32 %v6419_v53, %v5539_v8  ;;  %v5895_v53 = vld [vmem:[%s9361_s17 + $0x10] sm:$0xff] }
0x1b0e   : > { %v5559_v1 = vmax.f32 %v5557_v60, 0.0  ;;  %v7649_v60 = vpack.c.bf16 %v5896_v52, %v5895_v53 }
0x1b0f   : > { %v5558_v2 = vmax.f32 %v5556_v61, 0.0 }
0x1b10   : > { %v5571_v14 = vrot.slane %v5559_v1, 7  ;;  %v5757_v36 = vrot.slane %v5559_v1, 1 }
0x1b11   : > { %v5570_v12 = vrot.slane %v5558_v2, 7  ;;  %v5756_v13 = vrot.slane %v5558_v2, 1  ;;  %7217 = vmatprep.mubr.msk.f32.mxu1 %vm3889_vm6, %v5558_v2 }
0x1b12   : > { %7218 = vmatmul.mubr.msk.f32.vlgmr.msra.gmra.mrb[24].mxu1 %vm3889_vm6, %v5559_v1 }
0x1b13   : > { %7616 = vmatpush3.bf16.msra.mxu1 %v7613_v59  ;;  %v5573_v34 = vsel %vm852_vm8, %v5571_v14, %v5570_v12  ;;  %v5572_v38 = vsel %vm852_vm8, %v5570_v12, %v5571_v14  ;;  %v5758_v16 = vsel %vm1042_vm9, %v5756_v13, %v5757_v36  ;;  %v5759_v37 = vsel %vm1042_vm9, %v5757_v36, %v5756_v13 }
0x1b14   : > { %7618 = vmatprep.subr.bf16.mxu1 %v7617_v9  ;;  %v5574_v41 = vsel %vm855_vm10, %v5573_v34, 0.0  ;;  %v5761_v32 = vsel %vm1048_vm11, %v5759_v37, 0.0  ;;  %v7645_v59 = vpack.c.bf16 %v5894_v58, %v5893_v57 }
0x1b15   : > { %7236 = vmatprep.mubr.msk.f32.mxu1 %vm3889_vm6, %v5574_v41 }
0x1b16   : > { %7646 = vmatprep.subr.bf16.mxu0 %v7645_v59 }
0x1b17   : > { %7620 = vmatpush3.bf16.msra.mxu1 %v7617_v9  ;;  %7648 = vmatpush3.bf16.msra.mxu0 %v7645_v59 }
0x1b18   : > { %7622 = vmatprep.subr.bf16.mxu1 %v7621_v17  ;;  %7650 = vmatprep.subr.bf16.mxu0 %v7649_v60 }
0x1b1b   : > { %7624 = vmatpush3.bf16.msra.mxu1 %v7621_v17  ;;  %7652 = vmatpush3.bf16.msra.mxu0 %v7649_v60 }
0x1b1c   : > { %7626 = vmatprep.subr.bf16.mxu1 %v7625_v20 }
0x1b1f   : > { %7628 = vmatpush3.bf16.msra.mxu1 %v7625_v20 }
0x1b20   : > { %7630 = vmatprep.subr.bf16.mxu1 %v7629_v22 }
0x1b22   : > { %7237 = vmatmul.mubr.msk.f32.vlgmr.msra.gmra.mrb[24].mxu1 %vm3889_vm6, %v5572_v38  ;;  %v6455_v38 = vld [vmem:[%s9358_s14 + $0xd] ss:$0 sm:$0xff] }
0x1b23   : > { %7632 = vmatpush3.bf16.msra.mxu1 %v7629_v22  ;;  %7255 = vmatprep.mubr.msk.f32.mxu1 %vm3889_vm6, %v5758_v16 }
0x1b24   : > { %7634 = vmatprep.subr.bf16.mxu1 %v7633_v28 }
0x1b27   : > { %7636 = vmatpush3.bf16.msra.mxu1 %v7633_v28 }
0x1b28   : > { %7638 = vmatprep.subr.bf16.mxu1 %v7637_v6 }
0x1b2b   : > { %7640 = vmatpush3.bf16.msra.mxu1 %v7637_v6 }
0x1b2c   : > { %7642 = vmatprep.subr.bf16.mxu1 %v7641_v31 }
0x1b2f   : > { %7644 = vmatpush3.bf16.msra.mxu1 %v7641_v31 }
0x1b32   : > { %7256 = vmatmul.mubr.msk.f32.vlgmr.msra.gmra.mrb[24].mxu1 %vm3889_vm6, %v5761_v32 }
0x1c05   : > { %v7257_v39 = vpop.f32.mrb[24].mxu1 }
0x1c06   : > { %v5850_v45 = vadd.f32 %v7257_v39, %v6451_v35  ;;  %v5834_v40 = vpop.f32.mrb[25].mxu1 }
0x1c07   : > { %v5849_v42 = vadd.f32 %v6451_v35, %v5834_v40 }
0x1c08   : > { %v5852_v43 = vadd.f32 %v5850_v45, %v9106_v27 }
0x1c09   : > { %v5851_v44 = vadd.f32 %v5849_v42, %v9108_v30  ;;  %v2209_v30 = vld [vmem:[%s9360_s16 + $0xf] sm:$0x1] }
0x1c0a   : > { %v5858_v0 = vsel %vm872_vm7, %v5852_v43, 0.0 }
0x1c0b   : > { %5859 = vadd.xlane.f32.xlu1 %v5858_v0  ;;  %v5855_v7 = vsel %vm872_vm7, %v5851_v44, 0.0 }
0x1c0c   : > { %5856 = vadd.xlane.f32.xlu0 %v5855_v7 }
0x1c98   : > { %v5860_v46 = vpop.xlane.xlu1 %5859 }
0x1c99   : > { %v5862_v47 = vmul.f32 0.03125, %v5860_v46  ;;  %v5857_v4 = vpop.xlane.xlu0 %5856 }
0x1c9a   : > { %v5861_v10 = vmul.f32 0.03125, %v5857_v4 }
0x1c9b   : > { %v5864_v48 = vsub.f32 %v5852_v43, %v5862_v47 }
0x1c9c   : > { %v5863_v49 = vsub.f32 %v5851_v44, %v5861_v10 }
0x1c9d   : > { %v5866_v50 = vmul.f32 %v5864_v48, %v5864_v48 }
0x1c9e   : > { %v5865_v51 = vmul.f32 %v5863_v49, %v5863_v49 }
0x1c9f   : > { %v5870_v54 = vsel %vm872_vm7, %v5866_v50, 0.0 }
0x1ca0   : > { %5871 = vadd.xlane.f32.xlu1 %v5870_v54  ;;  %v5867_v27 = vsel %vm872_vm7, %v5865_v51, 0.0 }
0x1ca1   : > { %5868 = vadd.xlane.f32.xlu0 %v5867_v27 }
0x1cb1   : > { %2212 = vperm.xlu1 %7742, %v2209_v30  }
0x1cb7   : > { %1514 = vperm.xlu0 %7741, %v1511_v55  }
0x1d2d   : > { %v5872_v8 = vpop.xlane.xlu1 %5871 }
0x1d2e   : > { %v5874_v61 = vmul.f32 0.03125, %v5872_v8  ;;  %v5869_v62 = vpop.xlane.xlu0 %5868 }
0x1d2f   : > { %v5873_v63 = vmul.f32 0.03125, %v5869_v62 }
0x1d30   : > { %v5876_v1 = vadd.f32 1e-05, %v5874_v61 }
0x1d31   : > { %v5875_v2 = vadd.f32 1e-05, %v5873_v63  ;;  %v2213_v14 = vpop.permute.xlu1 %2212 }
0x1d32   : > { %7915 = vrsqrt.f32 %v5876_v1  ;;  %v2291_v36 = vadd.f32 %v8590_v11, %v2213_v14 }
0x1d33   : > { %7917 = vrsqrt.f32 %v5875_v2 }
0x1d34   : > { %2296 = vst.msk [vmem:[%s9383_s0] sm:$0x1] %vm2294_vm4, %v2291_v36 }
0x1d36   : > { %v1515_v9 = vpop.permute.xlu0 %1514 }
0x1d37   : > { %v1593_v12 = vadd.f32 %v8511_v56, %v1515_v9 }
0x1d39   : > { %2295 = vst.msk [vmem:[%s709_s18] sm:$0x1] %vm2294_vm4, %v1593_v12 }
0x1d3c   : > { %v7916_v13 = vpop.eup %7915 }
0x1d3d   : > { %v7918_v33 = vpop.eup %7917  ;;  %v5880_v34 = vmul.f32 %v7916_v13, %v5864_v48 }
0x1d3e   : > { %v5879_v11 = vmul.f32 %v7918_v33, %v5863_v49 }
0x1d3f   : > { %v5886_v16 = vmul.f32 %v6454_v15, %v5880_v34 }
0x1d40   : > { %v5885_v37 = vmul.f32 %v6454_v15, %v5879_v11 }
0x1d41   : > { %v5892_v41 = vadd.f32 %v6455_v38, %v5886_v16 }
0x1d42   : > { %v5891_v56 = vadd.f32 %v6455_v38, %v5885_v37 }
0x1d44   : > { %7266 = vmatprep.mubr.msk.f32.mxu0 %vm872_vm7, %v5891_v56 }
0x1d45   : > { %7267 = vmatmul.mubr.msk.f32.vlgmr.msra.gmra.mrb[42].mxu0 %vm872_vm7, %v5892_v41 }
0x1d46   : > { %7932 = shalt.err (!%p7929_p3)
}
0x1d47   : > { %s7933_s18 = scalar_lea.hbm %s9271_s30, 16  ;;  %s7937_s26 = scalar_lea.hbm %s9422_s21, 32 }
0x1d48   : > { %p7934_p4 = scmp.ne.s32.totalorder %s9271_s30, %s7933_s18  ;;  %p7938_p9 = scmp.lt.u32.totalorder %s9271_s30, %s9422_s21 }
0x1d49   : > { %p7939_p10 = scmp.lt.u32.totalorder %s7937_s26, %s7933_s18  ;;  %p7941_p12 = scmp.lt.u32.totalorder %s7933_s18, %s9271_s30 }
0x1d4a   : > { %p7935_p7 = pnand %p7934_p4, %p8177_p5 }
0x1d4b   : > { %p7940_p11 = por %p7939_p10, %p7938_p9 }
0x1d4c   : > { %p7936_p8 = pneg %p7935_p7 }
0x1d4d   : > { %p7942_p13 = por %p7941_p12, %p7940_p11 }
0x1d4f   : > { %p7943_p0 = pnand %p7942_p13, %p7936_p8 }
0x1d51   : > { %7946 = shalt.err (!%p7943_p0)
}
0x1d52   : > { %7685 = dma.vmem_to_hbm [thread:$0]  (%p8177_p5), %s6013_s23, 16, %s9271_s30, %s5993_s4  }
0x1d53   : > { %s9423_s24 = sld [smem:[#allocation26_spill]]  ;;  %s9424_s28 = scalar_lea.vmem [#allocation4], %s9249_s2 }
0x1d54   : > { %s6025_s26 = sshll.u32 %s9424_s28, 4  ;;  %s5997_s18 = scalar_lea.sflag [#allocation5], %s9249_s2  ;;  %s6026_s26 = int_to_ptr.vmem [resolvable:$true] %s6025_s26 }
0x1d55   : > { %s7947_s1 = scalar_lea.vmem %s6026_s26, 16  ;;  %s8028_s6 = smov [#allocation4]  }
0x1d56   : > { %p7948_p1 = scmp.ne.s32.totalorder %s6026_s26, %s7947_s1  ;;  %s7951_s7 = sshll.u32 %s8028_s6, 4  ;;  %s7952_s7 = int_to_ptr.vmem [resolvable:$false] %s7951_s7 }
0x1d57   : > { %s7953_s8 = scalar_lea.vmem %s7952_s7, 32  ;;  %p7954_p4 = scmp.lt.s32.totalorder %s6026_s26, %s7952_s7 }
0x1d58   : > { %p7949_p2 = pnand %p7948_p1, %p8177_p5  ;;  %p7955_p7 = scmp.lt.s32.totalorder %s7953_s8, %s7947_s1 }
0x1d59   : > { %s9296_s0 = scalar_lea.hbm %s9423_s24, %s6459_s22 }
0x1d5a   : > { %p7950_p3 = pneg %p7949_p2  ;;  %p7956_p8 = por %p7955_p7, %p7954_p4 }
0x1d5c   : > { %p7957_p9 = pnand %p7956_p8, %p7950_p3 }
0x1d5e   : > { %7960 = shalt.err (!%p7957_p9)
}
0x1d5f   : > { %s7961_s3 = scalar_lea.hbm %s9296_s0, 16  ;;  %s7965_s6 = scalar_lea.hbm %s9423_s24, 32 }
0x1d60   : > { %p7962_p10 = scmp.ne.s32.totalorder %s9296_s0, %s7961_s3  ;;  %p7966_p13 = scmp.lt.u32.totalorder %s9296_s0, %s9423_s24 }
0x1d61   : > { %p7967_p0 = scmp.lt.u32.totalorder %s7965_s6, %s7961_s3  ;;  %p7969_p2 = scmp.lt.u32.totalorder %s7961_s3, %s9296_s0 }
0x1d62   : > { %p7963_p11 = pnand %p7962_p10, %p8177_p5 }
0x1d63   : > { %p7968_p1 = por %p7967_p0, %p7966_p13 }
0x1d64   : > { %p7964_p12 = pneg %p7963_p11 }
0x1d65   : > { %p7970_p3 = por %p7969_p2, %p7968_p1 }
0x1d67   : > { %p7971_p4 = pnand %p7970_p3, %p7964_p12 }
0x1d69   : > { %7974 = shalt.err (!%p7971_p4)
}
0x1d6a   : > { %7686 = dma.vmem_to_hbm [thread:$0]  (%p8177_p5), %s6026_s26, 16, %s9296_s0, %s5997_s18  }
0x1d6b   : > { %s9425_s4 = sld [smem:[#allocation23_spill]]  ;;  %s9426_s28 = sld [smem:[#allocation24_spill]] }
0x1d71   : > { %v6456_v17 = vld [vmem:[%s9425_s4] ss:$0 sm:$0xff]  ;;  %s740_s1 = scalar_lea.vmem %s9426_s28, %s8521_s19 }
0x1e18   : > { %v7268_v24 = vpop.f32.mrb[42].mxu0 }
0x1e19   : > { %v5982_v19 = vadd.f32 %v7268_v24, %v6456_v17  ;;  %v5976_v20 = vpop.f32.mrb[43].mxu0 }
0x1e1a   : > { %v5977_v21 = vadd.f32 %v6456_v17, %v5976_v20 }
0x1e1b   : > { %5986 = vst.msk [vmem:[%s740_s1 + $0x8] sm:$0xff] %vm2983_vm3, %v5982_v19 }
0x1e1c   : > { %5985 = vst.msk [vmem:[%s740_s1] sm:$0xff] %vm2983_vm3, %v5977_v21 }
0x1e1d PF: > { %s9427_s5 = sld [smem:[#allocation10_spill]]  ;;  %s9428_s3 = sld [smem:[#allocation8_spill]] }
0x1e23   : > { %p7696_p5 = scmp.ge.s32.totalorder %s9427_s5, 2  ;;  %s6045_s26 = sand.u32 1, %s9428_s3  }
0x1e24   : > { %s6046_s18 = scalar_lea.sflag [#allocation3], %s6045_s26 }
0x1e25   : > { %p7690_p7 = pnand %p7696_p5, %p8181_p6 }
0x1e27   : > { %7992 = dma.done.wait (!%p7690_p7), %s6046_s18, 16  }
0x1e28   : > { %7994 = vsyncadd (!%p7690_p7), %s6046_s18, 4294967280  ;;  %s6054_s19 = scalar_lea.sflag [#allocation5], %s6045_s26 }
0x1e29   : > { %7996 = dma.done.wait (!%p7690_p7), %s6054_s19, 16  }
0x1e2a   : > { %7998 = vsyncadd (!%p7690_p7), %s6054_s19, 4294967280  ;;  %s9430_s27 = sld [smem:[#allocation11_spill]]  ;;  %s9431_s22 = sld [smem:[#allocation9_spill]] }
0x1e2b   : > { %s9432_s26 = sld [smem:[#allocation12_spill]]  ;;  %s9433_s2 = smov %s8005_s25 }
0x1e30   : > { %p35_p8 = scmp.ge.s32.totalorder %s9430_s27, 4   ;;  %s9434_s25 = smov %s9431_s22 }
0x1e32   :  { %37 = sbr.rel (!%p35_p8) target bundleno = 19 (0x13), region = 198 }
0x1e39   :  { %6058 = vsyncpa [#allocation3], 1 }
0x1e3a   :  { %6060 = vsyncpa [#allocation3 + $0x1], 1 }
0x1e3b   :  { %6061 = vsyncpa [#allocation5], 1 }
0x1e3c   :  { %6063 = vsyncpa [#allocation5 + $0x1], 1 }

</bundles_post_ra>
